<compile_context>
chip_gen: v6e
topology: v6e:2x2x1
jax: 0.10.0
libtpu: 0.0.40
codegen_flags: <defaults>
</compile_context>

<pallas_src>
import functools

import jax
import jax.numpy as jnp
from jax import lax
from jax.experimental import pallas as pl
from jax.experimental.pallas import tpu as pltpu


def _round_up(a, b):
    return (a + b - 1) // b * b


def _device_config():
    """Returns (elementwise dtype, max batch tile, vmem limit bytes) per TPU gen."""
    try:
        kind = jax.devices()[0].device_kind.lower()
    except Exception:
        kind = ""
    if "v5" in kind:
        # v5e: no native bf16 VPU elementwise path -> keep pooling/ReLU in f32.
        return jnp.float32, 32, 96 * 1024 * 1024
    if "v6" in kind:
        return jnp.bfloat16, 64, 96 * 1024 * 1024
    # v7x (64 MiB physical VMEM) or unknown generation: smaller tile + budget.
    return jnp.bfloat16, 32, 48 * 1024 * 1024


def _pick_batch_tile(n, max_tile):
    # Multiple of 8 (clean sublane tiling of the batch axis) and aim for >= 2 grid
    # steps so the "parallel" batch axis can split across v7x's two TensorCores.
    half = _round_up(max(1, (n + 1) // 2), 8)
    return max(8, min(max_tile, half))


# ----------------------------- kernel body ---------------------------------


def _conv_rows(act, t_ref, b_ref):
    """VALID 3x3 conv as 3 accumulating MXU matmuls against a block-Toeplitz weight.

    act:   (Hin, TB, Win*Cin) value (ew or f32)
    t_ref: (3, Win*Cin, Wo*Cout) bf16 ref (one Toeplitz matrix per kernel row)
    b_ref: (1, Wo*Cout) f32 ref (bias tiled over the fused (w, c) lane axis)
    returns (Ho, TB, Wo*Cout) in f32.
    """
    hin, tb, kc = act.shape
    ho = hin - 2
    n = t_ref.shape[2]
    out = None
    for dh in range(3):
        a = act[dh:dh + ho].astype(jnp.bfloat16).reshape(ho * tb, kc)
        p = jnp.dot(a, t_ref[dh], preferred_element_type=jnp.float32)
        out = p if out is None else out + p
    out = out + b_ref[0].astype(jnp.float32)
    return out.reshape(ho, tb, n)


def _pool2x2_relu(y, c, ew):
    """y: (Ho, TB, Wo*c) f32 -> 2x2 max pool (stride 2, floor) + ReLU, in ew."""
    ho, tb, wc = y.shape
    wo = wc // c
    hp, wp = ho // 2, wo // 2
    y = y.astype(ew)
    # H pool: pairs of adjacent leading rows (free leading-dim reshape + max).
    yh = y[:2 * hp].reshape(hp, 2, tb, wc)
    y = jnp.maximum(yh[:, 0], yh[:, 1])                           # (hp, TB, wc)
    # W pool: max of adjacent c-wide lane blocks, then keep the even blocks.
    pm = jnp.maximum(y[..., :(wo - 1) * c], y[..., c:])           # block j = max(j, j+1)
    if wp == 1:
        q = pm[..., :c]
    else:
        q = jnp.concatenate(
            [pm[..., 2 * j * c: 2 * j * c + c] for j in range(wp)], axis=-1)
    return jnp.maximum(q, 0.0)                                    # ReLU, (hp, TB, wp*c)


def _fwd_kernel(x_ref, t1, b1, t2, b2, t3, b3, fcw, fcb, o_ref, *,
                ew, c1, c2, c3):
    """Whole ImageClassifier forward for one batch tile, entirely in VMEM."""
    y = _conv_rows(x_ref[...], t1, b1)      # (26, TB, 26*c1) f32
    y = _pool2x2_relu(y, c1, ew)            # (13, TB, 13*c1)
    y = _conv_rows(y, t2, b2)               # (11, TB, 11*c2)
    y = _pool2x2_relu(y, c2, ew)            # (5,  TB, 5*c2)
    y = _conv_rows(y, t3, b3)               # (3,  TB, 3*c3)
    y = _pool2x2_relu(y, c3, ew)            # (1,  TB, c3)
    feat = y[0].astype(jnp.bfloat16)        # Flatten -> (TB, 64)
    out = jnp.dot(feat, fcw[...], preferred_element_type=jnp.float32) + fcb[0]
    o_ref[...] = out.astype(o_ref.dtype)    # lane-dense (TB, 128) store


# ----------------------------- host wrapper --------------------------------


def _toeplitz(w_hwio, win, dtype=jnp.bfloat16):
    """(3,3,Cin,Cout) conv weight -> (3, win*Cin, wo*Cout) block-Toeplitz matrices."""
    kh, kw, cin, cout = w_hwio.shape
    wo = win - kw + 1
    sel = (jnp.arange(win)[None, :, None]
           == (jnp.arange(wo)[None, None, :] + jnp.arange(kw)[:, None, None]))
    t = jnp.einsum('dvw,hdio->hviwo', sel.astype(jnp.float32),
                   w_hwio.astype(jnp.float32))
    return t.reshape(kh, win * cin, wo * cout).astype(dtype)


def _full_spec(shape):
    nd = len(shape)
    return pl.BlockSpec(shape, lambda i, _nd=nd: (0,) * _nd)


def image_classifier_fused(x_nchw, convs, fc_w, fc_b):
    n, cin, h, w = x_nchw.shape
    assert cin == 1 and h == w, "module expects 1-channel square images"
    (w1, b1), (w2, b2), (w3, b3) = convs
    c1, c2, c3 = w1.shape[-1], w2.shape[-1], w3.shape[-1]
    dout = fc_w.shape[-1]

    # Spatial bookkeeping: VALID 3x3 conv then floor 2x2 pool, three times.
    h1 = h - 2;   h1p = h1 // 2        # 26, 13
    h2 = h1p - 2; h2p = h2 // 2        # 11, 5
    h3 = h2p - 2; h3p = h3 // 2        # 3, 1
    assert h3p * h3p * c3 == fc_w.shape[0], "flatten size must match Linear in-features"

    ew, max_tile, vmem_bytes = _device_config()
    tb = _pick_batch_tile(n, max_tile)
    n_total = _round_up(n, tb)

    # NCHW -> (H, N, W): H leading, batch on sublanes, W lane-dense (contiguous DMA).
    x_hnw = jnp.transpose(x_nchw[:, 0], (1, 0, 2))
    if n_total != n:
        x_hnw = jnp.pad(x_hnw, ((0, 0), (0, n_total - n), (0, 0)))

    # Block-Toeplitz conv weights (bf16 MXU operands) + lane-fused f32 biases.
    t1 = _toeplitz(w1, h);   b1f = jnp.tile(b1, h1).reshape(1, h1 * c1)
    t2 = _toeplitz(w2, h1p); b2f = jnp.tile(b2, h2).reshape(1, h2 * c2)
    t3 = _toeplitz(w3, h2p); b3f = jnp.tile(b3, h3).reshape(1, h3 * c3)

    # Lane-dense FC: pad the 10 output columns to 128 (zeros), slice outside.
    fcm = jnp.zeros((fc_w.shape[0], 128), jnp.bfloat16).at[:, :dout].set(
        fc_w.astype(jnp.bfloat16))
    fcbp = jnp.zeros((1, 128), jnp.float32).at[0, :dout].set(fc_b)

    kernel = functools.partial(_fwd_kernel, ew=ew, c1=c1, c2=c2, c3=c3)
    out = pl.pallas_call(
        kernel,
        out_shape=jax.ShapeDtypeStruct((n_total, 128), jnp.float32),
        grid=(n_total // tb,),
        in_specs=[
            pl.BlockSpec((h, tb, w), lambda i: (0, i, 0)),
            _full_spec(t1.shape), _full_spec(b1f.shape),
            _full_spec(t2.shape), _full_spec(b2f.shape),
            _full_spec(t3.shape), _full_spec(b3f.shape),
            _full_spec(fcm.shape), _full_spec(fcbp.shape),
        ],
        out_specs=pl.BlockSpec((tb, 128), lambda i: (i, 0)),
        compiler_params=pltpu.CompilerParams(
            dimension_semantics=("parallel",),
            vmem_limit_bytes=vmem_bytes),
    )(x_hnw, t1, b1f, t2, b2f, t3, b3f, fcm, fcbp)
    return out[:n, :dout]


@jax.jit
def image_classifier_forward(x_nchw, convs, fc_w, fc_b):
    return image_classifier_fused(x_nchw, convs, fc_w, fc_b)


# ----------------------------- reference / test -----------------------------


def init_params(key):
    """Deterministic synthetic parameters with the module's shapes (HWIO / (in,out))."""
    ks = jax.random.split(key, 8)
    convs = [
        (jax.random.normal(ks[0], (3, 3, 1, 32), jnp.float32) * 0.1,
         jax.random.normal(ks[1], (32,), jnp.float32) * 0.01),
        (jax.random.normal(ks[2], (3, 3, 32, 32), jnp.float32) * 0.1,
         jax.random.normal(ks[3], (32,), jnp.float32) * 0.01),
        (jax.random.normal(ks[4], (3, 3, 32, 64), jnp.float32) * 0.1,
         jax.random.normal(ks[5], (64,), jnp.float32) * 0.01),
    ]
    fc_w = jax.random.normal(ks[6], (64, 10), jnp.float32) * 0.1
    fc_b = jax.random.normal(ks[7], (10,), jnp.float32) * 0.01
    return convs, fc_w, fc_b


def reference_forward(x_nchw, convs, fc_w, fc_b):
    """Pure-JAX reference for correctness checking."""
    y = jnp.transpose(x_nchw, (0, 2, 3, 1))
    for w, b in convs:
        y = lax.conv_general_dilated(
            y, w, window_strides=(1, 1), padding="VALID",
            dimension_numbers=("NHWC", "HWIO", "NHWC"),
            precision=lax.Precision.HIGHEST) + b
        y = lax.reduce_window(y, -jnp.inf, lax.max,
                              window_dimensions=(1, 2, 2, 1),
                              window_strides=(1, 2, 2, 1), padding="VALID")
        y = jnp.maximum(y, 0.0)
    y = y.reshape(y.shape[0], -1)
    return jnp.dot(y, fc_w, precision=lax.Precision.HIGHEST) + fc_b


if __name__ == "__main__":
    key = jax.random.PRNGKey(0)
    pkey, xkey = jax.random.split(key)
    convs, fc_w, fc_b = init_params(pkey)

    # PyTorch-style NCHW input; 28x28 (MNIST-like) so the flatten yields 64 features.
    x = jax.random.normal(xkey, (2, 1, 28, 28), jnp.float32)

    out = image_classifier_forward(x, convs, fc_w, fc_b)
    out = jax.block_until_ready(out)
    assert out.shape == (2, 10), out.shape

    ref = reference_forward(x, convs, fc_w, fc_b)
    assert jnp.allclose(out, ref, rtol=5e-2, atol=5e-2), (out, ref)
    print("KERNEL_OK")
</pallas_src>

<mosaic_0001>
module attributes {stable_mosaic.version = 11 : i64} {
  func.func @_fwd_kernel(%arg0: i32, %arg1: memref<28x8x28xf32, #tpu.memory_space<vmem>>, %arg2: memref<3x28x832xbf16, #tpu.memory_space<vmem>>, %arg3: memref<1x832xf32, #tpu.memory_space<vmem>>, %arg4: memref<3x416x352xbf16, #tpu.memory_space<vmem>>, %arg5: memref<1x352xf32, #tpu.memory_space<vmem>>, %arg6: memref<3x160x192xbf16, #tpu.memory_space<vmem>>, %arg7: memref<1x192xf32, #tpu.memory_space<vmem>>, %arg8: memref<64x128xbf16, #tpu.memory_space<vmem>>, %arg9: memref<1x128xf32, #tpu.memory_space<vmem>>, %arg10: memref<8x128xf32, #tpu.memory_space<vmem>>) attributes {dimension_semantics = [#tpu.dimension_semantics<parallel>], iteration_bounds = array<i64: 1>, scalar_prefetch = 0 : i64, scratch_operands = 0 : i64, tpu.core_type = #tpu.core_type<tc>, window_params = [{transform_indices = @transform_0, window_bounds = array<i64: 28, 8, 28>}, {pipeline_mode = #tpu.pipeline_mode<synchronous>, transform_indices = @transform_1, window_bounds = array<i64: 3, 28, 832>}, {pipeline_mode = #tpu.pipeline_mode<synchronous>, transform_indices = @transform_2, window_bounds = array<i64: 1, 832>}, {pipeline_mode = #tpu.pipeline_mode<synchronous>, transform_indices = @transform_3, window_bounds = array<i64: 3, 416, 352>}, {pipeline_mode = #tpu.pipeline_mode<synchronous>, transform_indices = @transform_4, window_bounds = array<i64: 1, 352>}, {pipeline_mode = #tpu.pipeline_mode<synchronous>, transform_indices = @transform_5, window_bounds = array<i64: 3, 160, 192>}, {pipeline_mode = #tpu.pipeline_mode<synchronous>, transform_indices = @transform_6, window_bounds = array<i64: 1, 192>}, {pipeline_mode = #tpu.pipeline_mode<synchronous>, transform_indices = @transform_7, window_bounds = array<i64: 64, 128>}, {pipeline_mode = #tpu.pipeline_mode<synchronous>, transform_indices = @transform_8, window_bounds = array<i64: 1, 128>}, {transform_indices = @transform_9, window_bounds = array<i64: 8, 128>}]} {
    %c0 = arith.constant 0 : index
    %c0_0 = arith.constant 0 : index
    %c0_1 = arith.constant 0 : index
    %0 = vector.load %arg1[%c0, %c0_0, %c0_1] : memref<28x8x28xf32, #tpu.memory_space<vmem>>, vector<28x8x28xf32>
    %1 = vector.extract_strided_slice %0 {offsets = [0, 0, 0], sizes = [26, 8, 28], strides = [1, 1, 1]} : vector<28x8x28xf32> to vector<26x8x28xf32>
    %2 = arith.truncf %1 : vector<26x8x28xf32> to vector<26x8x28xbf16>
    %3 = vector.shape_cast %2 : vector<26x8x28xbf16> to vector<208x28xbf16>
    %c0_2 = arith.constant 0 : index
    %c0_3 = arith.constant 0 : index
    %c0_4 = arith.constant 0 : index
    %4 = vector.load %arg2[%c0_2, %c0_3, %c0_4] : memref<3x28x832xbf16, #tpu.memory_space<vmem>>, vector<1x28x832xbf16>
    %5 = vector.shape_cast %4 : vector<1x28x832xbf16> to vector<28x832xbf16>
    %cst = arith.constant dense<0.000000e+00> : vector<208x832xf32>
    %6 = tpu.matmul %3, %5, %cst {dimension_numbers = #tpu.dot_dimension_numbers<[1], [0], [0], [1], [0, 0, 1, 1], [], []>} : vector<208x28xbf16>, vector<28x832xbf16>, vector<208x832xf32> -> vector<208x832xf32>
    %7 = vector.extract_strided_slice %0 {offsets = [1, 0, 0], sizes = [26, 8, 28], strides = [1, 1, 1]} : vector<28x8x28xf32> to vector<26x8x28xf32>
    %8 = arith.truncf %7 : vector<26x8x28xf32> to vector<26x8x28xbf16>
    %9 = vector.shape_cast %8 : vector<26x8x28xbf16> to vector<208x28xbf16>
    %c1 = arith.constant 1 : index
    %c0_5 = arith.constant 0 : index
    %c0_6 = arith.constant 0 : index
    %10 = vector.load %arg2[%c1, %c0_5, %c0_6] : memref<3x28x832xbf16, #tpu.memory_space<vmem>>, vector<1x28x832xbf16>
    %11 = vector.shape_cast %10 : vector<1x28x832xbf16> to vector<28x832xbf16>
    %cst_7 = arith.constant dense<0.000000e+00> : vector<208x832xf32>
    %12 = tpu.matmul %9, %11, %cst_7 {dimension_numbers = #tpu.dot_dimension_numbers<[1], [0], [0], [1], [0, 0, 1, 1], [], []>} : vector<208x28xbf16>, vector<28x832xbf16>, vector<208x832xf32> -> vector<208x832xf32>
    %13 = arith.addf %6, %12 : vector<208x832xf32>
    %14 = vector.extract_strided_slice %0 {offsets = [2, 0, 0], sizes = [26, 8, 28], strides = [1, 1, 1]} : vector<28x8x28xf32> to vector<26x8x28xf32>
    %15 = arith.truncf %14 : vector<26x8x28xf32> to vector<26x8x28xbf16>
    %16 = vector.shape_cast %15 : vector<26x8x28xbf16> to vector<208x28xbf16>
    %c2 = arith.constant 2 : index
    %c0_8 = arith.constant 0 : index
    %c0_9 = arith.constant 0 : index
    %17 = vector.load %arg2[%c2, %c0_8, %c0_9] : memref<3x28x832xbf16, #tpu.memory_space<vmem>>, vector<1x28x832xbf16>
    %18 = vector.shape_cast %17 : vector<1x28x832xbf16> to vector<28x832xbf16>
    %cst_10 = arith.constant dense<0.000000e+00> : vector<208x832xf32>
    %19 = tpu.matmul %16, %18, %cst_10 {dimension_numbers = #tpu.dot_dimension_numbers<[1], [0], [0], [1], [0, 0, 1, 1], [], []>} : vector<208x28xbf16>, vector<28x832xbf16>, vector<208x832xf32> -> vector<208x832xf32>
    %20 = arith.addf %13, %19 : vector<208x832xf32>
    %c0_11 = arith.constant 0 : index
    %c0_12 = arith.constant 0 : index
    %21 = vector.load %arg3[%c0_11, %c0_12] : memref<1x832xf32, #tpu.memory_space<vmem>>, vector<1x832xf32>
    %22 = vector.shape_cast %21 : vector<1x832xf32> to vector<832xf32>
    %23 = vector.shape_cast %22 : vector<832xf32> to vector<1x832xf32>
    %24 = vector.broadcast %23 : vector<1x832xf32> to vector<208x832xf32>
    %25 = arith.addf %20, %24 : vector<208x832xf32>
    %26 = vector.shape_cast %25 : vector<208x832xf32> to vector<26x8x832xf32>
    %27 = arith.truncf %26 : vector<26x8x832xf32> to vector<26x8x832xbf16>
    %28 = vector.shape_cast %27 : vector<26x8x832xbf16> to vector<13x2x8x832xbf16>
    %29 = vector.extract_strided_slice %28 {offsets = [0, 0, 0, 0], sizes = [13, 1, 8, 832], strides = [1, 1, 1, 1]} : vector<13x2x8x832xbf16> to vector<13x1x8x832xbf16>
    %30 = vector.shape_cast %29 : vector<13x1x8x832xbf16> to vector<13x8x832xbf16>
    %31 = vector.extract_strided_slice %28 {offsets = [0, 1, 0, 0], sizes = [13, 1, 8, 832], strides = [1, 1, 1, 1]} : vector<13x2x8x832xbf16> to vector<13x1x8x832xbf16>
    %32 = vector.shape_cast %31 : vector<13x1x8x832xbf16> to vector<13x8x832xbf16>
    %33 = arith.maximumf %30, %32 : vector<13x8x832xbf16>
    %34 = vector.extract_strided_slice %33 {offsets = [0, 0, 0], sizes = [13, 8, 800], strides = [1, 1, 1]} : vector<13x8x832xbf16> to vector<13x8x800xbf16>
    %35 = vector.extract_strided_slice %33 {offsets = [0, 0, 32], sizes = [13, 8, 800], strides = [1, 1, 1]} : vector<13x8x832xbf16> to vector<13x8x800xbf16>
    %36 = arith.maximumf %34, %35 : vector<13x8x800xbf16>
    %37 = vector.extract_strided_slice %36 {offsets = [0, 0, 0], sizes = [13, 8, 32], strides = [1, 1, 1]} : vector<13x8x800xbf16> to vector<13x8x32xbf16>
    %38 = vector.extract_strided_slice %36 {offsets = [0, 0, 64], sizes = [13, 8, 32], strides = [1, 1, 1]} : vector<13x8x800xbf16> to vector<13x8x32xbf16>
    %39 = vector.extract_strided_slice %36 {offsets = [0, 0, 128], sizes = [13, 8, 32], strides = [1, 1, 1]} : vector<13x8x800xbf16> to vector<13x8x32xbf16>
    %40 = vector.extract_strided_slice %36 {offsets = [0, 0, 192], sizes = [13, 8, 32], strides = [1, 1, 1]} : vector<13x8x800xbf16> to vector<13x8x32xbf16>
    %41 = vector.extract_strided_slice %36 {offsets = [0, 0, 256], sizes = [13, 8, 32], strides = [1, 1, 1]} : vector<13x8x800xbf16> to vector<13x8x32xbf16>
    %42 = vector.extract_strided_slice %36 {offsets = [0, 0, 320], sizes = [13, 8, 32], strides = [1, 1, 1]} : vector<13x8x800xbf16> to vector<13x8x32xbf16>
    %43 = vector.extract_strided_slice %36 {offsets = [0, 0, 384], sizes = [13, 8, 32], strides = [1, 1, 1]} : vector<13x8x800xbf16> to vector<13x8x32xbf16>
    %44 = vector.extract_strided_slice %36 {offsets = [0, 0, 448], sizes = [13, 8, 32], strides = [1, 1, 1]} : vector<13x8x800xbf16> to vector<13x8x32xbf16>
    %45 = vector.extract_strided_slice %36 {offsets = [0, 0, 512], sizes = [13, 8, 32], strides = [1, 1, 1]} : vector<13x8x800xbf16> to vector<13x8x32xbf16>
    %46 = vector.extract_strided_slice %36 {offsets = [0, 0, 576], sizes = [13, 8, 32], strides = [1, 1, 1]} : vector<13x8x800xbf16> to vector<13x8x32xbf16>
    %47 = vector.extract_strided_slice %36 {offsets = [0, 0, 640], sizes = [13, 8, 32], strides = [1, 1, 1]} : vector<13x8x800xbf16> to vector<13x8x32xbf16>
    %48 = vector.extract_strided_slice %36 {offsets = [0, 0, 704], sizes = [13, 8, 32], strides = [1, 1, 1]} : vector<13x8x800xbf16> to vector<13x8x32xbf16>
    %49 = vector.extract_strided_slice %36 {offsets = [0, 0, 768], sizes = [13, 8, 32], strides = [1, 1, 1]} : vector<13x8x800xbf16> to vector<13x8x32xbf16>
    %50 = tpu.concatenate %37, %38, %39, %40, %41, %42, %43, %44, %45, %46, %47, %48, %49 in 2 : vector<13x8x32xbf16>, vector<13x8x32xbf16>, vector<13x8x32xbf16>, vector<13x8x32xbf16>, vector<13x8x32xbf16>, vector<13x8x32xbf16>, vector<13x8x32xbf16>, vector<13x8x32xbf16>, vector<13x8x32xbf16>, vector<13x8x32xbf16>, vector<13x8x32xbf16>, vector<13x8x32xbf16>, vector<13x8x32xbf16> -> vector<13x8x416xbf16>
    %cst_13 = arith.constant 0.000000e+00 : bf16
    %51 = vector.broadcast %cst_13 : bf16 to vector<13x8x416xbf16>
    %52 = arith.maximumf %50, %51 : vector<13x8x416xbf16>
    %53 = vector.extract_strided_slice %52 {offsets = [0, 0, 0], sizes = [11, 8, 416], strides = [1, 1, 1]} : vector<13x8x416xbf16> to vector<11x8x416xbf16>
    %54 = vector.shape_cast %53 : vector<11x8x416xbf16> to vector<88x416xbf16>
    %c0_14 = arith.constant 0 : index
    %c0_15 = arith.constant 0 : index
    %c0_16 = arith.constant 0 : index
    %55 = vector.load %arg4[%c0_14, %c0_15, %c0_16] : memref<3x416x352xbf16, #tpu.memory_space<vmem>>, vector<1x416x352xbf16>
    %56 = vector.shape_cast %55 : vector<1x416x352xbf16> to vector<416x352xbf16>
    %cst_17 = arith.constant dense<0.000000e+00> : vector<88x352xf32>
    %57 = tpu.matmul %54, %56, %cst_17 {dimension_numbers = #tpu.dot_dimension_numbers<[1], [0], [0], [1], [0, 0, 1, 1], [], []>} : vector<88x416xbf16>, vector<416x352xbf16>, vector<88x352xf32> -> vector<88x352xf32>
    %58 = vector.extract_strided_slice %52 {offsets = [1, 0, 0], sizes = [11, 8, 416], strides = [1, 1, 1]} : vector<13x8x416xbf16> to vector<11x8x416xbf16>
    %59 = vector.shape_cast %58 : vector<11x8x416xbf16> to vector<88x416xbf16>
    %c1_18 = arith.constant 1 : index
    %c0_19 = arith.constant 0 : index
    %c0_20 = arith.constant 0 : index
    %60 = vector.load %arg4[%c1_18, %c0_19, %c0_20] : memref<3x416x352xbf16, #tpu.memory_space<vmem>>, vector<1x416x352xbf16>
    %61 = vector.shape_cast %60 : vector<1x416x352xbf16> to vector<416x352xbf16>
    %cst_21 = arith.constant dense<0.000000e+00> : vector<88x352xf32>
    %62 = tpu.matmul %59, %61, %cst_21 {dimension_numbers = #tpu.dot_dimension_numbers<[1], [0], [0], [1], [0, 0, 1, 1], [], []>} : vector<88x416xbf16>, vector<416x352xbf16>, vector<88x352xf32> -> vector<88x352xf32>
    %63 = arith.addf %57, %62 : vector<88x352xf32>
    %64 = vector.extract_strided_slice %52 {offsets = [2, 0, 0], sizes = [11, 8, 416], strides = [1, 1, 1]} : vector<13x8x416xbf16> to vector<11x8x416xbf16>
    %65 = vector.shape_cast %64 : vector<11x8x416xbf16> to vector<88x416xbf16>
    %c2_22 = arith.constant 2 : index
    %c0_23 = arith.constant 0 : index
    %c0_24 = arith.constant 0 : index
    %66 = vector.load %arg4[%c2_22, %c0_23, %c0_24] : memref<3x416x352xbf16, #tpu.memory_space<vmem>>, vector<1x416x352xbf16>
    %67 = vector.shape_cast %66 : vector<1x416x352xbf16> to vector<416x352xbf16>
    %cst_25 = arith.constant dense<0.000000e+00> : vector<88x352xf32>
    %68 = tpu.matmul %65, %67, %cst_25 {dimension_numbers = #tpu.dot_dimension_numbers<[1], [0], [0], [1], [0, 0, 1, 1], [], []>} : vector<88x416xbf16>, vector<416x352xbf16>, vector<88x352xf32> -> vector<88x352xf32>
    %69 = arith.addf %63, %68 : vector<88x352xf32>
    %c0_26 = arith.constant 0 : index
    %c0_27 = arith.constant 0 : index
    %70 = vector.load %arg5[%c0_26, %c0_27] : memref<1x352xf32, #tpu.memory_space<vmem>>, vector<1x352xf32>
    %71 = vector.shape_cast %70 : vector<1x352xf32> to vector<352xf32>
    %72 = vector.shape_cast %71 : vector<352xf32> to vector<1x352xf32>
    %73 = vector.broadcast %72 : vector<1x352xf32> to vector<88x352xf32>
    %74 = arith.addf %69, %73 : vector<88x352xf32>
    %75 = vector.shape_cast %74 : vector<88x352xf32> to vector<11x8x352xf32>
    %76 = arith.truncf %75 : vector<11x8x352xf32> to vector<11x8x352xbf16>
    %77 = vector.extract_strided_slice %76 {offsets = [0, 0, 0], sizes = [10, 8, 352], strides = [1, 1, 1]} : vector<11x8x352xbf16> to vector<10x8x352xbf16>
    %78 = vector.shape_cast %77 : vector<10x8x352xbf16> to vector<5x2x8x352xbf16>
    %79 = vector.extract_strided_slice %78 {offsets = [0, 0, 0, 0], sizes = [5, 1, 8, 352], strides = [1, 1, 1, 1]} : vector<5x2x8x352xbf16> to vector<5x1x8x352xbf16>
    %80 = vector.shape_cast %79 : vector<5x1x8x352xbf16> to vector<5x8x352xbf16>
    %81 = vector.extract_strided_slice %78 {offsets = [0, 1, 0, 0], sizes = [5, 1, 8, 352], strides = [1, 1, 1, 1]} : vector<5x2x8x352xbf16> to vector<5x1x8x352xbf16>
    %82 = vector.shape_cast %81 : vector<5x1x8x352xbf16> to vector<5x8x352xbf16>
    %83 = arith.maximumf %80, %82 : vector<5x8x352xbf16>
    %84 = vector.extract_strided_slice %83 {offsets = [0, 0, 0], sizes = [5, 8, 320], strides = [1, 1, 1]} : vector<5x8x352xbf16> to vector<5x8x320xbf16>
    %85 = vector.extract_strided_slice %83 {offsets = [0, 0, 32], sizes = [5, 8, 320], strides = [1, 1, 1]} : vector<5x8x352xbf16> to vector<5x8x320xbf16>
    %86 = arith.maximumf %84, %85 : vector<5x8x320xbf16>
    %87 = vector.extract_strided_slice %86 {offsets = [0, 0, 0], sizes = [5, 8, 32], strides = [1, 1, 1]} : vector<5x8x320xbf16> to vector<5x8x32xbf16>
    %88 = vector.extract_strided_slice %86 {offsets = [0, 0, 64], sizes = [5, 8, 32], strides = [1, 1, 1]} : vector<5x8x320xbf16> to vector<5x8x32xbf16>
    %89 = vector.extract_strided_slice %86 {offsets = [0, 0, 128], sizes = [5, 8, 32], strides = [1, 1, 1]} : vector<5x8x320xbf16> to vector<5x8x32xbf16>
    %90 = vector.extract_strided_slice %86 {offsets = [0, 0, 192], sizes = [5, 8, 32], strides = [1, 1, 1]} : vector<5x8x320xbf16> to vector<5x8x32xbf16>
    %91 = vector.extract_strided_slice %86 {offsets = [0, 0, 256], sizes = [5, 8, 32], strides = [1, 1, 1]} : vector<5x8x320xbf16> to vector<5x8x32xbf16>
    %92 = tpu.concatenate %87, %88, %89, %90, %91 in 2 : vector<5x8x32xbf16>, vector<5x8x32xbf16>, vector<5x8x32xbf16>, vector<5x8x32xbf16>, vector<5x8x32xbf16> -> vector<5x8x160xbf16>
    %cst_28 = arith.constant 0.000000e+00 : bf16
    %93 = vector.broadcast %cst_28 : bf16 to vector<5x8x160xbf16>
    %94 = arith.maximumf %92, %93 : vector<5x8x160xbf16>
    %95 = vector.extract_strided_slice %94 {offsets = [0, 0, 0], sizes = [3, 8, 160], strides = [1, 1, 1]} : vector<5x8x160xbf16> to vector<3x8x160xbf16>
    %96 = vector.shape_cast %95 : vector<3x8x160xbf16> to vector<24x160xbf16>
    %c0_29 = arith.constant 0 : index
    %c0_30 = arith.constant 0 : index
    %c0_31 = arith.constant 0 : index
    %97 = vector.load %arg6[%c0_29, %c0_30, %c0_31] : memref<3x160x192xbf16, #tpu.memory_space<vmem>>, vector<1x160x192xbf16>
    %98 = vector.shape_cast %97 : vector<1x160x192xbf16> to vector<160x192xbf16>
    %cst_32 = arith.constant dense<0.000000e+00> : vector<24x192xf32>
    %99 = tpu.matmul %96, %98, %cst_32 {dimension_numbers = #tpu.dot_dimension_numbers<[1], [0], [0], [1], [0, 0, 1, 1], [], []>} : vector<24x160xbf16>, vector<160x192xbf16>, vector<24x192xf32> -> vector<24x192xf32>
    %100 = vector.extract_strided_slice %94 {offsets = [1, 0, 0], sizes = [3, 8, 160], strides = [1, 1, 1]} : vector<5x8x160xbf16> to vector<3x8x160xbf16>
    %101 = vector.shape_cast %100 : vector<3x8x160xbf16> to vector<24x160xbf16>
    %c1_33 = arith.constant 1 : index
    %c0_34 = arith.constant 0 : index
    %c0_35 = arith.constant 0 : index
    %102 = vector.load %arg6[%c1_33, %c0_34, %c0_35] : memref<3x160x192xbf16, #tpu.memory_space<vmem>>, vector<1x160x192xbf16>
    %103 = vector.shape_cast %102 : vector<1x160x192xbf16> to vector<160x192xbf16>
    %cst_36 = arith.constant dense<0.000000e+00> : vector<24x192xf32>
    %104 = tpu.matmul %101, %103, %cst_36 {dimension_numbers = #tpu.dot_dimension_numbers<[1], [0], [0], [1], [0, 0, 1, 1], [], []>} : vector<24x160xbf16>, vector<160x192xbf16>, vector<24x192xf32> -> vector<24x192xf32>
    %105 = arith.addf %99, %104 : vector<24x192xf32>
    %106 = vector.extract_strided_slice %94 {offsets = [2, 0, 0], sizes = [3, 8, 160], strides = [1, 1, 1]} : vector<5x8x160xbf16> to vector<3x8x160xbf16>
    %107 = vector.shape_cast %106 : vector<3x8x160xbf16> to vector<24x160xbf16>
    %c2_37 = arith.constant 2 : index
    %c0_38 = arith.constant 0 : index
    %c0_39 = arith.constant 0 : index
    %108 = vector.load %arg6[%c2_37, %c0_38, %c0_39] : memref<3x160x192xbf16, #tpu.memory_space<vmem>>, vector<1x160x192xbf16>
    %109 = vector.shape_cast %108 : vector<1x160x192xbf16> to vector<160x192xbf16>
    %cst_40 = arith.constant dense<0.000000e+00> : vector<24x192xf32>
    %110 = tpu.matmul %107, %109, %cst_40 {dimension_numbers = #tpu.dot_dimension_numbers<[1], [0], [0], [1], [0, 0, 1, 1], [], []>} : vector<24x160xbf16>, vector<160x192xbf16>, vector<24x192xf32> -> vector<24x192xf32>
    %111 = arith.addf %105, %110 : vector<24x192xf32>
    %c0_41 = arith.constant 0 : index
    %c0_42 = arith.constant 0 : index
    %112 = vector.load %arg7[%c0_41, %c0_42] : memref<1x192xf32, #tpu.memory_space<vmem>>, vector<1x192xf32>
    %113 = vector.shape_cast %112 : vector<1x192xf32> to vector<192xf32>
    %114 = vector.shape_cast %113 : vector<192xf32> to vector<1x192xf32>
    %115 = vector.broadcast %114 : vector<1x192xf32> to vector<24x192xf32>
    %116 = arith.addf %111, %115 : vector<24x192xf32>
    %117 = vector.shape_cast %116 : vector<24x192xf32> to vector<3x8x192xf32>
    %118 = arith.truncf %117 : vector<3x8x192xf32> to vector<3x8x192xbf16>
    %119 = vector.extract_strided_slice %118 {offsets = [0, 0, 0], sizes = [2, 8, 192], strides = [1, 1, 1]} : vector<3x8x192xbf16> to vector<2x8x192xbf16>
    %120 = vector.shape_cast %119 : vector<2x8x192xbf16> to vector<1x2x8x192xbf16>
    %121 = vector.extract_strided_slice %120 {offsets = [0, 0, 0, 0], sizes = [1, 1, 8, 192], strides = [1, 1, 1, 1]} : vector<1x2x8x192xbf16> to vector<1x1x8x192xbf16>
    %122 = vector.shape_cast %121 : vector<1x1x8x192xbf16> to vector<1x8x192xbf16>
    %123 = vector.extract_strided_slice %120 {offsets = [0, 1, 0, 0], sizes = [1, 1, 8, 192], strides = [1, 1, 1, 1]} : vector<1x2x8x192xbf16> to vector<1x1x8x192xbf16>
    %124 = vector.shape_cast %123 : vector<1x1x8x192xbf16> to vector<1x8x192xbf16>
    %125 = arith.maximumf %122, %124 : vector<1x8x192xbf16>
    %126 = vector.extract_strided_slice %125 {offsets = [0, 0, 0], sizes = [1, 8, 128], strides = [1, 1, 1]} : vector<1x8x192xbf16> to vector<1x8x128xbf16>
    %127 = vector.extract_strided_slice %125 {offsets = [0, 0, 64], sizes = [1, 8, 128], strides = [1, 1, 1]} : vector<1x8x192xbf16> to vector<1x8x128xbf16>
    %128 = arith.maximumf %126, %127 : vector<1x8x128xbf16>
    %129 = vector.extract_strided_slice %128 {offsets = [0, 0, 0], sizes = [1, 8, 64], strides = [1, 1, 1]} : vector<1x8x128xbf16> to vector<1x8x64xbf16>
    %cst_43 = arith.constant 0.000000e+00 : bf16
    %130 = vector.broadcast %cst_43 : bf16 to vector<1x8x64xbf16>
    %131 = arith.maximumf %129, %130 : vector<1x8x64xbf16>
    %132 = vector.shape_cast %131 : vector<1x8x64xbf16> to vector<8x64xbf16>
    %c0_44 = arith.constant 0 : index
    %c0_45 = arith.constant 0 : index
    %133 = vector.load %arg8[%c0_44, %c0_45] : memref<64x128xbf16, #tpu.memory_space<vmem>>, vector<64x128xbf16>
    %cst_46 = arith.constant dense<0.000000e+00> : vector<8x128xf32>
    %134 = tpu.matmul %132, %133, %cst_46 {dimension_numbers = #tpu.dot_dimension_numbers<[1], [0], [0], [1], [0, 0, 1, 1], [], []>} : vector<8x64xbf16>, vector<64x128xbf16>, vector<8x128xf32> -> vector<8x128xf32>
    %c0_47 = arith.constant 0 : index
    %c0_48 = arith.constant 0 : index
    %135 = vector.load %arg9[%c0_47, %c0_48] : memref<1x128xf32, #tpu.memory_space<vmem>>, vector<1x128xf32>
    %136 = vector.shape_cast %135 : vector<1x128xf32> to vector<128xf32>
    %137 = vector.shape_cast %136 : vector<128xf32> to vector<1x128xf32>
    %138 = vector.broadcast %137 : vector<1x128xf32> to vector<8x128xf32>
    %139 = arith.addf %134, %138 : vector<8x128xf32>
    %c0_49 = arith.constant 0 : index
    %c0_50 = arith.constant 0 : index
    %140 = vector.load %arg10[%c0_49, %c0_50] : memref<8x128xf32, #tpu.memory_space<vmem>>, vector<8x128xf32>
    tpu.vector_store %arg10[%c0_49, %c0_50], %139 {strides = array<i32>} : memref<8x128xf32, #tpu.memory_space<vmem>>, vector<8x128xf32>,
    return
  }
  func.func @transform_0(%arg0: i32) -> (i32, i32, i32) {
    %c0_i32 = arith.constant 0 : i32
    %c0_i32_0 = arith.constant 0 : i32
    %c0_i32_1 = arith.constant 0 : i32
    return %c0_i32, %arg0, %c0_i32_0 : i32, i32, i32
  }
  func.func @transform_1(%arg0: i32) -> (i32, i32, i32) {
    %c0_i32 = arith.constant 0 : i32
    %c0_i32_0 = arith.constant 0 : i32
    %c0_i32_1 = arith.constant 0 : i32
    %c0_i32_2 = arith.constant 0 : i32
    return %c0_i32, %c0_i32_0, %c0_i32_1 : i32, i32, i32
  }
  func.func @transform_2(%arg0: i32) -> (i32, i32) {
    %c0_i32 = arith.constant 0 : i32
    %c0_i32_0 = arith.constant 0 : i32
    %c0_i32_1 = arith.constant 0 : i32
    return %c0_i32, %c0_i32_0 : i32, i32
  }
  func.func @transform_3(%arg0: i32) -> (i32, i32, i32) {
    %c0_i32 = arith.constant 0 : i32
    %c0_i32_0 = arith.constant 0 : i32
    %c0_i32_1 = arith.constant 0 : i32
    %c0_i32_2 = arith.constant 0 : i32
    return %c0_i32, %c0_i32_0, %c0_i32_1 : i32, i32, i32
  }
  func.func @transform_4(%arg0: i32) -> (i32, i32) {
    %c0_i32 = arith.constant 0 : i32
    %c0_i32_0 = arith.constant 0 : i32
    %c0_i32_1 = arith.constant 0 : i32
    return %c0_i32, %c0_i32_0 : i32, i32
  }
  func.func @transform_5(%arg0: i32) -> (i32, i32, i32) {
    %c0_i32 = arith.constant 0 : i32
    %c0_i32_0 = arith.constant 0 : i32
    %c0_i32_1 = arith.constant 0 : i32
    %c0_i32_2 = arith.constant 0 : i32
    return %c0_i32, %c0_i32_0, %c0_i32_1 : i32, i32, i32
  }
  func.func @transform_6(%arg0: i32) -> (i32, i32) {
    %c0_i32 = arith.constant 0 : i32
    %c0_i32_0 = arith.constant 0 : i32
    %c0_i32_1 = arith.constant 0 : i32
    return %c0_i32, %c0_i32_0 : i32, i32
  }
  func.func @transform_7(%arg0: i32) -> (i32, i32) {
    %c0_i32 = arith.constant 0 : i32
    %c0_i32_0 = arith.constant 0 : i32
    %c0_i32_1 = arith.constant 0 : i32
    return %c0_i32, %c0_i32_0 : i32, i32
  }
  func.func @transform_8(%arg0: i32) -> (i32, i32) {
    %c0_i32 = arith.constant 0 : i32
    %c0_i32_0 = arith.constant 0 : i32
    %c0_i32_1 = arith.constant 0 : i32
    return %c0_i32, %c0_i32_0 : i32, i32
  }
  func.func @transform_9(%arg0: i32) -> (i32, i32) {
    %c0_i32 = arith.constant 0 : i32
    %c0_i32_0 = arith.constant 0 : i32
    return %arg0, %c0_i32 : i32, i32
  }
}

</mosaic_0001>

<bundles_post_ra>
// kernel: tile.18
= control target key start
LH: loop header
LB: loop body
LE: loop exit
PB: predicated region body
PF: predicated region fallthrough
CT: control target
= control target key end

     0   :  { %s40_s0 = inlined_call_operand.vmem [shape: f32[32], index: 0, kind: input, shape index: {}]   ;;  %s41_s1 = inlined_call_operand.vmem [shape: f32[26,32], index: 1, kind: output, shape index: {}]  }
   0x1   :  { %v4_v0 = vld [vmem:[%s40_s0] ss:$0 sm:$0xff] }
   0x2   :  { %5 = vst [vmem:[%s41_s1] sm:$0xff] %v4_v0  ;;  %12 = vst [vmem:[%s41_s1 + $0x8] sm:$0xff] %v4_v0 }
   0x3   :  { %13 = vst [vmem:[%s41_s1 + $0x10] sm:$0xff] %v4_v0  ;;  %14 = vst [vmem:[%s41_s1 + $0x18] sm:$0xff] %v4_v0 }

// kernel: tile.19
= control target key start
LH: loop header
LB: loop body
LE: loop exit
PB: predicated region body
PF: predicated region fallthrough
CT: control target
= control target key end

     0   :  { %s93_s8 = smov 96   ;;  %vm3_vm0 = vcmask 261120   ;;  %s95_s15 = smov 64   ;;  %vm10_vm1 = vcmask 1048320   ;;  %vm17_vm2 = vcmask 785920   ;;  %vm24_vm3 = vcmask 523520   ;;  %s139_s0 = inlined_call_operand.vmem [shape: f32[26,32], index: 0, kind: input, shape index: {}]   ;;  %s140_s1 = inlined_call_operand.vmem [shape: f32[1,832], index: 1, kind: output, shape index: {}]  }
   0x1   :  { %v81_v0 = vld [vmem:[%s139_s0 + $0x3] ss:$4 sm:$0x3f]   ;;  %v82_v1 = vld [vmem:[%s139_s0 + $0x2] ss:$4 sm:$0x3f]  }
   0x2   :  { %8 = vrot.lane.b32.xlu0 %v81_v0, %s93_s8  ;;  %v83_v2 = vld [vmem:[%s139_s0 + $0x1] ss:$4 sm:$0x7f]   ;;  %v2_v3 = vld [vmem:[%s139_s0] ss:$4 sm:$0x7f]  }
   0x3   :  { %s94_s0 = smov 32   ;;  %4 = vst.msk [vmem:[#allocation0] ss:$8 sm:$0xf] %vm3_vm0, %v2_v3  }
   0x4   :  { %22 = vrot.lane.b32.xlu1 %v83_v2, %s94_s0  ;;  %5 = vst.msk [vmem:[#allocation0] ss:$8 sm:$0x70] %vm3_vm0, %v2_v3  }
   0x6   :  { %15 = vrot.lane.b32.xlu0 %v82_v1, %s95_s15 }
  0x74   :  { %v9_v4 = vpop.permute.xlu0 %8  }
  0x75   :  { %11 = vst.msk [vmem:[#allocation0] ss:$8 sm:$0xf] %vm10_vm1, %v9_v4   ;;  %12 = vst.msk [vmem:[#allocation0] ss:$8 sm:$0x30] %vm10_vm1, %v9_v4  }
  0x76   :  { %v23_v5 = vpop.permute.xlu1 %22  }
  0x78   :  { %v16_v6 = vpop.permute.xlu0 %15  }
  0x79   :  { %18 = vst.msk [vmem:[#allocation0] ss:$8 sm:$0xf] %vm17_vm2, %v16_v6   ;;  %19 = vst.msk [vmem:[#allocation0] ss:$8 sm:$0x30] %vm17_vm2, %v16_v6  }
  0x7a   :  { %25 = vst.msk [vmem:[#allocation0] ss:$8 sm:$0xf] %vm24_vm3, %v23_v5   ;;  %26 = vst.msk [vmem:[#allocation0] ss:$8 sm:$0x70] %vm24_vm3, %v23_v5  }
  0x81   :  { %v31_v7 = vld [vmem:[#allocation0] sm:$0x1]  ;;  %v36_v8 = vld [vmem:[#allocation0 + $0x8] sm:$0x1]  ;;  %v42_v9 = vld [vmem:[#allocation0 + $0x10] sm:$0x1] }
  0x82   :  { %34 = vst [vmem:[%s140_s1] sm:$0x1] %v31_v7  ;;  %84 = vst [vmem:[%s140_s1 + $0x1] sm:$0x1] %v36_v8  ;;  %v49_v10 = vld [vmem:[#allocation0 + $0x18] sm:$0x1] }
  0x83   :  { %85 = vst [vmem:[%s140_s1 + $0x2] sm:$0x1] %v42_v9  ;;  %v56_v11 = vld [vmem:[#allocation0 + $0x20] sm:$0x1]  ;;  %v63_v12 = vld [vmem:[#allocation0 + $0x28] sm:$0x1] }
  0x84   :  { %86 = vst [vmem:[%s140_s1 + $0x3] sm:$0x1] %v49_v10  ;;  %87 = vst [vmem:[%s140_s1 + $0x4] sm:$0x1] %v56_v11  ;;  %v70_v13 = vld [vmem:[#allocation0 + $0x30] sm:$0x1] }
  0x85   :  { %88 = vst [vmem:[%s140_s1 + $0x5] sm:$0x1] %v63_v12  ;;  %89 = vst [vmem:[%s140_s1 + $0x6] sm:$0x1] %v70_v13 }

// kernel: tile.23
= control target key start
LH: loop header
LB: loop body
LE: loop exit
PB: predicated region body
PF: predicated region fallthrough
CT: control target
= control target key end

     0   :  { %s28_s0 = inlined_call_operand.vmem [shape: f32[32], index: 0, kind: input, shape index: {}]   ;;  %s29_s1 = inlined_call_operand.vmem [shape: f32[11,32], index: 1, kind: output, shape index: {}]  }
   0x1   :  { %v4_v0 = vld [vmem:[%s28_s0] ss:$0 sm:$0xff] }
   0x2   :  { %5 = vst [vmem:[%s29_s1] sm:$0xff] %v4_v0  ;;  %8 = vst [vmem:[%s29_s1 + $0x8] sm:$0xff] %v4_v0 }

// kernel: tile.24
= control target key start
LH: loop header
LB: loop body
LE: loop exit
PB: predicated region body
PF: predicated region fallthrough
CT: control target
= control target key end

     0   :  { %s6_s6 = smov 3  ;;  %s54_s11 = smov 96   ;;  %vm3_vm0 = vcmask 261120   ;;  %vm10_vm1 = vcmask 1048320   ;;  %vm16_vm2 = vcmask 785920   ;;  %vm22_vm3 = vcmask 523520   ;;  %s88_s0 = inlined_call_operand.vmem [shape: f32[11,32], index: 0, kind: input, shape index: {}]   ;;  %s89_s1 = inlined_call_operand.vmem [shape: f32[1,352], index: 1, kind: output, shape index: {}]  }
   0x1   :  { %v46_v0 = vld [vmem:[%s88_s0 + $0x3] ss:$4 sm:%s6_s6]   ;;  %v48_v1 = vld [vmem:[%s88_s0 + $0x1] ss:$4 sm:$0x7]   ;;  %s56_s16 = smov 64  }
   0x2   :  { %8 = vrot.lane.b32.xlu0 %v46_v0, %s54_s11  ;;  %v2_v2 = vld [vmem:[%s88_s0] ss:$4 sm:$0x7]   ;;  %v47_v3 = vld [vmem:[%s88_s0 + $0x2] ss:$4 sm:$0x7]  }
   0x3   :  { %s55_s0 = smov 32   ;;  %4 = vst.msk [vmem:[#allocation0] ss:$8 sm:$0x7] %vm3_vm0, %v2_v2  }
   0x4   :  { %20 = vrot.lane.b32.xlu1 %v48_v1, %s55_s0 }
   0x6   :  { %14 = vrot.lane.b32.xlu0 %v47_v3, %s56_s16 }
  0x74   :  { %v9_v4 = vpop.permute.xlu0 %8  }
  0x75   :  { %11 = vst.msk [vmem:[#allocation0] ss:$8 sm:$0x3] %vm10_vm1, %v9_v4  }
  0x76   :  { %v21_v5 = vpop.permute.xlu1 %20  }
  0x78   :  { %v15_v6 = vpop.permute.xlu0 %14  }
  0x79   :  { %17 = vst.msk [vmem:[#allocation0] ss:$8 sm:$0x7] %vm16_vm2, %v15_v6  }
  0x7a   :  { %23 = vst.msk [vmem:[#allocation0] ss:$8 sm:$0x7] %vm22_vm3, %v21_v5  }
  0x81   :  { %v28_v7 = vld [vmem:[#allocation0] sm:$0x1]  ;;  %v33_v8 = vld [vmem:[#allocation0 + $0x8] sm:$0x1]  ;;  %v39_v9 = vld [vmem:[#allocation0 + $0x10] sm:$0x1] }
  0x82   :  { %31 = vst [vmem:[%s89_s1] sm:$0x1] %v28_v7  ;;  %49 = vst [vmem:[%s89_s1 + $0x1] sm:$0x1] %v33_v8 }
  0x83   :  { %50 = vst [vmem:[%s89_s1 + $0x2] sm:$0x1] %v39_v9 }

// kernel: tile.28
= control target key start
LH: loop header
LB: loop body
LE: loop exit
PB: predicated region body
PF: predicated region fallthrough
CT: control target
= control target key end

     0   :  { %s22_s0 = inlined_call_operand.vmem [shape: f32[64], index: 0, kind: input, shape index: {}]   ;;  %s23_s1 = inlined_call_operand.vmem [shape: f32[3,64], index: 1, kind: output, shape index: {}]  }
   0x1   :  { %v4_v0 = vld [vmem:[%s22_s0] ss:$0 sm:$0xff] }
   0x2   :  { %5 = vst [vmem:[%s23_s1] sm:$0xf] %v4_v0 }

// kernel: tile.29
= control target key start
LH: loop header
LB: loop body
LE: loop exit
PB: predicated region body
PF: predicated region fallthrough
CT: control target
= control target key end

     0   :  { %vm9_vm0 = vcmask 523264   ;;  %s33_s8 = smov 64   ;;  %vm15_vm1 = vcmask 1048064   ;;  %s53_s0 = inlined_call_operand.vmem [shape: f32[3,64], index: 0, kind: input, shape index: {}]   ;;  %s54_s1 = inlined_call_operand.vmem [shape: f32[1,192], index: 1, kind: output, shape index: {}]  }
   0x1   :  { %v5_v0 = vld [vmem:[%s53_s0] sm:$0xf]  ;;  %s7_s0 = smov 3 }
   0x2   :  { %6 = vst [vmem:[#allocation1] sm:$0xf] %v5_v0 }
   0x9   :  { %v12_v1 = vld [vmem:[#allocation1 + $0x1] sm:$0x1]   ;;  %v8_v2 = vld [vmem:[#allocation1] ss:$2 sm:%s7_s0]  }
   0xa   :  { %13 = vrot.lane.b32.xlu0 %v12_v1, %s33_s8  ;;  %10 = vst.msk [vmem:[#allocation0] ss:$8 sm:$0x3] %vm9_vm0, %v8_v2  }
  0x11   :  { %v26_v3 = vld [vmem:[#allocation0 + $0x8] sm:$0x1] }
  0x12   :  { %31 = vst [vmem:[%s54_s1 + $0x1] sm:$0x1] %v26_v3 }
  0x7c   :  { %v14_v4 = vpop.permute.xlu0 %13  }
  0x7d   :  { %16 = vst.msk [vmem:[#allocation0] sm:$0x1] %vm15_vm1, %v14_v4  }
  0x84   :  { %v21_v5 = vld [vmem:[#allocation0] sm:$0x1] }
  0x85   :  { %24 = vst [vmem:[%s54_s1] sm:$0x1] %v21_v5 }

// kernel: image_classifier_forward.1
= control target key start
LH: loop header
LB: loop body
LE: loop exit
PB: predicated region body
PF: predicated region fallthrough
CT: control target
= control target key end

     0   :  { %vm291_vm0 = vcmask 1045504   ;;  %v15706_v1 = vmov 0   ;;  %vm251_vm1 = vcmask 228352   ;;  %v15704_v52 = vmov 0.0   ;;  %s9945_s21 = smov 96   ;;  %s9947_s24 = smov 32   ;;  %s15694_s1 = inlined_call_operand.vmem [shape: bf16[3,28,832], index: 1, kind: input, shape index: {}]   ;;  %s15695_s0 = inlined_call_operand.vmem [shape: f32[28,8,28], index: 0, kind: input, shape index: {}]   ;;  %s15696_s2 = inlined_call_operand.vmem [shape: f32[1,832], index: 2, kind: input, shape index: {}]   ;;  %s15697_s3 = inlined_call_operand.vmem [shape: bf16[3,416,352], index: 3, kind: input, shape index: {}]   ;;  %s15698_s4 = inlined_call_operand.vmem [shape: f32[1,352], index: 4, kind: input, shape index: {}]   ;;  %s15699_s5 = inlined_call_operand.vmem [shape: bf16[3,160,192], index: 5, kind: input, shape index: {}]   ;;  %s15700_s7 = inlined_call_operand.vmem [shape: bf16[64,128], index: 7, kind: input, shape index: {}]   ;;  %s15701_s6 = inlined_call_operand.vmem [shape: f32[1,192], index: 6, kind: input, shape index: {}]   ;;  %s15702_s8 = inlined_call_operand.vmem [shape: f32[1,128], index: 8, kind: input, shape index: {}]   ;;  %s15703_s9 = inlined_call_operand.vmem [shape: f32[8,128], index: 9, kind: output, shape index: {}]  }
   0x1   :  { %v9475_v0 = vld [vmem:[%s15694_s1 + $0xac] ss:$28 sps:$4 sm:$0x3f]   ;;  %345 = vmatprep.mubr.bf16.mxu0 %v15706_v1  ;;  %455 = vmatprep.mubr.bf16.mxu1 %v15706_v1  ;;  %v9478_v3 = vld [vmem:[%s15694_s1 + $0x74] ss:$28 sps:$4 sm:$0xff]   ;;  %v33_v5 = vld [vmem:[%s15695_s0] sm:$0xff] }
   0x2   :  { %v9477_v2 = vld [vmem:[%s15694_s1 + $0xa8] ss:$28 sps:$4 sm:$0x3f]   ;;  %8171 = vmatprep.subr.msk.bf16.mxu0 %vm291_vm0, %v9475_v0  ;;  %9465 = vmatprep.subr.msk.bf16.mxu1 %vm291_vm0, %v9475_v0  ;;  %v9480_v4 = vld [vmem:[%s15694_s1 + $0x70] ss:$28 sps:$4 sm:$0xff]   ;;  %v10027_v9 = vld [vmem:[%s15695_s0 + $0xb8] sm:$0xff] }
   0x3   :  { %v293_v6 = vsel %vm291_vm0, %v9477_v2, 0  ;;  %v34_v7 = vld [vmem:[%s15695_s0 + $0x8] sm:$0xff]  ;;  %v35_v8 = vld [vmem:[%s15695_s0 + $0x10] sm:$0xff]  ;;  %v57_v11 = vld [vmem:[%s15695_s0 + $0xc0] sm:$0xff]  ;;  %vm9944_vm2 = vmmov 0   ;;  %vm3388_vm3 = vcmask 785408  }
   0x4   :  { %326 = vmatpush1.bf16.msra.mxu0 %v293_v6  ;;  %9467 = vmatpush1.bf16.msra.mxu1 %v293_v6  ;;  %v10029_v10 = vpack.c.bf16 %v34_v7, %v33_v5  ;;  %v9481_v12 = vld [vmem:[%s15694_s1 + $0xb4] ss:$28 sps:$4 sm:$0x3f]   ;;  %v9484_v14 = vld [vmem:[%s15694_s1 + $0xbc] ss:$28 sps:$4 sm:$0x3f]   ;;  %v10043_v15 = vpack.c.bf16 %v35_v8, %v34_v7  ;;  %v10046_v16 = vpack.c.bf16 %v57_v11, %v10027_v9 }
   0x5   :  { %327 = vmatprep.subr.bf16.mxu0 %v9478_v3  ;;  %9466 = vmatprep.subr.bf16.mxu1 %v9478_v3  ;;  %v9483_v13 = vld [vmem:[%s15694_s1 + $0xb0] ss:$28 sps:$4 sm:$0x3f]   ;;  %v9486_v17 = vld [vmem:[%s15694_s1 + $0xb8] ss:$28 sps:$4 sm:$0x3f]  }
   0x6   :  { %v36_v18 = vld [vmem:[%s15695_s0 + $0x18] sm:$0xff]  ;;  %v58_v20 = vld [vmem:[%s15695_s0 + $0xc8] sm:$0xff]  ;;  %v59_v21 = vld [vmem:[%s15695_s0 + $0xd0] sm:$0xff]  ;;  %v299_v23 = vsel %vm291_vm0, %v9483_v13, 0  ;;  %v305_v24 = vsel %vm291_vm0, %v9486_v17, 0  ;;  %vm3961_vm4 = vcmask 261120  }
   0x7   :  { %v10054_v19 = vpack.c.bf16 %v36_v18, %v35_v8  ;;  %v60_v22 = vld [vmem:[%s15695_s0 + $0xd8] sm:$0xff]  ;;  %v37_v25 = vld [vmem:[%s15695_s0 + $0x20] sm:$0xff]  ;;  %v10072_v26 = vpack.c.bf16 %v58_v20, %v57_v11  ;;  %v38_v29 = vld [vmem:[%s15695_s0 + $0x28] sm:$0xff]  ;;  %v10128_v45 = vpack.c.bf16 %v59_v21, %v58_v20  ;;  %vm4001_vm5 = vcmask 523264  }
   0x8   :  { %328 = vmatpush1.bf16.msra.mxu0 %v9480_v4  ;;  %9468 = vmatpush1.bf16.msra.mxu1 %v9480_v4  ;;  %v10074_v27 = vpack.c.bf16 %v60_v22, %v59_v21  ;;  %v9489_v28 = vld [vmem:[%s15694_s1 + $0x7c] ss:$28 sps:$4 sm:$0xff]   ;;  %v39_v30 = vld [vmem:[%s15695_s0 + $0x30] sm:$0xff]  ;;  %v10089_v31 = vpack.c.bf16 %v38_v29, %v37_v25  ;;  %v41_v34 = vld [vmem:[%s15695_s0 + $0x40] sm:$0xff]  ;;  %v10126_v44 = vpack.c.bf16 %v37_v25, %v36_v18 }
   0x9   :  { %8185 = vmatprep.subr.msk.bf16.mxu1 %vm291_vm0, %v9481_v12  ;;  %8199 = vmatprep.subr.msk.bf16.mxu0 %vm291_vm0, %v9484_v14  ;;  %v40_v32 = vld [vmem:[%s15695_s0 + $0x38] sm:$0xff]  ;;  %v42_v36 = vld [vmem:[%s15695_s0 + $0x48] sm:$0xff]  ;;  %v43_v37 = vld [vmem:[%s15695_s0 + $0x50] sm:$0xff]  ;;  %v10187_v2 = vpack.c.bf16 %v39_v30, %v38_v29 }
   0xa   :  { %v9487_v33 = vld [vmem:[%s15694_s1 + $0x78] ss:$28 sps:$4 sm:$0xff]   ;;  %v10100_v35 = vpack.c.bf16 %v40_v32, %v39_v30  ;;  %v10110_v38 = vpack.c.bf16 %v42_v36, %v41_v34  ;;  %v45_v40 = vld [vmem:[%s15695_s0 + $0x60] sm:$0xff]  ;;  %v46_v42 = vld [vmem:[%s15695_s0 + $0x68] sm:$0xff]  ;;  %v10203_v6 = vpack.c.bf16 %v41_v34, %v40_v32  ;;  %v10212_v7 = vpack.c.bf16 %v43_v37, %v42_v36 }
   0xb   :  { %8172 = vmatmul.mubr.msk.bf16.vlgmr.msra.gmra.mxu0 %vm251_vm1, %v10043_v15  ;;  %8183 = vmatmul.mubr.msk.bf16.vlgmr.msra.gmra.mxu1 %vm251_vm1, %v10046_v16  ;;  %v44_v39 = vld [vmem:[%s15695_s0 + $0x58] sm:$0xff]  ;;  %v47_v43 = vld [vmem:[%s15695_s0 + $0x70] sm:$0xff]  ;;  %v10130_v46 = vpack.c.bf16 %v46_v42, %v45_v40  ;;  %v9493_v48 = vld [vmem:[%s15694_s1 + $0x84] ss:$28 sps:$4 sm:$0xff]  }
   0xc   :  { %489 = vmatpush1.bf16.msra.mxu1 %v299_v23  ;;  %652 = vmatpush1.bf16.msra.mxu0 %v305_v24  ;;  %v10118_v41 = vpack.c.bf16 %v44_v39, %v43_v37  ;;  %v9491_v47 = vld [vmem:[%s15694_s1 + $0x80] ss:$28 sps:$4 sm:$0xff]   ;;  %v50_v51 = vld [vmem:[%s15695_s0 + $0x88] sm:$0xff]  ;;  %v51_v55 = vld [vmem:[%s15695_s0 + $0x90] sm:$0xff]  ;;  %v10220_v8 = vpack.c.bf16 %v45_v40, %v44_v39 }
   0xd   :  { %355 = vmatprep.mubr.bf16.mxu0 %v15706_v1  ;;  %465 = vmatprep.mubr.bf16.mxu1 %v15706_v1  ;;  %v48_v49 = vld [vmem:[%s15695_s0 + $0x78] sm:$0xff]  ;;  %v49_v50 = vld [vmem:[%s15695_s0 + $0x80] sm:$0xff]  ;;  %v54_v59 = vld [vmem:[%s15695_s0 + $0xa8] sm:$0xff]  ;;  %v10244_v12 = vpack.c.bf16 %v51_v55, %v50_v51 }
   0xe   :  { %490 = vmatprep.subr.bf16.mxu1 %v9489_v28  ;;  %653 = vmatprep.subr.bf16.mxu0 %v9493_v48  ;;  %v10148_v53 = vpack.c.bf16 %v48_v49, %v47_v43  ;;  %v10150_v54 = vpack.c.bf16 %v50_v51, %v49_v50  ;;  %v52_v56 = vld [vmem:[%s15695_s0 + $0x98] sm:$0xff]  ;;  %v53_v57 = vld [vmem:[%s15695_s0 + $0xa0] sm:$0xff]  ;;  %v55_v60 = vld [vmem:[%s15695_s0 + $0xb0] sm:$0xff]  ;;  %v10236_v11 = vpack.c.bf16 %v49_v50, %v48_v49 }
   0xf   :  { %v10165_v58 = vpack.c.bf16 %v52_v56, %v51_v55  ;;  %v10175_v61 = vpack.c.bf16 %v54_v59, %v53_v57  ;;  %v10178_v62 = vpack.c.bf16 %v10027_v9, %v55_v60  ;;  %v9495_v63 = vld [vmem:[%s15694_s1 + $0x3c] ss:$28 sps:$4 sm:$0x3f]   ;;  %v9494_v4 = vld [vmem:[%s15694_s1 + $0x88] ss:$28 sps:$4 sm:$0xff]   ;;  %v10228_v9 = vpack.c.bf16 %v47_v43, %v46_v42 }
  0x10   :  { %491 = vmatpush1.bf16.msra.mxu1 %v9487_v33  ;;  %654 = vmatpush1.bf16.msra.mxu0 %v9491_v47  ;;  %v9490_v0 = vld [vmem:[%s15694_s1 + $0xc0] ss:$28 sps:$4 sm:$0x3f]   ;;  %v10252_v13 = vpack.c.bf16 %v53_v57, %v52_v56  ;;  %v10260_v14 = vpack.c.bf16 %v55_v60, %v54_v59  ;;  %v9497_v17 = vld [vmem:[%s15694_s1 + $0x38] ss:$28 sps:$4 sm:$0x3f]  }
  0x11   :  { %9285 = vmatprep.subr.bf16.mxu1 %v15704_v52  ;;  %8253 = vmatprep.subr.msk.bf16.mxu0 %vm291_vm0, %v9495_v63  ;;  %v311_v3 = vsel %vm291_vm0, %v9490_v0, 0  ;;  %v9498_v5 = vld [vmem:[%s15694_s1 + $0x44] ss:$28 sps:$4 sm:$0x3f]   ;;  %v1059_v18 = vsel %vm291_vm0, %v9497_v17, 0 }
  0x12   :  { %v9503_v20 = vld [vmem:[%s15694_s1 + $0x4] ss:$28 sps:$4 sm:$0xff]   ;;  %v9507_v22 = vld [vmem:[%s15694_s1 + $0x4c] ss:$28 sps:$4 sm:$0x3f]  }
  0x13   :  { %8173 = vmatmul.mubr.msk.bf16.gmra.mxu0 %vm251_vm1, %v10126_v44  ;;  %8184 = vmatmul.mubr.msk.bf16.gmra.mxu1 %vm251_vm1, %v10128_v45  ;;  %v9501_v21 = vld [vmem:[%s15694_s1] ss:$28 sps:$4 sm:$0xff]   ;;  %v9506_v25 = vld [vmem:[%s15694_s1 + $0xc] ss:$28 sps:$4 sm:$0xff]   ;;  %v9513_v30 = vld [vmem:[%s15694_s1 + $0x14] ss:$28 sps:$4 sm:$0xff]  }
  0x14   :  { %365 = vmatprep.mubr.bf16.mxu0 %v15706_v1  ;;  %508 = vmatprep.mubr.bf16.mxu1 %v15706_v1  ;;  %v9500_v23 = vld [vmem:[%s15694_s1 + $0x40] ss:$28 sps:$4 sm:$0x3f]   ;;  %v9504_v28 = vld [vmem:[%s15694_s1 + $0x8] ss:$28 sps:$4 sm:$0xff]  }
  0x15   :  { %v1065_v24 = vsel %vm291_vm0, %v9500_v23, 0  ;;  %v9511_v34 = vld [vmem:[%s15694_s1 + $0x10] ss:$28 sps:$4 sm:$0xff]   ;;  %v9515_v39 = vld [vmem:[%s15694_s1 + $0x11c] ss:$28 sps:$4 sm:$0x3f]  }
  0x16   :  { %v9518_v23 = vld [vmem:[%s15694_s1 + $0x124] ss:$28 sps:$4 sm:$0x3f]  }
  0x1b   :  { %8174 = vmatmul.mubr.msk.bf16.gmra.mxu0 %vm251_vm1, %v10187_v2  ;;  %8186 = vmatmul.mubr.msk.bf16.vlgmr.msra.gmra.mxu1 %vm251_vm1, %v10043_v15 }
  0x1c   :  { %9286 = vmatpush3.bf16.msra.mxu1 %v311_v3  ;;  %375 = vmatprep.mubr.bf16.mxu0 %v15706_v1 }
  0x1d   :  { %518 = vmatprep.mubr.bf16.mxu1 %v15706_v1  ;;  %9287 = vmatprep.subr.bf16.mxu1 %v15704_v52 }
  0x20   :  { %9288 = vmatpush3.bf16.msra.mxu1 %v9494_v4 }
  0x21   :  { %8267 = vmatprep.subr.msk.bf16.mxu1 %vm291_vm0, %v9498_v5 }
  0x23   :  { %8175 = vmatmul.mubr.msk.bf16.gmra.mxu0 %vm251_vm1, %v10203_v6  ;;  %8187 = vmatmul.mubr.msk.bf16.gmra.mxu1 %vm251_vm1, %v10126_v44 }
  0x24   :  { %385 = vmatprep.mubr.bf16.mxu0 %v15706_v1  ;;  %528 = vmatprep.mubr.bf16.mxu1 %v15706_v1 }
  0x2b   :  { %8176 = vmatmul.mubr.msk.bf16.gmra.mxu0 %vm251_vm1, %v10212_v7  ;;  %8188 = vmatmul.mubr.msk.bf16.gmra.mxu1 %vm251_vm1, %v10187_v2 }
  0x2c   :  { %395 = vmatprep.mubr.bf16.mxu0 %v15706_v1  ;;  %538 = vmatprep.mubr.bf16.mxu1 %v15706_v1 }
  0x33   :  { %8177 = vmatmul.mubr.msk.bf16.gmra.mxu0 %vm251_vm1, %v10220_v8  ;;  %8189 = vmatmul.mubr.msk.bf16.gmra.mxu1 %vm251_vm1, %v10203_v6 }
  0x34   :  { %405 = vmatprep.mubr.bf16.mxu0 %v15706_v1  ;;  %548 = vmatprep.mubr.bf16.mxu1 %v15706_v1 }
  0x3b   :  { %8178 = vmatmul.mubr.msk.bf16.gmra.mxu0 %vm251_vm1, %v10228_v9  ;;  %8190 = vmatmul.mubr.msk.bf16.gmra.mxu1 %vm251_vm1, %v10212_v7 }
  0x3c   :  { %415 = vmatprep.mubr.bf16.mxu0 %v15706_v1  ;;  %558 = vmatprep.mubr.bf16.mxu1 %v15706_v1 }
  0x43   :  { %8179 = vmatmul.mubr.msk.bf16.gmra.mxu0 %vm251_vm1, %v10236_v11  ;;  %8191 = vmatmul.mubr.msk.bf16.gmra.mxu1 %vm251_vm1, %v10220_v8 }
  0x44   :  { %425 = vmatprep.mubr.bf16.mxu0 %v15706_v1  ;;  %568 = vmatprep.mubr.bf16.mxu1 %v15706_v1 }
  0x4b   :  { %8180 = vmatmul.mubr.msk.bf16.gmra.mxu0 %vm251_vm1, %v10244_v12  ;;  %8192 = vmatmul.mubr.msk.bf16.gmra.mxu1 %vm251_vm1, %v10228_v9 }
  0x4c   :  { %435 = vmatprep.mubr.bf16.mxu0 %v15706_v1  ;;  %578 = vmatprep.mubr.bf16.mxu1 %v15706_v1 }
  0x53   :  { %8181 = vmatmul.mubr.msk.bf16.gmra.mxu0 %vm251_vm1, %v10252_v13  ;;  %8193 = vmatmul.mubr.msk.bf16.gmra.mxu1 %vm251_vm1, %v10236_v11 }
  0x54   :  { %445 = vmatprep.mubr.bf16.mxu0 %v15706_v1  ;;  %588 = vmatprep.mubr.bf16.mxu1 %v15706_v1 }
  0x5b   :  { %8182 = vmatmul.mubr.msk.bf16.gmra.mxu0 %vm251_vm1, %v10260_v14  ;;  %8194 = vmatmul.mubr.msk.bf16.gmra.mxu1 %vm251_vm1, %v10244_v12 }
  0x5c   :  { %598 = vmatprep.mubr.bf16.mxu1 %v15706_v1  ;;  %671 = vmatprep.mubr.bf16.mxu0 %v15706_v1 }
  0x63   :  { %8195 = vmatmul.mubr.msk.bf16.gmra.mxu1 %vm251_vm1, %v10252_v13  ;;  %8200 = vmatmul.mubr.msk.bf16.vlgmr.msra.gmra.mxu0 %vm251_vm1, %v10043_v15 }
  0x64   :  { %1092 = vmatpush1.bf16.msra.mxu0 %v1059_v18  ;;  %608 = vmatprep.mubr.bf16.mxu1 %v15706_v1 }
  0x65   :  { %681 = vmatprep.mubr.bf16.mxu0 %v15706_v1  ;;  %1093 = vmatprep.subr.bf16.mxu0 %v9503_v20  ;;  %v9514_v20 = vld [vmem:[%s15694_s1 + $0x18] ss:$28 sps:$4 sm:$0xff]  }
  0x68   :  { %1094 = vmatpush1.bf16.msra.mxu0 %v9501_v21 }
  0x69   :  { %8281 = vmatprep.subr.msk.bf16.mxu0 %vm291_vm0, %v9507_v22 }
  0x6b   :  { %8196 = vmatmul.mubr.msk.bf16.gmra.mxu1 %vm251_vm1, %v10260_v14  ;;  %8201 = vmatmul.mubr.msk.bf16.gmra.mxu0 %vm251_vm1, %v10126_v44 }
  0x6c   :  { %618 = vmatprep.mubr.bf16.mxu1 %v15706_v1  ;;  %691 = vmatprep.mubr.bf16.mxu0 %v15706_v1 }
  0x73   :  { %8197 = vmatmul.mubr.msk.bf16.gmra.mxu1 %vm251_vm1, %v10046_v16  ;;  %8202 = vmatmul.mubr.msk.bf16.gmra.mxu0 %vm251_vm1, %v10187_v2 }
  0x74   :  { %628 = vmatprep.mubr.bf16.mxu1 %v15706_v1  ;;  %701 = vmatprep.mubr.bf16.mxu0 %v15706_v1 }
  0x7b   :  { %8198 = vmatmul.mubr.msk.bf16.gmra.mxu1 %vm251_vm1, %v10128_v45  ;;  %8203 = vmatmul.mubr.msk.bf16.gmra.mxu0 %vm251_vm1, %v10203_v6 }
  0x7c   :  { %711 = vmatprep.mubr.bf16.mxu0 %v15706_v1  ;;  %9289 = vmatprep.mubr.msk.bf16.mxu1 %vm9944_vm2, %v15704_v52 }
  0x83   :  { %8204 = vmatmul.mubr.msk.bf16.gmra.mxu0 %vm251_vm1, %v10212_v7  ;;  %9290 = vmatmul.mubr.msk.bf16.vlgmr.msra.gmra.mxu1 %vm251_vm1, %v10043_v15  ;;  %v9509_v15 = vld [vmem:[%s15694_s1 + $0x48] ss:$28 sps:$4 sm:$0x3f]  }
  0x84   :  { %1255 = vmatpush1.bf16.msra.mxu1 %v1065_v24  ;;  %721 = vmatprep.mubr.bf16.mxu0 %v15706_v1  ;;  %v1071_v29 = vsel %vm291_vm0, %v9509_v15, 0 }
  0x85   :  { %9293 = vmatprep.mubr.msk.bf16.mxu1 %vm9944_vm2, %v15704_v52  ;;  %1256 = vmatprep.subr.bf16.mxu1 %v9506_v25 }
  0x88   :  { %1257 = vmatpush1.bf16.msra.mxu1 %v9504_v28 }
  0x89   :  { %9341 = vmatprep.subr.bf16.mxu1 %v15704_v52 }
  0x8b   :  { %8205 = vmatmul.mubr.msk.bf16.gmra.mxu0 %vm251_vm1, %v10220_v8  ;;  %9294 = vmatmul.mubr.msk.bf16.gmra.mxu1 %vm251_vm1, %v10126_v44 }
  0x8c   :  { %731 = vmatprep.mubr.bf16.mxu0 %v15706_v1  ;;  %9297 = vmatprep.mubr.msk.bf16.mxu1 %vm9944_vm2, %v15704_v52 }
  0x93   :  { %8206 = vmatmul.mubr.msk.bf16.gmra.mxu0 %vm251_vm1, %v10228_v9  ;;  %9298 = vmatmul.mubr.msk.bf16.gmra.mxu1 %vm251_vm1, %v10187_v2 }
  0x94   :  { %741 = vmatprep.mubr.bf16.mxu0 %v15706_v1  ;;  %9301 = vmatprep.mubr.msk.bf16.mxu1 %vm9944_vm2, %v15704_v52 }
  0x9b   :  { %8207 = vmatmul.mubr.msk.bf16.gmra.mxu0 %vm251_vm1, %v10236_v11  ;;  %9302 = vmatmul.mubr.msk.bf16.gmra.mxu1 %vm251_vm1, %v10203_v6 }
  0x9c   :  { %751 = vmatprep.mubr.bf16.mxu0 %v15706_v1  ;;  %9305 = vmatprep.mubr.msk.bf16.mxu1 %vm9944_vm2, %v15704_v52 }
  0xa3   :  { %8208 = vmatmul.mubr.msk.bf16.gmra.mxu0 %vm251_vm1, %v10244_v12  ;;  %9306 = vmatmul.mubr.msk.bf16.gmra.mxu1 %vm251_vm1, %v10212_v7 }
  0xa4   :  { %761 = vmatprep.mubr.bf16.mxu0 %v15706_v1  ;;  %9309 = vmatprep.mubr.msk.bf16.mxu1 %vm9944_vm2, %v15704_v52 }
  0xab   :  { %8209 = vmatmul.mubr.msk.bf16.gmra.mxu0 %vm251_vm1, %v10252_v13  ;;  %9310 = vmatmul.mubr.msk.bf16.gmra.mxu1 %vm251_vm1, %v10220_v8 }
  0xac   :  { %771 = vmatprep.mubr.bf16.mxu0 %v15706_v1  ;;  %9313 = vmatprep.mubr.msk.bf16.mxu1 %vm9944_vm2, %v15704_v52 }
  0xb3   :  { %8210 = vmatmul.mubr.msk.bf16.gmra.mxu0 %vm251_vm1, %v10260_v14  ;;  %9314 = vmatmul.mubr.msk.bf16.gmra.mxu1 %vm251_vm1, %v10228_v9  ;;  %v9510_v9 = vld [vmem:[%s15694_s1 + $0x50] ss:$28 sps:$4 sm:$0x3f]  }
  0xb4   :  { %781 = vmatprep.mubr.bf16.mxu0 %v15706_v1  ;;  %9317 = vmatprep.mubr.msk.bf16.mxu1 %vm9944_vm2, %v15704_v52 }
  0xbb   :  { %8211 = vmatmul.mubr.msk.bf16.gmra.mxu0 %vm251_vm1, %v10046_v16  ;;  %9318 = vmatmul.mubr.msk.bf16.gmra.mxu1 %vm251_vm1, %v10236_v11 }
  0xbc   :  { %791 = vmatprep.mubr.bf16.mxu0 %v15706_v1  ;;  %9321 = vmatprep.mubr.msk.bf16.mxu1 %vm9944_vm2, %v15704_v52 }
  0xc3   :  { %8212 = vmatmul.mubr.msk.bf16.gmra.mxu0 %vm251_vm1, %v10128_v45  ;;  %9322 = vmatmul.mubr.msk.bf16.gmra.mxu1 %vm251_vm1, %v10244_v12 }
  0xc4   :  { %9325 = vmatprep.mubr.msk.bf16.mxu1 %vm9944_vm2, %v15704_v52  ;;  %1111 = vmatprep.mubr.bf16.mxu0 %v15706_v1 }
  0xcb   :  { %v10388_v32 = vpop.f32.mrf.mxu0  ;;  %v10390_v33 = vpop.f32.mrf.mxu1  ;;  %9326 = vmatmul.mubr.msk.bf16.gmra.mxu1 %vm251_vm1, %v10252_v13  ;;  %8254 = vmatmul.mubr.msk.bf16.vlgmr.msra.gmra.mxu0 %vm251_vm1, %v10029_v10 }
  0xcc   :  { %15826 = vst [vmem:[#allocation2_spill] sm:$0xff] %v10390_v33  ;;  %1418 = vmatpush1.bf16.msra.mxu0 %v1071_v29  ;;  %9329 = vmatprep.mubr.msk.bf16.mxu1 %vm9944_vm2, %v15704_v52 }
  0xcd   :  { %v10401_v36 = vpop.f32.mrf.mxu0  ;;  %v10403_v37 = vpop.f32.mrf.mxu1  ;;  %1121 = vmatprep.mubr.bf16.mxu0 %v15706_v1  ;;  %1419 = vmatprep.subr.bf16.mxu0 %v9513_v30 }
  0xce   :  { %15827 = vst [vmem:[#allocation3_spill] sm:$0xff] %v10403_v37 }
  0xcf   :  { %v10409_v40 = vpop.f32.mrf.mxu0  ;;  %v10411_v42 = vpop.f32.mrf.mxu1 }
  0xd0   :  { %15828 = vst [vmem:[#allocation4_spill] sm:$0xff] %v10411_v42  ;;  %1420 = vmatpush1.bf16.msra.mxu0 %v9511_v34 }
  0xd1   :  { %v10413_v43 = vpop.f32.mrf.mxu0  ;;  %v10415_v44 = vpop.f32.mrf.mxu1  ;;  %8339 = vmatprep.subr.msk.bf16.mxu0 %vm291_vm0, %v9515_v39 }
  0xd2   :  { %15829 = vst [vmem:[#allocation5_spill] sm:$0xff] %v10415_v44 }
  0xd3   :  { %v10418_v47 = vpop.f32.mrf.mxu0  ;;  %v10420_v48 = vpop.f32.mrf.mxu1  ;;  %9330 = vmatmul.mubr.msk.bf16.gmra.mxu1 %vm251_vm1, %v10260_v14  ;;  %8255 = vmatmul.mubr.msk.bf16.gmra.mxu0 %vm251_vm1, %v10054_v19  ;;  %v1077_v14 = vsel %vm291_vm0, %v9510_v9, 0 }
  0xd4   :  { %15830 = vst [vmem:[#allocation6_spill] sm:$0xff] %v10420_v48  ;;  %9333 = vmatprep.mubr.msk.bf16.mxu1 %vm9944_vm2, %v15704_v52  ;;  %1131 = vmatprep.mubr.bf16.mxu0 %v15706_v1 }
  0xd5   :  { %v10429_v49 = vpop.f32.mrf.mxu0  ;;  %v10431_v50 = vpop.f32.mrf.mxu1 }
  0xd6   :  { %15831 = vst [vmem:[#allocation7_spill] sm:$0xff] %v10431_v50 }
  0xd7   :  { %v10433_v51 = vpop.f32.mrf.mxu0  ;;  %v10435_v55 = vpop.f32.mrf.mxu1 }
  0xd8   :  { %15832 = vst [vmem:[#allocation8_spill] sm:$0xff] %v10435_v55 }
  0xd9   :  { %v10437_v56 = vpop.f32.mrf.mxu0  ;;  %v10439_v57 = vpop.f32.mrf.mxu1 }
  0xda   :  { %15833 = vst [vmem:[#allocation9_spill] sm:$0xff] %v10439_v57 }
  0xdb   :  { %v10441_v59 = vpop.f32.mrf.mxu0  ;;  %v10443_v60 = vpop.f32.mrf.mxu1  ;;  %9334 = vmatmul.mubr.msk.bf16.gmra.mxu1 %vm251_vm1, %v10046_v16  ;;  %8256 = vmatmul.mubr.msk.bf16.gmra.mxu0 %vm251_vm1, %v10089_v31 }
  0xdc   :  { %9337 = vmatprep.mubr.msk.bf16.mxu1 %vm9944_vm2, %v15704_v52  ;;  %1141 = vmatprep.mubr.bf16.mxu0 %v15706_v1 }
  0xdd   :  { %v10452_v63 = vpop.f32.mrf.mxu0  ;;  %v10454_v0 = vpop.f32.mrf.mxu1 }
  0xdf   :  { %v10456_v2 = vpop.f32.mrf.mxu0  ;;  %v10458_v3 = vpop.f32.mrf.mxu1 }
  0xe0   :  { %15834 = vst [vmem:[#allocation10_spill] sm:$0xff] %v10458_v3 }
  0xe1   :  { %v10460_v4 = vpop.f32.mrf.mxu0  ;;  %v10462_v5 = vpop.f32.mrf.mxu1 }
  0xe2   :  { %15835 = vst [vmem:[#allocation11_spill] sm:$0xff] %v10462_v5 }
  0xe3   :  { %v10464_v16 = vpop.f32.mrf.mxu0  ;;  %v10466_v6 = vpop.f32.mrf.mxu1  ;;  %9338 = vmatmul.mubr.msk.bf16.gmra.mxu1 %vm251_vm1, %v10128_v45  ;;  %8257 = vmatmul.mubr.msk.bf16.gmra.mxu0 %vm251_vm1, %v10100_v35 }
  0xe4   :  { %15836 = vst [vmem:[#allocation12_spill] sm:$0xff] %v10466_v6  ;;  %1151 = vmatprep.mubr.bf16.mxu0 %v15706_v1  ;;  %1274 = vmatprep.mubr.bf16.mxu1 %v15706_v1 }
  0xe5   :  { %v10474_v7 = vpop.f32.mrf.mxu0  ;;  %v10476_v8 = vpop.f32.mrf.mxu1 }
  0xe6   :  { %15837 = vst [vmem:[#allocation13_spill] sm:$0xff] %v10476_v8 }
  0xe7   :  { %v10481_v11 = vpop.f32.mrf.mxu0  ;;  %v10483_v12 = vpop.f32.mrf.mxu1 }
  0xe8   :  { %15838 = vst [vmem:[#allocation14_spill] sm:$0xff] %v10483_v12 }
  0xe9   :  { %v10485_v45 = vpop.f32.mrf.mxu0  ;;  %v10487_v13 = vpop.f32.mrf.mxu1 }
  0xea   :  { %15839 = vst [vmem:[#allocation15_spill] sm:$0xff] %v10487_v13 }
  0xeb   :  { %v10490_v17 = vpop.f32.mrf.mxu0  ;;  %v10492_v18 = vpop.f32.mrf.mxu1  ;;  %8258 = vmatmul.mubr.msk.bf16.gmra.mxu0 %vm251_vm1, %v10110_v38  ;;  %8268 = vmatmul.mubr.msk.bf16.vlgmr.msra.gmra.mxu1 %vm251_vm1, %v10029_v10 }
  0xec   :  { %15840 = vst [vmem:[#allocation16_spill] sm:$0xff] %v10492_v18  ;;  %9342 = vmatpush3.bf16.msra.mxu1 %v1077_v14  ;;  %1161 = vmatprep.mubr.bf16.mxu0 %v15706_v1 }
  0xed   :  { %v10502_v21 = vpop.f32.mrf.mxu0  ;;  %v10504_v22 = vpop.f32.mrf.mxu1  ;;  %1284 = vmatprep.mubr.bf16.mxu1 %v15706_v1  ;;  %9343 = vmatprep.subr.bf16.mxu1 %v15704_v52 }
  0xee   :  { %15841 = vst [vmem:[#allocation17_spill] sm:$0xff] %v10504_v22  ;;  %v9533_v22 = vld [vmem:[%s15694_s1 + $0xf4] ss:$28 sps:$4 sm:$0xff]  }
  0xef   :  { %v10511_v24 = vpop.f32.mrf.mxu0  ;;  %v10513_v25 = vpop.f32.mrf.mxu1 }
  0xf0   :  { %15842 = vst [vmem:[#allocation18_spill] sm:$0xff] %v10511_v24  ;;  %15843 = vst [vmem:[#allocation19_spill] sm:$0xff] %v10513_v25  ;;  %9344 = vmatpush3.bf16.msra.mxu1 %v9514_v20 }
  0xf1   :  { %v10515_v28 = vpop.f32.mrf.mxu0  ;;  %v10517_v15 = vpop.f32.mrf.mxu1  ;;  %8353 = vmatprep.subr.msk.bf16.mxu1 %vm291_vm0, %v9518_v23 }
  0xf2   :  { %15844 = vst [vmem:[#allocation20_spill] sm:$0xff] %v10515_v28  ;;  %15845 = vst [vmem:[#allocation21_spill] sm:$0xff] %v10517_v15  ;;  %v9526_v15 = vld [vmem:[%s15694_s1 + $0xec] ss:$28 sps:$4 sm:$0xff]  }
  0xf3   :  { %v10520_v29 = vpop.f32.mrf.mxu0  ;;  %v10522_v30 = vpop.f32.mrf.mxu1  ;;  %8259 = vmatmul.mubr.msk.bf16.gmra.mxu0 %vm251_vm1, %v10118_v41  ;;  %8269 = vmatmul.mubr.msk.bf16.gmra.mxu1 %vm251_vm1, %v10054_v19 }
  0xf4   :  { %15846 = vst [vmem:[#allocation22_spill] sm:$0xff] %v10520_v29  ;;  %15847 = vst [vmem:[#allocation23_spill] sm:$0xff] %v10522_v30  ;;  %1171 = vmatprep.mubr.bf16.mxu0 %v15706_v1  ;;  %1294 = vmatprep.mubr.bf16.mxu1 %v15706_v1 }
  0xf5   :  { %v10530_v34 = vpop.f32.mrf.mxu0  ;;  %v10532_v39 = vpop.f32.mrf.mxu1 }
  0xf6   :  { %15848 = vst [vmem:[#allocation24_spill] sm:$0xff] %v10530_v34  ;;  %15849 = vst [vmem:[#allocation25_spill] sm:$0xff] %v10532_v39 }
  0xf7   :  { %v10534_v9 = vpop.f32.mrf.mxu0  ;;  %v10536_v14 = vpop.f32.mrf.mxu1 }
  0xf8   :  { %15850 = vst [vmem:[#allocation26_spill] sm:$0xff] %v10534_v9  ;;  %15851 = vst [vmem:[#allocation27_spill] sm:$0xff] %v10536_v14 }
  0xf9   :  { %v10538_v20 = vpop.f32.mrf.mxu0  ;;  %v10540_v23 = vpop.f32.mrf.mxu1 }
  0xfa   :  { %15852 = vst [vmem:[#allocation28_spill] sm:$0xff] %v10538_v20  ;;  %15853 = vst [vmem:[#allocation29_spill] sm:$0xff] %v10540_v23 }
  0xfb   :  { %v10542_v52 = vpop.f32.mrf.mxu0  ;;  %v10544_v57 = vpop.f32.mrf.mxu1  ;;  %8260 = vmatmul.mubr.msk.bf16.gmra.mxu0 %vm251_vm1, %v10130_v46  ;;  %8270 = vmatmul.mubr.msk.bf16.gmra.mxu1 %vm251_vm1, %v10089_v31 }
  0xfc   :  { %15854 = vst [vmem:[#allocation30_spill] sm:$0xff] %v10542_v52  ;;  %15855 = vst [vmem:[#allocation31_spill] sm:$0xff] %v10544_v57  ;;  %1181 = vmatprep.mubr.bf16.mxu0 %v15706_v1  ;;  %1304 = vmatprep.mubr.bf16.mxu1 %v15706_v1 }
  0xfd   :  { %v10552_v55 = vpop.f32.mrf.mxu0  ;;  %v10554_v50 = vpop.f32.mrf.mxu1 }
  0xfe   :  { %15856 = vst [vmem:[#allocation32_spill] sm:$0xff] %v10552_v55  ;;  %15857 = vst [vmem:[#allocation33_spill] sm:$0xff] %v10554_v50 }
  0xff   :  { %v10556_v48 = vpop.f32.mrf.mxu0  ;;  %v10558_v44 = vpop.f32.mrf.mxu1 }
 0x100   :  { %15858 = vst [vmem:[#allocation34_spill] sm:$0xff] %v10556_v48  ;;  %15859 = vst [vmem:[#allocation35_spill] sm:$0xff] %v10558_v44 }
 0x101   :  { %v10560_v42 = vpop.f32.mrf.mxu0  ;;  %v10562_v37 = vpop.f32.mrf.mxu1 }
 0x102   :  { %15860 = vst [vmem:[#allocation36_spill] sm:$0xff] %v10560_v42  ;;  %15861 = vst [vmem:[#allocation37_spill] sm:$0xff] %v10562_v37 }
 0x103   :  { %v10564_v33 = vpop.f32.mrf.mxu0  ;;  %v10566_v57 = vpop.f32.mrf.mxu1  ;;  %8261 = vmatmul.mubr.msk.bf16.gmra.mxu0 %vm251_vm1, %v10148_v53  ;;  %8271 = vmatmul.mubr.msk.bf16.gmra.mxu1 %vm251_vm1, %v10100_v35 }
 0x104   :  { %15862 = vst [vmem:[#allocation38_spill] sm:$0xff] %v10564_v33  ;;  %15863 = vst [vmem:[#allocation39_spill] sm:$0xff] %v10566_v57  ;;  %1191 = vmatprep.mubr.bf16.mxu0 %v15706_v1  ;;  %1314 = vmatprep.mubr.bf16.mxu1 %v15706_v1 }
 0x105   :  { %v10574_v50 = vpop.f32.mrf.mxu0  ;;  %v10576_v44 = vpop.f32.mrf.mxu1 }
 0x106   :  { %15864 = vst [vmem:[#allocation40_spill] sm:$0xff] %v10574_v50  ;;  %15865 = vst [vmem:[#allocation41_spill] sm:$0xff] %v10576_v44 }
 0x107   :  { %v10578_v23 = vpop.f32.mrf.mxu0  ;;  %v10580_v37 = vpop.f32.mrf.mxu1 }
 0x108   :  { %15866 = vst [vmem:[#allocation42_spill] sm:$0xff] %v10578_v23  ;;  %15867 = vst [vmem:[#allocation43_spill] sm:$0xff] %v10580_v37 }
 0x109   :  { %v10582_v14 = vpop.f32.mrf.mxu0  ;;  %v10584_v57 = vpop.f32.mrf.mxu1 }
 0x10a   :  { %15868 = vst [vmem:[#allocation44_spill] sm:$0xff] %v10582_v14  ;;  %15869 = vst [vmem:[#allocation45_spill] sm:$0xff] %v10584_v57 }
 0x10b   :  { %v10586_v39 = vpop.f32.mrf.mxu0  ;;  %v10588_v30 = vpop.f32.mrf.mxu1  ;;  %8262 = vmatmul.mubr.msk.bf16.gmra.mxu0 %vm251_vm1, %v10150_v54  ;;  %8272 = vmatmul.mubr.msk.bf16.gmra.mxu1 %vm251_vm1, %v10110_v38 }
 0x10c   :  { %15870 = vst [vmem:[#allocation46_spill] sm:$0xff] %v10586_v39  ;;  %15871 = vst [vmem:[#allocation47_spill] sm:$0xff] %v10588_v30  ;;  %1201 = vmatprep.mubr.bf16.mxu0 %v15706_v1  ;;  %1324 = vmatprep.mubr.bf16.mxu1 %v15706_v1 }
 0x10d   :  { %v10596_v44 = vpop.f32.mrf.mxu0  ;;  %v10598_v37 = vpop.f32.mrf.mxu1 }
 0x10e   :  { %15872 = vst [vmem:[#allocation48_spill] sm:$0xff] %v10596_v44  ;;  %15873 = vst [vmem:[#allocation49_spill] sm:$0xff] %v10598_v37 }
 0x10f   :  { %v10600_v14 = vpop.f32.mrf.mxu0  ;;  %v10602_v57 = vpop.f32.mrf.mxu1 }
 0x110   :  { %15874 = vst [vmem:[#allocation50_spill] sm:$0xff] %v10600_v14  ;;  %15875 = vst [vmem:[#allocation51_spill] sm:$0xff] %v10602_v57 }
 0x111   :  { %v10604_v39 = vpop.f32.mrf.mxu0  ;;  %v10606_v30 = vpop.f32.mrf.mxu1 }
 0x112   :  { %15876 = vst [vmem:[#allocation52_spill] sm:$0xff] %v10604_v39  ;;  %15877 = vst [vmem:[#allocation53_spill] sm:$0xff] %v10606_v30 }
 0x113   :  { %v10608_v23 = vpop.f32.mrf.mxu0  ;;  %v10610_v50 = vpop.f32.mrf.mxu1  ;;  %8263 = vmatmul.mubr.msk.bf16.gmra.mxu0 %vm251_vm1, %v10165_v58  ;;  %8273 = vmatmul.mubr.msk.bf16.gmra.mxu1 %vm251_vm1, %v10118_v41 }
 0x114   :  { %15878 = vst [vmem:[#allocation54_spill] sm:$0xff] %v10608_v23  ;;  %15879 = vst [vmem:[#allocation55_spill] sm:$0xff] %v10610_v50  ;;  %1211 = vmatprep.mubr.bf16.mxu0 %v15706_v1  ;;  %1334 = vmatprep.mubr.bf16.mxu1 %v15706_v1 }
 0x115   :  { %v10618_v37 = vpop.f32.mrf.mxu0  ;;  %v10620_v57 = vpop.f32.mrf.mxu1 }
 0x116   :  { %15880 = vst [vmem:[#allocation56_spill] sm:$0xff] %v10618_v37  ;;  %15881 = vst [vmem:[#allocation57_spill] sm:$0xff] %v10620_v57 }
 0x117   :  { %v10622_v39 = vpop.f32.mrf.mxu0  ;;  %v10624_v30 = vpop.f32.mrf.mxu1 }
 0x118   :  { %15882 = vst [vmem:[#allocation58_spill] sm:$0xff] %v10622_v39  ;;  %15883 = vst [vmem:[#allocation59_spill] sm:$0xff] %v10624_v30 }
 0x119   :  { %v10626_v23 = vpop.f32.mrf.mxu0  ;;  %v10628_v50 = vpop.f32.mrf.mxu1 }
 0x11a   :  { %15884 = vst [vmem:[#allocation60_spill] sm:$0xff] %v10626_v23  ;;  %15885 = vst [vmem:[#allocation61_spill] sm:$0xff] %v10628_v50 }
 0x11b   :  { %v10630_v14 = vpop.f32.mrf.mxu0  ;;  %v10632_v44 = vpop.f32.mrf.mxu1  ;;  %8264 = vmatmul.mubr.msk.bf16.gmra.mxu0 %vm251_vm1, %v10175_v61  ;;  %8274 = vmatmul.mubr.msk.bf16.gmra.mxu1 %vm251_vm1, %v10130_v46 }
 0x11c   :  { %15886 = vst [vmem:[#allocation62_spill] sm:$0xff] %v10630_v14  ;;  %15887 = vst [vmem:[#allocation63_spill] sm:$0xff] %v10632_v44  ;;  %1221 = vmatprep.mubr.bf16.mxu0 %v15706_v1  ;;  %1344 = vmatprep.mubr.bf16.mxu1 %v15706_v1 }
 0x11d   :  { %v10640_v57 = vpop.f32.mrf.mxu0  ;;  %v10642_v30 = vpop.f32.mrf.mxu1 }
 0x11e   :  { %15888 = vst [vmem:[#allocation64_spill] sm:$0xff] %v10640_v57  ;;  %15889 = vst [vmem:[#allocation65_spill] sm:$0xff] %v10642_v30 }
 0x11f   :  { %v10644_v23 = vpop.f32.mrf.mxu0  ;;  %v10646_v50 = vpop.f32.mrf.mxu1 }
 0x120   :  { %15890 = vst [vmem:[#allocation66_spill] sm:$0xff] %v10644_v23  ;;  %15891 = vst [vmem:[#allocation67_spill] sm:$0xff] %v10646_v50 }
 0x121   :  { %v10648_v14 = vpop.f32.mrf.mxu0  ;;  %v10650_v44 = vpop.f32.mrf.mxu1 }
 0x122   :  { %15892 = vst [vmem:[#allocation68_spill] sm:$0xff] %v10648_v14  ;;  %15893 = vst [vmem:[#allocation69_spill] sm:$0xff] %v10650_v44 }
 0x123   :  { %v10652_v39 = vpop.f32.mrf.mxu1  ;;  %v10654_v37 = vpop.f32.mrf.mxu0  ;;  %8265 = vmatmul.mubr.msk.bf16.gmra.mxu0 %vm251_vm1, %v10178_v62  ;;  %8275 = vmatmul.mubr.msk.bf16.gmra.mxu1 %vm251_vm1, %v10148_v53 }
 0x124   :  { %15894 = vst [vmem:[#allocation70_spill] sm:$0xff] %v10652_v39  ;;  %15895 = vst [vmem:[#allocation71_spill] sm:$0xff] %v10654_v37  ;;  %1231 = vmatprep.mubr.bf16.mxu0 %v15706_v1  ;;  %1354 = vmatprep.mubr.bf16.mxu1 %v15706_v1 }
 0x125   :  { %v10662_v30 = vpop.f32.mrf.mxu1  ;;  %v10664_v50 = vpop.f32.mrf.mxu0 }
 0x126   :  { %15896 = vst [vmem:[#allocation72_spill] sm:$0xff] %v10662_v30  ;;  %15897 = vst [vmem:[#allocation73_spill] sm:$0xff] %v10664_v50 }
 0x127   :  { %v10666_v14 = vpop.f32.mrf.mxu1  ;;  %v10668_v44 = vpop.f32.mrf.mxu0 }
 0x128   :  { %15898 = vst [vmem:[#allocation74_spill] sm:$0xff] %v10666_v14  ;;  %15899 = vst [vmem:[#allocation75_spill] sm:$0xff] %v10668_v44 }
 0x129   :  { %v10670_v39 = vpop.f32.mrf.mxu1  ;;  %v10672_v37 = vpop.f32.mrf.mxu0 }
 0x12a   :  { %15900 = vst [vmem:[#allocation76_spill] sm:$0xff] %v10670_v39  ;;  %15901 = vst [vmem:[#allocation77_spill] sm:$0xff] %v10672_v37 }
 0x12b   :  { %v10674_v23 = vpop.f32.mrf.mxu1  ;;  %v10676_v57 = vpop.f32.mrf.mxu0  ;;  %8266 = vmatmul.mubr.msk.bf16.gmra.mxu0 %vm251_vm1, %v10072_v26  ;;  %8276 = vmatmul.mubr.msk.bf16.gmra.mxu1 %vm251_vm1, %v10150_v54 }
 0x12c   :  { %15902 = vst [vmem:[#allocation78_spill] sm:$0xff] %v10674_v23  ;;  %15903 = vst [vmem:[#allocation79_spill] sm:$0xff] %v10676_v57  ;;  %1364 = vmatprep.mubr.bf16.mxu1 %v15706_v1  ;;  %1437 = vmatprep.mubr.bf16.mxu0 %v15706_v1  ;;  %v9517_v23 = vld [vmem:[%s15694_s1 + $0x118] ss:$28 sps:$4 sm:$0x3f]  }
 0x12d   :  { %v10684_v14 = vpop.f32.mrf.mxu1  ;;  %v10686_v44 = vpop.f32.mrf.mxu0  ;;  %v1795_v30 = vsel %vm291_vm0, %v9517_v23, 0  ;;  %v9523_v1 = vld [vmem:[%s15694_s1 + $0xe4] ss:$28 sps:$4 sm:$0xff]  }
 0x12e   :  { %15904 = vst [vmem:[#allocation80_spill] sm:$0xff] %v10684_v14  ;;  %15905 = vst [vmem:[#allocation81_spill] sm:$0xff] %v10686_v44  ;;  %v9521_v23 = vld [vmem:[%s15694_s1 + $0xe0] ss:$28 sps:$4 sm:$0xff]  }
 0x12f   :  { %v10691_v37 = vpop.f32.mrf.mxu1  ;;  %v10693_v57 = vpop.f32.mrf.mxu0 }
 0x130   :  { %15906 = vst [vmem:[#allocation82_spill] sm:$0xff] %v10691_v37  ;;  %15907 = vst [vmem:[#allocation83_spill] sm:$0xff] %v10693_v57 }
 0x131   :  { %v10695_v39 = vpop.f32.mrf.mxu1  ;;  %v10697_v50 = vpop.f32.mrf.mxu0 }
 0x132   :  { %15908 = vst [vmem:[#allocation84_spill] sm:$0xff] %v10695_v39  ;;  %15909 = vst [vmem:[#allocation85_spill] sm:$0xff] %v10697_v50  ;;  %v15912_v39 = vmov 0  }
 0x133   :  { %v10703_v14 = vpop.f32.mrf.mxu1  ;;  %v10705_v44 = vpop.f32.mrf.mxu0  ;;  %8277 = vmatmul.mubr.msk.bf16.gmra.mxu1 %vm251_vm1, %v10165_v58  ;;  %8282 = vmatmul.mubr.msk.bf16.vlgmr.msra.gmra.mxu0 %vm251_vm1, %v10029_v10 }
 0x134   :  { %15910 = vst [vmem:[#allocation86_spill] sm:$0xff] %v10703_v14  ;;  %15911 = vst [vmem:[#allocation87_spill] sm:$0xff] %v10705_v44  ;;  %1828 = vmatpush1.bf16.msra.mxu0 %v1795_v30  ;;  %1374 = vmatprep.mubr.bf16.mxu1 %v15912_v39  ;;  %v9527_v44 = vld [vmem:[%s15694_s1 + $0x12c] ss:$28 sps:$4 sm:$0x3f]  }
 0x135   :  { %v10715_v50 = vpop.f32.mrf.mxu1  ;;  %v10717_v57 = vpop.f32.mrf.mxu0  ;;  %1447 = vmatprep.mubr.bf16.mxu0 %v15912_v39  ;;  %1829 = vmatprep.subr.bf16.mxu0 %v9523_v1 }
 0x136   :  { %15913 = vst [vmem:[#allocation88_spill] sm:$0xff] %v10715_v50  ;;  %15914 = vst [vmem:[#allocation89_spill] sm:$0xff] %v10717_v57 }
 0x137   :  { %v10723_v14 = vpop.f32.mrf.mxu1  ;;  %v10725_v30 = vpop.f32.mrf.mxu0 }
 0x138   :  { %15915 = vst [vmem:[#allocation90_spill] sm:$0xff] %v10723_v14  ;;  %15916 = vst [vmem:[#allocation91_spill] sm:$0xff] %v10725_v30  ;;  %1830 = vmatpush1.bf16.msra.mxu0 %v9521_v23 }
 0x139   :  { %v10727_v37 = vpop.f32.mrf.mxu1  ;;  %v10729_v33 = vpop.f32.mrf.mxu0  ;;  %8367 = vmatprep.subr.msk.bf16.mxu0 %vm291_vm0, %v9527_v44 }
 0x13a   :  { %15917 = vst [vmem:[#allocation92_spill] sm:$0xff] %v10727_v37  ;;  %15918 = vst [vmem:[#allocation93_spill] sm:$0xff] %v10729_v33 }
 0x13b   :  { %v10732_v50 = vpop.f32.mrf.mxu1  ;;  %v10734_v57 = vpop.f32.mrf.mxu0  ;;  %8278 = vmatmul.mubr.msk.bf16.gmra.mxu1 %vm251_vm1, %v10175_v61  ;;  %8283 = vmatmul.mubr.msk.bf16.gmra.mxu0 %vm251_vm1, %v10054_v19 }
 0x13c   :  { %15919 = vst [vmem:[#allocation94_spill] sm:$0xff] %v10732_v50  ;;  %15920 = vst [vmem:[#allocation95_spill] sm:$0xff] %v10734_v57  ;;  %1384 = vmatprep.mubr.bf16.mxu1 %v15912_v39  ;;  %1457 = vmatprep.mubr.bf16.mxu0 %v15912_v39 }
 0x13d   :  { %v10742_v1 = vpop.f32.mrf.mxu1  ;;  %v10744_v23 = vpop.f32.mrf.mxu0 }
 0x13e   :  { %15921 = vst [vmem:[#allocation96_spill] sm:$0xff] %v10742_v1  ;;  %15922 = vst [vmem:[#allocation97_spill] sm:$0xff] %v10744_v23 }
 0x13f   :  { %v10746_v33 = vpop.f32.mrf.mxu1  ;;  %v10748_v44 = vpop.f32.mrf.mxu0 }
 0x140   :  { %15923 = vst [vmem:[#allocation98_spill] sm:$0xff] %v10746_v33  ;;  %15924 = vst [vmem:[#allocation99_spill] sm:$0xff] %v10748_v44 }
 0x141   :  { %v10750_v50 = vpop.f32.mrf.mxu1  ;;  %v10752_v57 = vpop.f32.mrf.mxu0 }
 0x142   :  { %15925 = vst [vmem:[#allocation100_spill] sm:$0xff] %v10750_v50  ;;  %15926 = vst [vmem:[#allocation101_spill] sm:$0xff] %v10752_v57 }
 0x143   :  { %v10754_v37 = vpop.f32.mrf.mxu0  ;;  %v10756_v30 = vpop.f32.mrf.mxu1  ;;  %8279 = vmatmul.mubr.msk.bf16.gmra.mxu1 %vm251_vm1, %v10178_v62  ;;  %8284 = vmatmul.mubr.msk.bf16.gmra.mxu0 %vm251_vm1, %v10089_v31 }
 0x144   :  { %15927 = vst [vmem:[#allocation102_spill] sm:$0xff] %v10754_v37  ;;  %15928 = vst [vmem:[#allocation103_spill] sm:$0xff] %v10756_v30  ;;  %1394 = vmatprep.mubr.bf16.mxu1 %v15912_v39  ;;  %1467 = vmatprep.mubr.bf16.mxu0 %v15912_v39 }
 0x145   :  { %v10764_v33 = vpop.f32.mrf.mxu0  ;;  %v9291_v44 = vpop.f32.mrf.mxu1 }
 0x146   :  { %15929 = vst [vmem:[#allocation104_spill] sm:$0xff] %v10764_v33  ;;  %v15935_v44 = vmov 0.0  }
 0x147   :  { %v10766_v50 = vpop.f32.mrf.mxu0  ;;  %v10768_v57 = vpop.f32.mrf.mxu1 }
 0x148   :  { %15930 = vst [vmem:[#allocation105_spill] sm:$0xff] %v10766_v50  ;;  %15931 = vst [vmem:[#allocation106_spill] sm:$0xff] %v10768_v57 }
 0x149   :  { %v10770_v37 = vpop.f32.mrf.mxu0  ;;  %v9292_v30 = vpop.f32.mrf.mxu1 }
 0x14a   :  { %15932 = vst [vmem:[#allocation107_spill] sm:$0xff] %v10770_v37  ;;  %v9520_v30 = vld [vmem:[%s15694_s1 + $0x120] ss:$28 sps:$4 sm:$0x3f]  }
 0x14b   :  { %v10772_v23 = vpop.f32.mrf.mxu0  ;;  %v10774_v1 = vpop.f32.mrf.mxu1  ;;  %8280 = vmatmul.mubr.msk.bf16.gmra.mxu1 %vm251_vm1, %v10072_v26  ;;  %8285 = vmatmul.mubr.msk.bf16.gmra.mxu0 %vm251_vm1, %v10100_v35  ;;  %v1801_v14 = vsel %vm291_vm0, %v9520_v30, 0 }
 0x14c   :  { %15933 = vst [vmem:[#allocation108_spill] sm:$0xff] %v10772_v23  ;;  %15934 = vst [vmem:[#allocation109_spill] sm:$0xff] %v10774_v1  ;;  %1477 = vmatprep.mubr.bf16.mxu0 %v15912_v39  ;;  %9345 = vmatprep.mubr.msk.bf16.mxu1 %vm9944_vm2, %v15935_v44 }
 0x14d   :  { %v10783_v50 = vpop.f32.mrf.mxu0  ;;  %v9295_v57 = vpop.f32.mrf.mxu1 }
 0x14e   :  { %15936 = vst [vmem:[#allocation110_spill] sm:$0xff] %v10783_v50 }
 0x14f   :  { %v10788_v23 = vpop.f32.mrf.mxu0  ;;  %v10790_v1 = vpop.f32.mrf.mxu1 }
 0x150   :  { %15937 = vst [vmem:[#allocation111_spill] sm:$0xff] %v10788_v23  ;;  %15938 = vst [vmem:[#allocation112_spill] sm:$0xff] %v10790_v1 }
 0x151   :  { %v10792_v37 = vpop.f32.mrf.mxu0  ;;  %v9296_v33 = vpop.f32.mrf.mxu1 }
 0x152   :  { %15939 = vst [vmem:[#allocation113_spill] sm:$0xff] %v10792_v37  ;;  %v9524_v33 = vld [vmem:[%s15694_s1 + $0xe8] ss:$28 sps:$4 sm:$0xff]  }
 0x153   :  { %v10798_v42 = vpop.f32.mrf.mxu0  ;;  %v10800_v57 = vpop.f32.mrf.mxu1  ;;  %8286 = vmatmul.mubr.msk.bf16.gmra.mxu0 %vm251_vm1, %v10110_v38  ;;  %9346 = vmatmul.mubr.msk.bf16.vlgmr.msra.gmra.mxu1 %vm251_vm1, %v10029_v10 }
 0x154   :  { %15940 = vst [vmem:[#allocation114_spill] sm:$0xff] %v10798_v42  ;;  %15941 = vst [vmem:[#allocation115_spill] sm:$0xff] %v10800_v57  ;;  %1991 = vmatpush1.bf16.msra.mxu1 %v1801_v14  ;;  %1487 = vmatprep.mubr.bf16.mxu0 %v15912_v39 }
 0x155   :  { %v10810_v30 = vpop.f32.mrf.mxu0  ;;  %v9299_v37 = vpop.f32.mrf.mxu1  ;;  %9349 = vmatprep.mubr.msk.bf16.mxu1 %vm9944_vm2, %v15935_v44  ;;  %1992 = vmatprep.subr.bf16.mxu1 %v9526_v15 }
 0x156   :  { %15942 = vst [vmem:[#allocation116_spill] sm:$0xff] %v10810_v30 }
 0x157   :  { %v10814_v57 = vpop.f32.mrf.mxu0  ;;  %v10816_v42 = vpop.f32.mrf.mxu1 }
 0x158   :  { %15943 = vst [vmem:[#allocation117_spill] sm:$0xff] %v10814_v57  ;;  %15944 = vst [vmem:[#allocation118_spill] sm:$0xff] %v10816_v42  ;;  %1993 = vmatpush1.bf16.msra.mxu1 %v9524_v33 }
 0x159   :  { %v10818_v10 = vpop.f32.mrf.mxu0  ;;  %v9300_v14 = vpop.f32.mrf.mxu1  ;;  %9397 = vmatprep.subr.bf16.mxu1 %v15935_v44 }
 0x15a   :  { %15945 = vst [vmem:[#allocation119_spill] sm:$0xff] %v10818_v10 }
 0x15b   :  { %v10821_v1 = vpop.f32.mrf.mxu0  ;;  %v10823_v23 = vpop.f32.mrf.mxu1  ;;  %8287 = vmatmul.mubr.msk.bf16.gmra.mxu0 %vm251_vm1, %v10118_v41  ;;  %9350 = vmatmul.mubr.msk.bf16.gmra.mxu1 %vm251_vm1, %v10054_v19 }
 0x15c   :  { %15946 = vst [vmem:[#allocation120_spill] sm:$0xff] %v10821_v1  ;;  %15947 = vst [vmem:[#allocation121_spill] sm:$0xff] %v10823_v23  ;;  %1497 = vmatprep.mubr.bf16.mxu0 %v15912_v39  ;;  %9353 = vmatprep.mubr.msk.bf16.mxu1 %vm9944_vm2, %v15935_v44 }
 0x15d   :  { %v10832_v37 = vpop.f32.mrf.mxu0  ;;  %v9303_v15 = vpop.f32.mrf.mxu1 }
 0x15e   :  { %15948 = vst [vmem:[#allocation122_spill] sm:$0xff] %v10832_v37 }
 0x15f   :  { %v10834_v33 = vpop.f32.mrf.mxu0  ;;  %v10836_v14 = vpop.f32.mrf.mxu1 }
 0x160   :  { %15949 = vst [vmem:[#allocation123_spill] sm:$0xff] %v10834_v33  ;;  %15950 = vst [vmem:[#allocation124_spill] sm:$0xff] %v10836_v14 }
 0x161   :  { %v10838_v1 = vpop.f32.mrf.mxu0  ;;  %v9304_v23 = vpop.f32.mrf.mxu1 }
 0x162   :  { %15951 = vst [vmem:[#allocation125_spill] sm:$0xff] %v10838_v1 }
 0x163   :  { %v10840_v10 = vpop.f32.mrf.mxu0  ;;  %v10842_v42 = vpop.f32.mrf.mxu1  ;;  %8288 = vmatmul.mubr.msk.bf16.gmra.mxu0 %vm251_vm1, %v10130_v46  ;;  %9354 = vmatmul.mubr.msk.bf16.gmra.mxu1 %vm251_vm1, %v10089_v31 }
 0x164   :  { %15952 = vst [vmem:[#allocation126_spill] sm:$0xff] %v10840_v10  ;;  %15953 = vst [vmem:[#allocation127_spill] sm:$0xff] %v10842_v42  ;;  %1507 = vmatprep.mubr.bf16.mxu0 %v15912_v39  ;;  %9357 = vmatprep.mubr.msk.bf16.mxu1 %vm9944_vm2, %v15935_v44 }
 0x165   :  { %v10851_v15 = vpop.f32.mrf.mxu0  ;;  %v9307_v14 = vpop.f32.mrf.mxu1 }
 0x166   :  { %15954 = vst [vmem:[#allocation128_spill] sm:$0xff] %v10851_v15 }
 0x167   :  { %v10853_v1 = vpop.f32.mrf.mxu0  ;;  %v10855_v23 = vpop.f32.mrf.mxu1 }
 0x168   :  { %15955 = vst [vmem:[#allocation129_spill] sm:$0xff] %v10853_v1  ;;  %15956 = vst [vmem:[#allocation130_spill] sm:$0xff] %v10855_v23 }
 0x169   :  { %v10857_v10 = vpop.f32.mrf.mxu0  ;;  %v9308_v42 = vpop.f32.mrf.mxu1 }
 0x16a   :  { %15957 = vst [vmem:[#allocation131_spill] sm:$0xff] %v10857_v10 }
 0x16b   :  { %v10859_v33 = vpop.f32.mrf.mxu0  ;;  %v10861_v37 = vpop.f32.mrf.mxu1  ;;  %8289 = vmatmul.mubr.msk.bf16.gmra.mxu0 %vm251_vm1, %v10148_v53  ;;  %9358 = vmatmul.mubr.msk.bf16.gmra.mxu1 %vm251_vm1, %v10100_v35 }
 0x16c   :  { %15958 = vst [vmem:[#allocation132_spill] sm:$0xff] %v10859_v33  ;;  %15959 = vst [vmem:[#allocation133_spill] sm:$0xff] %v10861_v37  ;;  %1517 = vmatprep.mubr.bf16.mxu0 %v15912_v39  ;;  %9361 = vmatprep.mubr.msk.bf16.mxu1 %vm9944_vm2, %v15935_v44 }
 0x16d   :  { %v10870_v14 = vpop.f32.mrf.mxu0  ;;  %v9311_v23 = vpop.f32.mrf.mxu1 }
 0x16e   :  { %15960 = vst [vmem:[#allocation134_spill] sm:$0xff] %v10870_v14 }
 0x16f   :  { %v10872_v10 = vpop.f32.mrf.mxu0  ;;  %v10874_v42 = vpop.f32.mrf.mxu1 }
 0x170   :  { %15961 = vst [vmem:[#allocation135_spill] sm:$0xff] %v10872_v10  ;;  %15962 = vst [vmem:[#allocation136_spill] sm:$0xff] %v10874_v42 }
 0x171   :  { %v10876_v33 = vpop.f32.mrf.mxu0  ;;  %v9312_v37 = vpop.f32.mrf.mxu1 }
 0x172   :  { %15963 = vst [vmem:[#allocation137_spill] sm:$0xff] %v10876_v33 }
 0x173   :  { %v10878_v1 = vpop.f32.mrf.mxu0  ;;  %v10880_v15 = vpop.f32.mrf.mxu1  ;;  %8290 = vmatmul.mubr.msk.bf16.gmra.mxu0 %vm251_vm1, %v10150_v54  ;;  %9362 = vmatmul.mubr.msk.bf16.gmra.mxu1 %vm251_vm1, %v10110_v38 }
 0x174   :  { %15964 = vst [vmem:[#allocation138_spill] sm:$0xff] %v10878_v1  ;;  %15965 = vst [vmem:[#allocation139_spill] sm:$0xff] %v10880_v15  ;;  %1527 = vmatprep.mubr.bf16.mxu0 %v15912_v39  ;;  %9365 = vmatprep.mubr.msk.bf16.mxu1 %vm9944_vm2, %v15935_v44 }
 0x175   :  { %v10889_v23 = vpop.f32.mrf.mxu0  ;;  %v9315_v42 = vpop.f32.mrf.mxu1 }
 0x176   :  { %15966 = vst [vmem:[#allocation140_spill] sm:$0xff] %v10889_v23 }
 0x177   :  { %v10891_v33 = vpop.f32.mrf.mxu0  ;;  %v10893_v37 = vpop.f32.mrf.mxu1 }
 0x178   :  { %15967 = vst [vmem:[#allocation141_spill] sm:$0xff] %v10891_v33  ;;  %15968 = vst [vmem:[#allocation142_spill] sm:$0xff] %v10893_v37 }
 0x179   :  { %v10895_v1 = vpop.f32.mrf.mxu0  ;;  %v9316_v15 = vpop.f32.mrf.mxu1 }
 0x17a   :  { %15969 = vst [vmem:[#allocation143_spill] sm:$0xff] %v10895_v1 }
 0x17b   :  { %v10897_v10 = vpop.f32.mrf.mxu0  ;;  %v10899_v14 = vpop.f32.mrf.mxu1  ;;  %8291 = vmatmul.mubr.msk.bf16.gmra.mxu0 %vm251_vm1, %v10165_v58  ;;  %9366 = vmatmul.mubr.msk.bf16.gmra.mxu1 %vm251_vm1, %v10118_v41 }
 0x17c   :  { %15970 = vst [vmem:[#allocation144_spill] sm:$0xff] %v10897_v10  ;;  %15971 = vst [vmem:[#allocation145_spill] sm:$0xff] %v10899_v14  ;;  %1537 = vmatprep.mubr.bf16.mxu0 %v15912_v39  ;;  %9369 = vmatprep.mubr.msk.bf16.mxu1 %vm9944_vm2, %v15935_v44 }
 0x17d   :  { %v10908_v42 = vpop.f32.mrf.mxu0  ;;  %v9319_v37 = vpop.f32.mrf.mxu1 }
 0x17e   :  { %15972 = vst [vmem:[#allocation146_spill] sm:$0xff] %v10908_v42 }
 0x17f   :  { %v10910_v1 = vpop.f32.mrf.mxu0  ;;  %v10912_v15 = vpop.f32.mrf.mxu1 }
 0x180   :  { %15973 = vst [vmem:[#allocation147_spill] sm:$0xff] %v10910_v1  ;;  %15974 = vst [vmem:[#allocation148_spill] sm:$0xff] %v10912_v15 }
 0x181   :  { %v10914_v10 = vpop.f32.mrf.mxu0  ;;  %v9320_v14 = vpop.f32.mrf.mxu1 }
 0x182   :  { %15975 = vst [vmem:[#allocation149_spill] sm:$0xff] %v10914_v10 }
 0x183   :  { %v10916_v33 = vpop.f32.mrf.mxu0  ;;  %v10918_v23 = vpop.f32.mrf.mxu1  ;;  %8292 = vmatmul.mubr.msk.bf16.gmra.mxu0 %vm251_vm1, %v10175_v61  ;;  %9370 = vmatmul.mubr.msk.bf16.gmra.mxu1 %vm251_vm1, %v10130_v46 }
 0x184   :  { %15976 = vst [vmem:[#allocation150_spill] sm:$0xff] %v10916_v33  ;;  %15977 = vst [vmem:[#allocation151_spill] sm:$0xff] %v10918_v23  ;;  %1547 = vmatprep.mubr.bf16.mxu0 %v15912_v39  ;;  %9373 = vmatprep.mubr.msk.bf16.mxu1 %vm9944_vm2, %v15935_v44 }
 0x185   :  { %v10927_v37 = vpop.f32.mrf.mxu0  ;;  %v9323_v42 = vpop.f32.mrf.mxu1 }
 0x186   :  { %15978 = vst [vmem:[#allocation152_spill] sm:$0xff] %v10927_v37 }
 0x187   :  { %v10929_v10 = vpop.f32.mrf.mxu0  ;;  %v10931_v14 = vpop.f32.mrf.mxu1 }
 0x188   :  { %15979 = vst [vmem:[#allocation153_spill] sm:$0xff] %v10929_v10  ;;  %15980 = vst [vmem:[#allocation154_spill] sm:$0xff] %v10931_v14 }
 0x189   :  { %v10933_v33 = vpop.f32.mrf.mxu0  ;;  %v9324_v23 = vpop.f32.mrf.mxu1 }
 0x18a   :  { %15981 = vst [vmem:[#allocation155_spill] sm:$0xff] %v10933_v33 }
 0x18b   :  { %v10935_v15 = vpop.f32.mrf.mxu1  ;;  %v10937_v1 = vpop.f32.mrf.mxu0  ;;  %8293 = vmatmul.mubr.msk.bf16.gmra.mxu0 %vm251_vm1, %v10178_v62  ;;  %9374 = vmatmul.mubr.msk.bf16.gmra.mxu1 %vm251_vm1, %v10148_v53 }
 0x18c   :  { %15982 = vst [vmem:[#allocation156_spill] sm:$0xff] %v10935_v15  ;;  %1557 = vmatprep.mubr.bf16.mxu0 %v15912_v39  ;;  %9377 = vmatprep.mubr.msk.bf16.mxu1 %vm9944_vm2, %v15935_v44 }
 0x18d   :  { %v9327_v42 = vpop.f32.mrf.mxu1  ;;  %v10946_v37 = vpop.f32.mrf.mxu0 }
 0x18f   :  { %v10948_v33 = vpop.f32.mrf.mxu1  ;;  %v10950_v23 = vpop.f32.mrf.mxu0 }
 0x190   :  { %15983 = vst [vmem:[#allocation157_spill] sm:$0xff] %v10948_v33 }
 0x191   :  { %v9328_v15 = vpop.f32.mrf.mxu1  ;;  %v10952_v14 = vpop.f32.mrf.mxu0 }
 0x192   :  { %v9529_v15 = vld [vmem:[%s15694_s1 + $0x128] ss:$28 sps:$4 sm:$0x3f]  }
 0x193   :  { %v10954_v10 = vpop.f32.mrf.mxu1  ;;  %v10956_v57 = vpop.f32.mrf.mxu0  ;;  %8294 = vmatmul.mubr.msk.bf16.gmra.mxu0 %vm251_vm1, %v10072_v26  ;;  %9378 = vmatmul.mubr.msk.bf16.gmra.mxu1 %vm251_vm1, %v10150_v54  ;;  %v1807_v48 = vsel %vm291_vm0, %v9529_v15, 0 }
 0x194   :  { %15984 = vst [vmem:[#allocation158_spill] sm:$0xff] %v10954_v10  ;;  %9381 = vmatprep.mubr.msk.bf16.mxu1 %vm9944_vm2, %v15935_v44  ;;  %1847 = vmatprep.mubr.bf16.mxu0 %v15912_v39 }
 0x195   :  { %v9331_v42 = vpop.f32.mrf.mxu1  ;;  %v10965_v33 = vpop.f32.mrf.mxu0 }
 0x197   :  { %v10970_v10 = vpop.f32.mrf.mxu1  ;;  %v10972_v30 = vpop.f32.mrf.mxu0 }
 0x198   :  { %15985 = vst [vmem:[#allocation159_spill] sm:$0xff] %v10970_v10 }
 0x199   :  { %v9332_v50 = vpop.f32.mrf.mxu1  ;;  %v10974_v25 = vpop.f32.mrf.mxu0 }
 0x19a   :  { %v9531_v50 = vld [vmem:[%s15694_s1 + $0xf0] ss:$28 sps:$4 sm:$0xff]  }
 0x19b   :  { %v10980_v42 = vpop.f32.mrf.mxu1  ;;  %v10982_v55 = vpop.f32.mrf.mxu0  ;;  %9382 = vmatmul.mubr.msk.bf16.gmra.mxu1 %vm251_vm1, %v10165_v58  ;;  %8340 = vmatmul.mubr.msk.bf16.vlgmr.msra.gmra.mxu0 %vm251_vm1, %v10054_v19 }
 0x19c   :  { %15986 = vst [vmem:[#allocation160_spill] sm:$0xff] %v10980_v42  ;;  %2154 = vmatpush1.bf16.msra.mxu0 %v1807_v48  ;;  %9385 = vmatprep.mubr.msk.bf16.mxu1 %vm9944_vm2, %v15935_v44 }
 0x19d   :  { %v9335_v15 = vpop.f32.mrf.mxu1  ;;  %v10993_v10 = vpop.f32.mrf.mxu0  ;;  %1857 = vmatprep.mubr.bf16.mxu0 %v15912_v39  ;;  %2155 = vmatprep.subr.bf16.mxu0 %v9533_v22 }
 0x19f   :  { %v10996_v42 = vpop.f32.mrf.mxu1  ;;  %v10998_v18 = vpop.f32.mrf.mxu0 }
 0x1a0   :  { %15987 = vst [vmem:[#allocation161_spill] sm:$0xff] %v10996_v42  ;;  %2156 = vmatpush1.bf16.msra.mxu0 %v9531_v50 }
 0x1a1   :  { %v9336_v52 = vpop.f32.mrf.mxu1  ;;  %v11000_v48 = vpop.f32.mrf.mxu0 }
 0x1a3   :  { %v11002_v13 = vpop.f32.mrf.mxu1  ;;  %v11004_v20 = vpop.f32.mrf.mxu0  ;;  %9386 = vmatmul.mubr.msk.bf16.gmra.mxu1 %vm251_vm1, %v10175_v61  ;;  %8341 = vmatmul.mubr.msk.bf16.gmra.mxu0 %vm251_vm1, %v10089_v31 }
 0x1a4   :  { %15988 = vst [vmem:[#allocation162_spill] sm:$0xff] %v11002_v13  ;;  %9389 = vmatprep.mubr.msk.bf16.mxu1 %vm9944_vm2, %v15935_v44  ;;  %1867 = vmatprep.mubr.bf16.mxu0 %v15912_v39 }
 0x1a5   :  { %v9339_v22 = vpop.f32.mrf.mxu1  ;;  %v11013_v50 = vpop.f32.mrf.mxu0 }
 0x1a7   :  { %v11015_v52 = vpop.f32.mrf.mxu1  ;;  %v11017_v15 = vpop.f32.mrf.mxu0 }
 0x1a8   :  { %15989 = vst [vmem:[#allocation163_spill] sm:$0xff] %v11015_v52 }
 0x1a9   :  { %v9340_v13 = vpop.f32.mrf.mxu1  ;;  %v11019_v42 = vpop.f32.mrf.mxu0 }
 0x1ab   :  { %v11021_v12 = vpop.f32.mrf.mxu0  ;;  %v11023_v9 = vpop.f32.mrf.mxu1  ;;  %9390 = vmatmul.mubr.msk.bf16.gmra.mxu1 %vm251_vm1, %v10178_v62  ;;  %8342 = vmatmul.mubr.msk.bf16.gmra.mxu0 %vm251_vm1, %v10100_v35 }
 0x1ac   :  { %9393 = vmatprep.mubr.msk.bf16.mxu1 %vm9944_vm2, %v15935_v44  ;;  %1877 = vmatprep.mubr.bf16.mxu0 %v15912_v39 }
 0x1ad   :  { %v11032_v22 = vpop.f32.mrf.mxu0  ;;  %v11034_v13 = vpop.f32.mrf.mxu1 }
 0x1ae   :  { %15990 = vst [vmem:[#allocation164_spill] sm:$0xff] %v11034_v13 }
 0x1af   :  { %v11036_v52 = vpop.f32.mrf.mxu0  ;;  %v11038_v8 = vpop.f32.mrf.mxu1 }
 0x1b0   :  { %15991 = vst [vmem:[#allocation165_spill] sm:$0xff] %v11036_v52  ;;  %15992 = vst [vmem:[#allocation166_spill] sm:$0xff] %v11038_v8 }
 0x1b1   :  { %v11040_v34 = vpop.f32.mrf.mxu0  ;;  %v11042_v6 = vpop.f32.mrf.mxu1 }
 0x1b2   :  { %15993 = vst [vmem:[#allocation167_spill] sm:$0xff] %v11040_v34  ;;  %15994 = vst [vmem:[#allocation168_spill] sm:$0xff] %v11042_v6 }
 0x1b3   :  { %v11044_v29 = vpop.f32.mrf.mxu0  ;;  %v11046_v5 = vpop.f32.mrf.mxu1  ;;  %9394 = vmatmul.mubr.msk.bf16.gmra.mxu1 %vm251_vm1, %v10072_v26  ;;  %8343 = vmatmul.mubr.msk.bf16.gmra.mxu0 %vm251_vm1, %v10110_v38 }
 0x1b4   :  { %15995 = vst [vmem:[#allocation169_spill] sm:$0xff] %v11044_v29  ;;  %15996 = vst [vmem:[#allocation170_spill] sm:$0xff] %v11046_v5  ;;  %1887 = vmatprep.mubr.bf16.mxu0 %v15912_v39  ;;  %2010 = vmatprep.mubr.bf16.mxu1 %v15912_v39  ;;  %v9530_v29 = vld [vmem:[%s15694_s1 + $0x130] ss:$28 sps:$4 sm:$0x3f]  }
 0x1b5   :  { %v11054_v28 = vpop.f32.mrf.mxu0  ;;  %v11056_v8 = vpop.f32.mrf.mxu1  ;;  %v1813_v52 = vsel %vm291_vm0, %v9530_v29, 0 }
 0x1b6   :  { %15997 = vst [vmem:[#allocation171_spill] sm:$0xff] %v11056_v8 }
 0x1b7   :  { %v11061_v6 = vpop.f32.mrf.mxu0  ;;  %v11063_v5 = vpop.f32.mrf.mxu1 }
 0x1b8   :  { %15998 = vst [vmem:[#allocation172_spill] sm:$0xff] %v11061_v6  ;;  %15999 = vst [vmem:[#allocation173_spill] sm:$0xff] %v11063_v5 }
 0x1b9   :  { %v11065_v34 = vpop.f32.mrf.mxu0  ;;  %v11067_v3 = vpop.f32.mrf.mxu1 }
 0x1ba   :  { %16000 = vst [vmem:[#allocation174_spill] sm:$0xff] %v11065_v34  ;;  %16001 = vst [vmem:[#allocation175_spill] sm:$0xff] %v11067_v3  ;;  %v9534_v34 = vld [vmem:[%s15694_s1 + $0xf8] ss:$28 sps:$4 sm:$0xff]  }
 0x1bb   :  { %v11070_v24 = vpop.f32.mrf.mxu0  ;;  %v11072_v13 = vpop.f32.mrf.mxu1  ;;  %8344 = vmatmul.mubr.msk.bf16.gmra.mxu0 %vm251_vm1, %v10118_v41  ;;  %8354 = vmatmul.mubr.msk.bf16.vlgmr.msra.gmra.mxu1 %vm251_vm1, %v10054_v19 }
 0x1bc   :  { %16002 = vst [vmem:[#allocation176_spill] sm:$0xff] %v11070_v24  ;;  %16003 = vst [vmem:[#allocation177_spill] sm:$0xff] %v11072_v13  ;;  %9398 = vmatpush3.bf16.msra.mxu1 %v1813_v52  ;;  %1897 = vmatprep.mubr.bf16.mxu0 %v15912_v39 }
 0x1bd   :  { %v11082_v3 = vpop.f32.mrf.mxu0  ;;  %v11084_v29 = vpop.f32.mrf.mxu1  ;;  %2020 = vmatprep.mubr.bf16.mxu1 %v15912_v39  ;;  %9399 = vmatprep.subr.bf16.mxu1 %v15935_v44 }
 0x1be   :  { %16004 = vst [vmem:[#allocation178_spill] sm:$0xff] %v11084_v29 }
 0x1bf   :  { %v11088_v13 = vpop.f32.mrf.mxu0  ;;  %v11090_v24 = vpop.f32.mrf.mxu1 }
 0x1c0   :  { %16005 = vst [vmem:[#allocation179_spill] sm:$0xff] %v11088_v13  ;;  %16006 = vst [vmem:[#allocation180_spill] sm:$0xff] %v11090_v24  ;;  %9400 = vmatpush3.bf16.msra.mxu1 %v9534_v34 }
 0x1c1   :  { %v11092_v52 = vpop.f32.mrf.mxu0  ;;  %v11094_v5 = vpop.f32.mrf.mxu1 }
 0x1c2   :  { %16007 = vst [vmem:[#allocation181_spill] sm:$0xff] %v11092_v52  ;;  %16008 = vst [vmem:[#allocation182_spill] sm:$0xff] %v11094_v5 }
 0x1c3   :  { %v11096_v6 = vpop.f32.mrf.mxu0  ;;  %v11098_v8 = vpop.f32.mrf.mxu1  ;;  %8345 = vmatmul.mubr.msk.bf16.gmra.mxu0 %vm251_vm1, %v10130_v46  ;;  %8355 = vmatmul.mubr.msk.bf16.gmra.mxu1 %vm251_vm1, %v10089_v31 }
 0x1c4   :  { %16009 = vst [vmem:[#allocation183_spill] sm:$0xff] %v11096_v6  ;;  %16010 = vst [vmem:[#allocation184_spill] sm:$0xff] %v11098_v8  ;;  %1907 = vmatprep.mubr.bf16.mxu0 %v15912_v39  ;;  %2030 = vmatprep.mubr.bf16.mxu1 %v15912_v39 }
 0x1c5   :  { %v11106_v24 = vpop.f32.mrf.mxu0  ;;  %v11108_v34 = vpop.f32.mrf.mxu1 }
 0x1c6   :  { %16011 = vst [vmem:[#allocation185_spill] sm:$0xff] %v11106_v24  ;;  %16012 = vst [vmem:[#allocation186_spill] sm:$0xff] %v11108_v34 }
 0x1c7   :  { %v11110_v52 = vpop.f32.mrf.mxu0  ;;  %v11112_v5 = vpop.f32.mrf.mxu1 }
 0x1c8   :  { %16013 = vst [vmem:[#allocation187_spill] sm:$0xff] %v11110_v52  ;;  %16014 = vst [vmem:[#allocation188_spill] sm:$0xff] %v11112_v5 }
 0x1c9   :  { %v11114_v6 = vpop.f32.mrf.mxu0  ;;  %v11116_v8 = vpop.f32.mrf.mxu1 }
 0x1ca   :  { %16015 = vst [vmem:[#allocation189_spill] sm:$0xff] %v11114_v6  ;;  %16016 = vst [vmem:[#allocation190_spill] sm:$0xff] %v11116_v8 }
 0x1cb   :  { %v11118_v13 = vpop.f32.mrf.mxu0  ;;  %v11120_v29 = vpop.f32.mrf.mxu1  ;;  %8346 = vmatmul.mubr.msk.bf16.gmra.mxu0 %vm251_vm1, %v10148_v53  ;;  %8356 = vmatmul.mubr.msk.bf16.gmra.mxu1 %vm251_vm1, %v10100_v35 }
 0x1cc   :  { %16017 = vst [vmem:[#allocation191_spill] sm:$0xff] %v11118_v13  ;;  %16018 = vst [vmem:[#allocation192_spill] sm:$0xff] %v11120_v29  ;;  %1917 = vmatprep.mubr.bf16.mxu0 %v15912_v39  ;;  %2040 = vmatprep.mubr.bf16.mxu1 %v15912_v39 }
 0x1cd   :  { %v11128_v52 = vpop.f32.mrf.mxu0  ;;  %v11130_v5 = vpop.f32.mrf.mxu1 }
 0x1ce   :  { %16019 = vst [vmem:[#allocation193_spill] sm:$0xff] %v11128_v52  ;;  %16020 = vst [vmem:[#allocation194_spill] sm:$0xff] %v11130_v5 }
 0x1cf   :  { %v11132_v6 = vpop.f32.mrf.mxu0  ;;  %v11134_v8 = vpop.f32.mrf.mxu1 }
 0x1d0   :  { %16021 = vst [vmem:[#allocation195_spill] sm:$0xff] %v11132_v6  ;;  %16022 = vst [vmem:[#allocation196_spill] sm:$0xff] %v11134_v8 }
 0x1d1   :  { %v11136_v13 = vpop.f32.mrf.mxu0  ;;  %v11138_v29 = vpop.f32.mrf.mxu1 }
 0x1d2   :  { %16023 = vst [vmem:[#allocation197_spill] sm:$0xff] %v11136_v13  ;;  %16024 = vst [vmem:[#allocation198_spill] sm:$0xff] %v11138_v29 }
 0x1d3   :  { %v11140_v34 = vpop.f32.mrf.mxu0  ;;  %v11142_v24 = vpop.f32.mrf.mxu1  ;;  %8347 = vmatmul.mubr.msk.bf16.gmra.mxu0 %vm251_vm1, %v10150_v54  ;;  %8357 = vmatmul.mubr.msk.bf16.gmra.mxu1 %vm251_vm1, %v10110_v38 }
 0x1d4   :  { %16025 = vst [vmem:[#allocation199_spill] sm:$0xff] %v11140_v34  ;;  %16026 = vst [vmem:[#allocation200_spill] sm:$0xff] %v11142_v24  ;;  %1927 = vmatprep.mubr.bf16.mxu0 %v15912_v39  ;;  %2050 = vmatprep.mubr.bf16.mxu1 %v15912_v39 }
 0x1d5   :  { %v11150_v6 = vpop.f32.mrf.mxu0  ;;  %v11152_v8 = vpop.f32.mrf.mxu1 }
 0x1d6   :  { %16027 = vst [vmem:[#allocation201_spill] sm:$0xff] %v11150_v6  ;;  %16028 = vst [vmem:[#allocation202_spill] sm:$0xff] %v11152_v8 }
 0x1d7   :  { %v11154_v13 = vpop.f32.mrf.mxu0  ;;  %v11156_v29 = vpop.f32.mrf.mxu1 }
 0x1d8   :  { %16029 = vst [vmem:[#allocation203_spill] sm:$0xff] %v11154_v13  ;;  %16030 = vst [vmem:[#allocation204_spill] sm:$0xff] %v11156_v29 }
 0x1d9   :  { %v11158_v34 = vpop.f32.mrf.mxu0  ;;  %v11160_v24 = vpop.f32.mrf.mxu1 }
 0x1da   :  { %16031 = vst [vmem:[#allocation205_spill] sm:$0xff] %v11158_v34  ;;  %16032 = vst [vmem:[#allocation206_spill] sm:$0xff] %v11160_v24 }
 0x1db   :  { %v11162_v5 = vpop.f32.mrf.mxu0  ;;  %v11164_v52 = vpop.f32.mrf.mxu1  ;;  %8348 = vmatmul.mubr.msk.bf16.gmra.mxu0 %vm251_vm1, %v10165_v58  ;;  %8358 = vmatmul.mubr.msk.bf16.gmra.mxu1 %vm251_vm1, %v10118_v41 }
 0x1dc   :  { %16033 = vst [vmem:[#allocation207_spill] sm:$0xff] %v11162_v5  ;;  %16034 = vst [vmem:[#allocation208_spill] sm:$0xff] %v11164_v52  ;;  %1937 = vmatprep.mubr.bf16.mxu0 %v15912_v39  ;;  %2060 = vmatprep.mubr.bf16.mxu1 %v15912_v39 }
 0x1dd   :  { %v11172_v13 = vpop.f32.mrf.mxu0  ;;  %v11174_v29 = vpop.f32.mrf.mxu1 }
 0x1de   :  { %16035 = vst [vmem:[#allocation209_spill] sm:$0xff] %v11172_v13  ;;  %16036 = vst [vmem:[#allocation210_spill] sm:$0xff] %v11174_v29 }
 0x1df   :  { %v11176_v34 = vpop.f32.mrf.mxu0  ;;  %v11178_v24 = vpop.f32.mrf.mxu1 }
 0x1e0   :  { %16037 = vst [vmem:[#allocation211_spill] sm:$0xff] %v11176_v34  ;;  %16038 = vst [vmem:[#allocation212_spill] sm:$0xff] %v11178_v24 }
 0x1e1   :  { %v11180_v5 = vpop.f32.mrf.mxu0  ;;  %v11182_v52 = vpop.f32.mrf.mxu1 }
 0x1e2   :  { %16039 = vst [vmem:[#allocation213_spill] sm:$0xff] %v11180_v5  ;;  %16040 = vst [vmem:[#allocation214_spill] sm:$0xff] %v11182_v52 }
 0x1e3   :  { %v11184_v8 = vpop.f32.mrf.mxu0  ;;  %v11186_v6 = vpop.f32.mrf.mxu1  ;;  %8349 = vmatmul.mubr.msk.bf16.gmra.mxu0 %vm251_vm1, %v10175_v61  ;;  %8359 = vmatmul.mubr.msk.bf16.gmra.mxu1 %vm251_vm1, %v10130_v46 }
 0x1e4   :  { %16041 = vst [vmem:[#allocation215_spill] sm:$0xff] %v11184_v8  ;;  %16042 = vst [vmem:[#allocation216_spill] sm:$0xff] %v11186_v6  ;;  %1947 = vmatprep.mubr.bf16.mxu0 %v15912_v39  ;;  %2070 = vmatprep.mubr.bf16.mxu1 %v15912_v39 }
 0x1e5   :  { %v11194_v34 = vpop.f32.mrf.mxu0  ;;  %v11196_v24 = vpop.f32.mrf.mxu1 }
 0x1e6   :  { %16043 = vst [vmem:[#allocation217_spill] sm:$0xff] %v11194_v34  ;;  %16044 = vst [vmem:[#allocation218_spill] sm:$0xff] %v11196_v24 }
 0x1e7   :  { %v11198_v5 = vpop.f32.mrf.mxu0  ;;  %v11200_v52 = vpop.f32.mrf.mxu1 }
 0x1e8   :  { %16045 = vst [vmem:[#allocation219_spill] sm:$0xff] %v11198_v5  ;;  %16046 = vst [vmem:[#allocation220_spill] sm:$0xff] %v11200_v52 }
 0x1e9   :  { %v11202_v8 = vpop.f32.mrf.mxu0  ;;  %v11204_v6 = vpop.f32.mrf.mxu1 }
 0x1ea   :  { %16047 = vst [vmem:[#allocation221_spill] sm:$0xff] %v11202_v8  ;;  %16048 = vst [vmem:[#allocation222_spill] sm:$0xff] %v11204_v6 }
 0x1eb   :  { %v11206_v29 = vpop.f32.mrf.mxu0  ;;  %v11208_v13 = vpop.f32.mrf.mxu1  ;;  %8350 = vmatmul.mubr.msk.bf16.gmra.mxu0 %vm251_vm1, %v10178_v62  ;;  %8360 = vmatmul.mubr.msk.bf16.gmra.mxu1 %vm251_vm1, %v10148_v53 }
 0x1ec   :  { %16049 = vst [vmem:[#allocation223_spill] sm:$0xff] %v11206_v29  ;;  %16050 = vst [vmem:[#allocation224_spill] sm:$0xff] %v11208_v13  ;;  %1957 = vmatprep.mubr.bf16.mxu0 %v15912_v39  ;;  %2080 = vmatprep.mubr.bf16.mxu1 %v15912_v39 }
 0x1ed   :  { %v11216_v5 = vpop.f32.mrf.mxu0  ;;  %v11218_v52 = vpop.f32.mrf.mxu1 }
 0x1ee   :  { %16051 = vst [vmem:[#allocation225_spill] sm:$0xff] %v11216_v5  ;;  %16052 = vst [vmem:[#allocation226_spill] sm:$0xff] %v11218_v52 }
 0x1ef   :  { %v11220_v8 = vpop.f32.mrf.mxu0  ;;  %v11222_v6 = vpop.f32.mrf.mxu1 }
 0x1f0   :  { %16053 = vst [vmem:[#allocation227_spill] sm:$0xff] %v11220_v8  ;;  %16054 = vst [vmem:[#allocation228_spill] sm:$0xff] %v11222_v6 }
 0x1f1   :  { %v11224_v29 = vpop.f32.mrf.mxu0  ;;  %v11226_v13 = vpop.f32.mrf.mxu1 }
 0x1f2   :  { %16055 = vst [vmem:[#allocation229_spill] sm:$0xff] %v11224_v29  ;;  %16056 = vst [vmem:[#allocation230_spill] sm:$0xff] %v11226_v13 }
 0x1f3   :  { %v11228_v24 = vpop.f32.mrf.mxu1  ;;  %v11230_v34 = vpop.f32.mrf.mxu0  ;;  %8351 = vmatmul.mubr.msk.bf16.gmra.mxu0 %vm251_vm1, %v10072_v26  ;;  %8361 = vmatmul.mubr.msk.bf16.gmra.mxu1 %vm251_vm1, %v10150_v54 }
 0x1f4   :  { %16057 = vst [vmem:[#allocation231_spill] sm:$0xff] %v11228_v24  ;;  %16058 = vst [vmem:[#allocation232_spill] sm:$0xff] %v11230_v34  ;;  %1967 = vmatprep.mubr.bf16.mxu0 %v15912_v39  ;;  %2090 = vmatprep.mubr.bf16.mxu1 %v15912_v39 }
 0x1f5   :  { %v11238_v8 = vpop.f32.mrf.mxu1  ;;  %v11240_v6 = vpop.f32.mrf.mxu0 }
 0x1f6   :  { %16059 = vst [vmem:[#allocation233_spill] sm:$0xff] %v11238_v8  ;;  %16060 = vst [vmem:[#allocation234_spill] sm:$0xff] %v11240_v6 }
 0x1f7   :  { %v11242_v29 = vpop.f32.mrf.mxu1  ;;  %v11244_v13 = vpop.f32.mrf.mxu0 }
 0x1f8   :  { %16061 = vst [vmem:[#allocation235_spill] sm:$0xff] %v11242_v29  ;;  %16062 = vst [vmem:[#allocation236_spill] sm:$0xff] %v11244_v13 }
 0x1f9   :  { %v11246_v24 = vpop.f32.mrf.mxu1  ;;  %v11248_v34 = vpop.f32.mrf.mxu0 }
 0x1fa   :  { %16063 = vst [vmem:[#allocation237_spill] sm:$0xff] %v11246_v24  ;;  %16064 = vst [vmem:[#allocation238_spill] sm:$0xff] %v11248_v34 }
 0x1fb   :  { %v11250_v52 = vpop.f32.mrf.mxu1  ;;  %v11252_v5 = vpop.f32.mrf.mxu0  ;;  %8352 = vmatmul.mubr.msk.bf16.gmra.mxu0 %vm251_vm1, %v10074_v27  ;;  %8362 = vmatmul.mubr.msk.bf16.gmra.mxu1 %vm251_vm1, %v10165_v58 }
 0x1fc   :  { %16065 = vst [vmem:[#allocation239_spill] sm:$0xff] %v11250_v52  ;;  %16066 = vst [vmem:[#allocation240_spill] sm:$0xff] %v11252_v5  ;;  %2100 = vmatprep.mubr.bf16.mxu1 %v15912_v39  ;;  %2173 = vmatprep.mubr.bf16.mxu0 %v15912_v39 }
 0x1fd   :  { %v11260_v29 = vpop.f32.mrf.mxu1  ;;  %v11262_v13 = vpop.f32.mrf.mxu0 }
 0x1fe   :  { %16067 = vst [vmem:[#allocation241_spill] sm:$0xff] %v11260_v29  ;;  %16068 = vst [vmem:[#allocation242_spill] sm:$0xff] %v11262_v13 }
 0x1ff   :  { %v11264_v24 = vpop.f32.mrf.mxu1  ;;  %v11266_v34 = vpop.f32.mrf.mxu0 }
 0x200   :  { %16069 = vst [vmem:[#allocation243_spill] sm:$0xff] %v11264_v24  ;;  %16070 = vst [vmem:[#allocation244_spill] sm:$0xff] %v11266_v34 }
 0x201   :  { %v11268_v52 = vpop.f32.mrf.mxu1  ;;  %v11270_v5 = vpop.f32.mrf.mxu0 }
 0x202   :  { %16071 = vst [vmem:[#allocation245_spill] sm:$0xff] %v11268_v52  ;;  %16072 = vst [vmem:[#allocation246_spill] sm:$0xff] %v11270_v5 }
 0x203   :  { %v11272_v6 = vpop.f32.mrf.mxu1  ;;  %v11274_v8 = vpop.f32.mrf.mxu0  ;;  %8363 = vmatmul.mubr.msk.bf16.gmra.mxu1 %vm251_vm1, %v10175_v61  ;;  %8368 = vmatmul.mubr.msk.bf16.vlgmr.msra.gmra.mxu0 %vm251_vm1, %v10054_v19 }
 0x204   :  { %16073 = vst [vmem:[#allocation247_spill] sm:$0xff] %v11272_v6  ;;  %16074 = vst [vmem:[#allocation248_spill] sm:$0xff] %v11274_v8  ;;  %2110 = vmatprep.mubr.bf16.mxu1 %v15912_v39  ;;  %2183 = vmatprep.mubr.bf16.mxu0 %v15912_v39 }
 0x205   :  { %v11282_v24 = vpop.f32.mrf.mxu1  ;;  %v11284_v34 = vpop.f32.mrf.mxu0 }
 0x206   :  { %16075 = vst [vmem:[#allocation249_spill] sm:$0xff] %v11282_v24  ;;  %16076 = vst [vmem:[#allocation250_spill] sm:$0xff] %v11284_v34 }
 0x207   :  { %v11286_v52 = vpop.f32.mrf.mxu1  ;;  %v11288_v5 = vpop.f32.mrf.mxu0 }
 0x208   :  { %16077 = vst [vmem:[#allocation251_spill] sm:$0xff] %v11286_v52  ;;  %16078 = vst [vmem:[#allocation252_spill] sm:$0xff] %v11288_v5 }
 0x209   :  { %v11290_v6 = vpop.f32.mrf.mxu1  ;;  %v11292_v8 = vpop.f32.mrf.mxu0 }
 0x20a   :  { %16079 = vst [vmem:[#allocation253_spill] sm:$0xff] %v11290_v6  ;;  %16080 = vst [vmem:[#allocation254_spill] sm:$0xff] %v11292_v8 }
 0x20b   :  { %v11294_v13 = vpop.f32.mrf.mxu1  ;;  %v11296_v29 = vpop.f32.mrf.mxu0  ;;  %8364 = vmatmul.mubr.msk.bf16.gmra.mxu1 %vm251_vm1, %v10178_v62  ;;  %8369 = vmatmul.mubr.msk.bf16.gmra.mxu0 %vm251_vm1, %v10089_v31 }
 0x20c   :  { %16081 = vst [vmem:[#allocation255_spill] sm:$0xff] %v11294_v13  ;;  %16082 = vst [vmem:[#allocation256_spill] sm:$0xff] %v11296_v29  ;;  %2120 = vmatprep.mubr.bf16.mxu1 %v15912_v39  ;;  %2193 = vmatprep.mubr.bf16.mxu0 %v15912_v39 }
 0x20d   :  { %v11304_v52 = vpop.f32.mrf.mxu1  ;;  %v11306_v5 = vpop.f32.mrf.mxu0 }
 0x20e   :  { %16083 = vst [vmem:[#allocation257_spill] sm:$0xff] %v11304_v52  ;;  %16084 = vst [vmem:[#allocation258_spill] sm:$0xff] %v11306_v5 }
 0x20f   :  { %v11308_v6 = vpop.f32.mrf.mxu1  ;;  %v11310_v8 = vpop.f32.mrf.mxu0 }
 0x210   :  { %16085 = vst [vmem:[#allocation259_spill] sm:$0xff] %v11308_v6  ;;  %16086 = vst [vmem:[#allocation260_spill] sm:$0xff] %v11310_v8 }
 0x211   :  { %v11312_v13 = vpop.f32.mrf.mxu1  ;;  %v11314_v29 = vpop.f32.mrf.mxu0 }
 0x212   :  { %16087 = vst [vmem:[#allocation261_spill] sm:$0xff] %v11312_v13  ;;  %16088 = vst [vmem:[#allocation262_spill] sm:$0xff] %v11314_v29 }
 0x213   :  { %v11316_v34 = vpop.f32.mrf.mxu0  ;;  %v11318_v24 = vpop.f32.mrf.mxu1  ;;  %8365 = vmatmul.mubr.msk.bf16.gmra.mxu1 %vm251_vm1, %v10072_v26  ;;  %8370 = vmatmul.mubr.msk.bf16.gmra.mxu0 %vm251_vm1, %v10100_v35 }
 0x214   :  { %16089 = vst [vmem:[#allocation263_spill] sm:$0xff] %v11316_v34  ;;  %16090 = vst [vmem:[#allocation264_spill] sm:$0xff] %v11318_v24  ;;  %2130 = vmatprep.mubr.bf16.mxu1 %v15912_v39  ;;  %2203 = vmatprep.mubr.bf16.mxu0 %v15912_v39 }
 0x215   :  { %v11326_v6 = vpop.f32.mrf.mxu0  ;;  %v9347_v8 = vpop.f32.mrf.mxu1 }
 0x216   :  { %16091 = vst [vmem:[#allocation265_spill] sm:$0xff] %v11326_v6 }
 0x217   :  { %v11328_v13 = vpop.f32.mrf.mxu0  ;;  %v11330_v29 = vpop.f32.mrf.mxu1 }
 0x218   :  { %16092 = vst [vmem:[#allocation266_spill] sm:$0xff] %v11328_v13  ;;  %16093 = vst [vmem:[#allocation267_spill] sm:$0xff] %v11330_v29 }
 0x219   :  { %v11332_v34 = vpop.f32.mrf.mxu0  ;;  %v9348_v24 = vpop.f32.mrf.mxu1 }
 0x21a   :  { %16094 = vst [vmem:[#allocation268_spill] sm:$0xff] %v11332_v34 }
 0x21b   :  { %v11334_v5 = vpop.f32.mrf.mxu0  ;;  %v11336_v52 = vpop.f32.mrf.mxu1  ;;  %8366 = vmatmul.mubr.msk.bf16.gmra.mxu1 %vm251_vm1, %v10074_v27  ;;  %8371 = vmatmul.mubr.msk.bf16.gmra.mxu0 %vm251_vm1, %v10110_v38 }
 0x21c   :  { %16095 = vst [vmem:[#allocation269_spill] sm:$0xff] %v11334_v5  ;;  %16096 = vst [vmem:[#allocation270_spill] sm:$0xff] %v11336_v52  ;;  %2213 = vmatprep.mubr.bf16.mxu0 %v15912_v39  ;;  %9401 = vmatprep.mubr.msk.bf16.mxu1 %vm9944_vm2, %v15935_v44 }
 0x21d   :  { %v11345_v8 = vpop.f32.mrf.mxu0  ;;  %v9351_v29 = vpop.f32.mrf.mxu1 }
 0x21e   :  { %16097 = vst [vmem:[#allocation271_spill] sm:$0xff] %v11345_v8 }
 0x21f   :  { %v11347_v34 = vpop.f32.mrf.mxu0  ;;  %v11349_v24 = vpop.f32.mrf.mxu1 }
 0x220   :  { %16098 = vst [vmem:[#allocation272_spill] sm:$0xff] %v11347_v34  ;;  %16099 = vst [vmem:[#allocation273_spill] sm:$0xff] %v11349_v24 }
 0x221   :  { %v11351_v5 = vpop.f32.mrf.mxu0  ;;  %v9352_v52 = vpop.f32.mrf.mxu1 }
 0x222   :  { %16100 = vst [vmem:[#allocation274_spill] sm:$0xff] %v11351_v5 }
 0x223   :  { %v11353_v13 = vpop.f32.mrf.mxu0  ;;  %v11355_v6 = vpop.f32.mrf.mxu1  ;;  %8372 = vmatmul.mubr.msk.bf16.gmra.mxu0 %vm251_vm1, %v10118_v41  ;;  %9402 = vmatmul.mubr.msk.bf16.vlgmr.msra.gmra.mxu1 %vm251_vm1, %v10054_v19 }
 0x224   :  { %16101 = vst [vmem:[#allocation275_spill] sm:$0xff] %v11353_v13  ;;  %16102 = vst [vmem:[#allocation276_spill] sm:$0xff] %v11355_v6  ;;  %2223 = vmatprep.mubr.bf16.mxu0 %v15912_v39  ;;  %9405 = vmatprep.mubr.msk.bf16.mxu1 %vm9944_vm2, %v15935_v44 }
 0x225   :  { %v11364_v29 = vpop.f32.mrf.mxu0  ;;  %v9355_v24 = vpop.f32.mrf.mxu1 }
 0x226   :  { %16103 = vst [vmem:[#allocation277_spill] sm:$0xff] %v11364_v29 }
 0x227   :  { %v11366_v5 = vpop.f32.mrf.mxu0  ;;  %v11368_v52 = vpop.f32.mrf.mxu1 }
 0x228   :  { %16104 = vst [vmem:[#allocation278_spill] sm:$0xff] %v11366_v5  ;;  %16105 = vst [vmem:[#allocation279_spill] sm:$0xff] %v11368_v52 }
 0x229   :  { %v11370_v13 = vpop.f32.mrf.mxu0  ;;  %v9356_v6 = vpop.f32.mrf.mxu1 }
 0x22a   :  { %16106 = vst [vmem:[#allocation280_spill] sm:$0xff] %v11370_v13 }
 0x22b   :  { %v11372_v34 = vpop.f32.mrf.mxu0  ;;  %v11374_v8 = vpop.f32.mrf.mxu1  ;;  %8373 = vmatmul.mubr.msk.bf16.gmra.mxu0 %vm251_vm1, %v10130_v46  ;;  %9406 = vmatmul.mubr.msk.bf16.gmra.mxu1 %vm251_vm1, %v10089_v31 }
 0x22c   :  { %16107 = vst [vmem:[#allocation281_spill] sm:$0xff] %v11372_v34  ;;  %16108 = vst [vmem:[#allocation282_spill] sm:$0xff] %v11374_v8  ;;  %2233 = vmatprep.mubr.bf16.mxu0 %v15912_v39  ;;  %9409 = vmatprep.mubr.msk.bf16.mxu1 %vm9944_vm2, %v15935_v44 }
 0x22d   :  { %v11383_v19 = vpop.f32.mrf.mxu0  ;;  %v9359_v24 = vpop.f32.mrf.mxu1 }
 0x22e   :  { %16109 = vst [vmem:[#allocation283_spill] sm:$0xff] %v11383_v19  ;;  %v16191_v19 = vld [vmem:[#allocation183_spill] sm:$0xff] }
 0x22f   :  { %v11385_v13 = vpop.f32.mrf.mxu0  ;;  %v11387_v6 = vpop.f32.mrf.mxu1 }
 0x230   :  { %16110 = vst [vmem:[#allocation284_spill] sm:$0xff] %v11385_v13  ;;  %16111 = vst [vmem:[#allocation285_spill] sm:$0xff] %v11387_v6 }
 0x231   :  { %v11389_v34 = vpop.f32.mrf.mxu0  ;;  %v9360_v8 = vpop.f32.mrf.mxu1 }
 0x232   :  { %16112 = vst [vmem:[#allocation286_spill] sm:$0xff] %v11389_v34 }
 0x233   :  { %v11391_v52 = vpop.f32.mrf.mxu0  ;;  %v11393_v5 = vpop.f32.mrf.mxu1  ;;  %8374 = vmatmul.mubr.msk.bf16.gmra.mxu0 %vm251_vm1, %v10148_v53  ;;  %9410 = vmatmul.mubr.msk.bf16.gmra.mxu1 %vm251_vm1, %v10100_v35 }
 0x234   :  { %16113 = vst [vmem:[#allocation287_spill] sm:$0xff] %v11391_v52  ;;  %16114 = vst [vmem:[#allocation288_spill] sm:$0xff] %v11393_v5  ;;  %2243 = vmatprep.mubr.bf16.mxu0 %v15912_v39  ;;  %9413 = vmatprep.mubr.msk.bf16.mxu1 %vm9944_vm2, %v15935_v44 }
 0x235   :  { %v11402_v31 = vpop.f32.mrf.mxu0  ;;  %v9363_v24 = vpop.f32.mrf.mxu1 }
 0x236   :  { %16115 = vst [vmem:[#allocation289_spill] sm:$0xff] %v11402_v31  ;;  %v16188_v31 = vld [vmem:[#allocation182_spill] sm:$0xff] }
 0x237   :  { %v11404_v34 = vpop.f32.mrf.mxu0  ;;  %v11406_v8 = vpop.f32.mrf.mxu1 }
 0x238   :  { %16116 = vst [vmem:[#allocation290_spill] sm:$0xff] %v11404_v34  ;;  %16117 = vst [vmem:[#allocation291_spill] sm:$0xff] %v11406_v8 }
 0x239   :  { %v11408_v52 = vpop.f32.mrf.mxu0  ;;  %v9364_v5 = vpop.f32.mrf.mxu1 }
 0x23a   :  { %16118 = vst [vmem:[#allocation292_spill] sm:$0xff] %v11408_v52 }
 0x23b   :  { %v11410_v6 = vpop.f32.mrf.mxu0  ;;  %v11412_v13 = vpop.f32.mrf.mxu1  ;;  %8375 = vmatmul.mubr.msk.bf16.gmra.mxu0 %vm251_vm1, %v10150_v54  ;;  %9414 = vmatmul.mubr.msk.bf16.gmra.mxu1 %vm251_vm1, %v10110_v38 }
 0x23c   :  { %16119 = vst [vmem:[#allocation293_spill] sm:$0xff] %v11410_v6  ;;  %16120 = vst [vmem:[#allocation294_spill] sm:$0xff] %v11412_v13  ;;  %2253 = vmatprep.mubr.bf16.mxu0 %v15912_v39  ;;  %9417 = vmatprep.mubr.msk.bf16.mxu1 %vm9944_vm2, %v15935_v44 }
 0x23d   :  { %v11421_v35 = vpop.f32.mrf.mxu0  ;;  %v9367_v24 = vpop.f32.mrf.mxu1 }
 0x23e   :  { %16121 = vst [vmem:[#allocation295_spill] sm:$0xff] %v11421_v35 }
 0x23f   :  { %v11423_v52 = vpop.f32.mrf.mxu0  ;;  %v11425_v5 = vpop.f32.mrf.mxu1 }
 0x240   :  { %16122 = vst [vmem:[#allocation296_spill] sm:$0xff] %v11423_v52  ;;  %16123 = vst [vmem:[#allocation297_spill] sm:$0xff] %v11425_v5 }
 0x241   :  { %v11427_v6 = vpop.f32.mrf.mxu0  ;;  %v9368_v13 = vpop.f32.mrf.mxu1 }
 0x242   :  { %16124 = vst [vmem:[#allocation298_spill] sm:$0xff] %v11427_v6 }
 0x243   :  { %v11429_v8 = vpop.f32.mrf.mxu0  ;;  %v11431_v34 = vpop.f32.mrf.mxu1  ;;  %8376 = vmatmul.mubr.msk.bf16.gmra.mxu0 %vm251_vm1, %v10165_v58  ;;  %9418 = vmatmul.mubr.msk.bf16.gmra.mxu1 %vm251_vm1, %v10118_v41 }
 0x244   :  { %16125 = vst [vmem:[#allocation299_spill] sm:$0xff] %v11429_v8  ;;  %16126 = vst [vmem:[#allocation300_spill] sm:$0xff] %v11431_v34  ;;  %2263 = vmatprep.mubr.bf16.mxu0 %v15912_v39  ;;  %9421 = vmatprep.mubr.msk.bf16.mxu1 %vm9944_vm2, %v15935_v44 }
 0x245   :  { %v11440_v38 = vpop.f32.mrf.mxu0  ;;  %v9371_v24 = vpop.f32.mrf.mxu1 }
 0x246   :  { %16127 = vst [vmem:[#allocation301_spill] sm:$0xff] %v11440_v38 }
 0x247   :  { %v11442_v6 = vpop.f32.mrf.mxu0  ;;  %v11444_v13 = vpop.f32.mrf.mxu1 }
 0x248   :  { %16128 = vst [vmem:[#allocation302_spill] sm:$0xff] %v11442_v6  ;;  %16129 = vst [vmem:[#allocation303_spill] sm:$0xff] %v11444_v13 }
 0x249   :  { %v11446_v8 = vpop.f32.mrf.mxu0  ;;  %v9372_v34 = vpop.f32.mrf.mxu1 }
 0x24a   :  { %16130 = vst [vmem:[#allocation304_spill] sm:$0xff] %v11446_v8 }
 0x24b   :  { %v11448_v5 = vpop.f32.mrf.mxu0  ;;  %v11450_v52 = vpop.f32.mrf.mxu1  ;;  %8377 = vmatmul.mubr.msk.bf16.gmra.mxu0 %vm251_vm1, %v10175_v61  ;;  %9422 = vmatmul.mubr.msk.bf16.gmra.mxu1 %vm251_vm1, %v10130_v46 }
 0x24c   :  { %16131 = vst [vmem:[#allocation305_spill] sm:$0xff] %v11448_v5  ;;  %16132 = vst [vmem:[#allocation306_spill] sm:$0xff] %v11450_v52  ;;  %2273 = vmatprep.mubr.bf16.mxu0 %v15912_v39  ;;  %9425 = vmatprep.mubr.msk.bf16.mxu1 %vm9944_vm2, %v15935_v44  ;;  %v2625_v5 = vlaneseq }
 0x24d   :  { %v11459_v41 = vpop.f32.mrf.mxu0  ;;  %v9375_v24 = vpop.f32.mrf.mxu1 }
 0x24e   :  { %16133 = vst [vmem:[#allocation307_spill] sm:$0xff] %v11459_v41  ;;  %v11478_v46 = vshrl.u32 %v2625_v5, 7  ;;  %v1114_v41 = vadd.f32 %v10937_v1, %v10388_v32  ;;  %v11494_v5 = vadd.f32 %v10956_v57, %v10418_v47  ;;  %v11502_v32 = vadd.f32 %v10972_v30, %v10433_v51  ;;  %v16146_v57 = vld [vmem:[#allocation164_spill] sm:$0xff] }
 0x24f   :  { %v11461_v8 = vpop.f32.mrf.mxu0  ;;  %v11463_v34 = vpop.f32.mrf.mxu1  ;;  %v11514_v47 = vadd.f32 %v10982_v55, %v10441_v59  ;;  %v11522_v51 = vadd.f32 %v10998_v18, %v10456_v2  ;;  %v11537_v55 = vadd.f32 %v11013_v50, %v10474_v7  ;;  %v11541_v59 = vadd.f32 %v11017_v15, %v10481_v11  ;;  %v16156_v15 = vld [vmem:[#allocation22_spill] sm:$0xff] }
 0x250   :  { %16134 = vst [vmem:[#allocation308_spill] sm:$0xff] %v11461_v8  ;;  %16135 = vst [vmem:[#allocation309_spill] sm:$0xff] %v11463_v34  ;;  %v11525_v1 = vsub.s32 0, %v11478_v46  ;;  %v11556_v7 = vadd.f32 %v11021_v12, %v10490_v17  ;;  %v11560_v11 = vadd.f32 %v11023_v9, %v10443_v60  ;;  %v11563_v18 = vsub.s32 1, %v11478_v46  ;;  %v16150_v60 = vld [vmem:[#allocation10_spill] sm:$0xff]  ;;  %v16180_v34 = vld [vmem:[#allocation179_spill] sm:$0xff] }
 0x251   :  { %v11465_v52 = vpop.f32.mrf.mxu0  ;;  %v9376_v13 = vpop.f32.mrf.mxu1  ;;  %16139 = vst [vmem:[#allocation313_spill] sm:$0xff] %v11478_v46  ;;  %v11571_v30 = vadd.f32 %v16146_v57, %v10454_v0  ;;  %v16159_v57 = vld [vmem:[#allocation170_spill] sm:$0xff] }
 0x252   :  { %16136 = vst [vmem:[#allocation310_spill] sm:$0xff] %v11465_v52  ;;  %v1116_v52 = vadd.f32 %v10946_v37, %v10401_v36  ;;  %v11506_v36 = vadd.f32 %v10974_v25, %v10437_v56  ;;  %16143 = vst [vmem:[#allocation317_spill] sm:$0xff] %v11525_v1  ;;  %v11529_v56 = vadd.f32 %v11000_v48, %v10460_v4  ;;  %v11548_v4 = vld [vmem:[%s15696_s2] sm:$0x7f]  ;;  %v16154_v48 = vld [vmem:[#allocation11_spill] sm:$0xff] }
 0x253   :  { %v11467_v6 = vpop.f32.mrf.mxu0  ;;  %v11469_v38 = vpop.f32.mrf.mxu1  ;;  %8378 = vmatmul.mubr.msk.bf16.gmra.mxu0 %vm251_vm1, %v10178_v62  ;;  %9426 = vmatmul.mubr.msk.bf16.gmra.mxu1 %vm251_vm1, %v10148_v53  ;;  %v11490_v53 = vadd.f32 %v10952_v14, %v10413_v43  ;;  %v11533_v25 = vadd.f32 %v11004_v20, %v10464_v16  ;;  %v11552_v16 = vadd.f32 %v11019_v42, %v10485_v45  ;;  %v16147_v45 = vld [vmem:[#allocation18_spill] sm:$0xff]  ;;  %v16152_v14 = vld [vmem:[#allocation20_spill] sm:$0xff] }
 0x254   :  { %16137 = vst [vmem:[#allocation311_spill] sm:$0xff] %v11467_v6  ;;  %16138 = vst [vmem:[#allocation312_spill] sm:$0xff] %v11469_v38  ;;  %2283 = vmatprep.mubr.bf16.mxu0 %v15912_v39  ;;  %9429 = vmatprep.mubr.msk.bf16.mxu1 %vm9944_vm2, %v15935_v44  ;;  %v1118_v38 = vadd.f32 %v10950_v23, %v10409_v40  ;;  %v11567_v20 = vadd.f32 %v11032_v22, %v10502_v21  ;;  %v16151_v21 = vld [vmem:[#allocation166_spill] sm:$0xff]  ;;  %v16153_v23 = vld [vmem:[#allocation167_spill] sm:$0xff] }
 0x255   :  { %v11480_v24 = vpop.f32.mrf.mxu0  ;;  %v9379_v13 = vpop.f32.mrf.mxu1  ;;  %16145 = vst [vmem:[#allocation319_spill] sm:$0xff] %v11563_v18  ;;  %v11585_v9 = vadd.f32 %v16151_v21, %v16150_v60  ;;  %v11589_v0 = vrot.slane %v11548_v4, %v11525_v1  ;;  %v11596_v42 = vadd.f32 %v16153_v23, %v16152_v14  ;;  %v16157_v22 = vld [vmem:[#allocation169_spill] sm:$0xff]  ;;  %v16160_v60 = vld [vmem:[#allocation24_spill] sm:$0xff]  ;;  %v16162_v23 = vld [vmem:[#allocation171_spill] sm:$0xff] }
 0x256   :  { %16140 = vst [vmem:[#allocation314_spill] sm:$0xff] %v11480_v24  ;;  %v11498_v13 = vadd.f32 %v10965_v33, %v10429_v49  ;;  %v11518_v49 = vadd.f32 %v10993_v10, %v10452_v63  ;;  %v16148_v10 = vld [vmem:[#allocation165_spill] sm:$0xff]  ;;  %v11612_v21 = vadd.f32 %v11054_v28, %v16160_v60  ;;  %v16168_v28 = vld [vmem:[#allocation174_spill] sm:$0xff] }
 0x257   :  { %v11508_v40 = vpop.f32.mrf.mxu0  ;;  %v11510_v43 = vpop.f32.mrf.mxu1  ;;  %v11575_v33 = vadd.f32 %v16148_v10, %v16147_v45  ;;  %v16161_v14 = vld [vmem:[#allocation13_spill] sm:$0xff] }
 0x258   :  { %16141 = vst [vmem:[#allocation315_spill] sm:$0xff] %v11508_v40  ;;  %16142 = vst [vmem:[#allocation316_spill] sm:$0xff] %v11510_v43  ;;  %v11616_v1 = vadd.f32 %v16162_v23, %v16161_v14  ;;  %v16170_v14 = vld [vmem:[#allocation175_spill] sm:$0xff] }
 0x259   :  { %v11543_v63 = vpop.f32.mrf.mxu0  ;;  %v9380_v2 = vpop.f32.mrf.mxu1 }
 0x25a   :  { %16144 = vst [vmem:[#allocation318_spill] sm:$0xff] %v11543_v63  ;;  %v16158_v2 = vld [vmem:[#allocation12_spill] sm:$0xff] }
 0x25b   :  { %v11577_v12 = vpop.f32.mrf.mxu1  ;;  %v1849_v17 = vpop.f32.mrf.mxu0  ;;  %8379 = vmatmul.mubr.msk.bf16.gmra.mxu0 %vm251_vm1, %v10072_v26  ;;  %9430 = vmatmul.mubr.msk.bf16.gmra.mxu1 %vm251_vm1, %v10150_v54  ;;  %v16155_v54 = vld [vmem:[#allocation168_spill] sm:$0xff]  ;;  %v11608_v45 = vadd.f32 %v16159_v57, %v16158_v2  ;;  %v16165_v2 = vld [vmem:[#allocation14_spill] sm:$0xff]  ;;  %v16166_v57 = vld [vmem:[#allocation173_spill] sm:$0xff] }
 0x25c   :  { %16149 = vst [vmem:[#allocation164_spill] sm:$0xff] %v11577_v12  ;;  %v2441_v37 = vadd.f32 %v1849_v17, %v1114_v41  ;;  %2293 = vmatprep.mubr.bf16.mxu0 %v15912_v39  ;;  %9433 = vmatprep.mubr.msk.bf16.mxu1 %vm9944_vm2, %v15935_v44  ;;  %v11600_v50 = vadd.f32 %v16155_v54, %v16154_v48  ;;  %v16167_v63 = vld [vmem:[#allocation28_spill] sm:$0xff]  ;;  %v16169_v39 = vld [vmem:[#allocation15_spill] sm:$0xff] }
 0x25d   :  { %v11604_v41 = vadd.f32 %v16157_v22, %v16156_v15  ;;  %v9383_v10 = vpop.f32.mrf.mxu1  ;;  %v1851_v17 = vpop.f32.mrf.mxu0  ;;  %v11620_v54 = vrot.slane %v11548_v4, %v11563_v18  ;;  %v16163_v15 = vld [vmem:[#allocation26_spill] sm:$0xff]  ;;  %v16164_v22 = vld [vmem:[#allocation172_spill] sm:$0xff]  ;;  %v11632_v60 = vadd.f32 %v16168_v28, %v16167_v63  ;;  %v11636_v23 = vadd.f32 %v16170_v14, %v16169_v39  ;;  %v16177_v39 = vld [vmem:[#allocation17_spill] sm:$0xff] }
 0x25e   :  { %v2442_v48 = vadd.f32 %v1851_v17, %v1116_v52  ;;  %v11624_v24 = vadd.f32 %v16164_v22, %v16163_v15  ;;  %v11628_v10 = vadd.f32 %v16166_v57, %v16165_v2  ;;  %v16172_v18 = vld [vmem:[#allocation30_spill] sm:$0xff]  ;;  %v16173_v12 = vld [vmem:[#allocation176_spill] sm:$0xff]  ;;  %v16175_v22 = vld [vmem:[#allocation177_spill] sm:$0xff]  ;;  %v2660_v2 = vadd.f32 %v11589_v0, %v2441_v37 }
 0x25f   :  { %v11638_v52 = vpop.f32.mrf.mxu1  ;;  %v1853_v17 = vpop.f32.mrf.mxu0  ;;  %v11642_v43 = vadd.f32 %v16173_v12, %v16172_v18  ;;  %v16174_v15 = vld [vmem:[#allocation16_spill] sm:$0xff]  ;;  %v16178_v14 = vld [vmem:[#allocation178_spill] sm:$0xff]  ;;  %v16181_v18 = vld [vmem:[#allocation19_spill] sm:$0xff] }
 0x260   :  { %16171 = vst [vmem:[#allocation18_spill] sm:$0xff] %v11638_v52  ;;  %v11646_v40 = vadd.f32 %v16175_v22, %v16174_v15  ;;  %v2448_v57 = vadd.f32 %v1853_v17, %v1118_v38  ;;  %v16176_v63 = vld [vmem:[#allocation32_spill] sm:$0xff]  ;;  %v11655_v6 = vadd.f32 %v16178_v14, %v16177_v39  ;;  %v16179_v52 = vld [vmem:[#allocation34_spill] sm:$0xff]  ;;  %v16185_v38 = vld [vmem:[#allocation181_spill] sm:$0xff] }
 0x261   :  { %v11651_v28 = vadd.f32 %v11082_v3, %v16176_v63  ;;  %v11659_v8 = vadd.f32 %v16180_v34, %v16179_v52  ;;  %v16182_v12 = vld [vmem:[#allocation180_spill] sm:$0xff]  ;;  %v9384_v15 = vpop.f32.mrf.mxu1  ;;  %v1855_v22 = vpop.f32.mrf.mxu0  ;;  %v2661_v3 = vadd.f32 %v11620_v54, %v2442_v48  ;;  %v16187_v14 = vld [vmem:[#allocation21_spill] sm:$0xff]  ;;  %v16190_v52 = vld [vmem:[#allocation38_spill] sm:$0xff] }
 0x262   :  { %v11663_v35 = vadd.f32 %v16182_v12, %v16181_v18  ;;  %v16184_v37 = vld [vmem:[#allocation36_spill] sm:$0xff]  ;;  %v2667_v63 = vadd.f32 %v11589_v0, %v2448_v57  ;;  %v2449_v39 = vadd.f32 %v1855_v22, %v11490_v53  ;;  %v11674_v34 = vadd.f32 %v16188_v31, %v16187_v14  ;;  %v16193_v12 = vld [vmem:[#allocation23_spill] sm:$0xff]  ;;  %v16198_v31 = vld [vmem:[#allocation185_spill] sm:$0xff] }
 0x263   :  { %v11667_v17 = vadd.f32 %v16185_v38, %v16184_v37  ;;  %v11678_v18 = vadd.f32 %v16191_v19, %v16190_v52  ;;  %v16194_v15 = vld [vmem:[#allocation184_spill] sm:$0xff]  ;;  %v11684_v37 = vpop.f32.mrf.mxu1  ;;  %v1859_v38 = vpop.f32.mrf.mxu0  ;;  %8380 = vmatmul.mubr.msk.bf16.gmra.mxu0 %vm251_vm1, %v10074_v27  ;;  %9434 = vmatmul.mubr.msk.bf16.gmra.mxu1 %vm251_vm1, %v10165_v58  ;;  %v2842_v57 = vpack.c.bf16 %v2660_v2, %v2660_v2  ;;  %v16200_v14 = vld [vmem:[#allocation25_spill] sm:$0xff]  ;;  %v16201_v52 = vld [vmem:[#allocation186_spill] sm:$0xff] }
 0x264   :  { %16183 = vst [vmem:[#allocation165_spill] sm:$0xff] %v11663_v35  ;;  %16189 = vst [vmem:[#allocation166_spill] sm:$0xff] %v11674_v34  ;;  %v11682_v29 = vadd.f32 %v16194_v15, %v16193_v12  ;;  %v16197_v53 = vld [vmem:[#allocation40_spill] sm:$0xff]  ;;  %v2849_v19 = vpack.c.bf16 %v2667_v63, %v2667_v63  ;;  %v2668_v22 = vadd.f32 %v11620_v54, %v2449_v39  ;;  %9437 = vmatprep.mubr.msk.bf16.mxu1 %vm9944_vm2, %v15935_v44  ;;  %v16203_v15 = vld [vmem:[#allocation42_spill] sm:$0xff] }
 0x265   :  { %16186 = vst [vmem:[#allocation10_spill] sm:$0xff] %v11667_v17  ;;  %16192 = vst [vmem:[#allocation20_spill] sm:$0xff] %v11678_v18  ;;  %v11692_v48 = vadd.f32 %v16198_v31, %v16197_v53  ;;  %v11699_v12 = vadd.f32 %v16201_v52, %v16200_v14  ;;  %v16206_v58 = vld [vmem:[#allocation27_spill] sm:$0xff]  ;;  %v16207_v18 = vld [vmem:[#allocation188_spill] sm:$0xff]  ;;  %v2455_v2 = vadd.f32 %v1859_v38, %v11494_v5  ;;  %v9387_v63 = vpop.f32.mrf.mxu1  ;;  %v1861_v53 = vpop.f32.mrf.mxu0 }
 0x266   :  { %16195 = vst [vmem:[#allocation167_spill] sm:$0xff] %v11682_v29  ;;  %16196 = vst [vmem:[#allocation11_spill] sm:$0xff] %v11684_v37  ;;  %v16204_v37 = vld [vmem:[#allocation187_spill] sm:$0xff]  ;;  %v11707_v34 = vadd.f32 %v16207_v18, %v16206_v58  ;;  %v16208_v39 = vld [vmem:[#allocation44_spill] sm:$0xff]  ;;  %v2843_v17 = vpack.c.bf16 %v2661_v3, %v2661_v3  ;;  %v11714_v35 = vmax.bf16 %v2849_v19, %v2842_v57 }
 0x267   :  { %16199 = vst [vmem:[#allocation168_spill] sm:$0xff] %v11692_v48  ;;  %16202 = vst [vmem:[#allocation22_spill] sm:$0xff] %v11699_v12  ;;  %v11703_v29 = vadd.f32 %v16204_v37, %v16203_v15  ;;  %v16209_v31 = vld [vmem:[#allocation189_spill] sm:$0xff]  ;;  %v2850_v14 = vpack.c.bf16 %v2668_v22, %v2668_v22  ;;  %v16212_v12 = vld [vmem:[#allocation190_spill] sm:$0xff]  ;;  %v2456_v63 = vadd.f32 %v1861_v53, %v11498_v13  ;;  %v1863_v3 = vpop.f32.mrf.mxu0 }
 0x268   :  { %v11712_v48 = vadd.f32 %v16209_v31, %v16208_v39  ;;  %16210 = vst [vmem:[#allocation12_spill] sm:$0xff] %v11714_v35  ;;  %v16211_v52 = vld [vmem:[#allocation29_spill] sm:$0xff]  ;;  %v16213_v15 = vld [vmem:[#allocation46_spill] sm:$0xff]  ;;  %v16216_v58 = vld [vmem:[#allocation31_spill] sm:$0xff]  ;;  %v11729_v39 = vpop.f32.mrf.mxu1 }
 0x269   :  { %16205 = vst [vmem:[#allocation169_spill] sm:$0xff] %v11703_v29  ;;  %v11718_v37 = vadd.f32 %v16212_v12, %v16211_v52  ;;  %v16214_v29 = vld [vmem:[#allocation191_spill] sm:$0xff]  ;;  %v16217_v5 = vld [vmem:[#allocation192_spill] sm:$0xff]  ;;  %16219 = vst [vmem:[#allocation13_spill] sm:$0xff] %v11729_v39 }
 0x26a   :  { %v11722_v18 = vadd.f32 %v16214_v29, %v16213_v15  ;;  %v11726_v38 = vadd.f32 %v16217_v5, %v16216_v58  ;;  %v16220_v57 = vld [vmem:[#allocation48_spill] sm:$0xff]  ;;  %v16221_v19 = vld [vmem:[#allocation193_spill] sm:$0xff]  ;;  %v16224_v12 = vld [vmem:[#allocation194_spill] sm:$0xff] }
 0x26b   :  { %v11733_v22 = vadd.f32 %v16221_v19, %v16220_v57  ;;  %v16223_v31 = vld [vmem:[#allocation33_spill] sm:$0xff]  ;;  %v16226_v35 = vld [vmem:[#allocation50_spill] sm:$0xff]  ;;  %v16227_v29 = vld [vmem:[#allocation195_spill] sm:$0xff]  ;;  %v2674_v57 = vadd.f32 %v11589_v0, %v2455_v2  ;;  %v2462_v19 = vadd.f32 %v1863_v3, %v11502_v32  ;;  %9438 = vmatmul.mubr.msk.bf16.gmra.mxu1 %vm251_vm1, %v10175_v61 }
 0x26c   :  { %16215 = vst [vmem:[#allocation170_spill] sm:$0xff] %v11722_v18  ;;  %16218 = vst [vmem:[#allocation24_spill] sm:$0xff] %v11726_v38  ;;  %v11737_v52 = vadd.f32 %v16224_v12, %v16223_v31  ;;  %v11741_v15 = vadd.f32 %v16227_v29, %v16226_v35  ;;  %v11743_v18 = vmax.bf16 %v2850_v14, %v2843_v17  ;;  %v16229_v58 = vld [vmem:[#allocation35_spill] sm:$0xff]  ;;  %v16230_v5 = vld [vmem:[#allocation196_spill] sm:$0xff]  ;;  %v9388_v31 = vpop.f32.mrf.mxu1  ;;  %v1865_v12 = vpop.f32.mrf.mxu0  ;;  %9441 = vmatprep.mubr.msk.bf16.mxu1 %vm9944_vm2, %v15935_v44 }
 0x26d   :  { %16222 = vst [vmem:[#allocation171_spill] sm:$0xff] %v11733_v22  ;;  %v11747_v13 = vadd.f32 %v16230_v5, %v16229_v58  ;;  %v16231_v53 = vld [vmem:[#allocation52_spill] sm:$0xff]  ;;  %v16232_v39 = vld [vmem:[#allocation197_spill] sm:$0xff]  ;;  %v16235_v22 = vld [vmem:[#allocation198_spill] sm:$0xff] }
 0x26e   :  { %16225 = vst [vmem:[#allocation26_spill] sm:$0xff] %v11737_v52  ;;  %16228 = vst [vmem:[#allocation172_spill] sm:$0xff] %v11743_v18  ;;  %v11751_v38 = vadd.f32 %v16232_v39, %v16231_v53  ;;  %v16234_v52 = vld [vmem:[#allocation37_spill] sm:$0xff]  ;;  %v16237_v17 = vld [vmem:[#allocation54_spill] sm:$0xff]  ;;  %v2463_v39 = vadd.f32 %v1865_v12, %v11506_v36 }
 0x26f   :  { %v11757_v35 = vadd.f32 %v16235_v22, %v16234_v52  ;;  %v16238_v14 = vld [vmem:[#allocation199_spill] sm:$0xff]  ;;  %v16241_v5 = vld [vmem:[#allocation200_spill] sm:$0xff]  ;;  %v16244_v2 = vld [vmem:[#allocation201_spill] sm:$0xff]  ;;  %v2675_v22 = vadd.f32 %v11620_v54, %v2456_v63  ;;  %v2681_v52 = vadd.f32 %v11589_v0, %v2462_v19 }
 0x270   :  { %16233 = vst [vmem:[#allocation14_spill] sm:$0xff] %v11751_v38  ;;  %v11761_v29 = vadd.f32 %v16238_v14, %v16237_v17  ;;  %v16240_v58 = vld [vmem:[#allocation39_spill] sm:$0xff]  ;;  %v16243_v53 = vld [vmem:[#allocation56_spill] sm:$0xff]  ;;  %v16246_v32 = vld [vmem:[#allocation41_spill] sm:$0xff]  ;;  %v11778_v17 = vpop.f32.mrf.mxu1  ;;  %v1869_v14 = vpop.f32.mrf.mxu0 }
 0x271   :  { %16236 = vst [vmem:[#allocation173_spill] sm:$0xff] %v11757_v35  ;;  %v11765_v18 = vadd.f32 %v16241_v5, %v16240_v58  ;;  %v11770_v38 = vadd.f32 %v16244_v2, %v16243_v53  ;;  %v16247_v3 = vld [vmem:[#allocation202_spill] sm:$0xff]  ;;  %16249 = vst [vmem:[#allocation30_spill] sm:$0xff] %v11778_v17  ;;  %v16251_v36 = vld [vmem:[#allocation203_spill] sm:$0xff]  ;;  %v2469_v63 = vadd.f32 %v1869_v14, %v11514_v47 }
 0x272   :  { %16239 = vst [vmem:[#allocation28_spill] sm:$0xff] %v11761_v29  ;;  %v11774_v31 = vadd.f32 %v16247_v3, %v16246_v32  ;;  %v16250_v58 = vld [vmem:[#allocation58_spill] sm:$0xff]  ;;  %v16253_v5 = vld [vmem:[#allocation43_spill] sm:$0xff]  ;;  %v16254_v53 = vld [vmem:[#allocation204_spill] sm:$0xff]  ;;  %v2682_v32 = vadd.f32 %v11620_v54, %v2463_v39 }
 0x273   :  { %16242 = vst [vmem:[#allocation174_spill] sm:$0xff] %v11765_v18  ;;  %16245 = vst [vmem:[#allocation15_spill] sm:$0xff] %v11770_v38  ;;  %v11784_v12 = vadd.f32 %v16251_v36, %v16250_v58  ;;  %v11788_v2 = vadd.f32 %v16254_v53, %v16253_v5  ;;  %v16256_v19 = vld [vmem:[#allocation60_spill] sm:$0xff]  ;;  %v16257_v3 = vld [vmem:[#allocation205_spill] sm:$0xff]  ;;  %v2856_v58 = vpack.c.bf16 %v2674_v57, %v2674_v57  ;;  %v1871_v5 = vpop.f32.mrf.mxu0  ;;  %9442 = vmatmul.mubr.msk.bf16.gmra.mxu1 %vm251_vm1, %v10178_v62 }
 0x274   :  { %16248 = vst [vmem:[#allocation175_spill] sm:$0xff] %v11774_v31  ;;  %v11796_v17 = vadd.f32 %v16257_v3, %v16256_v19  ;;  %v16259_v61 = vld [vmem:[#allocation45_spill] sm:$0xff]  ;;  %v16260_v31 = vld [vmem:[#allocation206_spill] sm:$0xff]  ;;  %v2863_v36 = vpack.c.bf16 %v2681_v52, %v2681_v52  ;;  %v16264_v47 = vld [vmem:[#allocation47_spill] sm:$0xff]  ;;  %v2864_v3 = vpack.c.bf16 %v2682_v32, %v2682_v32  ;;  %v2857_v57 = vpack.c.bf16 %v2675_v22, %v2675_v22 }
 0x275   :  { %16252 = vst [vmem:[#allocation176_spill] sm:$0xff] %v11784_v12  ;;  %16255 = vst [vmem:[#allocation16_spill] sm:$0xff] %v11788_v2  ;;  %v11800_v38 = vadd.f32 %v16260_v31, %v16259_v61  ;;  %v9391_v12 = vpop.f32.mrf.mxu1  ;;  %v16261_v53 = vld [vmem:[#allocation62_spill] sm:$0xff]  ;;  %v16262_v2 = vld [vmem:[#allocation207_spill] sm:$0xff]  ;;  %v2470_v52 = vadd.f32 %v1871_v5, %v11518_v49  ;;  %v2688_v32 = vadd.f32 %v11589_v0, %v2469_v63  ;;  %9445 = vmatprep.mubr.msk.bf16.mxu1 %vm9944_vm2, %v15935_v44 }
 0x276   :  { %16258 = vst [vmem:[#allocation177_spill] sm:$0xff] %v11796_v17  ;;  %v11804_v39 = vadd.f32 %v16262_v2, %v16261_v53  ;;  %v16265_v14 = vld [vmem:[#allocation208_spill] sm:$0xff]  ;;  %v16268_v35 = vld [vmem:[#allocation209_spill] sm:$0xff]  ;;  %v16270_v31 = vld [vmem:[#allocation210_spill] sm:$0xff]  ;;  %v1873_v2 = vpop.f32.mrf.mxu0  ;;  %v11821_v53 = vmax.bf16 %v2863_v36, %v2856_v58 }
 0x277   :  { %v11808_v18 = vadd.f32 %v16265_v14, %v16264_v47  ;;  %v16267_v29 = vld [vmem:[#allocation64_spill] sm:$0xff]  ;;  %v16269_v17 = vld [vmem:[#allocation49_spill] sm:$0xff]  ;;  %v11819_v12 = vpop.f32.mrf.mxu1  ;;  %v16275_v47 = vld [vmem:[#allocation211_spill] sm:$0xff] }
 0x278   :  { %16263 = vst [vmem:[#allocation32_spill] sm:$0xff] %v11804_v39  ;;  %v11812_v19 = vadd.f32 %v16268_v35, %v16267_v29  ;;  %v11816_v61 = vadd.f32 %v16270_v31, %v16269_v17  ;;  %16272 = vst [vmem:[#allocation34_spill] sm:$0xff] %v11819_v12  ;;  %v16274_v39 = vld [vmem:[#allocation66_spill] sm:$0xff]  ;;  %v16277_v35 = vld [vmem:[#allocation212_spill] sm:$0xff]  ;;  %v2476_v17 = vadd.f32 %v1873_v2, %v11522_v51  ;;  %3220 = vrot.lane.b32.xlu0 %v11821_v53, %s9945_s21  ;;  %v1875_v63 = vpop.f32.mrf.mxu0 }
 0x279   :  { %16266 = vst [vmem:[#allocation17_spill] sm:$0xff] %v11808_v18  ;;  %16273 = vst [vmem:[#allocation179_spill] sm:$0xff] %v11821_v53  ;;  %v11825_v14 = vadd.f32 %v16275_v47, %v16274_v39  ;;  %v16276_v18 = vld [vmem:[#allocation51_spill] sm:$0xff]  ;;  %v16278_v22 = vld [vmem:[#allocation68_spill] sm:$0xff]  ;;  %v11847_v47 = vmax.bf16 %v2864_v3, %v2857_v57  ;;  %v2689_v57 = vadd.f32 %v11620_v54, %v2470_v52 }
 0x27a   :  { %16271 = vst [vmem:[#allocation178_spill] sm:$0xff] %v11816_v61  ;;  %v11829_v29 = vadd.f32 %v16277_v35, %v16276_v18  ;;  %v16279_v31 = vld [vmem:[#allocation213_spill] sm:$0xff]  ;;  %v16281_v12 = vld [vmem:[#allocation214_spill] sm:$0xff]  ;;  %v16284_v61 = vld [vmem:[#allocation215_spill] sm:$0xff]  ;;  %v9392_v18 = vpop.f32.mrf.mxu1 }
 0x27b   :  { %v11835_v49 = vadd.f32 %v16279_v31, %v16278_v22  ;;  %v16280_v5 = vld [vmem:[#allocation53_spill] sm:$0xff]  ;;  %v16283_v36 = vld [vmem:[#allocation2_spill] sm:$0xff]  ;;  %16286 = vst [vmem:[#allocation36_spill] sm:$0xff] %v11847_v47  ;;  %v16287_v51 = vld [vmem:[#allocation55_spill] sm:$0xff]  ;;  %3222 = vrot.lane.b32.xlu1 %v11847_v47, %s9945_s21  ;;  %9446 = vmatmul.mubr.msk.bf16.gmra.mxu1 %vm251_vm1, %v10072_v26  ;;  %v16349_v26 = vsub.s32 2, %v11478_v46 }
 0x27c   :  { %v11839_v58 = vadd.f32 %v16281_v12, %v16280_v5  ;;  %v11843_v39 = vadd.f32 %v16284_v61, %v16283_v36  ;;  %v16288_v2 = vld [vmem:[#allocation216_spill] sm:$0xff]  ;;  %v16290_v22 = vld [vmem:[#allocation3_spill] sm:$0xff]  ;;  %v16291_v31 = vld [vmem:[#allocation217_spill] sm:$0xff]  ;;  %v2695_v5 = vadd.f32 %v11589_v0, %v2476_v17  ;;  %v2477_v61 = vadd.f32 %v1875_v63, %v11529_v56  ;;  %9449 = vmatprep.mubr.msk.bf16.mxu1 %vm9944_vm2, %v15935_v44 }
 0x27d   :  { %v11851_v35 = vadd.f32 %v16288_v2, %v16287_v51  ;;  %v11855_v12 = vadd.f32 %v16291_v31, %v16290_v22  ;;  %v16293_v36 = vld [vmem:[#allocation57_spill] sm:$0xff]  ;;  %v16296_v18 = vld [vmem:[#allocation4_spill] sm:$0xff]  ;;  %v16297_v53 = vld [vmem:[#allocation219_spill] sm:$0xff]  ;;  %v11870_v51 = vpop.f32.mrf.mxu1  ;;  %v1879_v2 = vpop.f32.mrf.mxu0 }
 0x27e   :  { %16282 = vst [vmem:[#allocation19_spill] sm:$0xff] %v11839_v58  ;;  %16285 = vst [vmem:[#allocation180_spill] sm:$0xff] %v11843_v39  ;;  %v16294_v39 = vld [vmem:[#allocation218_spill] sm:$0xff]  ;;  %v11865_v3 = vadd.f32 %v16297_v53, %v16296_v18  ;;  %v16300_v56 = vld [vmem:[#allocation59_spill] sm:$0xff]  ;;  %v2877_v22 = vpack.c.bf16 %v2695_v5, %v2695_v5  ;;  %v2696_v53 = vadd.f32 %v11620_v54, %v2477_v61 }
 0x27f   :  { %16289 = vst [vmem:[#allocation181_spill] sm:$0xff] %v11851_v35  ;;  %16292 = vst [vmem:[#allocation21_spill] sm:$0xff] %v11855_v12  ;;  %v11861_v58 = vadd.f32 %v16294_v39, %v16293_v36  ;;  %v16301_v17 = vld [vmem:[#allocation220_spill] sm:$0xff]  ;;  %v2870_v39 = vpack.c.bf16 %v2688_v32, %v2688_v32  ;;  %v16303_v52 = vld [vmem:[#allocation5_spill] sm:$0xff]  ;;  %v2483_v32 = vadd.f32 %v1879_v2, %v11533_v25  ;;  %v9395_v5 = vpop.f32.mrf.mxu1 }
 0x280   :  { %16298 = vst [vmem:[#allocation38_spill] sm:$0xff] %v11865_v3  ;;  %16299 = vst [vmem:[#allocation183_spill] sm:$0xff] %v11870_v51  ;;  %v11876_v63 = vadd.f32 %v16301_v17, %v16300_v56  ;;  %v16304_v31 = vld [vmem:[#allocation221_spill] sm:$0xff]  ;;  %v16307_v51 = vld [vmem:[#allocation222_spill] sm:$0xff]  ;;  %v1881_v56 = vpop.f32.mrf.mxu0  ;;  %v2871_v2 = vpack.c.bf16 %v2689_v57, %v2689_v57 }
 0x281   :  { %16295 = vst [vmem:[#allocation182_spill] sm:$0xff] %v11861_v58  ;;  %v11883_v36 = vadd.f32 %v16304_v31, %v16303_v52  ;;  %v16306_v18 = vld [vmem:[#allocation61_spill] sm:$0xff]  ;;  %v16309_v62 = vld [vmem:[#allocation6_spill] sm:$0xff]  ;;  %v16310_v12 = vld [vmem:[#allocation223_spill] sm:$0xff]  ;;  %v2878_v31 = vpack.c.bf16 %v2696_v53, %v2696_v53  ;;  %v2484_v5 = vadd.f32 %v1881_v56, %v11537_v55 }
 0x282   :  { %16302 = vst [vmem:[#allocation23_spill] sm:$0xff] %v11876_v63  ;;  %v11887_v47 = vadd.f32 %v16307_v51, %v16306_v18  ;;  %v11891_v3 = vadd.f32 %v16310_v12, %v16309_v62  ;;  %v16311_v61 = vld [vmem:[#allocation63_spill] sm:$0xff]  ;;  %v16312_v17 = vld [vmem:[#allocation224_spill] sm:$0xff]  ;;  %v16315_v35 = vld [vmem:[#allocation225_spill] sm:$0xff] }
 0x283   :  { %16305 = vst [vmem:[#allocation184_spill] sm:$0xff] %v11883_v36  ;;  %v11896_v63 = vadd.f32 %v16312_v17, %v16311_v61  ;;  %v16314_v58 = vld [vmem:[#allocation7_spill] sm:$0xff]  ;;  %v11902_v36 = vmax.bf16 %v2877_v22, %v2870_v39  ;;  %v16317_v51 = vld [vmem:[#allocation65_spill] sm:$0xff]  ;;  %v16318_v18 = vld [vmem:[#allocation226_spill] sm:$0xff]  ;;  %v11913_v61 = vpop.f32.mrf.mxu1  ;;  %v1883_v17 = vpop.f32.mrf.mxu0  ;;  %9450 = vmatmul.mubr.msk.bf16.gmra.mxu1 %vm251_vm1, %v10074_v27 }
 0x284   :  { %16308 = vst [vmem:[#allocation40_spill] sm:$0xff] %v11887_v47  ;;  %v11900_v52 = vadd.f32 %v16315_v35, %v16314_v58  ;;  %v11906_v47 = vadd.f32 %v16318_v18, %v16317_v51  ;;  %v16320_v12 = vld [vmem:[#allocation8_spill] sm:$0xff]  ;;  %v16321_v62 = vld [vmem:[#allocation227_spill] sm:$0xff]  ;;  %16322 = vst [vmem:[#allocation42_spill] sm:$0xff] %v11913_v61  ;;  %v11935_v61 = vmax.bf16 %v2878_v31, %v2871_v2 }
 0x285   :  { %16313 = vst [vmem:[#allocation185_spill] sm:$0xff] %v11896_v63  ;;  %16316 = vst [vmem:[#allocation25_spill] sm:$0xff] %v11902_v36  ;;  %v11910_v25 = vadd.f32 %v16321_v62, %v16320_v12  ;;  %v16323_v63 = vld [vmem:[#allocation67_spill] sm:$0xff]  ;;  %v16324_v58 = vld [vmem:[#allocation228_spill] sm:$0xff]  ;;  %v2490_v12 = vadd.f32 %v1883_v17, %v11541_v59  ;;  %3234 = vrot.lane.b32.xlu1 %v11902_v36, %s9945_s21  ;;  %v9396_v62 = vpop.f32.mrf.mxu1  ;;  %v2639_v36 = vsub.s32 3, %v11478_v46 }
 0x286   :  { %16319 = vst [vmem:[#allocation186_spill] sm:$0xff] %v11906_v47  ;;  %v11917_v35 = vadd.f32 %v16324_v58, %v16323_v63  ;;  %v16325_v39 = vld [vmem:[#allocation9_spill] sm:$0xff]  ;;  %v16328_v18 = vld [vmem:[#allocation230_spill] sm:$0xff]  ;;  %v16331_v57 = vld [vmem:[#allocation231_spill] sm:$0xff]  ;;  %v2702_v63 = vadd.f32 %v11589_v0, %v2483_v32  ;;  %v1885_v58 = vpop.f32.mrf.mxu0  ;;  %v2703_v2 = vadd.f32 %v11620_v54, %v2484_v5  ;;  %3236 = vrot.lane.b32.xlu0 %v11935_v61, %s9945_s21 }
 0x287   :  { %v16326_v22 = vld [vmem:[#allocation229_spill] sm:$0xff]  ;;  %v16330_v55 = vld [vmem:[#allocation70_spill] sm:$0xff]  ;;  %16333 = vst [vmem:[#allocation188_spill] sm:$0xff] %v11935_v61  ;;  %v2709_v59 = vadd.f32 %v11589_v0, %v2490_v12  ;;  %v2491_v17 = vadd.f32 %v1885_v58, %v11552_v16  ;;  %v16344_v12 = vld [vmem:[#allocation235_spill] sm:$0xff] }
 0x288   :  { %v11921_v53 = vadd.f32 %v16326_v22, %v16325_v39  ;;  %v16327_v51 = vld [vmem:[#allocation69_spill] sm:$0xff]  ;;  %v11932_v56 = vadd.f32 %v16331_v57, %v16330_v55  ;;  %v16334_v22 = vld [vmem:[#allocation71_spill] sm:$0xff]  ;;  %v16337_v55 = vld [vmem:[#allocation72_spill] sm:$0xff]  ;;  %v2884_v61 = vpack.c.bf16 %v2702_v63, %v2702_v63  ;;  %v11985_v63 = vrot.slane %v11548_v4, %v2639_v36 }
 0x289   :  { %v11925_v47 = vadd.f32 %v16328_v18, %v16327_v51  ;;  %v16335_v51 = vld [vmem:[#allocation232_spill] sm:$0xff]  ;;  %v16338_v57 = vld [vmem:[#allocation233_spill] sm:$0xff]  ;;  %v16341_v62 = vld [vmem:[#allocation234_spill] sm:$0xff] }
 0x28a   :  { %16332 = vst [vmem:[#allocation27_spill] sm:$0xff] %v11932_v56  ;;  %v11940_v18 = vadd.f32 %v16335_v51, %v16334_v22  ;;  %v11947_v56 = vadd.f32 %v16338_v57, %v16337_v55  ;;  %v16340_v32 = vld [vmem:[#allocation73_spill] sm:$0xff]  ;;  %v1889_v22 = vpop.f32.mrf.mxu0  ;;  %v2012_v51 = vpop.f32.mrf.mxu1  ;;  %v16343_v16 = vld [vmem:[#allocation74_spill] sm:$0xff]  ;;  %v2891_v55 = vpack.c.bf16 %v2709_v59, %v2709_v59  ;;  %v2710_v57 = vadd.f32 %v11620_v54, %v2491_v17  ;;  %v16346_v5 = vld [vmem:[#allocation75_spill] sm:$0xff] }
 0x28b   :  { %16329 = vst [vmem:[#allocation187_spill] sm:$0xff] %v11925_v47  ;;  %v11951_v31 = vadd.f32 %v16341_v62, %v16340_v32  ;;  %v11960_v58 = vadd.f32 %v16344_v12, %v16343_v16  ;;  %v2443_v32 = vadd.f32 %v2012_v51, %v11560_v11  ;;  %v16347_v62 = vld [vmem:[#allocation236_spill] sm:$0xff]  ;;  %v11974_v16 = vrot.slane %v11548_v4, %v16349_v26  ;;  %v16353_v51 = vld [vmem:[#allocation77_spill] sm:$0xff]  ;;  %v16354_v44 = vld [vmem:[#allocation238_spill] sm:$0xff] }
 0x28c   :  { %16336 = vst [vmem:[#allocation44_spill] sm:$0xff] %v11940_v18  ;;  %16339 = vst [vmem:[#allocation189_spill] sm:$0xff] %v11947_v56  ;;  %v11968_v39 = vadd.f32 %v16347_v62, %v16346_v5  ;;  %v1891_v59 = vpop.f32.mrf.mxu0  ;;  %v2014_v12 = vpop.f32.mrf.mxu1  ;;  %v16350_v17 = vld [vmem:[#allocation76_spill] sm:$0xff]  ;;  %v11982_v56 = vadd.f32 %v16354_v44, %v16353_v51  ;;  %v2892_v5 = vpack.c.bf16 %v2710_v57, %v2710_v57  ;;  %v16356_v47 = vld [vmem:[#allocation78_spill] sm:$0xff] }
 0x28d   :  { %16342 = vst [vmem:[#allocation29_spill] sm:$0xff] %v11951_v31  ;;  %16345 = vst [vmem:[#allocation190_spill] sm:$0xff] %v11960_v58  ;;  %v2497_v31 = vadd.f32 %v1889_v22, %v11556_v7  ;;  %v16351_v58 = vld [vmem:[#allocation237_spill] sm:$0xff]  ;;  %v2885_v7 = vpack.c.bf16 %v2703_v2, %v2703_v2  ;;  %v2498_v22 = vadd.f32 %v1891_v59, %v11567_v20  ;;  %v16359_v44 = vld [vmem:[#allocation240_spill] sm:$0xff] }
 0x28e   :  { %16348 = vst [vmem:[#allocation46_spill] sm:$0xff] %v11968_v39  ;;  %v11978_v11 = vadd.f32 %v16351_v58, %v16350_v17  ;;  %v2444_v62 = vadd.f32 %v2014_v12, %v11571_v30  ;;  %v1893_v26 = vpop.f32.mrf.mxu0  ;;  %v2016_v39 = vpop.f32.mrf.mxu1  ;;  %v11989_v18 = vmax.bf16 %v2891_v55, %v2884_v61  ;;  %v16357_v58 = vld [vmem:[#allocation239_spill] sm:$0xff]  ;;  %v16360_v57 = vld [vmem:[#allocation80_spill] sm:$0xff]  ;;  %v16361_v4 = vld [vmem:[#allocation241_spill] sm:$0xff]  ;;  %v2662_v2 = vadd.f32 %v11974_v16, %v2443_v32 }
 0x28f   :  { %v11993_v17 = vadd.f32 %v16357_v58, %v16356_v47  ;;  %v12001_v36 = vadd.f32 %v16361_v4, %v16360_v57  ;;  %v2504_v20 = vadd.f32 %v1893_v26, %v11575_v33  ;;  %v2716_v30 = vadd.f32 %v11589_v0, %v2497_v31  ;;  %v16363_v31 = vld [vmem:[#allocation81_spill] sm:$0xff]  ;;  %v16364_v26 = vld [vmem:[#allocation242_spill] sm:$0xff] }
 0x290   :  { %16352 = vst [vmem:[#allocation191_spill] sm:$0xff] %v11978_v11  ;;  %16355 = vst [vmem:[#allocation31_spill] sm:$0xff] %v11989_v18  ;;  %v16358_v11 = vld [vmem:[#allocation79_spill] sm:$0xff]  ;;  %v2450_v61 = vadd.f32 %v2016_v39, %v11585_v9  ;;  %3248 = vrot.lane.b32.xlu0 %v11989_v18, %s9945_s21  ;;  %v1895_v47 = vpop.f32.mrf.mxu0  ;;  %v2018_v55 = vpop.f32.mrf.mxu1  ;;  %v12009_v59 = vmax.bf16 %v2892_v5, %v2885_v7  ;;  %v2663_v12 = vadd.f32 %v11985_v63, %v2444_v62 }
 0x291   :  { %v11997_v51 = vadd.f32 %v16359_v44, %v16358_v11  ;;  %v2723_v11 = vadd.f32 %v11589_v0, %v2504_v20  ;;  %v2505_v58 = vadd.f32 %v1895_v47, %v11596_v42  ;;  %v2451_v33 = vadd.f32 %v2018_v55, %v11600_v50 }
 0x292   :  { %16362 = vst [vmem:[#allocation192_spill] sm:$0xff] %v12009_v59  ;;  %v12017_v32 = vadd.f32 %v16364_v26, %v16363_v31  ;;  %v2717_v9 = vadd.f32 %v11620_v54, %v2498_v22  ;;  %v2669_v39 = vadd.f32 %v11974_v16, %v2450_v61  ;;  %3250 = vrot.lane.b32.xlu1 %v12009_v59, %s9945_s21  ;;  %v1899_v5 = vpop.f32.mrf.mxu0  ;;  %v2022_v7 = vpop.f32.mrf.mxu1 }
 0x293   :  { %v2905_v62 = vpack.c.bf16 %v2723_v11, %v2723_v11  ;;  %v2724_v42 = vadd.f32 %v11620_v54, %v2505_v58  ;;  %v2670_v50 = vadd.f32 %v11985_v63, %v2451_v33  ;;  %v2511_v44 = vadd.f32 %v1899_v5, %v11604_v41 }
 0x294   :  { %v2898_v57 = vpack.c.bf16 %v2716_v30, %v2716_v30  ;;  %v2844_v4 = vpack.c.bf16 %v2662_v2, %v2662_v2  ;;  %v2851_v22 = vpack.c.bf16 %v2669_v39, %v2669_v39  ;;  %v2457_v20 = vadd.f32 %v2022_v7, %v11608_v45  ;;  %v1901_v61 = vpop.f32.mrf.mxu0  ;;  %v2024_v47 = vpop.f32.mrf.mxu1  ;;  %v16366_v30 = vld [vmem:[#allocation82_spill] sm:$0xff]  ;;  %v16367_v2 = vld [vmem:[#allocation243_spill] sm:$0xff] }
 0x295   :  { %v2845_v55 = vpack.c.bf16 %v2663_v12, %v2663_v12  ;;  %v2906_v31 = vpack.c.bf16 %v2724_v42, %v2724_v42  ;;  %v2852_v26 = vpack.c.bf16 %v2670_v50, %v2670_v50  ;;  %v2512_v59 = vadd.f32 %v1901_v61, %v11612_v21  ;;  %v16369_v21 = vld [vmem:[#allocation83_spill] sm:$0xff]  ;;  %v16372_v61 = vld [vmem:[#allocation84_spill] sm:$0xff] }
 0x296   :  { %v2899_v27 = vpack.c.bf16 %v2717_v9, %v2717_v9  ;;  %v12030_v11 = vmax.bf16 %v2851_v22, %v2844_v4  ;;  %v2458_v58 = vadd.f32 %v2024_v47, %v11616_v1  ;;  %v1903_v33 = vpop.f32.mrf.mxu0  ;;  %v2026_v18 = vpop.f32.mrf.mxu1  ;;  %v12033_v41 = vmax.bf16 %v2905_v62, %v2898_v57  ;;  %v16370_v9 = vld [vmem:[#allocation244_spill] sm:$0xff]  ;;  %v16373_v47 = vld [vmem:[#allocation245_spill] sm:$0xff] }
 0x297   :  { %v12037_v39 = vadd.f32 %v16367_v2, %v16366_v30  ;;  %v12039_v45 = vmax.bf16 %v2852_v26, %v2845_v55  ;;  %v2730_v12 = vadd.f32 %v11589_v0, %v2511_v44  ;;  %v2518_v5 = vadd.f32 %v1903_v33, %v11624_v24 }
 0x298   :  { %16365 = vst [vmem:[#allocation48_spill] sm:$0xff] %v12030_v11  ;;  %v12045_v7 = vadd.f32 %v16370_v9, %v16369_v21  ;;  %v2676_v1 = vadd.f32 %v11974_v16, %v2457_v20  ;;  %v2464_v42 = vadd.f32 %v2026_v18, %v11628_v10  ;;  %3262 = vrot.lane.b32.xlu1 %v12033_v41, %s9945_s21  ;;  %v1905_v62 = vpop.f32.mrf.mxu0  ;;  %v2028_v50 = vpop.f32.mrf.mxu1  ;;  %v16374_v10 = vld [vmem:[#allocation85_spill] sm:$0xff]  ;;  %v16375_v18 = vld [vmem:[#allocation246_spill] sm:$0xff] }
 0x299   :  { %16368 = vst [vmem:[#allocation193_spill] sm:$0xff] %v12039_v45  ;;  %v12051_v57 = vmax.bf16 %v2906_v31, %v2899_v27  ;;  %v2731_v4 = vadd.f32 %v11620_v54, %v2512_v59  ;;  %v2737_v44 = vadd.f32 %v11589_v0, %v2518_v5  ;;  %v2519_v24 = vadd.f32 %v1905_v62, %v11632_v60 }
 0x29a   :  { %v2465_v22 = vadd.f32 %v2028_v50, %v11636_v23  ;;  %v12059_v20 = vadd.f32 %v16373_v47, %v16372_v61  ;;  %v12063_v55 = vadd.f32 %v16375_v18, %v16374_v10  ;;  %v2677_v26 = vadd.f32 %v11985_v63, %v2458_v58  ;;  %v1909_v59 = vpop.f32.mrf.mxu0  ;;  %v2032_v27 = vpop.f32.mrf.mxu1 }
 0x29b   :  { %16371 = vst [vmem:[#allocation33_spill] sm:$0xff] %v12051_v57  ;;  %v2683_v31 = vadd.f32 %v11974_v16, %v2464_v42  ;;  %3264 = vrot.lane.b32.xlu0 %v12051_v57, %s9945_s21  ;;  %v2912_v60 = vpack.c.bf16 %v2730_v12, %v2730_v12  ;;  %v2919_v33 = vpack.c.bf16 %v2737_v44, %v2737_v44 }
 0x29c   :  { %v2738_v23 = vadd.f32 %v11620_v54, %v2519_v24  ;;  %v2684_v30 = vadd.f32 %v11985_v63, %v2465_v22  ;;  %v2858_v2 = vpack.c.bf16 %v2676_v1, %v2676_v1  ;;  %v2525_v21 = vadd.f32 %v1909_v59, %v11642_v43  ;;  %v1911_v58 = vpop.f32.mrf.mxu0  ;;  %v2034_v62 = vpop.f32.mrf.mxu1  ;;  %v16378_v22 = vld [vmem:[#allocation86_spill] sm:$0xff]  ;;  %v16379_v43 = vld [vmem:[#allocation247_spill] sm:$0xff]  ;;  %v16381_v59 = vld [vmem:[#allocation248_spill] sm:$0xff] }
 0x29d   :  { %v2865_v5 = vpack.c.bf16 %v2683_v31, %v2683_v31  ;;  %v2471_v9 = vadd.f32 %v2032_v27, %v11646_v40  ;;  %v2913_v42 = vpack.c.bf16 %v2731_v4, %v2731_v4  ;;  %v2526_v47 = vadd.f32 %v1911_v58, %v11651_v28  ;;  %v16380_v40 = vld [vmem:[#allocation87_spill] sm:$0xff]  ;;  %v16382_v28 = vld [vmem:[#allocation165_spill] sm:$0xff] }
 0x29e   :  { %v2920_v50 = vpack.c.bf16 %v2738_v23, %v2738_v23  ;;  %v2866_v61 = vpack.c.bf16 %v2684_v30, %v2684_v30  ;;  %v2859_v10 = vpack.c.bf16 %v2677_v26, %v2677_v26  ;;  %v2472_v12 = vadd.f32 %v2034_v62, %v11655_v6  ;;  %v1913_v44 = vpop.f32.mrf.mxu0  ;;  %v2036_v24 = vpop.f32.mrf.mxu1  ;;  %v16385_v62 = vld [vmem:[#allocation10_spill] sm:$0xff] }
 0x29f   :  { %v12075_v18 = vmax.bf16 %v2865_v5, %v2858_v2  ;;  %v12077_v1 = vmax.bf16 %v2919_v33, %v2912_v60  ;;  %v12081_v31 = vadd.f32 %v16379_v43, %v16378_v22  ;;  %v12085_v4 = vadd.f32 %v16381_v59, %v16380_v40  ;;  %v16388_v22 = vld [vmem:[#allocation89_spill] sm:$0xff]  ;;  %v16389_v43 = vld [vmem:[#allocation250_spill] sm:$0xff] }
 0x2a0   :  { %v2532_v27 = vadd.f32 %v1913_v44, %v11659_v8  ;;  %v2478_v26 = vadd.f32 %v2036_v24, %v16382_v28  ;;  %v2744_v6 = vadd.f32 %v11589_v0, %v2525_v21  ;;  %v2690_v23 = vadd.f32 %v11974_v16, %v2471_v9  ;;  %v1915_v60 = vpop.f32.mrf.mxu0  ;;  %v2038_v33 = vpop.f32.mrf.mxu1  ;;  %v16386_v21 = vld [vmem:[#allocation88_spill] sm:$0xff]  ;;  %v16387_v24 = vld [vmem:[#allocation249_spill] sm:$0xff] }
 0x2a1   :  { %16376 = vst [vmem:[#allocation194_spill] sm:$0xff] %v12075_v18  ;;  %16377 = vst [vmem:[#allocation50_spill] sm:$0xff] %v12077_v1  ;;  %3224 = vrot.lane.b32.xlu0 %v12075_v18, %s9945_s21  ;;  %v12093_v30 = vmax.bf16 %v2920_v50, %v2913_v42  ;;  %v12095_v2 = vmax.bf16 %v2866_v61, %v2859_v10  ;;  %v2745_v5 = vadd.f32 %v11620_v54, %v2526_v47  ;;  %v16390_v50 = vld [vmem:[#allocation166_spill] sm:$0xff]  ;;  %v16400_v18 = vld [vmem:[#allocation169_spill] sm:$0xff] }
 0x2a2   :  { %v2751_v58 = vadd.f32 %v11589_v0, %v2532_v27  ;;  %v2697_v8 = vadd.f32 %v11974_v16, %v2478_v26  ;;  %v2533_v44 = vadd.f32 %v1915_v60, %v16385_v62  ;;  %v12103_v9 = vadd.f32 %v16387_v24, %v16386_v21  ;;  %v1919_v47 = vpop.f32.mrf.mxu0  ;;  %v2042_v10 = vpop.f32.mrf.mxu1  ;;  %v16391_v26 = vld [vmem:[#allocation20_spill] sm:$0xff] }
 0x2a3   :  { %16383 = vst [vmem:[#allocation195_spill] sm:$0xff] %v12093_v30  ;;  %16384 = vst [vmem:[#allocation35_spill] sm:$0xff] %v12095_v2  ;;  %v12107_v40 = vadd.f32 %v16389_v43, %v16388_v22  ;;  %v2691_v42 = vadd.f32 %v11985_v63, %v2472_v12  ;;  %v2479_v61 = vadd.f32 %v2038_v33, %v16390_v50  ;;  %3278 = vrot.lane.b32.xlu1 %v12093_v30, %s9945_s21  ;;  %v16392_v22 = vld [vmem:[#allocation167_spill] sm:$0xff]  ;;  %v16394_v30 = vld [vmem:[#allocation168_spill] sm:$0xff] }
 0x2a4   :  { %v2933_v59 = vpack.c.bf16 %v2751_v58, %v2751_v58  ;;  %v2879_v27 = vpack.c.bf16 %v2697_v8, %v2697_v8  ;;  %v2752_v28 = vadd.f32 %v11620_v54, %v2533_v44  ;;  %v2539_v60 = vadd.f32 %v1919_v47, %v16391_v26  ;;  %v1921_v12 = vpop.f32.mrf.mxu0  ;;  %v2044_v33 = vpop.f32.mrf.mxu1  ;;  %v16393_v8 = vld [vmem:[#allocation22_spill] sm:$0xff] }
 0x2a5   :  { %v2926_v62 = vpack.c.bf16 %v2744_v6, %v2744_v6  ;;  %v2872_v21 = vpack.c.bf16 %v2690_v23, %v2690_v23  ;;  %v2698_v24 = vadd.f32 %v11985_v63, %v2479_v61  ;;  %v2485_v43 = vadd.f32 %v2042_v10, %v16392_v22  ;;  %3276 = vrot.lane.b32.xlu0 %v12077_v1, %s9945_s21  ;;  %v16396_v10 = vld [vmem:[#allocation90_spill] sm:$0xff]  ;;  %v16397_v22 = vld [vmem:[#allocation251_spill] sm:$0xff] }
 0x2a6   :  { %v2927_v50 = vpack.c.bf16 %v2745_v5, %v2745_v5  ;;  %v2934_v11 = vpack.c.bf16 %v2752_v28, %v2752_v28  ;;  %v2758_v58 = vadd.f32 %v11589_v0, %v2539_v60  ;;  %v2486_v45 = vadd.f32 %v2044_v33, %v16393_v8  ;;  %v1923_v6 = vpop.f32.mrf.mxu0  ;;  %v2046_v23 = vpop.f32.mrf.mxu1  ;;  %v16398_v1 = vld [vmem:[#allocation91_spill] sm:$0xff]  ;;  %v16399_v5 = vld [vmem:[#allocation252_spill] sm:$0xff] }
 0x2a7   :  { %v2880_v44 = vpack.c.bf16 %v2698_v24, %v2698_v24  ;;  %v2540_v47 = vadd.f32 %v1921_v12, %v16394_v30  ;;  %v12122_v26 = vmax.bf16 %v2879_v27, %v2872_v21  ;;  %v12124_v61 = vmax.bf16 %v2933_v59, %v2926_v62 }
 0x2a8   :  { %v12128_v57 = vadd.f32 %v16397_v22, %v16396_v10  ;;  %v12132_v28 = vadd.f32 %v16399_v5, %v16398_v1  ;;  %v2873_v60 = vpack.c.bf16 %v2691_v42, %v2691_v42  ;;  %v2546_v33 = vadd.f32 %v1923_v6, %v16400_v18  ;;  %v1925_v59 = vpop.f32.mrf.mxu0  ;;  %v2048_v27 = vpop.f32.mrf.mxu1 }
 0x2a9   :  { %16395 = vst [vmem:[#allocation196_spill] sm:$0xff] %v12124_v61  ;;  %v2704_v24 = vadd.f32 %v11974_v16, %v2485_v43  ;;  %v2492_v30 = vadd.f32 %v2046_v23, %v11707_v34  ;;  %3238 = vrot.lane.b32.xlu1 %v12122_v26, %s9945_s21  ;;  %3226 = vrot.lane.b32.xlu0 %v12095_v2, %s9945_s21  ;;  %v16410_v2 = vld [vmem:[#allocation93_spill] sm:$0xff] }
 0x2aa   :  { %v12141_v62 = vmax.bf16 %v2934_v11, %v2927_v50  ;;  %v2940_v21 = vpack.c.bf16 %v2758_v58, %v2758_v58  ;;  %v2705_v1 = vadd.f32 %v11985_v63, %v2486_v45  ;;  %v2765_v42 = vadd.f32 %v11589_v0, %v2546_v33  ;;  %v1929_v8 = vpop.f32.mrf.mxu0  ;;  %v2052_v6 = vpop.f32.mrf.mxu1  ;;  %v16403_v50 = vld [vmem:[#allocation170_spill] sm:$0xff]  ;;  %v16404_v45 = vld [vmem:[#allocation24_spill] sm:$0xff] }
 0x2ab   :  { %v2547_v18 = vadd.f32 %v1925_v59, %v11712_v48  ;;  %v2759_v43 = vadd.f32 %v11620_v54, %v2540_v47  ;;  %v2711_v34 = vadd.f32 %v11974_v16, %v2492_v30  ;;  %v2493_v12 = vadd.f32 %v2048_v27, %v11718_v37  ;;  %v16405_v59 = vld [vmem:[#allocation171_spill] sm:$0xff] }
 0x2ac   :  { %16401 = vst [vmem:[#allocation52_spill] sm:$0xff] %v12141_v62  ;;  %v12149_v23 = vmax.bf16 %v2880_v44, %v2873_v60  ;;  %v2947_v10 = vpack.c.bf16 %v2765_v42, %v2765_v42  ;;  %v2553_v58 = vadd.f32 %v1929_v8, %v16403_v50  ;;  %v2499_v22 = vadd.f32 %v2052_v6, %v16404_v45  ;;  %v1931_v37 = vpop.f32.mrf.mxu0  ;;  %v2054_v44 = vpop.f32.mrf.mxu1  ;;  %v16408_v6 = vld [vmem:[#allocation92_spill] sm:$0xff]  ;;  %v16409_v50 = vld [vmem:[#allocation253_spill] sm:$0xff] }
 0x2ad   :  { %v2766_v11 = vadd.f32 %v11620_v54, %v2547_v18  ;;  %v2886_v5 = vpack.c.bf16 %v2704_v24, %v2704_v24  ;;  %v2893_v33 = vpack.c.bf16 %v2711_v34, %v2711_v34  ;;  %v2712_v48 = vadd.f32 %v11985_v63, %v2493_v12  ;;  %3290 = vrot.lane.b32.xlu1 %v12124_v61, %s9945_s21  ;;  %v16427_v61 = vld [vmem:[#allocation16_spill] sm:$0xff] }
 0x2ae   :  { %16402 = vst [vmem:[#allocation197_spill] sm:$0xff] %v12149_v23  ;;  %3292 = vrot.lane.b32.xlu0 %v12141_v62, %s9945_s21  ;;  %v2887_v47 = vpack.c.bf16 %v2705_v1, %v2705_v1  ;;  %v2772_v30 = vadd.f32 %v11589_v0, %v2553_v58  ;;  %v2554_v27 = vadd.f32 %v1931_v37, %v16405_v59  ;;  %v1933_v18 = vpop.f32.mrf.mxu0  ;;  %v2056_v34 = vpop.f32.mrf.mxu1  ;;  %v16411_v1 = vld [vmem:[#allocation254_spill] sm:$0xff] }
 0x2af   :  { %v2948_v60 = vpack.c.bf16 %v2766_v11, %v2766_v11  ;;  %v2894_v42 = vpack.c.bf16 %v2712_v48, %v2712_v48  ;;  %v2718_v24 = vadd.f32 %v11974_v16, %v2499_v22  ;;  %v12162_v12 = vmax.bf16 %v2893_v33, %v2886_v5  ;;  %v16412_v48 = vld [vmem:[#allocation26_spill] sm:$0xff] }
 0x2b0   :  { %v12164_v8 = vmax.bf16 %v2947_v10, %v2940_v21  ;;  %v12168_v45 = vadd.f32 %v16409_v50, %v16408_v6  ;;  %v12172_v11 = vadd.f32 %v16411_v1, %v16410_v2  ;;  %v2941_v58 = vpack.c.bf16 %v2759_v43, %v2759_v43  ;;  %v1935_v21 = vpop.f32.mrf.mxu0  ;;  %v2058_v10 = vpop.f32.mrf.mxu1  ;;  %v16414_v33 = vld [vmem:[#allocation14_spill] sm:$0xff] }
 0x2b1   :  { %16406 = vst [vmem:[#allocation37_spill] sm:$0xff] %v12162_v12  ;;  %v2560_v37 = vadd.f32 %v1933_v18, %v11741_v15  ;;  %v2500_v59 = vadd.f32 %v2054_v44, %v16412_v48  ;;  %v2506_v22 = vadd.f32 %v2056_v34, %v11747_v13  ;;  %3240 = vrot.lane.b32.xlu1 %v12149_v23, %s9945_s21  ;;  %v16415_v18 = vld [vmem:[#allocation173_spill] sm:$0xff] }
 0x2b2   :  { %16407 = vst [vmem:[#allocation198_spill] sm:$0xff] %v12164_v8  ;;  %3252 = vrot.lane.b32.xlu0 %v12162_v12, %s9945_s21  ;;  %v12181_v5 = vmax.bf16 %v2894_v42, %v2887_v47  ;;  %v2773_v2 = vadd.f32 %v11620_v54, %v2554_v27  ;;  %v2561_v15 = vadd.f32 %v1935_v21, %v16414_v33  ;;  %v1939_v50 = vpop.f32.mrf.mxu0  ;;  %v2062_v1 = vpop.f32.mrf.mxu1  ;;  %v16417_v27 = vld [vmem:[#allocation28_spill] sm:$0xff]  ;;  %v16418_v33 = vld [vmem:[#allocation174_spill] sm:$0xff]  ;;  %v16424_v12 = vld [vmem:[#allocation95_spill] sm:$0xff] }
 0x2b3   :  { %v2779_v43 = vadd.f32 %v11589_v0, %v2560_v37  ;;  %v2507_v44 = vadd.f32 %v2058_v10, %v16415_v18  ;;  %v2954_v6 = vpack.c.bf16 %v2772_v30, %v2772_v30  ;;  %v2900_v13 = vpack.c.bf16 %v2718_v24, %v2718_v24 }
 0x2b4   :  { %16413 = vst [vmem:[#allocation54_spill] sm:$0xff] %v12181_v5  ;;  %v2725_v34 = vadd.f32 %v11974_v16, %v2506_v22  ;;  %v12188_v48 = vmax.bf16 %v2948_v60, %v2941_v58  ;;  %v2780_v47 = vadd.f32 %v11620_v54, %v2561_v15  ;;  %v2567_v62 = vadd.f32 %v1939_v50, %v16417_v27  ;;  %v1941_v60 = vpop.f32.mrf.mxu0  ;;  %v2064_v30 = vpop.f32.mrf.mxu1  ;;  %v16419_v15 = vld [vmem:[#allocation15_spill] sm:$0xff] }
 0x2b5   :  { %v2961_v23 = vpack.c.bf16 %v2779_v43, %v2779_v43  ;;  %v2726_v42 = vadd.f32 %v11985_v63, %v2507_v44  ;;  %v2719_v37 = vadd.f32 %v11985_v63, %v2500_v59  ;;  %v2513_v10 = vadd.f32 %v2062_v1, %v16418_v33  ;;  %3254 = vrot.lane.b32.xlu1 %v12181_v5, %s9945_s21  ;;  %v16420_v44 = vld [vmem:[#allocation175_spill] sm:$0xff]  ;;  %v16422_v33 = vld [vmem:[#allocation94_spill] sm:$0xff] }
 0x2b6   :  { %16416 = vst [vmem:[#allocation199_spill] sm:$0xff] %v12188_v48  ;;  %v2907_v21 = vpack.c.bf16 %v2725_v34, %v2725_v34  ;;  %3304 = vrot.lane.b32.xlu0 %v12164_v8, %s9945_s21  ;;  %v2955_v24 = vpack.c.bf16 %v2773_v2, %v2773_v2  ;;  %v2962_v58 = vpack.c.bf16 %v2780_v47, %v2780_v47  ;;  %v1943_v34 = vpop.f32.mrf.mxu0  ;;  %v2066_v50 = vpop.f32.mrf.mxu1  ;;  %v16423_v5 = vld [vmem:[#allocation255_spill] sm:$0xff]  ;;  %v16425_v2 = vld [vmem:[#allocation256_spill] sm:$0xff] }
 0x2b7   :  { %v2908_v22 = vpack.c.bf16 %v2726_v42, %v2726_v42  ;;  %v2786_v43 = vadd.f32 %v11589_v0, %v2567_v62  ;;  %v2568_v18 = vadd.f32 %v1941_v60, %v16419_v15  ;;  %v2514_v59 = vadd.f32 %v2064_v30, %v16420_v44  ;;  %v16426_v42 = vld [vmem:[#allocation176_spill] sm:$0xff] }
 0x2b8   :  { %v12202_v1 = vmax.bf16 %v2907_v21, %v2900_v13  ;;  %v12204_v27 = vmax.bf16 %v2961_v23, %v2954_v6  ;;  %v12208_v8 = vadd.f32 %v16423_v5, %v16422_v33  ;;  %v12212_v47 = vadd.f32 %v16425_v2, %v16424_v12  ;;  %v1945_v23 = vpop.f32.mrf.mxu0  ;;  %v2068_v5 = vpop.f32.mrf.mxu1 }
 0x2b9   :  { %v2574_v62 = vadd.f32 %v1943_v34, %v16426_v42  ;;  %v2520_v60 = vadd.f32 %v2066_v50, %v16427_v61  ;;  %v2901_v15 = vpack.c.bf16 %v2719_v37, %v2719_v37  ;;  %v2732_v30 = vadd.f32 %v11974_v16, %v2513_v10  ;;  %3306 = vrot.lane.b32.xlu1 %v12188_v48, %s9945_s21  ;;  %v16429_v61 = vld [vmem:[#allocation177_spill] sm:$0xff] }
 0x2ba   :  { %16421 = vst [vmem:[#allocation39_spill] sm:$0xff] %v12202_v1  ;;  %3266 = vrot.lane.b32.xlu0 %v12202_v1, %s9945_s21  ;;  %v12221_v6 = vmax.bf16 %v2962_v58, %v2955_v24  ;;  %v2733_v12 = vadd.f32 %v11985_v63, %v2514_v59  ;;  %v2575_v37 = vadd.f32 %v1945_v23, %v16429_v61  ;;  %v1949_v50 = vpop.f32.mrf.mxu0  ;;  %v2072_v33 = vpop.f32.mrf.mxu1  ;;  %v16431_v59 = vld [vmem:[#allocation32_spill] sm:$0xff]  ;;  %v16432_v1 = vld [vmem:[#allocation17_spill] sm:$0xff] }
 0x2bb   :  { %v2793_v13 = vadd.f32 %v11589_v0, %v2574_v62  ;;  %v2739_v21 = vadd.f32 %v11974_v16, %v2520_v60  ;;  %v2968_v44 = vpack.c.bf16 %v2786_v43, %v2786_v43  ;;  %v2787_v10 = vadd.f32 %v11620_v54, %v2568_v18 }
 0x2bc   :  { %16428 = vst [vmem:[#allocation200_spill] sm:$0xff] %v12221_v6  ;;  %v2521_v34 = vadd.f32 %v2068_v5, %v11800_v38  ;;  %v12229_v2 = vmax.bf16 %v2908_v22, %v2901_v15  ;;  %v2794_v58 = vadd.f32 %v11620_v54, %v2575_v37  ;;  %v2581_v48 = vadd.f32 %v1949_v50, %v16431_v59  ;;  %v1951_v38 = vpop.f32.mrf.mxu0  ;;  %v2074_v22 = vpop.f32.mrf.mxu1  ;;  %v16436_v50 = vld [vmem:[#allocation96_spill] sm:$0xff] }
 0x2bd   :  { %v2975_v42 = vpack.c.bf16 %v2793_v13, %v2793_v13  ;;  %v2921_v24 = vpack.c.bf16 %v2739_v21, %v2739_v21  ;;  %v2914_v62 = vpack.c.bf16 %v2732_v30, %v2732_v30  ;;  %v2527_v23 = vadd.f32 %v2072_v33, %v16432_v1  ;;  %3318 = vrot.lane.b32.xlu1 %v12204_v27, %s9945_s21  ;;  %v16433_v30 = vld [vmem:[#allocation178_spill] sm:$0xff]  ;;  %v16437_v33 = vld [vmem:[#allocation257_spill] sm:$0xff] }
 0x2be   :  { %16430 = vst [vmem:[#allocation56_spill] sm:$0xff] %v12229_v2  ;;  %v2740_v60 = vadd.f32 %v11985_v63, %v2521_v34  ;;  %3320 = vrot.lane.b32.xlu0 %v12221_v6, %s9945_s21  ;;  %v2915_v43 = vpack.c.bf16 %v2733_v12, %v2733_v12  ;;  %v2976_v18 = vpack.c.bf16 %v2794_v58, %v2794_v58  ;;  %v1953_v61 = vpop.f32.mrf.mxu0  ;;  %v2076_v37 = vpop.f32.mrf.mxu1  ;;  %v16438_v6 = vld [vmem:[#allocation97_spill] sm:$0xff]  ;;  %v16439_v12 = vld [vmem:[#allocation258_spill] sm:$0xff] }
 0x2bf   :  { %v2800_v15 = vadd.f32 %v11589_v0, %v2581_v48  ;;  %v2582_v5 = vadd.f32 %v1951_v38, %v11812_v19  ;;  %v2528_v21 = vadd.f32 %v2074_v22, %v16433_v30  ;;  %v12242_v1 = vmax.bf16 %v2921_v24, %v2914_v62  ;;  %v16441_v22 = vld [vmem:[#allocation19_spill] sm:$0xff] }
 0x2c0   :  { %v2922_v13 = vpack.c.bf16 %v2740_v60, %v2740_v60  ;;  %v12244_v34 = vmax.bf16 %v2975_v42, %v2968_v44  ;;  %v12248_v59 = vadd.f32 %v16437_v33, %v16436_v50  ;;  %v12252_v58 = vadd.f32 %v16439_v12, %v16438_v6  ;;  %v1955_v44 = vpop.f32.mrf.mxu0  ;;  %v2078_v42 = vpop.f32.mrf.mxu1 }
 0x2c1   :  { %16434 = vst [vmem:[#allocation201_spill] sm:$0xff] %v12242_v1  ;;  %v2969_v48 = vpack.c.bf16 %v2787_v10, %v2787_v10  ;;  %v2588_v19 = vadd.f32 %v1953_v61, %v11825_v14  ;;  %v2746_v60 = vadd.f32 %v11974_v16, %v2527_v23  ;;  %v2534_v38 = vadd.f32 %v2076_v37, %v11829_v29 }
 0x2c2   :  { %16435 = vst [vmem:[#allocation41_spill] sm:$0xff] %v12244_v34  ;;  %3268 = vrot.lane.b32.xlu1 %v12229_v2, %s9945_s21  ;;  %3280 = vrot.lane.b32.xlu0 %v12242_v1, %s9945_s21  ;;  %v12261_v24 = vmax.bf16 %v2922_v13, %v2915_v43  ;;  %v2982_v62 = vpack.c.bf16 %v2800_v15, %v2800_v15  ;;  %v1959_v61 = vpop.f32.mrf.mxu0  ;;  %v2082_v37 = vpop.f32.mrf.mxu1  ;;  %v16443_v15 = vld [vmem:[#allocation180_spill] sm:$0xff] }
 0x2c3   :  { %v2801_v6 = vadd.f32 %v11620_v54, %v2582_v5  ;;  %v2807_v10 = vadd.f32 %v11589_v0, %v2588_v19  ;;  %v2589_v14 = vadd.f32 %v1955_v44, %v11835_v49  ;;  %v2747_v23 = vadd.f32 %v11985_v63, %v2528_v21  ;;  %v16444_v5 = vld [vmem:[#allocation181_spill] sm:$0xff] }
 0x2c4   :  { %16440 = vst [vmem:[#allocation202_spill] sm:$0xff] %v12261_v24  ;;  %v2753_v29 = vadd.f32 %v11974_v16, %v2534_v38  ;;  %v2535_v30 = vadd.f32 %v2078_v42, %v16441_v22  ;;  %v12269_v50 = vmax.bf16 %v2976_v18, %v2969_v48  ;;  %v2595_v13 = vadd.f32 %v1959_v61, %v16443_v15  ;;  %v1961_v21 = vpop.f32.mrf.mxu0  ;;  %v2084_v18 = vpop.f32.mrf.mxu1  ;;  %v16448_v15 = vld [vmem:[#allocation259_spill] sm:$0xff] }
 0x2c5   :  { %v2989_v33 = vpack.c.bf16 %v2807_v10, %v2807_v10  ;;  %v2808_v43 = vadd.f32 %v11620_v54, %v2589_v14  ;;  %v2541_v12 = vadd.f32 %v2082_v37, %v16444_v5  ;;  %v2928_v19 = vpack.c.bf16 %v2746_v60, %v2746_v60  ;;  %v16445_v14 = vld [vmem:[#allocation182_spill] sm:$0xff] }
 0x2c6   :  { %16442 = vst [vmem:[#allocation58_spill] sm:$0xff] %v12269_v50  ;;  %v2935_v2 = vpack.c.bf16 %v2753_v29, %v2753_v29  ;;  %v2754_v49 = vadd.f32 %v11985_v63, %v2535_v30  ;;  %3282 = vrot.lane.b32.xlu1 %v12261_v24, %s9945_s21  ;;  %3332 = vrot.lane.b32.xlu0 %v12244_v34, %s9945_s21  ;;  %v1963_v29 = vpop.f32.mrf.mxu0  ;;  %v2086_v22 = vpop.f32.mrf.mxu1  ;;  %v16447_v37 = vld [vmem:[#allocation98_spill] sm:$0xff]  ;;  %v16449_v24 = vld [vmem:[#allocation99_spill] sm:$0xff] }
 0x2c7   :  { %v2983_v48 = vpack.c.bf16 %v2801_v6, %v2801_v6  ;;  %v2990_v38 = vpack.c.bf16 %v2808_v43, %v2808_v43  ;;  %v2814_v44 = vadd.f32 %v11589_v0, %v2595_v13  ;;  %v2760_v42 = vadd.f32 %v11974_v16, %v2541_v12  ;;  %v16450_v6 = vld [vmem:[#allocation260_spill] sm:$0xff]  ;;  %v16451_v34 = vld [vmem:[#allocation38_spill] sm:$0xff] }
 0x2c8   :  { %v2936_v10 = vpack.c.bf16 %v2754_v49, %v2754_v49  ;;  %v2542_v60 = vadd.f32 %v2084_v18, %v16445_v14  ;;  %v12282_v30 = vmax.bf16 %v2935_v2, %v2928_v19  ;;  %v12284_v61 = vmax.bf16 %v2989_v33, %v2982_v62  ;;  %v16452_v49 = vld [vmem:[#allocation21_spill] sm:$0xff]  ;;  %v16453_v18 = vld [vmem:[#allocation23_spill] sm:$0xff]  ;;  %v1965_v2 = vpop.f32.mrf.mxu0  ;;  %v2088_v62 = vpop.f32.mrf.mxu1  ;;  %v16455_v19 = vld [vmem:[#allocation184_spill] sm:$0xff] }
 0x2c9   :  { %v12288_v5 = vadd.f32 %v16448_v15, %v16447_v37  ;;  %v12292_v43 = vadd.f32 %v16450_v6, %v16449_v24  ;;  %v2929_v13 = vpack.c.bf16 %v2747_v23, %v2747_v23  ;;  %v2602_v12 = vadd.f32 %v1963_v29, %v16451_v34  ;;  %v16456_v29 = vld [vmem:[#allocation40_spill] sm:$0xff] }
 0x2ca   :  { %16446 = vst [vmem:[#allocation203_spill] sm:$0xff] %v12282_v30  ;;  %v2596_v1 = vadd.f32 %v1961_v21, %v16452_v49  ;;  %v2548_v14 = vadd.f32 %v2086_v22, %v16453_v18  ;;  %3334 = vrot.lane.b32.xlu1 %v12269_v50, %s9945_s21  ;;  %3294 = vrot.lane.b32.xlu0 %v12282_v30, %s9945_s21  ;;  %v2643_v24 = vsub.s32 4, %v11478_v46  ;;  %v1969_v49 = vpop.f32.mrf.mxu0  ;;  %v2092_v18 = vpop.f32.mrf.mxu1 }
 0x2cb   :  { %v12301_v33 = vmax.bf16 %v2990_v38, %v2983_v48  ;;  %v2761_v23 = vadd.f32 %v11985_v63, %v2542_v60  ;;  %v2821_v34 = vadd.f32 %v11589_v0, %v2602_v12  ;;  %v2603_v21 = vadd.f32 %v1965_v2, %v16455_v19  ;;  %v16458_v19 = vld [vmem:[#allocation185_spill] sm:$0xff] }
 0x2cc   :  { %v2549_v22 = vadd.f32 %v2088_v62, %v16456_v29  ;;  %v2996_v37 = vpack.c.bf16 %v2814_v44, %v2814_v44  ;;  %v2942_v15 = vpack.c.bf16 %v2760_v42, %v2760_v42  ;;  %v2767_v6 = vadd.f32 %v11974_v16, %v2548_v14  ;;  %v1971_v44 = vpop.f32.mrf.mxu0  ;;  %v2094_v42 = vpop.f32.mrf.mxu1 }
 0x2cd   :  { %16454 = vst [vmem:[#allocation43_spill] sm:$0xff] %v12301_v33  ;;  %v12309_v50 = vmax.bf16 %v2936_v10, %v2929_v13  ;;  %v3003_v48 = vpack.c.bf16 %v2821_v34, %v2821_v34  ;;  %v2822_v38 = vadd.f32 %v11620_v54, %v2603_v21  ;;  %v2609_v60 = vadd.f32 %v1969_v49, %v11891_v3  ;;  %v16459_v21 = vld [vmem:[#allocation186_spill] sm:$0xff] }
 0x2ce   :  { %v2768_v30 = vadd.f32 %v11985_v63, %v2549_v22  ;;  %v2815_v12 = vadd.f32 %v11620_v54, %v2596_v1  ;;  %v2949_v2 = vpack.c.bf16 %v2767_v6, %v2767_v6  ;;  %v2555_v62 = vadd.f32 %v2092_v18, %v16458_v19  ;;  %3346 = vrot.lane.b32.xlu1 %v12284_v61, %s9945_s21  ;;  %v1973_v29 = vpop.f32.mrf.mxu0  ;;  %v2096_v22 = vpop.f32.mrf.mxu1  ;;  %v16461_v18 = vld [vmem:[#allocation100_spill] sm:$0xff]  ;;  %v16462_v19 = vld [vmem:[#allocation261_spill] sm:$0xff] }
 0x2cf   :  { %16457 = vst [vmem:[#allocation204_spill] sm:$0xff] %v12309_v50  ;;  %3348 = vrot.lane.b32.xlu0 %v12301_v33, %s9945_s21  ;;  %v2943_v10 = vpack.c.bf16 %v2761_v23, %v2761_v23  ;;  %v3004_v13 = vpack.c.bf16 %v2822_v38, %v2822_v38  ;;  %v2610_v34 = vadd.f32 %v1971_v44, %v11900_v52  ;;  %v12336_v52 = vld [vmem:[%s15696_s2] sm:$0x7f]  ;;  %s9946_s2 = smov 64  }
 0x2d0   :  { %v2950_v14 = vpack.c.bf16 %v2768_v30, %v2768_v30  ;;  %v2828_v3 = vadd.f32 %v11589_v0, %v2609_v60  ;;  %v2556_v1 = vadd.f32 %v2094_v42, %v16459_v21  ;;  %v12323_v6 = vmax.bf16 %v2949_v2, %v2942_v15  ;;  %v16464_v21 = vld [vmem:[#allocation187_spill] sm:$0xff] }
 0x2d1   :  { %v12325_v49 = vmax.bf16 %v3003_v48, %v2996_v37  ;;  %v12329_v33 = vadd.f32 %v16462_v19, %v16461_v18  ;;  %v2616_v23 = vadd.f32 %v1973_v29, %v11910_v25  ;;  %v2562_v30 = vadd.f32 %v2096_v22, %v11917_v35  ;;  %v1975_v25 = vpop.f32.mrf.mxu0  ;;  %v2098_v48 = vpop.f32.mrf.mxu1 }
 0x2d2   :  { %16460 = vst [vmem:[#allocation60_spill] sm:$0xff] %v12323_v6  ;;  %v12339_v38 = vrot.slane %v12336_v52, %v2643_v24  ;;  %v2997_v15 = vpack.c.bf16 %v2815_v12, %v2815_v12  ;;  %v2774_v37 = vadd.f32 %v11974_v16, %v2555_v62  ;;  %3296 = vrot.lane.b32.xlu1 %v12309_v50, %s9945_s21  ;;  %v2647_v60 = vsub.s32 5, %v11478_v46 }
 0x2d3   :  { %3308 = vrot.lane.b32.xlu0 %v12323_v6, %s9945_s21  ;;  %v12346_v35 = vmax.bf16 %v2950_v14, %v2943_v10  ;;  %v2829_v2 = vadd.f32 %v11620_v54, %v2610_v34  ;;  %v2835_v24 = vadd.f32 %v11589_v0, %v2616_v23  ;;  %v2781_v12 = vadd.f32 %v11974_v16, %v2562_v30  ;;  %v2102_v22 = vpop.f32.mrf.mxu1  ;;  %v2175_v18 = vpop.f32.mrf.mxu0  ;;  %v16465_v34 = vld [vmem:[#allocation27_spill] sm:$0xff]  ;;  %v16466_v30 = vld [vmem:[#allocation44_spill] sm:$0xff] }
 0x2d4   :  { %v2617_v62 = vadd.f32 %v1975_v25, %v11921_v53  ;;  %v3010_v44 = vpack.c.bf16 %v2828_v3, %v2828_v3  ;;  %v2775_v42 = vadd.f32 %v11985_v63, %v2556_v1  ;;  %v2563_v29 = vadd.f32 %v2098_v48, %v16464_v21 }
 0x2d5   :  { %16463 = vst [vmem:[#allocation205_spill] sm:$0xff] %v12346_v35  ;;  %v12355_v19 = vmax.bf16 %v3004_v13, %v2997_v15  ;;  %v3017_v10 = vpack.c.bf16 %v2835_v24, %v2835_v24  ;;  %v2963_v14 = vpack.c.bf16 %v2781_v12, %v2781_v12  ;;  %v2569_v6 = vadd.f32 %v2102_v22, %v16465_v34  ;;  %v2104_v3 = vpop.f32.mrf.mxu1  ;;  %v2177_v13 = vpop.f32.mrf.mxu0 }
 0x2d6   :  { %v2836_v50 = vadd.f32 %v11620_v54, %v2617_v62  ;;  %v2956_v0 = vpack.c.bf16 %v2774_v37, %v2774_v37  ;;  %v2782_v23 = vadd.f32 %v11985_v63, %v2563_v29  ;;  %v2445_v53 = vadd.f32 %v2175_v18, %v16466_v30  ;;  %3310 = vrot.lane.b32.xlu1 %v12346_v35, %s9945_s21  ;;  %v16468_v54 = vld [vmem:[#allocation189_spill] sm:$0xff]  ;;  %v16473_v30 = vld [vmem:[#allocation46_spill] sm:$0xff] }
 0x2d7   :  { %3360 = vrot.lane.b32.xlu0 %v12325_v49, %s9945_s21  ;;  %v3011_v1 = vpack.c.bf16 %v2829_v2, %v2829_v2  ;;  %v12365_v15 = vmax.bf16 %v3017_v10, %v3010_v44  ;;  %v2570_v48 = vadd.f32 %v2104_v3, %v16468_v54  ;;  %v2788_v37 = vadd.f32 %v11974_v16, %v2569_v6  ;;  %v2106_v62 = vpop.f32.mrf.mxu1  ;;  %v2179_v21 = vpop.f32.mrf.mxu0  ;;  %v16471_v2 = vld [vmem:[#allocation190_spill] sm:$0xff]  ;;  %v16472_v10 = vld [vmem:[#allocation29_spill] sm:$0xff] }
 0x2d8   :  { %v3018_v25 = vpack.c.bf16 %v2836_v50, %v2836_v50  ;;  %v2964_v24 = vpack.c.bf16 %v2782_v23, %v2782_v23  ;;  %v2664_v12 = vadd.f32 %v12339_v38, %v2445_v53  ;;  %v12370_v29 = vmax.bf16 %v2963_v14, %v2956_v0  ;;  %v16474_v0 = vld [vmem:[#allocation101_spill] sm:$0xff]  ;;  %v16475_v53 = vld [vmem:[#allocation262_spill] sm:$0xff] }
 0x2d9   :  { %16467 = vst [vmem:[#allocation45_spill] sm:$0xff] %v12365_v15  ;;  %v2957_v22 = vpack.c.bf16 %v2775_v42, %v2775_v42  ;;  %v12375_v34 = vrot.slane %v12336_v52, %v2647_v60  ;;  %v2576_v44 = vadd.f32 %v2106_v62, %v16471_v2  ;;  %v2789_v50 = vadd.f32 %v11985_v63, %v2570_v48  ;;  %v2108_v42 = vpop.f32.mrf.mxu1  ;;  %v2181_v14 = vpop.f32.mrf.mxu0 }
 0x2da   :  { %v12372_v18 = vmax.bf16 %v3018_v25, %v3011_v1  ;;  %v2446_v23 = vadd.f32 %v2177_v13, %v16472_v10  ;;  %v2452_v6 = vadd.f32 %v2179_v21, %v16473_v30  ;;  %3362 = vrot.lane.b32.xlu1 %v12355_v19, %s9945_s21  ;;  %v12387_v60 = vadd.f32 %v16475_v53, %v16474_v0  ;;  %v16476_v1 = vld [vmem:[#allocation191_spill] sm:$0xff] }
 0x2db   :  { %16470 = vst [vmem:[#allocation62_spill] sm:$0xff] %v12375_v34  ;;  %3322 = vrot.lane.b32.xlu0 %v12370_v29, %s9945_s21  ;;  %v2795_v3 = vadd.f32 %v11974_v16, %v2576_v44  ;;  %v2577_v25 = vadd.f32 %v2108_v42, %v16476_v1  ;;  %v2453_v13 = vadd.f32 %v2181_v14, %v11982_v56  ;;  %v2112_v21 = vpop.f32.mrf.mxu1  ;;  %v2185_v2 = vpop.f32.mrf.mxu0 }
 0x2dc   :  { %16469 = vst [vmem:[#allocation206_spill] sm:$0xff] %v12372_v18  ;;  %v2970_v54 = vpack.c.bf16 %v2788_v37, %v2788_v37  ;;  %v2846_v48 = vpack.c.bf16 %v2664_v12, %v2664_v12  ;;  %v2671_v62 = vadd.f32 %v12339_v38, %v2452_v6  ;;  %v12393_v10 = vmax.bf16 %v2964_v24, %v2957_v22 }
 0x2dd   :  { %v2977_v30 = vpack.c.bf16 %v2795_v3, %v2795_v3  ;;  %v2796_v15 = vadd.f32 %v11985_v63, %v2577_v25  ;;  %v2672_v0 = vadd.f32 %v12375_v34, %v2453_v13  ;;  %v2583_v53 = vadd.f32 %v2112_v21, %v11993_v17  ;;  %v2114_v37 = vpop.f32.mrf.mxu1  ;;  %v2187_v12 = vpop.f32.mrf.mxu0  ;;  %v16479_v13 = vld [vmem:[#allocation102_spill] sm:$0xff] }
 0x2de   :  { %16477 = vst [vmem:[#allocation207_spill] sm:$0xff] %v12393_v10  ;;  %v2971_v44 = vpack.c.bf16 %v2789_v50, %v2789_v50  ;;  %v2665_v42 = vadd.f32 %v12375_v34, %v2446_v23  ;;  %v2853_v1 = vpack.c.bf16 %v2671_v62, %v2671_v62  ;;  %v2459_v56 = vadd.f32 %v2185_v2, %v11997_v51  ;;  %v16480_v62 = vld [vmem:[#allocation263_spill] sm:$0xff]  ;;  %v16482_v2 = vld [vmem:[#allocation264_spill] sm:$0xff] }
 0x2df   :  { %3324 = vrot.lane.b32.xlu1 %v12393_v10, %s9945_s21  ;;  %v2978_v24 = vpack.c.bf16 %v2796_v15, %v2796_v15  ;;  %v2854_v22 = vpack.c.bf16 %v2672_v0, %v2672_v0  ;;  %v2802_v6 = vadd.f32 %v11974_v16, %v2583_v53  ;;  %v2584_v14 = vadd.f32 %v2114_v37, %v12001_v36  ;;  %v2116_v50 = vpop.f32.mrf.mxu1  ;;  %v2189_v23 = vpop.f32.mrf.mxu0  ;;  %v16481_v15 = vld [vmem:[#allocation103_spill] sm:$0xff] }
 0x2e0   :  { %v2678_v3 = vadd.f32 %v12339_v38, %v2459_v56  ;;  %v2460_v17 = vadd.f32 %v2187_v12, %v12017_v32  ;;  %v12406_v25 = vmax.bf16 %v2853_v1, %v2846_v48  ;;  %v12408_v51 = vmax.bf16 %v2977_v30, %v2970_v54 }
 0x2e1   :  { %v12412_v21 = vadd.f32 %v16480_v62, %v16479_v13  ;;  %v12416_v0 = vadd.f32 %v16482_v2, %v16481_v15  ;;  %v2590_v36 = vadd.f32 %v2116_v50, %v12037_v39  ;;  %v2466_v53 = vadd.f32 %v2189_v23, %v12045_v7  ;;  %v2118_v54 = vpop.f32.mrf.mxu1  ;;  %v2191_v48 = vpop.f32.mrf.mxu0 }
 0x2e2   :  { %16478 = vst [vmem:[#allocation47_spill] sm:$0xff] %v12406_v25  ;;  %v2847_v56 = vpack.c.bf16 %v2665_v42, %v2665_v42  ;;  %v2803_v32 = vadd.f32 %v11985_v63, %v2584_v14  ;;  %3336 = vrot.lane.b32.xlu0 %v12408_v51, %s9945_s21  ;;  %v12425_v30 = vmax.bf16 %v2978_v24, %v2971_v44 }
 0x2e3   :  { %3214 = vrot.lane.b32.xlu1 %v12406_v25, %s9945_s21  ;;  %v2679_v1 = vadd.f32 %v12375_v34, %v2460_v17  ;;  %v2809_v37 = vadd.f32 %v11974_v16, %v2590_v36  ;;  %v2685_v39 = vadd.f32 %v12339_v38, %v2466_v53  ;;  %v2591_v7 = vadd.f32 %v2118_v54, %v12059_v20  ;;  %v2122_v50 = vpop.f32.mrf.mxu1  ;;  %v2195_v23 = vpop.f32.mrf.mxu0 }
 0x2e4   :  { %16483 = vst [vmem:[#allocation208_spill] sm:$0xff] %v12425_v30  ;;  %v2984_v42 = vpack.c.bf16 %v2802_v6, %v2802_v6  ;;  %v2860_v12 = vpack.c.bf16 %v2678_v3, %v2678_v3  ;;  %v2467_v14 = vadd.f32 %v2191_v48, %v12063_v55  ;;  %v12432_v13 = vmax.bf16 %v2854_v22, %v2847_v56 }
 0x2e5   :  { %v2991_v62 = vpack.c.bf16 %v2809_v37, %v2809_v37  ;;  %v2867_v15 = vpack.c.bf16 %v2685_v39, %v2685_v39  ;;  %v2810_v44 = vadd.f32 %v11985_v63, %v2591_v7  ;;  %v2597_v24 = vadd.f32 %v2122_v50, %v12081_v31  ;;  %v2124_v20 = vpop.f32.mrf.mxu1  ;;  %v2197_v55 = vpop.f32.mrf.mxu0  ;;  %v16485_v37 = vld [vmem:[#allocation104_spill] sm:$0xff]  ;;  %v16486_v39 = vld [vmem:[#allocation265_spill] sm:$0xff] }
 0x2e6   :  { %16484 = vst [vmem:[#allocation64_spill] sm:$0xff] %v12432_v13  ;;  %v2985_v17 = vpack.c.bf16 %v2803_v32, %v2803_v32  ;;  %v2686_v2 = vadd.f32 %v12375_v34, %v2467_v14  ;;  %v2473_v36 = vadd.f32 %v2195_v23, %v12085_v4  ;;  %3216 = vrot.lane.b32.xlu0 %v12432_v13, %s9945_s21  ;;  %v16487_v14 = vld [vmem:[#allocation105_spill] sm:$0xff] }
 0x2e7   :  { %3338 = vrot.lane.b32.xlu1 %v12425_v30, %s9945_s21  ;;  %v2861_v22 = vpack.c.bf16 %v2679_v1, %v2679_v1  ;;  %v2992_v6 = vpack.c.bf16 %v2810_v44, %v2810_v44  ;;  %v2816_v3 = vadd.f32 %v11974_v16, %v2597_v24  ;;  %v2474_v53 = vadd.f32 %v2197_v55, %v12107_v40  ;;  %v2126_v32 = vpop.f32.mrf.mxu1  ;;  %v2199_v54 = vpop.f32.mrf.mxu0  ;;  %v16488_v1 = vld [vmem:[#allocation266_spill] sm:$0xff] }
 0x2e8   :  { %v2868_v31 = vpack.c.bf16 %v2686_v2, %v2686_v2  ;;  %v2598_v56 = vadd.f32 %v2124_v20, %v12103_v9  ;;  %v12445_v4 = vmax.bf16 %v2867_v15, %v2860_v12  ;;  %v12447_v48 = vmax.bf16 %v2991_v62, %v2984_v42  ;;  %v16491_v24 = vld [vmem:[#allocation106_spill] sm:$0xff]  ;;  %v16492_v2 = vld [vmem:[#allocation267_spill] sm:$0xff] }
 0x2e9   :  { %v12451_v7 = vadd.f32 %v16486_v39, %v16485_v37  ;;  %v12455_v50 = vadd.f32 %v16488_v1, %v16487_v14  ;;  %v2692_v23 = vadd.f32 %v12339_v38, %v2473_v36  ;;  %v2604_v40 = vadd.f32 %v2126_v32, %v12128_v57  ;;  %v2128_v42 = vpop.f32.mrf.mxu1  ;;  %v2201_v12 = vpop.f32.mrf.mxu0 }
 0x2ea   :  { %v2693_v9 = vadd.f32 %v12375_v34, %v2474_v53  ;;  %v2480_v44 = vadd.f32 %v2199_v54, %v12132_v28  ;;  %3228 = vrot.lane.b32.xlu0 %v12445_v4, %s9945_s21  ;;  %v12463_v62 = vmax.bf16 %v2992_v6, %v2985_v17  ;;  %v12465_v15 = vmax.bf16 %v2868_v31, %v2861_v22 }
 0x2eb   :  { %v12469_v20 = vadd.f32 %v16492_v2, %v16491_v24  ;;  %v2823_v36 = vadd.f32 %v11974_v16, %v2604_v40  ;;  %v2605_v57 = vadd.f32 %v2128_v42, %v12168_v45  ;;  %v2651_v55 = vsub.s32 6, %v11478_v46  ;;  %v2132_v22 = vpop.f32.mrf.mxu1  ;;  %v2205_v6 = vpop.f32.mrf.mxu0  ;;  %v16532_v46 = vld [vmem:[#allocation280_spill] sm:$0xff] }
 0x2ec   :  { %16489 = vst [vmem:[#allocation209_spill] sm:$0xff] %v12463_v62  ;;  %16490 = vst [vmem:[#allocation49_spill] sm:$0xff] %v12465_v15  ;;  %v2998_v28 = vpack.c.bf16 %v2816_v3, %v2816_v3  ;;  %v2817_v53 = vadd.f32 %v11985_v63, %v2598_v56  ;;  %v2699_v32 = vadd.f32 %v12339_v38, %v2480_v44  ;;  %3352 = vrot.lane.b32.xlu1 %v12463_v62, %s9945_s21  ;;  %v16568_v62 = vld [vmem:[#allocation134_spill] sm:$0xff] }
 0x2ed   :  { %v2481_v17 = vadd.f32 %v2201_v12, %v12172_v11  ;;  %v3005_v31 = vpack.c.bf16 %v2823_v36, %v2823_v36  ;;  %v2824_v54 = vadd.f32 %v11985_v63, %v2605_v57  ;;  %v2611_v37 = vadd.f32 %v2132_v22, %v12208_v8  ;;  %v2134_v11 = vpop.f32.mrf.mxu1  ;;  %v2207_v1 = vpop.f32.mrf.mxu0  ;;  %v16493_v36 = vld [vmem:[#allocation107_spill] sm:$0xff]  ;;  %v16494_v57 = vld [vmem:[#allocation268_spill] sm:$0xff] }
 0x2ee   :  { %v2487_v45 = vadd.f32 %v2205_v6, %v12212_v47  ;;  %v2874_v39 = vpack.c.bf16 %v2692_v23, %v2692_v23  ;;  %v2875_v3 = vpack.c.bf16 %v2693_v9, %v2693_v9  ;;  %v2881_v14 = vpack.c.bf16 %v2699_v32, %v2699_v32  ;;  %3350 = vrot.lane.b32.xlu0 %v12447_v48, %s9945_s21 }
 0x2ef   :  { %v2700_v56 = vadd.f32 %v12375_v34, %v2481_v17  ;;  %v3006_v40 = vpack.c.bf16 %v2824_v54, %v2824_v54  ;;  %v2830_v44 = vadd.f32 %v11974_v16, %v2611_v37  ;;  %v2612_v12 = vadd.f32 %v2134_v11, %v12248_v59  ;;  %v2136_v23 = vpop.f32.mrf.mxu1  ;;  %v2209_v9 = vpop.f32.mrf.mxu0 }
 0x2f0   :  { %v2706_v42 = vadd.f32 %v12339_v38, %v2487_v45  ;;  %v2488_v47 = vadd.f32 %v2207_v1, %v12252_v58  ;;  %v12489_v24 = vmax.bf16 %v2881_v14, %v2874_v39  ;;  %v12491_v2 = vmax.bf16 %v3005_v31, %v2998_v28 }
 0x2f1   :  { %v2882_v8 = vpack.c.bf16 %v2700_v56, %v2700_v56  ;;  %v1486_v32 = vadd.f32 %v16494_v57, %v16493_v36  ;;  %v2999_v17 = vpack.c.bf16 %v2817_v53, %v2817_v53  ;;  %v2618_v22 = vadd.f32 %v2136_v23, %v12288_v5  ;;  %v2138_v58 = vpop.f32.mrf.mxu1  ;;  %v2211_v28 = vpop.f32.mrf.mxu0  ;;  %v16497_v23 = vld [vmem:[#allocation108_spill] sm:$0xff] }
 0x2f2   :  { %v12497_v6 = vrot.slane %v12336_v52, %v2651_v55  ;;  %v2831_v59 = vadd.f32 %v11985_v63, %v2612_v12  ;;  %v2494_v54 = vadd.f32 %v2209_v9, %v12292_v43  ;;  %3242 = vrot.lane.b32.xlu1 %v12489_v24, %s9945_s21  ;;  %3230 = vrot.lane.b32.xlu0 %v12465_v15, %s9945_s21  ;;  %v16498_v9 = vld [vmem:[#allocation269_spill] sm:$0xff] }
 0x2f3   :  { %v12505_v31 = vmax.bf16 %v2882_v8, %v2875_v3  ;;  %v2707_v53 = vadd.f32 %v12375_v34, %v2488_v47  ;;  %v2837_v5 = vadd.f32 %v11974_v16, %v2618_v22  ;;  %v2619_v52 = vadd.f32 %v2138_v58, %v12329_v33  ;;  %v2215_v39 = vpop.f32.mrf.mxu0  ;;  %v2338_v12 = vpop.f32.mrf.mxu1 }
 0x2f4   :  { %v2495_v55 = vadd.f32 %v2211_v28, %v12387_v60  ;;  %v3012_v37 = vpack.c.bf16 %v2830_v44, %v2830_v44  ;;  %v2888_v43 = vpack.c.bf16 %v2706_v42, %v2706_v42  ;;  %v2713_v45 = vadd.f32 %v12339_v38, %v2494_v54  ;;  %v12520_v60 = vpop.permute.xlu1 %3222 }
 0x2f5   :  { %v12512_v14 = vmax.bf16 %v3006_v40, %v2999_v17  ;;  %v3019_v56 = vpack.c.bf16 %v2837_v5, %v2837_v5  ;;  %v2838_v11 = vadd.f32 %v11985_v63, %v2619_v52  ;;  %v2501_v1 = vadd.f32 %v2215_v39, %v12412_v21  ;;  %v2217_v40 = vpop.f32.mrf.mxu0  ;;  %v9403_v47 = vpop.f32.mrf.mxu1  ;;  %v16502_v52 = vld [vmem:[#allocation109_spill] sm:$0xff]  ;;  %v16504_v39 = vld [vmem:[#allocation110_spill] sm:$0xff] }
 0x2f6   :  { %v2714_v3 = vadd.f32 %v12375_v34, %v2495_v55  ;;  %v3013_v16 = vpack.c.bf16 %v2831_v59, %v2831_v59  ;;  %v2895_v8 = vpack.c.bf16 %v2713_v45, %v2713_v45  ;;  %v2447_v33 = vadd.f32 %v2338_v12, %v12416_v0  ;;  %3244 = vrot.lane.b32.xlu1 %v12505_v31, %s9945_s21  ;;  %v3221_v0 = vpop.permute.xlu0 %3220  ;;  %v16503_v55 = vld [vmem:[#allocation270_spill] sm:$0xff]  ;;  %v16510_v47 = vld [vmem:[#allocation179_spill] sm:$0xff] }
 0x2f7   :  { %16495 = vst [vmem:[#allocation210_spill] sm:$0xff] %v12512_v14  ;;  %3364 = vrot.lane.b32.xlu0 %v12491_v2, %s9945_s21  ;;  %v2889_v63 = vpack.c.bf16 %v2707_v53, %v2707_v53  ;;  %v12524_v44 = vmax.bf16 %v3019_v56, %v3012_v37  ;;  %v3020_v42 = vpack.c.bf16 %v2838_v11, %v2838_v11  ;;  %v2219_v22 = vpop.f32.mrf.mxu0  ;;  %v2341_v53 = vpop.f32.mrf.mxu1  ;;  %v16505_v56 = vld [vmem:[#allocation271_spill] sm:$0xff] }
 0x2f8   :  { %v2896_v21 = vpack.c.bf16 %v2714_v3, %v2714_v3  ;;  %v1490_v36 = vadd.f32 %v16498_v9, %v16497_v23  ;;  %v2720_v57 = vadd.f32 %v12339_v38, %v2501_v1  ;;  %v2502_v17 = vadd.f32 %v2217_v40, %v12451_v7  ;;  %v16509_v40 = vld [vmem:[#allocation273_spill] sm:$0xff] }
 0x2f9   :  { %16496 = vst [vmem:[#allocation66_spill] sm:$0xff] %v12524_v44  ;;  %v12530_v59 = vmax.bf16 %v2895_v8, %v2888_v43  ;;  %v12532_v54 = vmax.bf16 %v3020_v42, %v3013_v16  ;;  %v3395_v58 = vsel %vm3388_vm3, %v3221_v0, %v12520_v60  ;;  %v2508_v28 = vadd.f32 %v2219_v22, %v12455_v50  ;;  %v2221_v43 = vpop.f32.mrf.mxu0  ;;  %v9404_v12 = vpop.f32.mrf.mxu1  ;;  %v16506_v16 = vld [vmem:[#allocation111_spill] sm:$0xff]  ;;  %v16507_v8 = vld [vmem:[#allocation272_spill] sm:$0xff] }
 0x2fa   :  { %v12537_v5 = vmax.bf16 %v2896_v21, %v2889_v63  ;;  %v1611_v37 = vadd.f32 %v16503_v55, %v16502_v52  ;;  %v2666_v45 = vadd.f32 %v12497_v6, %v2447_v33  ;;  %v2454_v7 = vadd.f32 %v2341_v53, %v12469_v20  ;;  %3366 = vrot.lane.b32.xlu1 %v12512_v14, %s9945_s21  ;;  %v16508_v20 = vld [vmem:[#allocation112_spill] sm:$0xff]  ;;  %v3235_v22 = vpop.permute.xlu1 %3234 }
 0x2fb   :  { %16499 = vst [vmem:[#allocation211_spill] sm:$0xff] %v12530_v59  ;;  %16500 = vst [vmem:[#allocation51_spill] sm:$0xff] %v12532_v54  ;;  %3256 = vrot.lane.b32.xlu0 %v12530_v59, %s9945_s21  ;;  %v1492_v50 = vadd.f32 %v16505_v56, %v16504_v39  ;;  %v2721_v11 = vadd.f32 %v12375_v34, %v2502_v17  ;;  %v2727_v3 = vadd.f32 %v12339_v38, %v2508_v28  ;;  %v2225_v21 = vpop.f32.mrf.mxu0 }
 0x2fc   :  { %16501 = vst [vmem:[#allocation212_spill] sm:$0xff] %v12537_v5  ;;  %v2509_v1 = vadd.f32 %v2221_v43, %v1486_v32  ;;  %v1494_v33 = vadd.f32 %v16507_v8, %v16506_v16  ;;  %v1614_v63 = vadd.f32 %v16509_v40, %v16508_v20  ;;  %v2673_v42 = vadd.f32 %v12497_v6, %v2454_v7  ;;  %v2346_v32 = vpop.f32.mrf.mxu1  ;;  %v12564_v7 = vpop.permute.xlu0 %3236  ;;  %v16514_v16 = vld [vmem:[#allocation25_spill] sm:$0xff] }
 0x2fd   :  { %v12557_v23 = vmax.bf16 %v3395_v58, %v16510_v47  ;;  %v2902_v9 = vpack.c.bf16 %v2720_v57, %v2720_v57  ;;  %v2909_v0 = vpack.c.bf16 %v2727_v3, %v2727_v3  ;;  %v2515_v28 = vadd.f32 %v2225_v21, %v1490_v36  ;;  %v2227_v58 = vpop.f32.mrf.mxu0  ;;  %v16512_v3 = vld [vmem:[#allocation113_spill] sm:$0xff] }
 0x2fe   :  { %v2728_v17 = vadd.f32 %v12375_v34, %v2509_v1  ;;  %v2848_v53 = vpack.c.bf16 %v2666_v45, %v2666_v45  ;;  %v2855_v52 = vpack.c.bf16 %v2673_v42, %v2673_v42  ;;  %v2461_v55 = vadd.f32 %v2346_v32, %v1611_v37  ;;  %v9407_v36 = vpop.f32.mrf.mxu1  ;;  %v16513_v45 = vld [vmem:[#allocation274_spill] sm:$0xff] }
 0x2ff   :  { %16511 = vst [vmem:[#allocation68_spill] sm:$0xff] %v12557_v23  ;;  %3258 = vrot.lane.b32.xlu0 %v12537_v5, %s9945_s21  ;;  %3664 = vrot.lane.b32.xlu1 %v12557_v23, %s9945_s21  ;;  %v2903_v43 = vpack.c.bf16 %v2721_v11, %v2721_v11  ;;  %v3401_v39 = vsel %vm3388_vm3, %v3235_v22, %v12564_v7  ;;  %v2229_v37 = vpop.f32.mrf.mxu0  ;;  %v16525_v36 = vld [vmem:[#allocation278_spill] sm:$0xff] }
 0x300   :  { %v2910_v57 = vpack.c.bf16 %v2728_v17, %v2728_v17  ;;  %v2516_v56 = vadd.f32 %v2227_v58, %v1492_v50  ;;  %v1496_v1 = vadd.f32 %v16513_v45, %v16512_v3  ;;  %v12570_v12 = vmax.bf16 %v2909_v0, %v2902_v9  ;;  %v2349_v21 = vpop.f32.mrf.mxu1  ;;  %v16518_v0 = vld [vmem:[#allocation114_spill] sm:$0xff]  ;;  %v16519_v17 = vld [vmem:[#allocation275_spill] sm:$0xff] }
 0x301   :  { %v12573_v8 = vmax.bf16 %v3401_v39, %v16514_v16  ;;  %v12575_v20 = vmax.bf16 %v2855_v52, %v2848_v53  ;;  %v2734_v40 = vadd.f32 %v12339_v38, %v2515_v28  ;;  %v2680_v11 = vadd.f32 %v12497_v6, %v2461_v55  ;;  %v2231_v9 = vpop.f32.mrf.mxu0  ;;  %v16520_v52 = vld [vmem:[#allocation115_spill] sm:$0xff]  ;;  %v16521_v55 = vld [vmem:[#allocation276_spill] sm:$0xff]  ;;  %v16524_v39 = vld [vmem:[#allocation117_spill] sm:$0xff] }
 0x302   :  { %v2522_v42 = vadd.f32 %v2229_v37, %v1494_v33  ;;  %v12579_v47 = vmax.bf16 %v2910_v57, %v2903_v43  ;;  %v2468_v50 = vadd.f32 %v2349_v21, %v1614_v63  ;;  %v1500_v22 = vadd.f32 %v16519_v17, %v16518_v0  ;;  %v9408_v33 = vpop.f32.mrf.mxu1  ;;  %v16522_v63 = vld [vmem:[#allocation116_spill] sm:$0xff]  ;;  %v16523_v43 = vld [vmem:[#allocation277_spill] sm:$0xff] }
 0x303   :  { %16515 = vst [vmem:[#allocation213_spill] sm:$0xff] %v12573_v8  ;;  %16516 = vst [vmem:[#allocation53_spill] sm:$0xff] %v12575_v20  ;;  %3270 = vrot.lane.b32.xlu1 %v12570_v12, %s9945_s21  ;;  %3666 = vrot.lane.b32.xlu0 %v12573_v8, %s9945_s21  ;;  %v2735_v32 = vadd.f32 %v12375_v34, %v2516_v56  ;;  %v2523_v53 = vadd.f32 %v2231_v9, %v1496_v1  ;;  %v2235_v37 = vpop.f32.mrf.mxu0 }
 0x304   :  { %16517 = vst [vmem:[#allocation214_spill] sm:$0xff] %v12579_v47  ;;  %v2741_v28 = vadd.f32 %v12339_v38, %v2522_v42  ;;  %v1619_v58 = vadd.f32 %v16521_v55, %v16520_v52  ;;  %v1502_v57 = vadd.f32 %v16523_v43, %v16522_v63  ;;  %v1504_v3 = vadd.f32 %v16525_v36, %v16524_v39  ;;  %v3249_v42 = vpop.permute.xlu0 %3248  ;;  %v2354_v1 = vpop.f32.mrf.mxu1  ;;  %v16526_v63 = vld [vmem:[#allocation118_spill] sm:$0xff]  ;;  %v16527_v43 = vld [vmem:[#allocation279_spill] sm:$0xff] }
 0x305   :  { %v2687_v45 = vadd.f32 %v12497_v6, %v2468_v50  ;;  %v2916_v16 = vpack.c.bf16 %v2734_v40, %v2734_v40  ;;  %v2862_v21 = vpack.c.bf16 %v2680_v11, %v2680_v11  ;;  %v2742_v56 = vadd.f32 %v12375_v34, %v2523_v53  ;;  %v12597_v52 = vpop.permute.xlu1 %3250  ;;  %v2237_v50 = vpop.f32.mrf.mxu0  ;;  %v16528_v36 = vld [vmem:[#allocation31_spill] sm:$0xff] }
 0x306   :  { %v2923_v0 = vpack.c.bf16 %v2741_v28, %v2741_v28  ;;  %v2529_v17 = vadd.f32 %v2235_v37, %v1500_v22  ;;  %v2475_v33 = vadd.f32 %v2354_v1, %v1619_v58  ;;  %v2917_v55 = vpack.c.bf16 %v2735_v32, %v2735_v32  ;;  %v9411_v53 = vpop.f32.mrf.mxu1  ;;  %v16531_v1 = vld [vmem:[#allocation119_spill] sm:$0xff] }
 0x307   :  { %v2869_v9 = vpack.c.bf16 %v2687_v45, %v2687_v45  ;;  %3272 = vrot.lane.b32.xlu1 %v12579_v47, %s9945_s21  ;;  %3218 = vrot.lane.b32.xlu0 %v12575_v20, %s9945_s21  ;;  %v2924_v40 = vpack.c.bf16 %v2742_v56, %v2742_v56  ;;  %v3407_v11 = vsel %vm3388_vm3, %v3249_v42, %v12597_v52  ;;  %v2239_v58 = vpop.f32.mrf.mxu0 }
 0x308   :  { %v2530_v28 = vadd.f32 %v2237_v50, %v1502_v57  ;;  %v1622_v22 = vadd.f32 %v16527_v43, %v16526_v63  ;;  %v12610_v45 = vmax.bf16 %v3407_v11, %v16528_v36  ;;  %v12612_v37 = vmax.bf16 %v2923_v0, %v2916_v16  ;;  %v2357_v20 = vpop.f32.mrf.mxu1  ;;  %v16535_v0 = vld [vmem:[#allocation281_spill] sm:$0xff]  ;;  %v16537_v11 = vld [vmem:[#allocation282_spill] sm:$0xff]  ;;  %v16539_v43 = vld [vmem:[#allocation283_spill] sm:$0xff] }
 0x309   :  { %v12607_v39 = vmax.bf16 %v2869_v9, %v2862_v21  ;;  %v1506_v32 = vadd.f32 %v16532_v46, %v16531_v1  ;;  %v2536_v56 = vadd.f32 %v2239_v58, %v1504_v3  ;;  %v12616_v18 = vmax.bf16 %v2924_v40, %v2917_v55  ;;  %v2241_v16 = vpop.f32.mrf.mxu0  ;;  %v16534_v21 = vld [vmem:[#allocation120_spill] sm:$0xff]  ;;  %v16538_v63 = vld [vmem:[#allocation122_spill] sm:$0xff] }
 0x30a   :  { %16529 = vst [vmem:[#allocation2_spill] sm:$0xff] %v12610_v45  ;;  %16530 = vst [vmem:[#allocation215_spill] sm:$0xff] %v12612_v37  ;;  %v2748_v57 = vadd.f32 %v12339_v38, %v2529_v17  ;;  %v2694_v42 = vadd.f32 %v12497_v6, %v2475_v33  ;;  %v2482_v50 = vadd.f32 %v2357_v20, %v1622_v22  ;;  %v9412_v40 = vpop.f32.mrf.mxu1  ;;  %v16536_v17 = vld [vmem:[#allocation121_spill] sm:$0xff] }
 0x30b   :  { %16533 = vst [vmem:[#allocation55_spill] sm:$0xff] %v12616_v18  ;;  %3232 = vrot.lane.b32.xlu0 %v12607_v39, %s9945_s21  ;;  %3668 = vrot.lane.b32.xlu1 %v12610_v45, %s9945_s21  ;;  %v1510_v9 = vadd.f32 %v16535_v0, %v16534_v21  ;;  %v2749_v46 = vadd.f32 %v12375_v34, %v2530_v28  ;;  %v2245_v53 = vpop.f32.mrf.mxu0  ;;  %v16541_v40 = vld [vmem:[#allocation284_spill] sm:$0xff] }
 0x30c   :  { %v2755_v3 = vadd.f32 %v12339_v38, %v2536_v56  ;;  %v2537_v55 = vadd.f32 %v2241_v16, %v1506_v32  ;;  %v1627_v33 = vadd.f32 %v16537_v11, %v16536_v17  ;;  %v2701_v20 = vadd.f32 %v12497_v6, %v2482_v50  ;;  %v2362_v21 = vpop.f32.mrf.mxu1  ;;  %v16540_v50 = vld [vmem:[#allocation123_spill] sm:$0xff]  ;;  %v16542_v11 = vld [vmem:[#allocation124_spill] sm:$0xff] }
 0x30d   :  { %v1512_v22 = vadd.f32 %v16539_v43, %v16538_v63  ;;  %v2543_v1 = vadd.f32 %v2245_v53, %v1510_v9  ;;  %v2930_v0 = vpack.c.bf16 %v2748_v57, %v2748_v57  ;;  %v2876_v28 = vpack.c.bf16 %v2694_v42, %v2694_v42  ;;  %v12636_v32 = vpop.permute.xlu0 %3264  ;;  %v2247_v16 = vpop.f32.mrf.mxu0  ;;  %v16543_v63 = vld [vmem:[#allocation285_spill] sm:$0xff]  ;;  %v16545_v57 = vld [vmem:[#allocation286_spill] sm:$0xff] }
 0x30e   :  { %v2937_v58 = vpack.c.bf16 %v2755_v3, %v2755_v3  ;;  %v2756_v36 = vadd.f32 %v12375_v34, %v2537_v55  ;;  %v2883_v44 = vpack.c.bf16 %v2701_v20, %v2701_v20  ;;  %v2489_v56 = vadd.f32 %v2362_v21, %v1627_v33  ;;  %v9415_v9 = vpop.f32.mrf.mxu1  ;;  %v16544_v53 = vld [vmem:[#allocation125_spill] sm:$0xff]  ;;  %v3263_v20 = vpop.permute.xlu1 %3262 }
 0x30f   :  { %3284 = vrot.lane.b32.xlu0 %v12612_v37, %s9945_s21  ;;  %v1514_v17 = vadd.f32 %v16541_v40, %v16540_v50  ;;  %v1630_v3 = vadd.f32 %v16543_v63, %v16542_v11  ;;  %v2931_v43 = vpack.c.bf16 %v2749_v46, %v2749_v46  ;;  %v1516_v42 = vadd.f32 %v16545_v57, %v16544_v53  ;;  %v2249_v21 = vpop.f32.mrf.mxu0  ;;  %v16551_v9 = vld [vmem:[#allocation288_spill] sm:$0xff] }
 0x310   :  { %v2938_v55 = vpack.c.bf16 %v2756_v36, %v2756_v36  ;;  %v2762_v33 = vadd.f32 %v12339_v38, %v2543_v1  ;;  %v12645_v54 = vmax.bf16 %v2883_v44, %v2876_v28  ;;  %v12647_v25 = vmax.bf16 %v2937_v58, %v2930_v0  ;;  %v2365_v11 = vpop.f32.mrf.mxu1  ;;  %v16548_v58 = vld [vmem:[#allocation126_spill] sm:$0xff]  ;;  %v16549_v1 = vld [vmem:[#allocation287_spill] sm:$0xff] }
 0x311   :  { %v3413_v50 = vsel %vm3388_vm3, %v3263_v20, %v12636_v32  ;;  %v2544_v40 = vadd.f32 %v2247_v16, %v1512_v22  ;;  %v2550_v13 = vadd.f32 %v2249_v21, %v1514_v17  ;;  %v2708_v36 = vadd.f32 %v12497_v6, %v2489_v56  ;;  %v2251_v44 = vpop.f32.mrf.mxu0  ;;  %v16550_v28 = vld [vmem:[#allocation127_spill] sm:$0xff]  ;;  %v16553_v56 = vld [vmem:[#allocation289_spill] sm:$0xff] }
 0x312   :  { %16546 = vst [vmem:[#allocation216_spill] sm:$0xff] %v12647_v25  ;;  %v12651_v46 = vmax.bf16 %v2938_v55, %v2931_v43  ;;  %v2496_v63 = vadd.f32 %v2365_v11, %v1630_v3  ;;  %3246 = vrot.lane.b32.xlu1 %v12645_v54, %s9945_s21  ;;  %v1520_v0 = vadd.f32 %v16549_v1, %v16548_v58  ;;  %v9416_v43 = vpop.f32.mrf.mxu1  ;;  %v16552_v55 = vld [vmem:[#allocation128_spill] sm:$0xff] }
 0x313   :  { %3286 = vrot.lane.b32.xlu0 %v12616_v18, %s9945_s21  ;;  %v1635_v22 = vadd.f32 %v16551_v9, %v16550_v28  ;;  %v2769_v16 = vadd.f32 %v12339_v38, %v2550_v13  ;;  %v2551_v17 = vadd.f32 %v2251_v44, %v1516_v42  ;;  %v1522_v3 = vadd.f32 %v16553_v56, %v16552_v55  ;;  %v12666_v20 = vpop.permute.xlu0 %3224  ;;  %v2255_v21 = vpop.f32.mrf.mxu0  ;;  %v16559_v56 = vld [vmem:[#allocation291_spill] sm:$0xff] }
 0x314   :  { %16547 = vst [vmem:[#allocation3_spill] sm:$0xff] %v12651_v46  ;;  %v2944_v53 = vpack.c.bf16 %v2762_v33, %v2762_v33  ;;  %v2715_v57 = vadd.f32 %v12497_v6, %v2496_v63  ;;  %v12669_v11 = vmax.bf16 %v3413_v50, %v12033_v41  ;;  %v2763_v58 = vadd.f32 %v12375_v34, %v2544_v40  ;;  %v2370_v42 = vpop.f32.mrf.mxu1  ;;  %v16555_v63 = vld [vmem:[#allocation129_spill] sm:$0xff]  ;;  %v16556_v41 = vld [vmem:[#allocation290_spill] sm:$0xff] }
 0x315   :  { %v2951_v1 = vpack.c.bf16 %v2769_v16, %v2769_v16  ;;  %v2770_v28 = vadd.f32 %v12375_v34, %v2551_v17  ;;  %v2557_v13 = vadd.f32 %v2255_v21, %v1520_v0  ;;  %v2890_v44 = vpack.c.bf16 %v2708_v36, %v2708_v36  ;;  %v2257_v33 = vpop.f32.mrf.mxu0  ;;  %v12679_v40 = vpop.permute.xlu1 %3278  ;;  %v16558_v36 = vld [vmem:[#allocation130_spill] sm:$0xff]  ;;  %v16561_v21 = vld [vmem:[#allocation292_spill] sm:$0xff] }
 0x316   :  { %16554 = vst [vmem:[#allocation217_spill] sm:$0xff] %v12669_v11  ;;  %v2897_v9 = vpack.c.bf16 %v2715_v57, %v2715_v57  ;;  %v2503_v43 = vadd.f32 %v2370_v42, %v1635_v22  ;;  %3298 = vrot.lane.b32.xlu1 %v12647_v25, %s9945_s21  ;;  %v1524_v50 = vadd.f32 %v16556_v41, %v16555_v63  ;;  %v9419_v17 = vpop.f32.mrf.mxu1  ;;  %v16560_v57 = vld [vmem:[#allocation131_spill] sm:$0xff]  ;;  %v16592_v25 = vld [vmem:[#allocation50_spill] sm:$0xff] }
 0x317   :  { %3670 = vrot.lane.b32.xlu0 %v12669_v11, %s9945_s21  ;;  %v2952_v55 = vpack.c.bf16 %v2770_v28, %v2770_v28  ;;  %v2558_v16 = vadd.f32 %v2257_v33, %v1522_v3  ;;  %v12681_v0 = vmax.bf16 %v2951_v1, %v2944_v53  ;;  %v1638_v22 = vadd.f32 %v16559_v56, %v16558_v36  ;;  %v12687_v23 = vpop.permute.xlu0 %3276  ;;  %v2259_v30 = vpop.f32.mrf.mxu0  ;;  %v16566_v36 = vld [vmem:[#allocation294_spill] sm:$0xff] }
 0x318   :  { %v1526_v42 = vadd.f32 %v16561_v21, %v16560_v57  ;;  %v12689_v14 = vmax.bf16 %v2897_v9, %v2890_v44  ;;  %v2945_v18 = vpack.c.bf16 %v2763_v58, %v2763_v58  ;;  %v3396_v28 = vsel %vm3388_vm3, %v12520_v60, %v12666_v20  ;;  %v2373_v1 = vpop.f32.mrf.mxu1 }
 0x319   :  { %16557 = vst [vmem:[#allocation57_spill] sm:$0xff] %v12681_v0  ;;  %v2776_v3 = vadd.f32 %v12339_v38, %v2557_v13  ;;  %v2564_v53 = vadd.f32 %v2259_v30, %v1524_v50  ;;  %v2722_v33 = vadd.f32 %v12497_v6, %v2503_v43  ;;  %v2510_v63 = vadd.f32 %v2373_v1, %v1638_v22  ;;  %v2261_v44 = vpop.f32.mrf.mxu0  ;;  %v16563_v30 = vld [vmem:[#allocation132_spill] sm:$0xff]  ;;  %v16564_v13 = vld [vmem:[#allocation293_spill] sm:$0xff] }
 0x31a   :  { %3300 = vrot.lane.b32.xlu1 %v12651_v46, %s9945_s21  ;;  %v2777_v58 = vadd.f32 %v12375_v34, %v2558_v16  ;;  %v2565_v41 = vadd.f32 %v2261_v44, %v1526_v42  ;;  %v9420_v60 = vpop.f32.mrf.mxu1  ;;  %v12702_v17 = vmax.bf16 %v2952_v55, %v2945_v18  ;;  %v1530_v50 = vadd.f32 %v16564_v13, %v16563_v30  ;;  %v16565_v43 = vld [vmem:[#allocation133_spill] sm:$0xff]  ;;  %v16567_v1 = vld [vmem:[#allocation36_spill] sm:$0xff] }
 0x31b   :  { %3260 = vrot.lane.b32.xlu0 %v12689_v14, %s9945_s21  ;;  %v2783_v9 = vadd.f32 %v12339_v38, %v2564_v53  ;;  %v1643_v56 = vadd.f32 %v16566_v36, %v16565_v43  ;;  %v2729_v22 = vadd.f32 %v12497_v6, %v2510_v63  ;;  %v12709_v57 = vpop.permute.xlu1 %3238  ;;  %v12711_v21 = vpop.permute.xlu0 %3226  ;;  %v3566_v16 = vmax.bf16 %v3396_v28, %v16567_v1  ;;  %v16569_v53 = vld [vmem:[#allocation295_spill] sm:$0xff] }
 0x31c   :  { %16562 = vst [vmem:[#allocation218_spill] sm:$0xff] %v12702_v17  ;;  %v1532_v42 = vadd.f32 %v16569_v53, %v16568_v62  ;;  %v2958_v44 = vpack.c.bf16 %v2776_v3, %v2776_v3  ;;  %v2784_v55 = vadd.f32 %v12375_v34, %v2565_v41  ;;  %v2265_v60 = vpop.f32.mrf.mxu0  ;;  %v2378_v30 = vpop.f32.mrf.mxu1  ;;  %v2904_v13 = vpack.c.bf16 %v2722_v33, %v2722_v33  ;;  %v16572_v41 = vld [vmem:[#allocation296_spill] sm:$0xff] }
 0x31d   :  { %v2965_v18 = vpack.c.bf16 %v2783_v9, %v2783_v9  ;;  %v2911_v35 = vpack.c.bf16 %v2729_v22, %v2729_v22  ;;  %v2571_v43 = vadd.f32 %v2265_v60, %v1530_v50  ;;  %v2959_v63 = vpack.c.bf16 %v2777_v58, %v2777_v58  ;;  %v16571_v9 = vld [vmem:[#allocation135_spill] sm:$0xff]  ;;  %v16574_v60 = vld [vmem:[#allocation136_spill] sm:$0xff] }
 0x31e   :  { %3703 = vrot.lane.b32.xlu1 %v3566_v16, %s9946_s2  ;;  %v2966_v28 = vpack.c.bf16 %v2784_v55, %v2784_v55  ;;  %v2517_v36 = vadd.f32 %v2378_v30, %v1643_v56  ;;  %v2267_v1 = vpop.f32.mrf.mxu0  ;;  %v9423_v62 = vpop.f32.mrf.mxu1  ;;  %v1534_v53 = vadd.f32 %v16572_v41, %v16571_v9  ;;  %v3402_v58 = vsel %vm3388_vm3, %v12564_v7, %v12709_v57  ;;  %v16577_v55 = vld [vmem:[#allocation137_spill] sm:$0xff]  ;;  %v16578_v30 = vld [vmem:[#allocation298_spill] sm:$0xff]  ;;  %v16581_v9 = vld [vmem:[#allocation139_spill] sm:$0xff] }
 0x31f   :  { %3312 = vrot.lane.b32.xlu0 %v12681_v0, %s9945_s21  ;;  %v12720_v3 = vmax.bf16 %v2965_v18, %v2958_v44  ;;  %v2572_v11 = vadd.f32 %v2267_v1, %v1532_v42  ;;  %v12724_v33 = vpop.permute.xlu1 %3290  ;;  %v12728_v22 = vmax.bf16 %v2911_v35, %v2904_v13  ;;  %v16575_v0 = vld [vmem:[#allocation297_spill] sm:$0xff]  ;;  %v1536_v42 = vadd.f32 %v16578_v30, %v16577_v55  ;;  %v16580_v62 = vld [vmem:[#allocation299_spill] sm:$0xff]  ;;  %v16582_v41 = vld [vmem:[#allocation300_spill] sm:$0xff] }
 0x320   :  { %v12726_v50 = vpop.permute.xlu0 %3292  ;;  %v1646_v46 = vadd.f32 %v16575_v0, %v16574_v60  ;;  %v2269_v56 = vpop.f32.mrf.mxu0  ;;  %v12735_v18 = vmax.bf16 %v2966_v28, %v2959_v63  ;;  %v3397_v1 = vsel %vm3388_vm3, %v12666_v20, %v12711_v21  ;;  %v2790_v35 = vadd.f32 %v12339_v38, %v2571_v43  ;;  %v16579_v0 = vld [vmem:[#allocation138_spill] sm:$0xff] }
 0x321   :  { %16570 = vst [vmem:[#allocation4_spill] sm:$0xff] %v12720_v3  ;;  %16573 = vst [vmem:[#allocation219_spill] sm:$0xff] %v12728_v22  ;;  %v2381_v44 = vpop.f32.mrf.mxu1  ;;  %v2578_v13 = vadd.f32 %v2269_v56, %v1534_v53  ;;  %v1540_v7 = vadd.f32 %v16580_v62, %v16579_v0  ;;  %v1651_v63 = vadd.f32 %v16582_v41, %v16581_v9  ;;  %v16583_v0 = vld [vmem:[#allocation188_spill] sm:$0xff]  ;;  %v16585_v41 = vld [vmem:[#allocation301_spill] sm:$0xff] }
 0x322   :  { %16576 = vst [vmem:[#allocation59_spill] sm:$0xff] %v12735_v18  ;;  %v2736_v28 = vadd.f32 %v12497_v6, %v2517_v36  ;;  %v2524_v60 = vadd.f32 %v2381_v44, %v1646_v46  ;;  %3729 = vrot.lane.b32.xlu1 %v3566_v16, %s9947_s24  ;;  %v2271_v55 = vpop.f32.mrf.mxu0  ;;  %v2791_v43 = vadd.f32 %v12375_v34, %v2572_v11  ;;  %v16584_v9 = vld [vmem:[#allocation140_spill] sm:$0xff] }
 0x323   :  { %3314 = vrot.lane.b32.xlu0 %v12702_v17, %s9945_s21  ;;  %v9424_v20 = vpop.f32.mrf.mxu1  ;;  %v2797_v53 = vadd.f32 %v12339_v38, %v2578_v13  ;;  %v2579_v56 = vadd.f32 %v2271_v55, %v1536_v42  ;;  %v12753_v30 = vpop.permute.xlu1 %3240  ;;  %v3573_v62 = vmax.bf16 %v3402_v58, %v16583_v0  ;;  %v1542_v36 = vadd.f32 %v16585_v41, %v16584_v9  ;;  %v16588_v42 = vld [vmem:[#allocation141_spill] sm:$0xff]  ;;  %v16589_v55 = vld [vmem:[#allocation302_spill] sm:$0xff] }
 0x324   :  { %v12755_v17 = vpop.permute.xlu0 %3252  ;;  %v3419_v46 = vsel %vm3388_vm3, %v12687_v23, %v12679_v40  ;;  %v2743_v16 = vadd.f32 %v12497_v6, %v2524_v60  ;;  %v2275_v44 = vpop.f32.mrf.mxu0  ;;  %v16586_v20 = vld [vmem:[#allocation194_spill] sm:$0xff]  ;;  %v1544_v5 = vadd.f32 %v16589_v55, %v16588_v42  ;;  %v2972_v37 = vpack.c.bf16 %v2790_v35, %v2790_v35 }
 0x325   :  { %v2386_v11 = vpop.f32.mrf.mxu1  ;;  %v12765_v13 = vmax.bf16 %v3397_v1, %v16586_v20  ;;  %v2979_v10 = vpack.c.bf16 %v2797_v53, %v2797_v53  ;;  %v2798_v58 = vadd.f32 %v12375_v34, %v2579_v56  ;;  %v2918_v0 = vpack.c.bf16 %v2736_v28, %v2736_v28  ;;  %v16590_v1 = vld [vmem:[#allocation142_spill] sm:$0xff]  ;;  %v16591_v20 = vld [vmem:[#allocation303_spill] sm:$0xff] }
 0x326   :  { %v2925_v9 = vpack.c.bf16 %v2743_v16, %v2743_v16  ;;  %v2585_v41 = vadd.f32 %v2275_v44, %v1540_v7  ;;  %v2531_v23 = vadd.f32 %v2386_v11, %v1651_v63  ;;  %v2277_v60 = vpop.f32.mrf.mxu0  ;;  %v1654_v15 = vadd.f32 %v16591_v20, %v16590_v1  ;;  %v16596_v11 = vld [vmem:[#allocation143_spill] sm:$0xff] }
 0x327   :  { %16587 = vst [vmem:[#allocation220_spill] sm:$0xff] %v12765_v13  ;;  %3705 = vrot.lane.b32.xlu0 %v3573_v62, %s9946_s2  ;;  %3768 = vrot.lane.b32.xlu1 %v12765_v13, %s9945_s21  ;;  %v9427_v47 = vpop.f32.mrf.mxu1  ;;  %v12776_v42 = vmax.bf16 %v3419_v46, %v16592_v25  ;;  %v2973_v35 = vpack.c.bf16 %v2791_v43, %v2791_v43  ;;  %v12778_v56 = vpop.permute.xlu1 %3254  ;;  %v16597_v25 = vld [vmem:[#allocation304_spill] sm:$0xff] }
 0x328   :  { %v2980_v53 = vpack.c.bf16 %v2798_v58, %v2798_v58  ;;  %v12780_v55 = vpop.permute.xlu0 %3304  ;;  %v3403_v7 = vsel %vm3388_vm3, %v12709_v57, %v12753_v30  ;;  %v2586_v63 = vadd.f32 %v2277_v60, %v1542_v36  ;;  %v2279_v28 = vpop.f32.mrf.mxu0  ;;  %v12785_v47 = vmax.bf16 %v2925_v9, %v2918_v0 }
 0x329   :  { %16593 = vst [vmem:[#allocation5_spill] sm:$0xff] %v12776_v42  ;;  %v2389_v16 = vpop.f32.mrf.mxu1  ;;  %v12787_v44 = vmax.bf16 %v2979_v10, %v2972_v37  ;;  %v1546_v46 = vadd.f32 %v16597_v25, %v16596_v11  ;;  %v2592_v43 = vadd.f32 %v2279_v28, %v1544_v5  ;;  %v2804_v58 = vadd.f32 %v12339_v38, %v2585_v41  ;;  %v16599_v10 = vld [vmem:[#allocation144_spill] sm:$0xff]  ;;  %v16600_v37 = vld [vmem:[#allocation305_spill] sm:$0xff] }
 0x32a   :  { %16594 = vst [vmem:[#allocation221_spill] sm:$0xff] %v12785_v47  ;;  %v2750_v1 = vadd.f32 %v12497_v6, %v2531_v23  ;;  %v2538_v20 = vadd.f32 %v2389_v16, %v1654_v15  ;;  %v2281_v57 = vpop.f32.mrf.mxu0  ;;  %v12796_v0 = vmax.bf16 %v2980_v53, %v2973_v35  ;;  %v1550_v9 = vadd.f32 %v16600_v37, %v16599_v10  ;;  %v16602_v15 = vld [vmem:[#allocation145_spill] sm:$0xff]  ;;  %v16603_v23 = vld [vmem:[#allocation306_spill] sm:$0xff] }
 0x32b   :  { %16595 = vst [vmem:[#allocation61_spill] sm:$0xff] %v12787_v44  ;;  %3731 = vrot.lane.b32.xlu0 %v3573_v62, %s9947_s24  ;;  %3672 = vrot.lane.b32.xlu1 %v12776_v42, %s9945_s21  ;;  %v9428_v36 = vpop.f32.mrf.mxu1  ;;  %v2811_v60 = vadd.f32 %v12339_v38, %v2592_v43  ;;  %v2593_v5 = vadd.f32 %v2281_v57, %v1546_v46  ;;  %v12801_v28 = vpop.permute.xlu1 %3306 }
 0x32c   :  { %16598 = vst [vmem:[#allocation222_spill] sm:$0xff] %v12796_v0  ;;  %v12803_v62 = vpop.permute.xlu0 %3266  ;;  %v12806_v41 = vmax.bf16 %v3403_v7, %v12122_v26  ;;  %v1659_v16 = vadd.f32 %v16603_v23, %v16602_v15  ;;  %v3425_v35 = vsel %vm3388_vm3, %v12724_v33, %v12726_v50  ;;  %v2805_v53 = vadd.f32 %v12375_v34, %v2586_v63  ;;  %v2285_v25 = vpop.f32.mrf.mxu0  ;;  %v16605_v15 = vld [vmem:[#allocation308_spill] sm:$0xff] }
 0x32d   :  { %v2757_v11 = vadd.f32 %v12497_v6, %v2538_v20  ;;  %v2394_v46 = vpop.f32.mrf.mxu1  ;;  %v2993_v43 = vpack.c.bf16 %v2811_v60, %v2811_v60  ;;  %v2812_v57 = vadd.f32 %v12375_v34, %v2593_v5  ;;  %v2599_v36 = vadd.f32 %v2285_v25, %v1550_v9  ;;  %v16604_v20 = vld [vmem:[#allocation147_spill] sm:$0xff]  ;;  %v16606_v5 = vld [vmem:[#allocation196_spill] sm:$0xff] }
 0x32e   :  { %16601 = vst [vmem:[#allocation6_spill] sm:$0xff] %v12806_v41  ;;  %v2986_v26 = vpack.c.bf16 %v2804_v58, %v2804_v58  ;;  %v2932_v7 = vpack.c.bf16 %v2750_v1, %v2750_v1  ;;  %v2545_v37 = vadd.f32 %v2394_v46, %v1659_v16  ;;  %v12820_v33 = vpop.f32.mrf.mxu0  ;;  %v1554_v23 = vadd.f32 %v16605_v15, %v16604_v20  ;;  %v16608_v58 = vld [vmem:[#allocation148_spill] sm:$0xff]  ;;  %v16609_v1 = vld [vmem:[#allocation309_spill] sm:$0xff] }
 0x32f   :  { %3770 = vrot.lane.b32.xlu0 %v12806_v41, %s9945_s21  ;;  %v2939_v10 = vpack.c.bf16 %v2757_v11, %v2757_v11  ;;  %3274 = vrot.lane.b32.xlu1 %v12728_v22, %s9945_s21  ;;  %v9431_v63 = vpop.f32.mrf.mxu1  ;;  %v2994_v60 = vpack.c.bf16 %v2812_v57, %v2812_v57  ;;  %v12824_v13 = vpop.permute.xlu1 %3318  ;;  %v12829_v25 = vmax.bf16 %v3425_v35, %v16606_v5 }
 0x330   :  { %v12826_v9 = vpop.permute.xlu0 %3320  ;;  %v1662_v16 = vadd.f32 %v16609_v1, %v16608_v58  ;;  %v2987_v11 = vpack.c.bf16 %v2805_v53, %v2805_v53  ;;  %v2289_v46 = vpop.f32.mrf.mxu0  ;;  %v12835_v63 = vmax.bf16 %v2993_v43, %v2986_v26  ;;  %v2818_v20 = vadd.f32 %v12339_v38, %v2599_v36  ;;  %v16615_v1 = vld [vmem:[#allocation151_spill] sm:$0xff] }
 0x331   :  { %16607 = vst [vmem:[#allocation223_spill] sm:$0xff] %v12829_v25  ;;  %v2397_v41 = vpop.f32.mrf.mxu1  ;;  %v12833_v42 = vmax.bf16 %v2939_v10, %v2932_v7  ;;  %v2606_v57 = vadd.f32 %v2289_v46, %v1554_v23  ;;  %v2764_v15 = vadd.f32 %v12497_v6, %v2545_v37  ;;  %v16613_v7 = vld [vmem:[#allocation150_spill] sm:$0xff]  ;;  %v16614_v10 = vld [vmem:[#allocation311_spill] sm:$0xff]  ;;  %v16616_v37 = vld [vmem:[#allocation312_spill] sm:$0xff] }
 0x332   :  { %16611 = vst [vmem:[#allocation224_spill] sm:$0xff] %v12835_v63  ;;  %v2552_v35 = vadd.f32 %v2397_v41, %v1662_v16  ;;  %v12843_v5 = vpop.f32.mrf.mxu0  ;;  %v12845_v58 = vmax.bf16 %v2994_v60, %v2987_v11  ;;  %v1560_v23 = vadd.f32 %v16614_v10, %v16613_v7  ;;  %v1667_v41 = vadd.f32 %v16616_v37, %v16615_v1  ;;  %v16618_v1 = vld [vmem:[#allocation153_spill] sm:$0xff]  ;;  %v16619_v37 = vld [vmem:[#allocation315_spill] sm:$0xff] }
 0x333   :  { %16610 = vst [vmem:[#allocation63_spill] sm:$0xff] %v12833_v42  ;;  %3674 = vrot.lane.b32.xlu0 %v12829_v25, %s9945_s21  ;;  %3326 = vrot.lane.b32.xlu1 %v12720_v3, %s9945_s21  ;;  %v9432_v53 = vpop.f32.mrf.mxu1  ;;  %v2825_v43 = vadd.f32 %v12339_v38, %v2606_v57  ;;  %v3408_v60 = vsel %vm3388_vm3, %v12597_v52, %v12755_v17 }
 0x334   :  { %16612 = vst [vmem:[#allocation7_spill] sm:$0xff] %v12845_v58  ;;  %v12848_v26 = vpop.permute.xlu1 %3268  ;;  %v12850_v36 = vpop.permute.xlu0 %3280  ;;  %v2771_v16 = vadd.f32 %v12497_v6, %v2552_v35  ;;  %v3000_v11 = vpack.c.bf16 %v2818_v20, %v2818_v20  ;;  %v2946_v53 = vpack.c.bf16 %v2764_v15, %v2764_v15  ;;  %v1564_v8 = vadd.f32 %v16619_v37, %v16618_v1  ;;  %v16620_v20 = vld [vmem:[#allocation154_spill] sm:$0xff] }
 0x335   :  { %v2295_v46 = vpop.f32.mrf.mxu0  ;;  %v2402_v25 = vpop.f32.mrf.mxu1  ;;  %v3007_v57 = vpack.c.bf16 %v2825_v43, %v2825_v43  ;;  %v16621_v43 = vld [vmem:[#allocation316_spill] sm:$0xff] }
 0x336   :  { %v2953_v3 = vpack.c.bf16 %v2771_v16, %v2771_v16  ;;  %v2613_v45 = vadd.f32 %v2295_v46, %v1560_v23  ;;  %v2559_v7 = vadd.f32 %v2402_v25, %v1667_v41  ;;  %v16622_v23 = vld [vmem:[#allocation192_spill] sm:$0xff] }
 0x337   :  { %3288 = vrot.lane.b32.xlu0 %v12785_v47, %s9945_s21  ;;  %3328 = vrot.lane.b32.xlu1 %v12735_v18, %s9945_s21  ;;  %v12864_v10 = vpop.f32.mrf.mxu0  ;;  %v9435_v35 = vpop.f32.mrf.mxu1  ;;  %v1670_v47 = vadd.f32 %v16621_v43, %v16620_v20  ;;  %v3580_v25 = vmax.bf16 %v3408_v60, %v16622_v23  ;;  %v12877_v46 = vmax.bf16 %v3007_v57, %v3000_v11  ;;  %v16625_v43 = vld [vmem:[#allocation156_spill] sm:$0xff]  ;;  %v16627_v23 = vld [vmem:[#allocation157_spill] sm:$0xff] }
 0x338   :  { %16617 = vst [vmem:[#allocation225_spill] sm:$0xff] %v12864_v10  ;;  %v12868_v59 = vpop.permute.xlu1 %3282  ;;  %v12870_v52 = vpop.permute.xlu0 %3332  ;;  %v12875_v41 = vmax.bf16 %v2953_v3, %v2946_v53  ;;  %v2832_v35 = vadd.f32 %v12339_v38, %v2613_v45  ;;  %v2778_v1 = vadd.f32 %v12497_v6, %v2559_v7  ;;  %v16626_v18 = vld [vmem:[#allocation164_spill] sm:$0xff]  ;;  %v3414_v11 = vsel %vm3388_vm3, %v12636_v32, %v12803_v62 }
 0x339   :  { %v2299_v15 = vpop.f32.mrf.mxu0  ;;  %v2405_v16 = vpop.f32.mrf.mxu1  ;;  %16624 = vst [vmem:[#allocation226_spill] sm:$0xff] %v12877_v46  ;;  %v1675_v22 = vadd.f32 %v16626_v18, %v16625_v43  ;;  %v16629_v43 = vld [vmem:[#allocation33_spill] sm:$0xff] }
 0x33a   :  { %16623 = vst [vmem:[#allocation65_spill] sm:$0xff] %v12875_v41  ;;  %v2620_v37 = vadd.f32 %v2299_v15, %v1564_v8  ;;  %v2566_v10 = vadd.f32 %v2405_v16, %v1670_v47  ;;  %v3409_v47 = vsel %vm3388_vm3, %v12755_v17, %v12778_v56  ;;  %v3014_v18 = vpack.c.bf16 %v2832_v35, %v2832_v35 }
 0x33b   :  { %3340 = vrot.lane.b32.xlu0 %v12787_v44, %s9945_s21  ;;  %3707 = vrot.lane.b32.xlu1 %v3580_v25, %s9946_s2  ;;  %v9436_v20 = vpop.f32.mrf.mxu1  ;;  %v2960_v7 = vpack.c.bf16 %v2778_v1, %v2778_v1  ;;  %v3587_v17 = vmax.bf16 %v3414_v11, %v16629_v43  ;;  %v16631_v1 = vld [vmem:[#allocation37_spill] sm:$0xff]  ;;  %v16651_v44 = vld [vmem:[#allocation310_spill] sm:$0xff] }
 0x33c   :  { %v12886_v60 = vpop.permute.xlu1 %3334  ;;  %v12888_v3 = vpop.permute.xlu0 %3294  ;;  %v2839_v45 = vadd.f32 %v12339_v38, %v2620_v37  ;;  %v2785_v57 = vadd.f32 %v12497_v6, %v2566_v10  ;;  %v16628_v38 = vld [vmem:[#allocation18_spill] sm:$0xff] }
 0x33d   :  { %v2410_v8 = vpop.f32.mrf.mxu1  ;;  %v1678_v37 = vadd.f32 %v16628_v38, %v16627_v23  ;;  %v16635_v38 = vld [vmem:[#allocation198_spill] sm:$0xff] }
 0x33e   :  { %v2573_v53 = vadd.f32 %v2410_v8, %v1675_v22  ;;  %v3021_v15 = vpack.c.bf16 %v2839_v45, %v2839_v45  ;;  %v2967_v16 = vpack.c.bf16 %v2785_v57, %v2785_v57  ;;  %v12913_v45 = vmax.bf16 %v3409_v47, %v16631_v1 }
 0x33f   :  { %3342 = vrot.lane.b32.xlu0 %v12796_v0, %s9945_s21  ;;  %3733 = vrot.lane.b32.xlu1 %v3580_v25, %s9947_s24  ;;  %v9439_v32 = vpop.f32.mrf.mxu1  ;;  %v3431_v25 = vsel %vm3388_vm3, %v12780_v55, %v12801_v28  ;;  %v3415_v55 = vsel %vm3388_vm3, %v12803_v62, %v12848_v26  ;;  %v16639_v62 = vld [vmem:[#allocation39_spill] sm:$0xff] }
 0x340   :  { %v12903_v10 = vpop.permute.xlu1 %3346  ;;  %v12908_v22 = vmax.bf16 %v3021_v15, %v3014_v18  ;;  %v12910_v8 = vmax.bf16 %v2967_v16, %v2960_v7  ;;  %16632 = vst [vmem:[#allocation227_spill] sm:$0xff] %v12913_v45  ;;  %v2792_v57 = vadd.f32 %v12497_v6, %v2573_v53  ;;  %v16633_v18 = vld [vmem:[#allocation158_spill] sm:$0xff]  ;;  %v16634_v7 = vld [vmem:[#allocation11_spill] sm:$0xff]  ;;  %v12945_v0 = vmax.bf16 %v3415_v55, %v16639_v62 }
 0x341   :  { %v12905_v20 = vpop.permute.xlu0 %3348  ;;  %v2413_v35 = vpop.f32.mrf.mxu1  ;;  %v1683_v15 = vadd.f32 %v16634_v7, %v16633_v18  ;;  %v16638_v18 = vld [vmem:[#allocation13_spill] sm:$0xff]  ;;  %v16642_v55 = vld [vmem:[#allocation30_spill] sm:$0xff] }
 0x342   :  { %16630 = vst [vmem:[#allocation8_spill] sm:$0xff] %v12908_v22  ;;  %v2580_v32 = vadd.f32 %v2413_v35, %v1678_v37  ;;  %v12933_v37 = vmax.bf16 %v3431_v25, %v16635_v38  ;;  %v2974_v43 = vpack.c.bf16 %v2792_v57, %v2792_v57  ;;  %16640 = vst [vmem:[#allocation228_spill] sm:$0xff] %v12945_v0  ;;  %v16641_v38 = vld [vmem:[#allocation160_spill] sm:$0xff] }
 0x343   :  { %3709 = vrot.lane.b32.xlu0 %v3587_v17, %s9946_s2  ;;  %3772 = vrot.lane.b32.xlu1 %v12913_v45, %s9945_s21  ;;  %v9440_v11 = vpop.f32.mrf.mxu1  ;;  %v3437_v25 = vsel %vm3388_vm3, %v12824_v13, %v12826_v9 }
 0x344   :  { %v2799_v16 = vadd.f32 %v12497_v6, %v2580_v32  ;;  %v12925_v47 = vpop.permute.xlu1 %3296  ;;  %16636 = vst [vmem:[#allocation67_spill] sm:$0xff] %v12933_v37  ;;  %v16637_v11 = vld [vmem:[#allocation159_spill] sm:$0xff]  ;;  %v12963_v13 = vmax.bf16 %v3437_v25, %v12204_v27  ;;  %v16644_v25 = vld [vmem:[#allocation161_spill] sm:$0xff] }
 0x345   :  { %v12927_v23 = vpop.permute.xlu0 %3308  ;;  %v2418_v53 = vpop.f32.mrf.mxu1  ;;  %v1686_v7 = vadd.f32 %v16638_v18, %v16637_v11  ;;  %v9537_v18 = vld [vmem:[%s15697_s3 + $0x31c] ss:$12 sps:$4 sm:$0xff]  }
 0x346   :  { %v2981_v35 = vpack.c.bf16 %v2799_v16, %v2799_v16  ;;  %v2587_v1 = vadd.f32 %v2418_v53, %v1683_v15  ;;  %16643 = vst [vmem:[#allocation9_spill] sm:$0xff] %v12963_v13  ;;  %5109 = vmatprep.subr.bf16.mxu0 %v9537_v18 }
 0x347   :  { %3735 = vrot.lane.b32.xlu0 %v3587_v17, %s9947_s24  ;;  %3676 = vrot.lane.b32.xlu1 %v12933_v37, %s9945_s21  ;;  %v9443_v32 = vpop.f32.mrf.mxu1 }
 0x348   :  { %v12940_v22 = vmax.bf16 %v2981_v35, %v2974_v43  ;;  %v12942_v45 = vpop.permute.xlu1 %3310  ;;  %v2806_v17 = vadd.f32 %v12497_v6, %v2587_v1  ;;  %v1691_v43 = vadd.f32 %v16642_v55, %v16641_v38  ;;  %v9535_v1 = vld [vmem:[%s15697_s3 + $0x318] ss:$12 sps:$4 sm:$0xff]  }
 0x349   :  { %v2421_v57 = vpop.f32.mrf.mxu1  ;;  %v12951_v15 = vpop.permute.xlu0 %3360  ;;  %5110 = vmatpush1.bf16.msra.mxu0 %v9535_v1 }
 0x34a   :  { %v2594_v16 = vadd.f32 %v2421_v57, %v1686_v7  ;;  %v2988_v7 = vpack.c.bf16 %v2806_v17, %v2806_v17  ;;  %v9540_v17 = vld [vmem:[%s15697_s3 + $0x304] ss:$12 sps:$4 sm:$0xff]  }
 0x34b   :  { %3774 = vrot.lane.b32.xlu0 %v12945_v0, %s9945_s21  ;;  %3302 = vrot.lane.b32.xlu1 %v12833_v42, %s9945_s21  ;;  %v9444_v53 = vpop.f32.mrf.mxu1  ;;  %v3421_v42 = vsel %vm3388_vm3, %v12850_v36, %v12868_v59 }
 0x34c   :  { %v2813_v35 = vadd.f32 %v12497_v6, %v2594_v16  ;;  %v12960_v32 = vpop.permute.xlu1 %3362  ;;  %v16645_v16 = vld [vmem:[#allocation34_spill] sm:$0xff]  ;;  %5111 = vmatprep.subr.bf16.mxu0 %v9540_v17 }
 0x34d   :  { %v2426_v11 = vpop.f32.mrf.mxu1  ;;  %v1694_v53 = vadd.f32 %v16645_v16, %v16644_v25  ;;  %v12979_v55 = vpop.permute.xlu0 %3322 }
 0x34e   :  { %v2995_v62 = vpack.c.bf16 %v2813_v35, %v2813_v35  ;;  %v2601_v57 = vadd.f32 %v2426_v11, %v1691_v43  ;;  %v9538_v35 = vld [vmem:[%s15697_s3 + $0x300] ss:$12 sps:$4 sm:$0xff]   ;;  %v3420_v11 = vsel %vm3388_vm3, %v12679_v40, %v12850_v36  ;;  %v9541_v40 = vld [vmem:[%s15697_s3 + $0x2e8] ss:$12 sps:$4 sm:$0xff]  }
 0x34f   :  { %3678 = vrot.lane.b32.xlu0 %v12963_v13, %s9945_s21  ;;  %3354 = vrot.lane.b32.xlu1 %v12835_v63, %s9945_s21  ;;  %v9447_v27 = vpop.f32.mrf.mxu1 }
 0x350   :  { %v12977_v38 = vmax.bf16 %v2995_v62, %v2988_v7  ;;  %v2820_v18 = vadd.f32 %v12497_v6, %v2601_v57  ;;  %v16646_v62 = vld [vmem:[#allocation162_spill] sm:$0xff]  ;;  %v16647_v27 = vld [vmem:[#allocation183_spill] sm:$0xff]  ;;  %5112 = vmatpush1.bf16.msra.mxu0 %v9538_v35 }
 0x351   :  { %v12981_v0 = vpop.permute.xlu1 %3324  ;;  %v2429_v43 = vpop.f32.mrf.mxu1  ;;  %v1699_v25 = vadd.f32 %v16647_v27, %v16646_v62  ;;  %v9543_v57 = vld [vmem:[%s15697_s3 + $0x2ec] ss:$12 sps:$4 sm:$0xff]  }
 0x352   :  { %v2608_v7 = vadd.f32 %v2429_v43, %v1694_v53  ;;  %v3426_v53 = vsel %vm3388_vm3, %v12726_v50, %v12888_v3  ;;  %v16648_v43 = vld [vmem:[#allocation195_spill] sm:$0xff]  ;;  %v3002_v62 = vpack.c.bf16 %v2820_v18, %v2820_v18  ;;  %5113 = vmatprep.subr.bf16.mxu0 %v9543_v57  ;;  %v9544_v50 = vld [vmem:[%s15697_s3 + $0x2d0] ss:$12 sps:$4 sm:$0xff]  }
 0x353   :  { %3316 = vrot.lane.b32.xlu0 %v12875_v41, %s9945_s21  ;;  %3356 = vrot.lane.b32.xlu1 %v12845_v58, %s9945_s21  ;;  %v9448_v1 = vpop.f32.mrf.mxu1  ;;  %v16650_v58 = vld [vmem:[#allocation149_spill] sm:$0xff]  ;;  %v16652_v18 = vld [vmem:[#allocation163_spill] sm:$0xff] }
 0x354   :  { %v2827_v16 = vadd.f32 %v12497_v6, %v2608_v7  ;;  %v13000_v13 = vpop.permute.xlu0 %3336  ;;  %v3594_v1 = vmax.bf16 %v3420_v11, %v16648_v43  ;;  %v1556_v37 = vadd.f32 %v16651_v44, %v16650_v58  ;;  %v9546_v11 = vld [vmem:[%s15697_s3 + $0x2d4] ss:$12 sps:$4 sm:$0xff]   ;;  %5114 = vmatpush1.bf16.msra.mxu0 %v9541_v40  ;;  %v9547_v40 = vld [vmem:[%s15697_s3 + $0x2b8] ss:$12 sps:$4 sm:$0xff]  }
 0x355   :  { %v2434_v17 = vpop.f32.mrf.mxu1  ;;  %v13012_v27 = vpop.permute.xlu1 %3214  ;;  %v16655_v44 = vld [vmem:[#allocation146_spill] sm:$0xff]  ;;  %5115 = vmatprep.subr.bf16.mxu0 %v9546_v11  ;;  %v3443_v11 = vsel %vm3388_vm3, %v12870_v52, %v12886_v60 }
 0x356   :  { %v3009_v7 = vpack.c.bf16 %v2827_v16, %v2827_v16  ;;  %16649 = vst [vmem:[#allocation229_spill] sm:$0xff] %v13012_v27  ;;  %v2615_v35 = vadd.f32 %v2434_v17, %v1699_v25  ;;  %v16653_v25 = vld [vmem:[#allocation42_spill] sm:$0xff]  ;;  %v16654_v17 = vld [vmem:[#allocation52_spill] sm:$0xff] }
 0x357   :  { %3368 = vrot.lane.b32.xlu0 %v12877_v46, %s9945_s21  ;;  %3711 = vrot.lane.b32.xlu1 %v3594_v1, %s9946_s2  ;;  %v9451_v63 = vpop.f32.mrf.mxu1  ;;  %v1702_v16 = vadd.f32 %v16653_v25, %v16652_v18  ;;  %v3601_v43 = vmax.bf16 %v3426_v53, %v16654_v17  ;;  %v2607_v46 = vadd.f32 %v12843_v5, %v1556_v37  ;;  %v9549_v5 = vld [vmem:[%s15697_s3 + $0x2bc] ss:$12 sps:$4 sm:$0xff]   ;;  %v9550_v52 = vld [vmem:[%s15697_s3 + $0x2a0] ss:$12 sps:$4 sm:$0xff]  }
 0x358   :  { %v13028_v57 = vmax.bf16 %v3009_v7, %v3002_v62  ;;  %v13030_v27 = vpop.permute.xlu0 %3216  ;;  %v16656_v63 = vld [vmem:[#allocation307_spill] sm:$0xff]  ;;  %v2834_v18 = vadd.f32 %v12497_v6, %v2615_v35  ;;  %5116 = vmatpush1.bf16.msra.mxu0 %v9544_v50  ;;  %v16657_v7 = vld [vmem:[#allocation201_spill] sm:$0xff] }
 0x359   :  { %v1552_v58 = vadd.f32 %v16656_v63, %v16655_v44  ;;  %v2437_v41 = vpop.f32.mrf.mxu1  ;;  %v13048_v62 = vpop.permute.xlu1 %3338  ;;  %v13058_v35 = vmax.bf16 %v3421_v42, %v16657_v7  ;;  %5117 = vmatprep.subr.bf16.mxu0 %v9549_v5  ;;  %v9555_v5 = vld [vmem:[%s15697_s3 + $0x28c] ss:$12 sps:$4 sm:$0xff]  }
 0x35a   :  { %v2622_v25 = vadd.f32 %v2437_v41, %v1702_v16  ;;  %v3016_v16 = vpack.c.bf16 %v2834_v18, %v2834_v18 }
 0x35b   :  { %3713 = vrot.lane.b32.xlu0 %v3601_v43, %s9946_s2  ;;  %v2600_v53 = vadd.f32 %v12820_v33, %v1552_v58  ;;  %3737 = vrot.lane.b32.xlu1 %v3594_v1, %s9947_s24  ;;  %v9452_v37 = vpop.f32.mrf.mxu1  ;;  %v2826_v33 = vadd.f32 %v12375_v34, %v2607_v46  ;;  %v3427_v1 = vsel %vm3388_vm3, %v12888_v3, %v12925_v47  ;;  %v16658_v46 = vld [vmem:[#allocation203_spill] sm:$0xff]  ;;  %v16660_v58 = vld [vmem:[#allocation41_spill] sm:$0xff] }
 0x35c   :  { %v2841_v36 = vadd.f32 %v12497_v6, %v2622_v25  ;;  %v13051_v41 = vpop.permute.xlu0 %3228  ;;  %v13068_v50 = vmax.bf16 %v3427_v1, %v16658_v46  ;;  %5118 = vmatpush1.bf16.msra.mxu0 %v9547_v40  ;;  %v13083_v18 = vmax.bf16 %v3443_v11, %v16660_v58  ;;  %v3449_v25 = vsel %vm3388_vm3, %v12903_v10, %v12905_v20  ;;  %v9553_v40 = vld [vmem:[%s15697_s3 + $0x288] ss:$12 sps:$4 sm:$0xff]  }
 0x35d   :  { %v2819_v6 = vadd.f32 %v12375_v34, %v2600_v53  ;;  %v3008_v63 = vpack.c.bf16 %v2826_v33, %v2826_v33  ;;  %v13099_v37 = vmax.bf16 %v3449_v25, %v12284_v61  ;;  %v9558_v61 = vld [vmem:[%s15697_s3 + $0x274] ss:$12 sps:$4 sm:$0xff]   ;;  %v3438_v11 = vsel %vm3388_vm3, %v12826_v9, %v12979_v55  ;;  %v9561_v9 = vld [vmem:[%s15697_s3 + $0x3dc] ss:$12 sps:$4 sm:$0xff]  }
 0x35e   :  { %v3023_v17 = vpack.c.bf16 %v2841_v36, %v2841_v36  ;;  %v13072_v42 = vpop.permute.xlu1 %3352  ;;  %v16661_v46 = vld [vmem:[#allocation200_spill] sm:$0xff]  ;;  %v9562_v25 = vld [vmem:[%s15697_s3 + $0x3c0] ss:$12 sps:$4 sm:$0xff]  }
 0x35f   :  { %3739 = vrot.lane.b32.xlu0 %v3601_v43, %s9947_s24  ;;  %3776 = vrot.lane.b32.xlu1 %v13058_v35, %s9945_s21  ;;  %v9552_v43 = vld [vmem:[%s15697_s3 + $0x2a4] ss:$12 sps:$4 sm:$0xff]   ;;  %v3001_v53 = vpack.c.bf16 %v2819_v6, %v2819_v6 }
 0x360   :  { %v13070_v3 = vmax.bf16 %v3023_v17, %v3016_v16  ;;  %v13074_v44 = vpop.permute.xlu0 %3350  ;;  %5119 = vmatprep.subr.bf16.mxu0 %v9552_v43  ;;  %v9556_v16 = vld [vmem:[%s15697_s3 + $0x270] ss:$12 sps:$4 sm:$0xff]   ;;  %v3432_v17 = vsel %vm3388_vm3, %v12801_v28, %v12927_v23  ;;  %v9559_v6 = vld [vmem:[%s15697_s3 + $0x3d8] ss:$12 sps:$4 sm:$0xff]  }
 0x361   :  { %5120 = vmatpush1.bf16.msra.mxu0 %v9550_v52  ;;  %v13105_v33 = vmax.bf16 %v3008_v63, %v3001_v53  ;;  %v3615_v52 = vmax.bf16 %v3438_v11, %v16661_v46  ;;  %v16662_v63 = vld [vmem:[#allocation199_spill] sm:$0xff]  ;;  %v9564_v53 = vld [vmem:[%s15697_s3 + $0x3c4] ss:$12 sps:$4 sm:$0xff]   ;;  %v3433_v11 = vsel %vm3388_vm3, %v12927_v23, %v12942_v45 }
 0x362   :  { %16659 = vst [vmem:[#allocation69_spill] sm:$0xff] %v13070_v3  ;;  %5121 = vmatprep.subr.bf16.mxu0 %v9555_v5  ;;  %v3608_v58 = vmax.bf16 %v3432_v17, %v16662_v63  ;;  %v9567_v23 = vld [vmem:[%s15697_s3 + $0x3ac] ss:$12 sps:$4 sm:$0xff]   ;;  %v9568_v63 = vld [vmem:[%s15697_s3 + $0x390] ss:$12 sps:$4 sm:$0xff]  }
 0x363   :  { %3778 = vrot.lane.b32.xlu0 %v13068_v50, %s9945_s21  ;;  %3680 = vrot.lane.b32.xlu1 %v13083_v18, %s9945_s21  ;;  %v9577_v3 = vld [vmem:[%s15697_s3 + $0x348] ss:$12 sps:$4 sm:$0xff]  }
 0x364   :  { %v13101_v10 = vpop.permute.xlu1 %3242  ;;  %v13103_v36 = vpop.permute.xlu0 %3230 }
 0x365   :  { %5122 = vmatpush1.bf16.msra.mxu0 %v9553_v40 }
 0x366   :  { %5123 = vmatprep.subr.bf16.mxu0 %v9558_v61  ;;  %v3439_v61 = vsel %vm3388_vm3, %v12979_v55, %v12981_v0  ;;  %v9565_v55 = vld [vmem:[%s15697_s3 + $0x3a8] ss:$12 sps:$4 sm:$0xff]  }
 0x367   :  { %3682 = vrot.lane.b32.xlu0 %v13099_v37, %s9945_s21  ;;  %3370 = vrot.lane.b32.xlu1 %v13105_v33, %s9945_s21 }
 0x368   :  { %v13111_v1 = vpop.permute.xlu1 %3244 }
 0x369   :  { %v13113_v7 = vpop.permute.xlu0 %3364  ;;  %5124 = vmatpush1.bf16.msra.mxu0 %v9556_v16  ;;  %v13164_v16 = vmax.bf16 %v3439_v61, %v12370_v29  ;;  %v3455_v29 = vsel %vm3388_vm3, %v12951_v15, %v12960_v32  ;;  %v16666_v61 = vld [vmem:[#allocation43_spill] sm:$0xff] }
 0x36a   :  { %5125 = vmatprep.subr.bf16.mxu0 %v9561_v9  ;;  %v13195_v15 = vmax.bf16 %v3455_v29, %v12325_v49  ;;  %v9573_v49 = vld [vmem:[%s15697_s3 + $0x37c] ss:$12 sps:$4 sm:$0xff]   ;;  %v9576_v29 = vld [vmem:[%s15697_s3 + $0x364] ss:$12 sps:$4 sm:$0xff]  }
 0x36b   :  { %3344 = vrot.lane.b32.xlu0 %v12940_v22, %s9945_s21  ;;  %3330 = vrot.lane.b32.xlu1 %v12910_v8, %s9945_s21  ;;  %16663 = vst [vmem:[#allocation230_spill] sm:$0xff] %v13164_v16 }
 0x36c   :  { %v13138_v43 = vpop.permute.xlu1 %3366 }
 0x36d   :  { %v13140_v28 = vpop.permute.xlu0 %3256  ;;  %5126 = vmatpush2.bf16.msra.mxu0 %v9559_v6  ;;  %v16664_v6 = vld [vmem:[#allocation60_spill] sm:$0xff] }
 0x36e   :  { %5127 = vmatprep.subr.bf16.mxu0 %v9564_v53  ;;  %v13177_v46 = vmax.bf16 %v3433_v11, %v16664_v6  ;;  %v9574_v6 = vld [vmem:[%s15697_s3 + $0x360] ss:$12 sps:$4 sm:$0xff]  }
 0x36f   :  { %3717 = vrot.lane.b32.xlu0 %v3615_v52, %s9946_s2  ;;  %3715 = vrot.lane.b32.xlu1 %v3608_v58, %s9946_s2 }
 0x370   :  { %16665 = vst [vmem:[#allocation70_spill] sm:$0xff] %v13177_v46 }
 0x371   :  { %v13151_v40 = vpop.permute.xlu1 %3664  ;;  %v13153_v5 = vpop.permute.xlu0 %3258  ;;  %5128 = vmatpush2.bf16.msra.mxu0 %v9562_v25  ;;  %v3450_v25 = vsel %vm3388_vm3, %v12905_v20, %v13074_v44  ;;  %v9571_v20 = vld [vmem:[%s15697_s3 + $0x378] ss:$12 sps:$4 sm:$0xff]  }
 0x372   :  { %5129 = vmatprep.subr.bf16.mxu0 %v9567_v23  ;;  %v3629_v11 = vmax.bf16 %v3450_v25, %v16666_v61  ;;  %v3444_v23 = vsel %vm3388_vm3, %v12886_v60, %v13000_v13  ;;  %v16667_v60 = vld [vmem:[#allocation58_spill] sm:$0xff]  ;;  %v3451_v61 = vsel %vm3388_vm3, %v13074_v44, %v13072_v42 }
 0x373   :  { %3743 = vrot.lane.b32.xlu0 %v3615_v52, %s9947_s24  ;;  %3741 = vrot.lane.b32.xlu1 %v3608_v58, %s9947_s24  ;;  %v9570_v58 = vld [vmem:[%s15697_s3 + $0x394] ss:$12 sps:$4 sm:$0xff]   ;;  %v3622_v25 = vmax.bf16 %v3444_v23, %v16667_v60  ;;  %v13246_v23 = vmax.bf16 %v3451_v61, %v12447_v48  ;;  %v3445_v60 = vsel %vm3388_vm3, %v13000_v13, %v13048_v62  ;;  %v16669_v48 = vmov 0   ;;  %v9583_v13 = vld [vmem:[%s15697_s3 + $0x330] ss:$12 sps:$4 sm:$0xff]  }
 0x375   :  { %v13166_v17 = vpop.permute.xlu1 %3270  ;;  %v13168_v9 = vpop.permute.xlu0 %3666  ;;  %5130 = vmatpush2.bf16.msra.mxu0 %v9565_v55  ;;  %16668 = vst [vmem:[#allocation231_spill] sm:$0xff] %v13246_v23 }
 0x376   :  { %5131 = vmatprep.subr.bf16.mxu0 %v9570_v58 }
 0x377   :  { %3782 = vrot.lane.b32.xlu0 %v13164_v16, %s9945_s21  ;;  %3780 = vrot.lane.b32.xlu1 %v13177_v46, %s9945_s21  ;;  %v16686_v16 = vld [vmem:[#allocation213_spill] sm:$0xff] }
 0x379   :  { %v13186_v52 = vpop.permute.xlu0 %3218  ;;  %v13200_v53 = vpop.permute.xlu1 %3272  ;;  %5132 = vmatpush2.bf16.msra.mxu0 %v9568_v63 }
 0x37a   :  { %5133 = vmatprep.subr.bf16.mxu0 %v9573_v49 }
 0x37b   :  { %3372 = vrot.lane.b32.xlu0 %v13028_v57, %s9945_s21  ;;  %3684 = vrot.lane.b32.xlu1 %v13195_v15, %s9945_s21 }
 0x37d   :  { %v13207_v55 = vpop.permute.xlu0 %3232  ;;  %v13227_v63 = vpop.permute.xlu1 %3668  ;;  %5134 = vmatpush2.bf16.msra.mxu0 %v9571_v20  ;;  %v9579_v20 = vld [vmem:[%s15697_s3 + $0x34c] ss:$12 sps:$4 sm:$0xff]  }
 0x37e   :  { %5135 = vmatprep.subr.bf16.mxu0 %v9576_v29  ;;  %v3571_v49 = vmax.bf16 %v13207_v55, %v12607_v39  ;;  %v3404_v39 = vsel %vm3388_vm3, %v12753_v30, %v13101_v10  ;;  %v9580_v30 = vld [vmem:[%s15697_s3 + $0x498] ss:$12 sps:$4 sm:$0xff]  }
 0x37f   :  { %3721 = vrot.lane.b32.xlu0 %v3629_v11, %s9946_s2  ;;  %3358 = vrot.lane.b32.xlu1 %v12977_v38, %s9945_s21 }
 0x380   :  { %v13263_v61 = vmax.bf16 %v16669_v48, %v3571_v49 }
 0x381   :  { %v13229_v58 = vpop.permute.xlu0 %3284  ;;  %5136 = vmatpush2.bf16.msra.mxu0 %v9574_v6 }
 0x382   :  { %5137 = vmatprep.subr.bf16.mxu0 %v9579_v20  ;;  %16670 = vst [vmem:[#allocation71_spill] sm:$0xff] %v13263_v61  ;;  %v16671_v20 = vld [vmem:[#allocation197_spill] sm:$0xff] }
 0x383   :  { %3747 = vrot.lane.b32.xlu0 %v3629_v11, %s9947_s24  ;;  %3719 = vrot.lane.b32.xlu1 %v3622_v25, %s9946_s2  ;;  %v3575_v34 = vmax.bf16 %v3404_v39, %v16671_v20  ;;  %v3398_v39 = vsel %vm3388_vm3, %v12711_v21, %v13051_v41 }
 0x384   :  { %v13248_v44 = vpop.permute.xlu1 %3246 }
 0x385   :  { %v13250_v29 = vpop.permute.xlu0 %3286  ;;  %v3578_v11 = vmax.bf16 %v13248_v44, %v12645_v54  ;;  %v9582_v54 = vld [vmem:[%s15697_s3 + $0x49c] ss:$12 sps:$4 sm:$0xff]   ;;  %5138 = vmatpush2.bf16.msra.mxu0 %v9577_v3  ;;  %v9588_v3 = vld [vmem:[%s15697_s3 + $0x484] ss:$12 sps:$4 sm:$0xff]  }
 0x386   :  { %5198 = vmatprep.subr.bf16.mxu1 %v9582_v54  ;;  %v16674_v54 = vld [vmem:[#allocation35_spill] sm:$0xff] }
 0x387   :  { %3786 = vrot.lane.b32.xlu0 %v13246_v23, %s9945_s21  ;;  %v4287_v6 = vmax.bf16 %v16669_v48, %v3578_v11  ;;  %3745 = vrot.lane.b32.xlu1 %v3622_v25, %s9947_s24  ;;  %v9585_v25 = vld [vmem:[%s15697_s3 + $0x334] ss:$12 sps:$4 sm:$0xff]   ;;  %v13285_v11 = vmax.bf16 %v3445_v60, %v12408_v51  ;;  %v3568_v20 = vmax.bf16 %v3398_v39, %v16674_v54 }
 0x388   :  { %v13277_v49 = vpop.permute.xlu1 %3298  ;;  %5139 = vmatprep.subr.bf16.mxu0 %v9585_v25  ;;  %v9586_v51 = vld [vmem:[%s15697_s3 + $0x480] ss:$12 sps:$4 sm:$0xff]   ;;  %5199 = vmatpush1.bf16.msra.mxu1 %v9580_v30  ;;  %v3405_v25 = vsel %vm3388_vm3, %v13101_v10, %v13111_v1 }
 0x389   :  { %v13279_v23 = vpop.permute.xlu0 %3670  ;;  %16672 = vst [vmem:[#allocation232_spill] sm:$0xff] %v13285_v11  ;;  %v13288_v46 = vcombine.low %v13263_v61, %v4287_v6  ;;  %5140 = vmatpush2.bf16.msra.mxu0 %v9583_v13  ;;  %5200 = vmatprep.subr.bf16.mxu1 %v9588_v3  ;;  %v9591_v30 = vld [vmem:[%s15697_s3 + $0x46c] ss:$12 sps:$4 sm:$0xff]   ;;  %v13326_v10 = vmax.bf16 %v3405_v25, %v12489_v24  ;;  %v9594_v24 = vld [vmem:[%s15697_s3 + $0x454] ss:$12 sps:$4 sm:$0xff]  }
 0x38b   :  { %16673 = vst [vmem:[#allocation72_spill] sm:$0xff] %v13288_v46  ;;  %3809 = vrot.lane.b32.xlu0 %v3575_v34, %s9946_s2  ;;  %3784 = vrot.lane.b32.xlu1 %v13285_v11, %s9945_s21 }
 0x38c   :  { %8600 = vmatprep.mubr.msk.bf16.mxu1 %vm3961_vm4, %v13288_v46  ;;  %v13304_v60 = vpop.permute.xlu1 %3300  ;;  %v9589_v46 = vld [vmem:[%s15697_s3 + $0x468] ss:$12 sps:$4 sm:$0xff]   ;;  %5201 = vmatpush1.bf16.msra.mxu1 %v9586_v51 }
 0x38d   :  { %v13306_v21 = vpop.permute.xlu0 %3260  ;;  %5202 = vmatprep.subr.bf16.mxu1 %v9591_v30  ;;  %v16676_v51 = vld [vmem:[#allocation56_spill] sm:$0xff]  ;;  %v9597_v30 = vld [vmem:[%s15697_s3 + $0x43c] ss:$12 sps:$4 sm:$0xff]  }
 0x38e   :  { %v3585_v61 = vmax.bf16 %v13306_v21, %v12689_v14 }
 0x38f   :  { %3835 = vrot.lane.b32.xlu0 %v3575_v34, %s9947_s24  ;;  %3807 = vrot.lane.b32.xlu1 %v3568_v20, %s9946_s2  ;;  %v3416_v34 = vsel %vm3388_vm3, %v12848_v26, %v13166_v17 }
 0x390   :  { %v13322_v13 = vmax.bf16 %v16669_v48, %v3585_v61  ;;  %v13328_v14 = vpop.permute.xlu1 %3703  ;;  %v3399_v61 = vsel %vm3388_vm3, %v13051_v41, %v13103_v36  ;;  %v3589_v54 = vmax.bf16 %v3416_v34, %v16676_v51  ;;  %5203 = vmatpush1.bf16.msra.mxu1 %v9589_v46  ;;  %v9595_v46 = vld [vmem:[%s15697_s3 + $0x438] ss:$12 sps:$4 sm:$0xff]  }
 0x391   :  { %v13330_v39 = vpop.permute.xlu0 %3312  ;;  %v13354_v41 = vmax.bf16 %v3399_v61, %v12445_v4  ;;  %5204 = vmatprep.subr.bf16.mxu1 %v9594_v24  ;;  %v9598_v24 = vld [vmem:[%s15697_s3 + $0x420] ss:$12 sps:$4 sm:$0xff]   ;;  %v9600_v51 = vld [vmem:[%s15697_s3 + $0x424] ss:$12 sps:$4 sm:$0xff]  }
 0x392   :  { %v13336_v3 = vcombine.low %v4287_v6, %v13322_v13  ;;  %v9592_v6 = vld [vmem:[%s15697_s3 + $0x450] ss:$12 sps:$4 sm:$0xff]  }
 0x393   :  { %3874 = vrot.lane.b32.xlu0 %v13326_v10, %s9945_s21  ;;  %3833 = vrot.lane.b32.xlu1 %v3568_v20, %s9947_s24  ;;  %v3456_v20 = vsel %vm3388_vm3, %v12960_v32, %v13113_v7  ;;  %v3417_v32 = vsel %vm3388_vm3, %v13166_v17, %v13200_v53  ;;  %v3406_v17 = vsel %vm3388_vm3, %v13111_v1, %v13248_v44  ;;  %v9601_v1 = vld [vmem:[%s15697_s3 + $0x408] ss:$12 sps:$4 sm:$0xff]  }
 0x394   :  { %16675 = vst [vmem:[#allocation233_spill] sm:$0xff] %v13336_v3  ;;  %v13356_v25 = vpop.permute.xlu1 %3729  ;;  %5205 = vmatpush1.bf16.msra.mxu1 %v9592_v6  ;;  %v3636_v34 = vmax.bf16 %v3456_v20, %v12355_v19  ;;  %v13387_v19 = vmax.bf16 %v3417_v32, %v12570_v12  ;;  %v3457_v20 = vsel %vm3388_vm3, %v13113_v7, %v13138_v43  ;;  %v9603_v12 = vld [vmem:[%s15697_s3 + $0x40c] ss:$12 sps:$4 sm:$0xff]  }
 0x395   :  { %v13348_v26 = vpop.permute.xlu0 %3314  ;;  %5206 = vmatprep.subr.bf16.mxu1 %v9597_v30  ;;  %v13410_v7 = vmax.bf16 %v3457_v20, %v12491_v2  ;;  %v9606_v2 = vld [vmem:[%s15697_s3 + $0x3f4] ss:$12 sps:$4 sm:$0xff]  }
 0x396   :  { %16677 = vst [vmem:[#allocation73_spill] sm:$0xff] %v13387_v19  ;;  %v9607_v20 = vld [vmem:[%s15697_s3 + $0x4c8] ss:$12 sps:$4 sm:$0xff]  }
 0x397   :  { %3813 = vrot.lane.b32.xlu0 %v3589_v54, %s9946_s2  ;;  %3872 = vrot.lane.b32.xlu1 %v13354_v41, %s9945_s21  ;;  %16678 = vst [vmem:[#allocation234_spill] sm:$0xff] %v13410_v7 }
 0x398   :  { %5207 = vmatpush1.bf16.msra.mxu1 %v9595_v46  ;;  %v3577_v46 = vmax.bf16 %v3406_v17, %v12505_v31  ;;  %v9604_v31 = vld [vmem:[%s15697_s3 + $0x3f0] ss:$12 sps:$4 sm:$0xff]  }
 0x399   :  { %v13370_v4 = vpop.permute.xlu0 %3705  ;;  %v13376_v61 = vpop.permute.xlu1 %3768  ;;  %5208 = vmatprep.subr.bf16.mxu1 %v9600_v51 }
 0x39b   :  { %3839 = vrot.lane.b32.xlu0 %v3589_v54, %s9947_s24  ;;  %3723 = vrot.lane.b32.xlu1 %v3636_v34, %s9946_s2 }
 0x39c   :  { %5209 = vmatpush1.bf16.msra.mxu1 %v9598_v24  ;;  %v16679_v24 = vld [vmem:[#allocation54_spill] sm:$0xff] }
 0x39d   :  { %v3732_v6 = vpop.permute.xlu0 %3731  ;;  %v13392_v54 = vpop.permute.xlu1 %3672  ;;  %5210 = vmatprep.subr.bf16.mxu1 %v9603_v12  ;;  %v9609_v12 = vld [vmem:[%s15697_s3 + $0x4cc] ss:$12 sps:$4 sm:$0xff]  }
 0x39f   :  { %3878 = vrot.lane.b32.xlu0 %v13387_v19, %s9945_s21  ;;  %3749 = vrot.lane.b32.xlu1 %v3636_v34, %s9947_s24  ;;  %v3410_v34 = vsel %vm3388_vm3, %v12778_v56, %v13140_v28  ;;  %v3428_v56 = vsel %vm3388_vm3, %v12925_v47, %v13277_v49  ;;  %v3400_v19 = vsel %vm3388_vm3, %v13103_v36, %v13207_v55  ;;  %v16690_v36 = vld [vmem:[#allocation49_spill] sm:$0xff] }
 0x3a0   :  { %5211 = vmatpush1.bf16.msra.mxu1 %v9601_v1  ;;  %v3582_v51 = vmax.bf16 %v3410_v34, %v16679_v24  ;;  %v16680_v1 = vld [vmem:[#allocation219_spill] sm:$0xff]  ;;  %v16681_v34 = vld [vmem:[#allocation204_spill] sm:$0xff]  ;;  %v3570_v55 = vmax.bf16 %v3400_v19, %v16690_v36  ;;  %v16691_v19 = vld [vmem:[#allocation214_spill] sm:$0xff] }
 0x3a1   :  { %v13404_v30 = vpop.permute.xlu0 %3770  ;;  %v3275_v44 = vpop.permute.xlu1 %3274  ;;  %5212 = vmatprep.subr.bf16.mxu1 %v9606_v2  ;;  %v3603_v24 = vmax.bf16 %v3428_v56, %v16681_v34 }
 0x3a2   :  { %v3592_v3 = vmax.bf16 %v3275_v44, %v16680_v1 }
 0x3a3   :  { %3913 = vrot.lane.b32.xlu0 %v3577_v46, %s9946_s2  ;;  %3788 = vrot.lane.b32.xlu1 %v13410_v7, %s9945_s21  ;;  %v3411_v7 = vsel %vm3388_vm3, %v13140_v28, %v13153_v5  ;;  %v9610_v28 = vld [vmem:[%s15697_s3 + $0x4b0] ss:$12 sps:$4 sm:$0xff]  }
 0x3a4   :  { %5213 = vmatpush1.bf16.msra.mxu1 %v9604_v31  ;;  %v13453_v1 = vmax.bf16 %v16669_v48, %v3592_v3  ;;  %v9612_v31 = vld [vmem:[%s15697_s3 + $0x4b4] ss:$12 sps:$4 sm:$0xff]  }
 0x3a5   :  { %v13424_v32 = vpop.permute.xlu0 %3674  ;;  %v13430_v17 = vpop.permute.xlu1 %3326  ;;  %5226 = vmatprep.subr.bf16.mxu1 %v9609_v12  ;;  %v16684_v12 = vld [vmem:[#allocation211_spill] sm:$0xff] }
 0x3a7   :  { %3939 = vrot.lane.b32.xlu0 %v3577_v46, %s9947_s24  ;;  %3811 = vrot.lane.b32.xlu1 %v3582_v51, %s9946_s2  ;;  %v16682_v46 = vld [vmem:[#allocation221_spill] sm:$0xff] }
 0x3a8   :  { %5227 = vmatpush2.bf16.msra.mxu1 %v9607_v20  ;;  %v3970_v20 = vsel %vm3961_vm4, %v16686_v16, %v13168_v9 }
 0x3a9   :  { %v13442_v47 = vpop.permute.xlu0 %3288  ;;  %v13444_v2 = vpop.permute.xlu1 %3328  ;;  %5228 = vmatprep.subr.bf16.mxu1 %v9612_v31 }
 0x3aa   :  { %v3599_v11 = vmax.bf16 %v13442_v47, %v16682_v46  ;;  %v13468_v46 = vmax.bf16 %v3411_v7, %v16684_v12  ;;  %v16687_v7 = vld [vmem:[#allocation2_spill] sm:$0xff]  ;;  %v16688_v12 = vld [vmem:[#allocation216_spill] sm:$0xff] }
 0x3ab   :  { %3817 = vrot.lane.b32.xlu0 %v3603_v24, %s9946_s2  ;;  %3837 = vrot.lane.b32.xlu1 %v3582_v51, %s9947_s24  ;;  %v3973_v31 = vsel %vm3961_vm4, %v16687_v7, %v13227_v63 }
 0x3ac   :  { %v13456_v56 = vmax.bf16 %v16669_v48, %v3599_v11  ;;  %v3429_v11 = vsel %vm3388_vm3, %v13277_v49, %v13304_v60  ;;  %v4007_v49 = vsel %vm4001_vm5, %v3970_v20, %v13370_v4  ;;  %5229 = vmatpush2.bf16.msra.mxu1 %v9610_v28  ;;  %v3418_v4 = vsel %vm3388_vm3, %v13200_v53, %v3275_v44 }
 0x3ad   :  { %v13462_v34 = vpop.permute.xlu0 %3340  ;;  %v3708_v3 = vpop.permute.xlu1 %3707  ;;  %v4036_v16 = vsel %vm3388_vm3, %v4007_v49, %v3732_v6  ;;  %5366 = vmatprep.subr.bf16.mxu1 %v16669_v48  ;;  %v3591_v53 = vmax.bf16 %v3418_v4, %v16691_v19  ;;  %v3422_v49 = vsel %vm3388_vm3, %v12868_v59, %v13229_v58  ;;  %v16694_v4 = vld [vmem:[#allocation207_spill] sm:$0xff] }
 0x3ae   :  { %16683 = vst [vmem:[#allocation74_spill] sm:$0xff] %v13456_v56  ;;  %v13475_v51 = vcombine.low %v13453_v1, %v13456_v56  ;;  %v13506_v6 = vmax.bf16 %v16669_v48, %v4036_v16  ;;  %v3440_v16 = vsel %vm3388_vm3, %v12981_v0, %v13430_v17 }
 0x3af   :  { %3843 = vrot.lane.b32.xlu0 %v3603_v24, %s9947_s24  ;;  %3876 = vrot.lane.b32.xlu1 %v13468_v46, %s9945_s21  ;;  %v4009_v24 = vsel %vm4001_vm5, %v3973_v31, %v3708_v3  ;;  %v16693_v31 = vld [vmem:[#allocation202_spill] sm:$0xff] }
 0x3b0   :  { %16685 = vst [vmem:[#allocation235_spill] sm:$0xff] %v13475_v51  ;;  %v13492_v51 = vmax.bf16 %v3429_v11, %v16688_v12  ;;  %v3596_v12 = vmax.bf16 %v3422_v49, %v16693_v31  ;;  %v3412_v31 = vsel %vm3388_vm3, %v13153_v5, %v13306_v21  ;;  %v16701_v5 = vld [vmem:[#allocation65_spill] sm:$0xff] }
 0x3b1   :  { %v13495_v9 = vpop.permute.xlu0 %3342  ;;  %v3734_v20 = vpop.permute.xlu1 %3733 }
 0x3b2   :  { %16689 = vst [vmem:[#allocation75_spill] sm:$0xff] %v13492_v51  ;;  %v4039_v63 = vsel %vm3388_vm3, %v4009_v24, %v3734_v20  ;;  %v3617_v24 = vmax.bf16 %v3440_v16, %v16694_v4 }
 0x3b3   :  { %3882 = vrot.lane.b32.xlu0 %v13492_v51, %s9945_s21  ;;  %v13509_v28 = vmax.bf16 %v16669_v48, %v4039_v63  ;;  %3911 = vrot.lane.b32.xlu1 %v3570_v55, %s9946_s2  ;;  %v16695_v63 = vld [vmem:[#allocation215_spill] sm:$0xff] }
 0x3b5   :  { %v3710_v44 = vpop.permute.xlu0 %3709  ;;  %v13515_v11 = vcombine.low %v13506_v6, %v13509_v28  ;;  %v13517_v3 = vpop.permute.xlu1 %3772 }
 0x3b7   :  { %16692 = vst [vmem:[#allocation236_spill] sm:$0xff] %v13515_v11  ;;  %3917 = vrot.lane.b32.xlu0 %v3591_v53, %s9946_s2  ;;  %3937 = vrot.lane.b32.xlu1 %v3570_v55, %s9947_s24  ;;  %v3423_v55 = vsel %vm3388_vm3, %v13229_v58, %v13250_v29  ;;  %v16697_v58 = vld [vmem:[#allocation63_spill] sm:$0xff] }
 0x3b8   :  { %v13543_v19 = vmax.bf16 %v3423_v55, %v16695_v63  ;;  %v16700_v63 = vld [vmem:[#allocation212_spill] sm:$0xff] }
 0x3b9   :  { %v3736_v7 = vpop.permute.xlu0 %3735  ;;  %v13528_v36 = vpop.permute.xlu1 %3676  ;;  %v3584_v11 = vmax.bf16 %v3412_v31, %v16700_v63  ;;  %v16703_v31 = vld [vmem:[#allocation3_spill] sm:$0xff]  ;;  %v16705_v63 = vld [vmem:[#allocation217_spill] sm:$0xff] }
 0x3ba   :  { %16696 = vst [vmem:[#allocation76_spill] sm:$0xff] %v13543_v19 }
 0x3bb   :  { %3943 = vrot.lane.b32.xlu0 %v3591_v53, %s9947_s24  ;;  %3815 = vrot.lane.b32.xlu1 %v3596_v12, %s9946_s2  ;;  %v3441_v53 = vsel %vm3388_vm3, %v13430_v17, %v13444_v2 }
 0x3bd   :  { %v13533_v59 = vpop.permute.xlu0 %3774  ;;  %v3303_v20 = vpop.permute.xlu1 %3302 }
 0x3be   :  { %v3606_v16 = vmax.bf16 %v3303_v20, %v16697_v58  ;;  %v3430_v17 = vsel %vm3388_vm3, %v13304_v60, %v3303_v20 }
 0x3bf   :  { %3821 = vrot.lane.b32.xlu0 %v3617_v24, %s9946_s2  ;;  %3841 = vrot.lane.b32.xlu1 %v3596_v12, %s9947_s24  ;;  %v16698_v12 = vld [vmem:[#allocation4_spill] sm:$0xff]  ;;  %v3605_v58 = vmax.bf16 %v3430_v17, %v16703_v31  ;;  %v16706_v17 = vld [vmem:[#allocation5_spill] sm:$0xff] }
 0x3c0   :  { %v13556_v4 = vmax.bf16 %v3441_v53, %v16698_v12  ;;  %v3979_v31 = vsel %vm3961_vm4, %v16706_v17, %v13392_v54 }
 0x3c1   :  { %v13540_v0 = vpop.permute.xlu0 %3678  ;;  %v3355_v49 = vpop.permute.xlu1 %3354 }
 0x3c2   :  { %16699 = vst [vmem:[#allocation237_spill] sm:$0xff] %v13556_v4 }
 0x3c3   :  { %3847 = vrot.lane.b32.xlu0 %v3617_v24, %s9947_s24  ;;  %3880 = vrot.lane.b32.xlu1 %v13543_v19, %s9945_s21  ;;  %v13570_v24 = vmax.bf16 %v16669_v48, %v3606_v16  ;;  %v3434_v16 = vsel %vm3388_vm3, %v12942_v45, %v13330_v39 }
 0x3c5   :  { %v13558_v55 = vpop.permute.xlu0 %3316  ;;  %v13563_v51 = vpop.permute.xlu1 %3356 }
 0x3c6   :  { %v3613_v21 = vmax.bf16 %v13558_v55, %v16701_v5  ;;  %v3976_v5 = vsel %vm3961_vm4, %v16705_v63, %v13279_v23  ;;  %v3452_v23 = vsel %vm3388_vm3, %v13072_v42, %v3355_v49  ;;  %v16708_v42 = vld [vmem:[#allocation209_spill] sm:$0xff] }
 0x3c7   :  { %3886 = vrot.lane.b32.xlu0 %v13556_v4, %s9945_s21  ;;  %3915 = vrot.lane.b32.xlu1 %v3584_v11, %s9946_s2 }
 0x3c8   :  { %v13573_v53 = vmax.bf16 %v16669_v48, %v3613_v21  ;;  %v4011_v21 = vsel %vm4001_vm5, %v3976_v5, %v3710_v44  ;;  %v9613_v44 = vld [vmem:[%s15697_s3 + $0x3e0] ss:$12 sps:$4 sm:$0xff]   ;;  %v16710_v5 = vld [vmem:[#allocation57_spill] sm:$0xff] }
 0x3c9   :  { %v3369_v12 = vpop.permute.xlu0 %3368  ;;  %v3712_v60 = vpop.permute.xlu1 %3711  ;;  %9124 = vmatprep.subr.bf16.mxu0 %v9613_v44 }
 0x3ca   :  { %16702 = vst [vmem:[#allocation77_spill] sm:$0xff] %v13573_v53  ;;  %v13579_v20 = vcombine.low %v13570_v24, %v13573_v53  ;;  %v16707_v53 = vld [vmem:[#allocation205_spill] sm:$0xff]  ;;  %v4013_v45 = vsel %vm4001_vm5, %v3979_v31, %v3712_v60  ;;  %v3424_v31 = vsel %vm3388_vm3, %v13250_v29, %v13442_v47  ;;  %v16713_v29 = vld [vmem:[#allocation210_spill] sm:$0xff] }
 0x3cb   :  { %3921 = vrot.lane.b32.xlu0 %v3605_v58, %s9946_s2  ;;  %3941 = vrot.lane.b32.xlu1 %v3584_v11, %s9947_s24  ;;  %v3610_v19 = vmax.bf16 %v3434_v16, %v16707_v53 }
 0x3cc   :  { %16704 = vst [vmem:[#allocation238_spill] sm:$0xff] %v13579_v20  ;;  %v4042_v20 = vsel %vm3388_vm3, %v4011_v21, %v3736_v7  ;;  %v3631_v7 = vmax.bf16 %v3452_v23, %v16708_v42  ;;  %v3453_v21 = vsel %vm3388_vm3, %v3355_v49, %v13563_v51  ;;  %v3458_v49 = vsel %vm3388_vm3, %v13138_v43, %v3369_v12 }
 0x3cd   :  { %v3714_v4 = vpop.permute.xlu0 %3713  ;;  %v3738_v63 = vpop.permute.xlu1 %3737  ;;  %v13604_v54 = vmax.bf16 %v16669_v48, %v4042_v20  ;;  %v3435_v20 = vsel %vm3388_vm3, %v13330_v39, %v13348_v26  ;;  %v16711_v39 = vld [vmem:[#allocation224_spill] sm:$0xff]  ;;  %v3638_v47 = vmax.bf16 %v3458_v49, %v16713_v29 }
 0x3ce   :  { %v4045_v56 = vsel %vm3388_vm3, %v4013_v45, %v3738_v63  ;;  %v13625_v16 = vmax.bf16 %v3435_v20, %v16710_v5  ;;  %v16712_v45 = vld [vmem:[#allocation55_spill] sm:$0xff]  ;;  %v3446_v5 = vsel %vm3388_vm3, %v13048_v62, %v13462_v34 }
 0x3cf   :  { %3947 = vrot.lane.b32.xlu0 %v3605_v58, %s9947_s24  ;;  %v13607_v11 = vmax.bf16 %v16669_v48, %v4045_v56  ;;  %3819 = vrot.lane.b32.xlu1 %v3610_v19, %s9946_s2  ;;  %v3598_v63 = vmax.bf16 %v3424_v31, %v16712_v45  ;;  %v16714_v45 = vld [vmem:[#allocation208_spill] sm:$0xff]  ;;  %v16715_v62 = vld [vmem:[#allocation223_spill] sm:$0xff] }
 0x3d0   :  { %v3624_v49 = vmax.bf16 %v3446_v5, %v16714_v45  ;;  %v16717_v5 = vld [vmem:[#allocation67_spill] sm:$0xff]  ;;  %v16718_v45 = vld [vmem:[#allocation226_spill] sm:$0xff] }
 0x3d1   :  { %v3740_v53 = vpop.permute.xlu0 %3739  ;;  %v13613_v60 = vcombine.low %v13604_v54, %v13607_v11  ;;  %v13615_v58 = vpop.permute.xlu1 %3776 }
 0x3d3   :  { %16709 = vst [vmem:[#allocation78_spill] sm:$0xff] %v13613_v60  ;;  %3825 = vrot.lane.b32.xlu0 %v3631_v7, %s9946_s2  ;;  %3845 = vrot.lane.b32.xlu1 %v3610_v19, %s9947_s24  ;;  %v13638_v19 = vmax.bf16 %v3453_v21, %v16711_v39 }
 0x3d5   :  { %v13622_v56 = vpop.permute.xlu0 %3778  ;;  %v13629_v17 = vpop.permute.xlu1 %3680 }
 0x3d7   :  { %3851 = vrot.lane.b32.xlu0 %v3631_v7, %s9947_s24  ;;  %3884 = vrot.lane.b32.xlu1 %v13625_v16, %s9945_s21 }
 0x3d9   :  { %v13640_v23 = vpop.permute.xlu0 %3682  ;;  %v13645_v44 = vpop.permute.xlu1 %3370 }
 0x3db   :  { %3890 = vrot.lane.b32.xlu0 %v13638_v19, %s9945_s21  ;;  %3919 = vrot.lane.b32.xlu1 %v3598_v63, %s9946_s2 }
 0x3dd   :  { %v3345_v42 = vpop.permute.xlu0 %3344  ;;  %v3331_v7 = vpop.permute.xlu1 %3330 }
 0x3de   :  { %v3627_v20 = vmax.bf16 %v3345_v42, %v12940_v22  ;;  %v3620_v21 = vmax.bf16 %v3331_v7, %v12910_v8  ;;  %v3459_v22 = vsel %vm3388_vm3, %v3369_v12, %v13645_v44  ;;  %v3982_v8 = vsel %vm3961_vm4, %v16715_v62, %v13424_v32 }
 0x3df   :  { %3827 = vrot.lane.b32.xlu0 %v3638_v47, %s9946_s2  ;;  %3945 = vrot.lane.b32.xlu1 %v3598_v63, %s9947_s24  ;;  %v4015_v63 = vsel %vm4001_vm5, %v3982_v8, %v3714_v4  ;;  %v13682_v60 = vmax.bf16 %v3459_v22, %v16718_v45  ;;  %v3447_v4 = vsel %vm3388_vm3, %v13462_v34, %v13495_v9 }
 0x3e0   :  { %v13658_v43 = vmax.bf16 %v16669_v48, %v3627_v20  ;;  %v13662_v31 = vmax.bf16 %v16669_v48, %v3620_v21  ;;  %v3985_v21 = vsel %vm3961_vm4, %v16717_v5, %v13528_v36  ;;  %v4048_v12 = vsel %vm3388_vm3, %v4015_v63, %v3740_v53 }
 0x3e1   :  { %v3718_v39 = vpop.permute.xlu0 %3717  ;;  %v3716_v29 = vpop.permute.xlu1 %3715  ;;  %v13694_v36 = vmax.bf16 %v16669_v48, %v4048_v12  ;;  %v3436_v5 = vsel %vm3388_vm3, %v13348_v26, %v13558_v55  ;;  %v3448_v26 = vsel %vm3388_vm3, %v13495_v9, %v3345_v42 }
 0x3e2   :  { %v13673_v20 = vcombine.low %v13662_v31, %v13658_v43  ;;  %v4017_v62 = vsel %vm4001_vm5, %v3985_v21, %v3716_v29  ;;  %v16720_v29 = vld [vmem:[#allocation61_spill] sm:$0xff]  ;;  %v16722_v21 = vld [vmem:[#allocation218_spill] sm:$0xff] }
 0x3e3   :  { %3853 = vrot.lane.b32.xlu0 %v3638_v47, %s9947_s24  ;;  %3823 = vrot.lane.b32.xlu1 %v3624_v49, %s9946_s2  ;;  %v3442_v47 = vsel %vm3388_vm3, %v13444_v2, %v3331_v7  ;;  %v16719_v2 = vld [vmem:[#allocation59_spill] sm:$0xff]  ;;  %v13704_v63 = vmax.bf16 %v3447_v4, %v16720_v29  ;;  %v3612_v12 = vmax.bf16 %v3436_v5, %v16722_v21  ;;  %v16724_v21 = vld [vmem:[#allocation222_spill] sm:$0xff] }
 0x3e4   :  { %16716 = vst [vmem:[#allocation239_spill] sm:$0xff] %v13673_v20  ;;  %v3619_v7 = vmax.bf16 %v3442_v47, %v16719_v2  ;;  %v16723_v2 = vld [vmem:[#allocation7_spill] sm:$0xff] }
 0x3e5   :  { %v3744_v32 = vpop.permute.xlu0 %3743  ;;  %v3742_v20 = vpop.permute.xlu1 %3741 }
 0x3e6   :  { %v4051_v8 = vsel %vm3388_vm3, %v4017_v62, %v3742_v20 }
 0x3e7   :  { %3892 = vrot.lane.b32.xlu0 %v13682_v60, %s9945_s21  ;;  %v13697_v53 = vmax.bf16 %v16669_v48, %v4051_v8  ;;  %3849 = vrot.lane.b32.xlu1 %v3624_v49, %s9947_s24 }
 0x3e9   :  { %v13701_v22 = vpop.permute.xlu0 %3782  ;;  %v13708_v34 = vcombine.low %v13694_v36, %v13697_v53  ;;  %v13710_v20 = vpop.permute.xlu1 %3780 }
 0x3eb   :  { %16721 = vst [vmem:[#allocation79_spill] sm:$0xff] %v13708_v34  ;;  %3925 = vrot.lane.b32.xlu0 %v3619_v7, %s9946_s2  ;;  %3888 = vrot.lane.b32.xlu1 %v13704_v63, %s9945_s21 }
 0x3ed   :  { %v3373_v49 = vpop.permute.xlu0 %3372  ;;  %v13719_v45 = vpop.permute.xlu1 %3684 }
 0x3ee   :  { %v3641_v62 = vmax.bf16 %v3373_v49, %v13028_v57  ;;  %v3626_v57 = vmax.bf16 %v3448_v26, %v16724_v21 }
 0x3ef   :  { %3951 = vrot.lane.b32.xlu0 %v3619_v7, %s9947_s24  ;;  %3923 = vrot.lane.b32.xlu1 %v3612_v12, %s9946_s2 }
 0x3f0   :  { %v13740_v34 = vmax.bf16 %v16669_v48, %v3641_v62  ;;  %v3991_v62 = vsel %vm3961_vm4, %v13083_v18, %v13629_v17 }
 0x3f1   :  { %v13723_v47 = vpop.permute.xlu0 %3721  ;;  %v3359_v4 = vpop.permute.xlu1 %3358 }
 0x3f2   :  { %v3454_v55 = vsel %vm3388_vm3, %v13563_v51, %v3359_v4  ;;  %v3634_v8 = vmax.bf16 %v3359_v4, %v12977_v38  ;;  %v16725_v51 = vld [vmem:[#allocation9_spill] sm:$0xff] }
 0x3f3   :  { %v3633_v29 = vmax.bf16 %v3454_v55, %v16723_v2  ;;  %3949 = vrot.lane.b32.xlu1 %v3612_v12, %s9947_s24  ;;  %v3988_v38 = vsel %vm3961_vm4, %v16725_v51, %v13540_v0  ;;  %v3460_v0 = vsel %vm3388_vm3, %v13645_v44, %v3373_v49  ;;  %v16728_v44 = vld [vmem:[#allocation193_spill] sm:$0xff] }
 0x3f4   :  { %v13734_v7 = vmax.bf16 %v16669_v48, %v3634_v8  ;;  %v4019_v42 = vsel %vm4001_vm5, %v3988_v38, %v3718_v39  ;;  %v3640_v17 = vmax.bf16 %v3460_v0, %v13105_v33  ;;  %v16730_v33 = vld [vmem:[#allocation68_spill] sm:$0xff] }
 0x3f5   :  { %v13736_v5 = vpop.permute.xlu0 %3747  ;;  %v3720_v9 = vpop.permute.xlu1 %3719  ;;  %3929 = vrot.lane.b32.xlu0 %v3633_v29, %s9946_s2  ;;  %v4054_v4 = vsel %vm3388_vm3, %v4019_v42, %v3744_v32  ;;  %v3967_v38 = vsel %vm3961_vm4, %v16730_v33, %v13151_v40 }
 0x3f6   :  { %v13750_v12 = vcombine.low %v13734_v7, %v13740_v34  ;;  %v4021_v55 = vsel %vm4001_vm5, %v3991_v62, %v3720_v9  ;;  %v13764_v2 = vmax.bf16 %v16669_v48, %v4054_v4  ;;  %v16731_v62 = vld [vmem:[#allocation48_spill] sm:$0xff]  ;;  %v3394_v4 = vsel %vm3388_vm3, %v13030_v27, %v13186_v52 }
 0x3f7   :  { %3927 = vrot.lane.b32.xlu1 %v3626_v57, %s9946_s2 }
 0x3f8   :  { %16726 = vst [vmem:[#allocation240_spill] sm:$0xff] %v13750_v12 }
 0x3f9   :  { %v13756_v26 = vpop.permute.xlu0 %3786  ;;  %v3746_v8 = vpop.permute.xlu1 %3745  ;;  %3955 = vrot.lane.b32.xlu0 %v3633_v29, %s9947_s24 }
 0x3fa   :  { %v4057_v39 = vsel %vm3388_vm3, %v4021_v55, %v3746_v8  ;;  %v4005_v55 = vsel %vm4001_vm5, %v3967_v38, %v13328_v14  ;;  %v16732_v8 = vld [vmem:[#allocation220_spill] sm:$0xff] }
 0x3fb   :  { %v13767_v21 = vmax.bf16 %v16669_v48, %v4057_v39  ;;  %3953 = vrot.lane.b32.xlu1 %v3626_v57, %s9947_s24  ;;  %v16729_v57 = vld [vmem:[#allocation6_spill] sm:$0xff]  ;;  %v4033_v40 = vsel %vm3388_vm3, %v4005_v55, %v13356_v25  ;;  %v16737_v25 = vld [vmem:[#allocation12_spill] sm:$0xff] }
 0x3fc   :  { %v4076_v51 = vsel %vm3961_vm4, %v16729_v57, %v13404_v30  ;;  %v4073_v30 = vsel %vm3961_vm4, %v16732_v8, %v13376_v61  ;;  %v16733_v57 = vld [vmem:[#allocation172_spill] sm:$0xff]  ;;  %v16739_v8 = vld [vmem:[#allocation47_spill] sm:$0xff] }
 0x3fd   :  { %v3810_v18 = vpop.permute.xlu0 %3809  ;;  %v13773_v32 = vcombine.low %v13764_v2, %v13767_v21  ;;  %v13775_v29 = vpop.permute.xlu1 %3784  ;;  %3212 = vrot.lane.b32.xlu0 %v16728_v44, %s9945_s21  ;;  %v16735_v61 = vld [vmem:[#allocation64_spill] sm:$0xff] }
 0x3fe   :  { %v4112_v42 = vsel %vm4001_vm5, %v4076_v51, %v3810_v18  ;;  %v16734_v51 = vld [vmem:[#allocation229_spill] sm:$0xff]  ;;  %v3563_v38 = vmax.bf16 %v3394_v4, %v16735_v61 }
 0x3ff   :  { %16727 = vst [vmem:[#allocation80_spill] sm:$0xff] %v13773_v32  ;;  %3931 = vrot.lane.b32.xlu1 %v3640_v17, %s9946_s2  ;;  %v3393_v14 = vsel %vm3388_vm3, %v16734_v51, %v13030_v27  ;;  %v9617_v61 = vld [vmem:[%s15697_s3 + $0x3b0] ss:$12 sps:$4 sm:$0xff]  }
 0x401   :  { %v3836_v49 = vpop.permute.xlu0 %3835  ;;  %v3808_v9 = vpop.permute.xlu1 %3807  ;;  %3957 = vrot.lane.b32.xlu0 %v3640_v17, %s9947_s24 }
 0x402   :  { %v4140_v0 = vsel %vm3388_vm3, %v4112_v42, %v3836_v49  ;;  %v4110_v18 = vsel %vm4001_vm5, %v4073_v30, %v3808_v9  ;;  %v13820_v9 = vmax.bf16 %v16669_v48, %v4033_v40  ;;  %v13823_v30 = vmax.bf16 %v3393_v14, %v16739_v8 }
 0x403   :  { %3210 = vrot.lane.b32.xlu1 %v16731_v62, %s9945_s21  ;;  %v13812_v49 = vmax.bf16 %v16669_v48, %v4140_v0  ;;  %v9614_v0 = vld [vmem:[%s15697_s3 + $0x320] ss:$12 sps:$4 sm:$0xff]  }
 0x404   :  { %16738 = vst [vmem:[#allocation81_spill] sm:$0xff] %v13820_v9  ;;  %16740 = vst [vmem:[#allocation242_spill] sm:$0xff] %v13823_v30  ;;  %v13837_v40 = vcombine.low %v13820_v9, %v13506_v6  ;;  %v3994_v6 = vsel %vm3961_vm4, %v13099_v37, %v13640_v23 }
 0x405   :  { %v13799_v39 = vpop.permute.xlu0 %3874  ;;  %v3834_v17 = vpop.permute.xlu1 %3833  ;;  %3208 = vrot.lane.b32.xlu0 %v16733_v57, %s9945_s21  ;;  %v4023_v8 = vsel %vm4001_vm5, %v3994_v6, %v13723_v47  ;;  %v9621_v6 = vld [vmem:[%s15697_s3 + $0x2d8] ss:$12 sps:$4 sm:$0xff]  }
 0x406   :  { %v4137_v33 = vsel %vm3388_vm3, %v4110_v18, %v3834_v17  ;;  %v9615_v18 = vld [vmem:[%s15697_s3 + $0x3c8] ss:$12 sps:$4 sm:$0xff]   ;;  %v4060_v12 = vsel %vm3388_vm3, %v4023_v8, %v13736_v5 }
 0x407   :  { %v13815_v42 = vmax.bf16 %v16669_v48, %v4137_v33  ;;  %3206 = vrot.lane.b32.xlu1 %v16737_v25, %s9945_s21  ;;  %v9616_v33 = vld [vmem:[%s15697_s3 + $0x308] ss:$12 sps:$4 sm:$0xff]  }
 0x409   :  { %16736 = vst [vmem:[#allocation241_spill] sm:$0xff] %v13815_v42  ;;  %v3814_v55 = vpop.permute.xlu0 %3813  ;;  %v13825_v27 = vpop.permute.xlu1 %3872  ;;  %3909 = vrot.lane.b32.xlu0 %v3563_v38, %s9946_s2  ;;  %v13830_v4 = vcombine.low %v13815_v42, %v13812_v49 }
 0x40b   :  { %5141 = vmatprep.mubr.bf16.mxu0 %v13830_v4  ;;  %3870 = vrot.lane.b32.xlu1 %v13823_v30, %s9945_s21 }
 0x40c   :  { %5142 = vmatmul.mubr.bf16.vlgmr.msra.gmra.mxu0 %v13837_v40 }
 0x40d   :  { %v3840_v17 = vpop.permute.xlu0 %3839  ;;  %v3724_v14 = vpop.permute.xlu1 %3723  ;;  %9125 = vmatpush3.bf16.msra.mxu0 %v9614_v0  ;;  %v3997_v0 = vsel %vm3961_vm4, %v13195_v15, %v13719_v45  ;;  %v9619_v15 = vld [vmem:[%s15697_s3 + $0x398] ss:$12 sps:$4 sm:$0xff]   ;;  %v13874_v45 = vmax.bf16 %v16669_v48, %v4060_v12  ;;  %v9622_v12 = vld [vmem:[%s15697_s3 + $0x380] ss:$12 sps:$4 sm:$0xff]  }
 0x40e   :  { %9126 = vmatprep.subr.bf16.mxu0 %v9615_v18  ;;  %v4025_v37 = vsel %vm4001_vm5, %v3997_v0, %v3724_v14  ;;  %v9618_v18 = vld [vmem:[%s15697_s3 + $0x2f0] ss:$12 sps:$4 sm:$0xff]   ;;  %v9624_v0 = vld [vmem:[%s15697_s3 + $0x2c0] ss:$12 sps:$4 sm:$0xff]  }
 0x40f   :  { %3935 = vrot.lane.b32.xlu1 %v3563_v38, %s9947_s24 }
 0x411   :  { %v13863_v32 = vpop.permute.xlu0 %3878  ;;  %v3750_v23 = vpop.permute.xlu1 %3749  ;;  %9127 = vmatpush3.bf16.msra.mxu0 %v9616_v33 }
 0x412   :  { %v4063_v47 = vsel %vm3388_vm3, %v4025_v37, %v3750_v23  ;;  %9128 = vmatprep.subr.bf16.mxu0 %v9617_v61  ;;  %v16742_v37 = vld [vmem:[#allocation228_spill] sm:$0xff] }
 0x413   :  { %v13877_v5 = vmax.bf16 %v16669_v48, %v4063_v47  ;;  %v4082_v23 = vsel %vm3961_vm4, %v16742_v37, %v13533_v59  ;;  %v9627_v59 = vld [vmem:[%s15697_s3 + $0x2a8] ss:$12 sps:$4 sm:$0xff]  }
 0x414   :  { %v4116_v47 = vsel %vm4001_vm5, %v4082_v23, %v3814_v55  ;;  %v9628_v55 = vld [vmem:[%s15697_s3 + $0x350] ss:$12 sps:$4 sm:$0xff]   ;;  %v9631_v23 = vld [vmem:[%s15697_s3 + $0x338] ss:$12 sps:$4 sm:$0xff]  }
 0x415   :  { %v3914_v38 = vpop.permute.xlu0 %3913  ;;  %v13881_v14 = vcombine.low %v13874_v45, %v13877_v5  ;;  %v13883_v33 = vpop.permute.xlu1 %3788  ;;  %9129 = vmatpush3.bf16.msra.mxu0 %v9618_v18  ;;  %v9625_v18 = vld [vmem:[%s15697_s3 + $0x368] ss:$12 sps:$4 sm:$0xff]  }
 0x416   :  { %9130 = vmatprep.subr.bf16.mxu0 %v9619_v15  ;;  %v16743_v15 = vld [vmem:[#allocation227_spill] sm:$0xff] }
 0x417   :  { %16741 = vst [vmem:[#allocation82_spill] sm:$0xff] %v13881_v14  ;;  %v4079_v14 = vsel %vm3961_vm4, %v16743_v15, %v13517_v3  ;;  %v4177_v15 = vsel %vm3961_vm4, %v13354_v41, %v13825_v27 }
 0x419   :  { %v3940_v61 = vpop.permute.xlu0 %3939  ;;  %v3812_v8 = vpop.permute.xlu1 %3811  ;;  %9131 = vmatpush3.bf16.msra.mxu0 %v9621_v6  ;;  %v4146_v6 = vsel %vm3388_vm3, %v4116_v47, %v3840_v17  ;;  %v9633_v47 = vld [vmem:[%s15697_s3 + $0x278] ss:$12 sps:$4 sm:$0xff]  }
 0x41a   :  { %9132 = vmatprep.subr.bf16.mxu0 %v9622_v12  ;;  %v4114_v42 = vsel %vm4001_vm5, %v4079_v14, %v3812_v8  ;;  %v4293_v3 = vmax.bf16 %v16669_v48, %v4146_v6 }
 0x41d   :  { %v3818_v9 = vpop.permute.xlu0 %3817  ;;  %v3838_v30 = vpop.permute.xlu1 %3837  ;;  %9133 = vmatpush3.bf16.msra.mxu0 %v9624_v0 }
 0x41e   :  { %v4143_v12 = vsel %vm3388_vm3, %v4114_v42, %v3838_v30  ;;  %9134 = vmatprep.subr.bf16.mxu0 %v9625_v18  ;;  %v9630_v42 = vld [vmem:[%s15697_s3 + $0x290] ss:$12 sps:$4 sm:$0xff]   ;;  %v13927_v30 = vcombine.low %v13509_v28, %v13604_v54  ;;  %v4180_v28 = vsel %vm3961_vm4, %v13326_v10, %v13799_v39 }
 0x41f   :  { %v4289_v17 = vmax.bf16 %v16669_v48, %v4143_v12  ;;  %v4216_v54 = vsel %vm4001_vm5, %v4180_v28, %v3914_v38  ;;  %v9620_v38 = vld [vmem:[%s15697_s3 + $0x4a0] ss:$12 sps:$4 sm:$0xff]  }
 0x420   :  { %v4244_v6 = vsel %vm3388_vm3, %v4216_v54, %v3940_v61  ;;  %v4088_v61 = vsel %vm3961_vm4, %v13068_v50, %v13622_v56  ;;  %v9623_v50 = vld [vmem:[%s15697_s3 + $0x488] ss:$12 sps:$4 sm:$0xff]  }
 0x421   :  { %v3844_v37 = vpop.permute.xlu0 %3843  ;;  %v13916_v14 = vcombine.low %v13812_v49, %v4289_v17  ;;  %v13918_v8 = vpop.permute.xlu1 %3876  ;;  %v13920_v0 = vcombine.low %v4289_v17, %v4293_v3  ;;  %9135 = vmatpush3.bf16.msra.mxu0 %v9627_v59 }
 0x422   :  { %9136 = vmatprep.subr.bf16.mxu0 %v9628_v55 }
 0x423   :  { %5151 = vmatprep.mubr.bf16.mxu0 %v13920_v0 }
 0x424   :  { %5152 = vmatmul.mubr.bf16.gmra.mxu0 %v13927_v30 }
 0x425   :  { %v13934_v49 = vpop.permute.xlu0 %3882  ;;  %v3912_v18 = vpop.permute.xlu1 %3911  ;;  %9137 = vmatpush3.bf16.msra.mxu0 %v9630_v42  ;;  %v4286_v42 = vmax.bf16 %v16669_v48, %v4244_v6 }
 0x426   :  { %9138 = vmatprep.subr.bf16.mxu0 %v9631_v23  ;;  %v4214_v12 = vsel %vm4001_vm5, %v4177_v15, %v3912_v18  ;;  %v13964_v23 = vcombine.low %v13322_v13, %v13453_v1  ;;  %v4120_v18 = vsel %vm4001_vm5, %v4088_v61, %v3818_v9 }
 0x427   :  { %v4152_v28 = vsel %vm3388_vm3, %v4120_v18, %v3844_v37  ;;  %v9626_v37 = vld [vmem:[%s15697_s3 + $0x470] ss:$12 sps:$4 sm:$0xff]  }
 0x429   :  { %v3918_v59 = vpop.permute.xlu0 %3917  ;;  %v3938_v55 = vpop.permute.xlu1 %3937  ;;  %9139 = vmatpush3.bf16.msra.mxu0 %v9633_v47  ;;  %v4085_v47 = vsel %vm3961_vm4, %v13058_v35, %v13615_v58  ;;  %v4301_v35 = vmax.bf16 %v16669_v48, %v4152_v28  ;;  %v9632_v28 = vld [vmem:[%s15697_s3 + $0x440] ss:$12 sps:$4 sm:$0xff]  }
 0x42a   :  { %v4241_v17 = vsel %vm3388_vm3, %v4214_v12, %v3938_v55  ;;  %v13994_v55 = vcombine.low %v13607_v11, %v13694_v36  ;;  %v4183_v36 = vsel %vm3961_vm4, %v13468_v46, %v13918_v8 }
 0x42b   :  { %v13951_v10 = vmax.bf16 %v16669_v48, %v4241_v17 }
 0x42d   :  { %v3944_v39 = vpop.permute.xlu0 %3943  ;;  %v13957_v41 = vcombine.low %v13951_v10, %v4286_v42  ;;  %v3816_v27 = vpop.permute.xlu1 %3815 }
 0x42e   :  { %v4118_v13 = vsel %vm4001_vm5, %v4085_v47, %v3816_v27  ;;  %v16744_v27 = vld [vmem:[#allocation73_spill] sm:$0xff] }
 0x42f   :  { %5231 = vmatmul.mubr.bf16.vlgmr.msra.gmra.mxu1 %v13957_v41  ;;  %v4186_v61 = vsel %vm3961_vm4, %v16744_v27, %v13863_v32  ;;  %v16746_v27 = vld [vmem:[#allocation74_spill] sm:$0xff] }
 0x430   :  { %8601 = vmatprep.mubr.msk.bf16.mxu1 %vm3961_vm4, %v13964_v23  ;;  %5367 = vmatpush1.bf16.msra.mxu1 %v9620_v38  ;;  %v4220_v11 = vsel %vm4001_vm5, %v4186_v61, %v3918_v59  ;;  %v14036_v61 = vcombine.low %v16746_v27, %v13570_v24  ;;  %v9635_v24 = vld [vmem:[%s15697_s3 + $0x410] ss:$12 sps:$4 sm:$0xff]   ;;  %v16748_v27 = vld [vmem:[#allocation75_spill] sm:$0xff] }
 0x431   :  { %v3822_v54 = vpop.permute.xlu0 %3821  ;;  %v3842_v1 = vpop.permute.xlu1 %3841  ;;  %5368 = vmatprep.subr.bf16.mxu1 %v16669_v48  ;;  %v4250_v18 = vsel %vm3388_vm3, %v4220_v11, %v3944_v39 }
 0x432   :  { %v4149_v56 = vsel %vm3388_vm3, %v4118_v13, %v3842_v1  ;;  %v4294_v46 = vmax.bf16 %v16669_v48, %v4250_v18  ;;  %v9634_v1 = vld [vmem:[%s15697_s3 + $0x428] ss:$12 sps:$4 sm:$0xff]  }
 0x433   :  { %v4297_v58 = vmax.bf16 %v16669_v48, %v4149_v56 }
 0x434   :  { %5369 = vmatpush1.bf16.msra.mxu1 %v9623_v50  ;;  %v9671_v50 = vld [vmem:[%s15697_s3 + $0xac] ss:$12 sps:$4 sm:$0xff]  }
 0x435   :  { %v3848_v9 = vpop.permute.xlu0 %3847  ;;  %v13985_v15 = vcombine.low %v4293_v3, %v4297_v58  ;;  %v13987_v6 = vpop.permute.xlu1 %3880  ;;  %v13989_v12 = vcombine.low %v4297_v58, %v4301_v35  ;;  %5370 = vmatprep.subr.bf16.mxu1 %v16669_v48  ;;  %v9629_v3 = vld [vmem:[%s15697_s3 + $0x458] ss:$12 sps:$4 sm:$0xff]   ;;  %5921 = vmatprep.subr.bf16.mxu0 %v9671_v50 }
 0x437   :  { %5161 = vmatprep.mubr.bf16.mxu0 %v13989_v12 }
 0x438   :  { %5162 = vmatmul.mubr.bf16.gmra.mxu0 %v13994_v55  ;;  %5371 = vmatpush1.bf16.msra.mxu1 %v9626_v37 }
 0x439   :  { %v13998_v17 = vpop.permute.xlu0 %3886  ;;  %v3916_v38 = vpop.permute.xlu1 %3915  ;;  %5372 = vmatprep.subr.bf16.mxu1 %v16669_v48 }
 0x43a   :  { %v4218_v32 = vsel %vm4001_vm5, %v4183_v36, %v3916_v38  ;;  %v16747_v36 = vld [vmem:[#allocation70_spill] sm:$0xff] }
 0x43c   :  { %5373 = vmatpush1.bf16.msra.mxu1 %v9629_v3  ;;  %v16745_v3 = vld [vmem:[#allocation230_spill] sm:$0xff] }
 0x43d   :  { %v3922_v47 = vpop.permute.xlu0 %3921  ;;  %v3942_v13 = vpop.permute.xlu1 %3941  ;;  %5374 = vmatprep.subr.bf16.mxu1 %v16669_v48  ;;  %v4094_v38 = vsel %vm3961_vm4, %v16745_v3, %v13701_v22 }
 0x43e   :  { %v4247_v59 = vsel %vm3388_vm3, %v4218_v32, %v3942_v13  ;;  %v4124_v11 = vsel %vm4001_vm5, %v4094_v38, %v3822_v54  ;;  %v9636_v13 = vld [vmem:[%s15697_s3 + $0x3f8] ss:$12 sps:$4 sm:$0xff]  }
 0x43f   :  { %v4290_v8 = vmax.bf16 %v16669_v48, %v4247_v59  ;;  %v4158_v18 = vsel %vm3388_vm3, %v4124_v11, %v3848_v9  ;;  %v4192_v11 = vsel %vm3961_vm4, %v16748_v27, %v13934_v49 }
 0x440   :  { %5375 = vmatpush1.bf16.msra.mxu1 %v9632_v28 }
 0x441   :  { %v3948_v39 = vpop.permute.xlu0 %3947  ;;  %v14026_v56 = vcombine.low %v4290_v8, %v4294_v46  ;;  %v14028_v58 = vcombine.low %v4286_v42, %v4290_v8  ;;  %v3820_v37 = vpop.permute.xlu1 %3819  ;;  %5376 = vmatprep.subr.bf16.mxu1 %v16669_v48  ;;  %v4091_v42 = vsel %vm3961_vm4, %v16747_v36, %v13710_v20  ;;  %v4309_v20 = vmax.bf16 %v16669_v48, %v4158_v18 }
 0x442   :  { %v4122_v22 = vsel %vm4001_vm5, %v4091_v42, %v3820_v37  ;;  %v14066_v37 = vcombine.low %v13697_v53, %v13764_v2  ;;  %v4224_v53 = vsel %vm4001_vm5, %v4192_v11, %v3922_v47  ;;  %v16749_v2 = vld [vmem:[#allocation76_spill] sm:$0xff] }
 0x443   :  { %5241 = vmatmul.mubr.bf16.gmra.mxu1 %v14026_v56  ;;  %v4189_v36 = vsel %vm3961_vm4, %v16749_v2, %v13987_v6  ;;  %v4256_v42 = vsel %vm3388_vm3, %v4224_v53, %v3948_v39  ;;  %v9641_v6 = vld [vmem:[%s15697_s3 + $0x22c] ss:$12 sps:$4 sm:$0xff]  }
 0x444   :  { %8602 = vmatprep.mubr.msk.bf16.mxu1 %vm3961_vm4, %v14036_v61  ;;  %5377 = vmatpush1.bf16.msra.mxu1 %v9634_v1 }
 0x445   :  { %v3826_v28 = vpop.permute.xlu0 %3825  ;;  %v3846_v54 = vpop.permute.xlu1 %3845  ;;  %5378 = vmatprep.subr.bf16.mxu1 %v16669_v48 }
 0x446   :  { %v4155_v50 = vsel %vm3388_vm3, %v4122_v22, %v3846_v54  ;;  %v16750_v22 = vld [vmem:[#allocation231_spill] sm:$0xff] }
 0x447   :  { %v4305_v9 = vmax.bf16 %v16669_v48, %v4155_v50  ;;  %v4100_v54 = vsel %vm3961_vm4, %v16750_v22, %v13756_v26 }
 0x448   :  { %5379 = vmatpush1.bf16.msra.mxu1 %v9635_v24  ;;  %v9638_v24 = vld [vmem:[%s15697_s3 + $0x4b8] ss:$12 sps:$4 sm:$0xff]   ;;  %v4128_v47 = vsel %vm4001_vm5, %v4100_v54, %v3826_v28 }
 0x449   :  { %v3852_v32 = vpop.permute.xlu0 %3851  ;;  %v14057_v59 = vcombine.low %v4301_v35, %v4305_v9  ;;  %v14059_v8 = vpop.permute.xlu1 %3884  ;;  %v14061_v1 = vcombine.low %v4305_v9, %v4309_v20  ;;  %5380 = vmatprep.subr.bf16.mxu1 %v16669_v48  ;;  %v9637_v35 = vld [vmem:[%s15697_s3 + $0x4d0] ss:$12 sps:$4 sm:$0xff]   ;;  %v16751_v9 = vld [vmem:[#allocation234_spill] sm:$0xff] }
 0x44a   :  { %v4164_v26 = vsel %vm3388_vm3, %v4128_v47, %v3852_v32  ;;  %v16752_v32 = vld [vmem:[#allocation77_spill] sm:$0xff] }
 0x44b   :  { %5171 = vmatprep.mubr.bf16.mxu0 %v14061_v1  ;;  %v14115_v22 = vcombine.low %v16752_v32, %v13662_v31 }
 0x44c   :  { %5172 = vmatmul.mubr.bf16.gmra.mxu0 %v14066_v37  ;;  %5381 = vmatpush1.bf16.msra.mxu1 %v9636_v13  ;;  %v4103_v13 = vsel %vm3961_vm4, %v16751_v9, %v13883_v33  ;;  %v14110_v33 = vmax.bf16 %v16669_v48, %v4164_v26 }
 0x44d   :  { %v14070_v3 = vpop.permute.xlu0 %3890  ;;  %v3920_v38 = vpop.permute.xlu1 %3919  ;;  %5394 = vmatprep.subr.bf16.mxu1 %v16669_v48 }
 0x44e   :  { %v4222_v49 = vsel %vm4001_vm5, %v4189_v36, %v3920_v38 }
 0x450   :  { %5395 = vmatpush2.bf16.msra.mxu1 %v9637_v35  ;;  %v4302_v35 = vmax.bf16 %v16669_v48, %v4256_v42 }
 0x451   :  { %v3828_v18 = vpop.permute.xlu0 %3827  ;;  %v3946_v50 = vpop.permute.xlu1 %3945  ;;  %5396 = vmatprep.subr.bf16.mxu1 %v16669_v48 }
 0x452   :  { %v4253_v39 = vsel %vm3388_vm3, %v4222_v49, %v3946_v50  ;;  %v4130_v27 = vsel %vm4001_vm5, %v4103_v13, %v3828_v18  ;;  %v16753_v18 = vld [vmem:[#allocation232_spill] sm:$0xff]  ;;  %v14136_v13 = vcombine.low %v13767_v21, %v13874_v45  ;;  %v4195_v21 = vsel %vm3961_vm4, %v13625_v16, %v14059_v8 }
 0x453   :  { %v4298_v38 = vmax.bf16 %v16669_v48, %v4253_v39 }
 0x454   :  { %5397 = vmatpush2.bf16.msra.mxu1 %v9638_v24 }
 0x455   :  { %v3854_v11 = vpop.permute.xlu0 %3853  ;;  %v14104_v53 = vcombine.low %v4298_v38, %v4302_v35  ;;  %v14106_v2 = vcombine.low %v4294_v46, %v4298_v38  ;;  %v3824_v28 = vpop.permute.xlu1 %3823  ;;  %6010 = vmatprep.subr.bf16.mxu1 %v9641_v6  ;;  %v4097_v46 = vsel %vm3961_vm4, %v16753_v18, %v13775_v29  ;;  %v14154_v18 = vcombine.low %v13877_v5, %v13877_v5 }
 0x456   :  { %v4167_v36 = vsel %vm3388_vm3, %v4130_v27, %v3854_v11  ;;  %v4126_v49 = vsel %vm4001_vm5, %v4097_v46, %v3824_v28  ;;  %v4204_v5 = vsel %vm3961_vm4, %v13638_v19, %v14070_v3 }
 0x457   :  { %v4321_v42 = vmax.bf16 %v16669_v48, %v4167_v36  ;;  %5251 = vmatmul.mubr.bf16.gmra.mxu1 %v14104_v53 }
 0x458   :  { %8603 = vmatprep.mubr.msk.bf16.mxu1 %vm3961_vm4, %v14115_v22 }
 0x459   :  { %v3893_v24 = vpop.permute.xlu0 %3892  ;;  %v14124_v54 = vcombine.low %v14110_v33, %v4321_v42  ;;  %v3850_v50 = vpop.permute.xlu1 %3849  ;;  %v14139_v26 = vcombine.low %v4321_v42, %v4321_v42 }
 0x45a   :  { %v4161_v6 = vsel %vm3388_vm3, %v4126_v49, %v3850_v50 }
 0x45b   :  { %v4313_v31 = vmax.bf16 %v16669_v48, %v4161_v6 }
 0x45d   :  { %v3926_v47 = vpop.permute.xlu0 %3925  ;;  %v14129_v39 = vcombine.low %v4309_v20, %v4313_v31  ;;  %v3889_v9 = vpop.permute.xlu1 %3888  ;;  %v14132_v29 = vcombine.low %v4313_v31, %v14110_v33  ;;  %v16754_v20 = vld [vmem:[#allocation237_spill] sm:$0xff]  ;;  %v14170_v31 = vcombine.low %v13658_v43, %v13734_v7  ;;  %v9669_v43 = vld [vmem:[%s15697_s3 + $0xa8] ss:$12 sps:$4 sm:$0xff]  }
 0x45e   :  { %v4198_v11 = vsel %vm3961_vm4, %v16754_v20, %v13998_v17  ;;  %v9674_v20 = vld [vmem:[%s15697_s3 + $0x94] ss:$12 sps:$4 sm:$0xff]  }
 0x45f   :  { %5181 = vmatprep.mubr.bf16.mxu0 %v14132_v29  ;;  %v4228_v28 = vsel %vm4001_vm5, %v4198_v11, %v3926_v47 }
 0x460   :  { %5182 = vmatmul.mubr.bf16.gmra.mxu0 %v14136_v13 }
 0x461   :  { %v3924_v38 = vpop.permute.xlu1 %3923  ;;  %5191 = vmatprep.mubr.bf16.mxu0 %v14139_v26  ;;  %v3952_v27 = vpop.permute.xlu0 %3951 }
 0x462   :  { %v4262_v36 = vsel %vm3388_vm3, %v4228_v28, %v3952_v27  ;;  %v4226_v42 = vsel %vm4001_vm5, %v4195_v21, %v3924_v38  ;;  %v4207_v28 = vsel %vm3961_vm4, %v13682_v60, %v3893_v24  ;;  %v9677_v60 = vld [vmem:[%s15697_s3 + $0x7c] ss:$12 sps:$4 sm:$0xff]  }
 0x463   :  { %v4310_v49 = vmax.bf16 %v16669_v48, %v4262_v36 }
 0x465   :  { %v3950_v32 = vpop.permute.xlu1 %3949 }
 0x466   :  { %v4259_v46 = vsel %vm3388_vm3, %v4226_v42, %v3950_v32  ;;  %v9672_v32 = vld [vmem:[%s15697_s3 + $0x90] ss:$12 sps:$4 sm:$0xff]  }
 0x467   :  { %v4306_v17 = vmax.bf16 %v16669_v48, %v4259_v46  ;;  %v3930_v50 = vpop.permute.xlu0 %3929 }
 0x468   :  { %5192 = vmatmul.mubr.bf16.gmra.mxu0 %v14154_v18  ;;  %v4232_v47 = vsel %vm4001_vm5, %v4204_v5, %v3930_v50  ;;  %v9675_v50 = vld [vmem:[%s15697_s3 + $0x78] ss:$12 sps:$4 sm:$0xff]  }
 0x469   :  { %v14160_v6 = vcombine.low %v4306_v17, %v4310_v49  ;;  %v14162_v16 = vcombine.low %v4302_v35, %v4306_v17  ;;  %v3928_v8 = vpop.permute.xlu1 %3927  ;;  %5319 = vmatprep.mubr.bf16.mxu0 %v13830_v4  ;;  %v4201_v35 = vsel %vm3961_vm4, %v13704_v63, %v3889_v9 }
 0x46a   :  { %v4230_v4 = vsel %vm4001_vm5, %v4201_v35, %v3928_v8 }
 0x46b   :  { %5261 = vmatmul.mubr.bf16.gmra.mxu1 %v14160_v6  ;;  %v3956_v38 = vpop.permute.xlu0 %3955 }
 0x46c   :  { %v4268_v27 = vsel %vm3388_vm3, %v4232_v47, %v3956_v38  ;;  %8604 = vmatprep.mubr.msk.bf16.mxu1 %vm3961_vm4, %v14170_v31  ;;  %v9680_v47 = vld [vmem:[%s15697_s3 + $0x64] ss:$12 sps:$4 sm:$0xff]   ;;  %v2301_v38 = vpop.f32.mrf.mxu0 }
 0x46d   :  { %v3954_v19 = vpop.permute.xlu1 %3953  ;;  %v14188_v63 = vmax.bf16 %v16669_v48, %v4268_v27 }
 0x46e   :  { %v4265_v3 = vsel %vm3388_vm3, %v4230_v4, %v3954_v19  ;;  %v16755_v19 = vld [vmem:[#allocation155_spill] sm:$0xff] }
 0x46f   :  { %v4314_v9 = vmax.bf16 %v16669_v48, %v4265_v3  ;;  %v3213_v11 = vpop.permute.xlu0 %3212 }
 0x470   :  { %5320 = vmatmul.mubr.bf16.vlgmr.msra.gmra.mxu0 %v13837_v40  ;;  %v14206_v40 = vcombine.low %v13740_v34, %v13740_v34  ;;  %v3392_v35 = vsel %vm3388_vm3, %v3213_v11, %v16734_v51  ;;  %v9678_v51 = vld [vmem:[%s15697_s3 + $0x60] ss:$12 sps:$4 sm:$0xff]  }
 0x471   :  { %v14195_v21 = vcombine.low %v4314_v9, %v14188_v63  ;;  %v14197_v36 = vcombine.low %v4310_v49, %v4314_v9  ;;  %v3932_v42 = vpop.permute.xlu1 %3931  ;;  %5327 = vmatprep.mubr.bf16.mxu0 %v13920_v0  ;;  %5922 = vmatpush1.bf16.msra.mxu0 %v9669_v43  ;;  %v16756_v43 = vld [vmem:[#allocation318_spill] sm:$0xff] }
 0x472   :  { %v4234_v46 = vsel %vm4001_vm5, %v4207_v28, %v3932_v42  ;;  %5923 = vmatprep.subr.bf16.mxu0 %v9674_v20  ;;  %v1566_v3 = vadd.f32 %v16756_v43, %v16755_v19  ;;  %v16758_v28 = vld [vmem:[#allocation314_spill] sm:$0xff] }
 0x473   :  { %5271 = vmatmul.mubr.bf16.gmra.mxu1 %v14195_v21  ;;  %v3958_v24 = vpop.permute.xlu0 %3957  ;;  %v9645_v43 = vld [vmem:[%s15697_s3 + $0x1f8] ss:$12 sps:$4 sm:$0xff]  }
 0x474   :  { %v4271_v0 = vsel %vm3388_vm3, %v4234_v46, %v3958_v24  ;;  %8605 = vmatprep.mubr.msk.bf16.mxu1 %vm3961_vm4, %v14206_v40  ;;  %v16759_v46 = vld [vmem:[#allocation72_spill] sm:$0xff] }
 0x475   :  { %v4322_v49 = vmax.bf16 %v16669_v48, %v4271_v0  ;;  %v3211_v17 = vpop.permute.xlu1 %3210  ;;  %5924 = vmatpush1.bf16.msra.mxu0 %v9672_v32  ;;  %v2621_v32 = vadd.f32 %v2301_v38, %v1566_v3  ;;  %v9681_v24 = vld [vmem:[%s15697_s3 + $0x48] ss:$12 sps:$4 sm:$0xff]   ;;  %v16763_v3 = vld [vmem:[#allocation69_spill] sm:$0xff] }
 0x476   :  { %v3391_v34 = vsel %vm3388_vm3, %v3211_v17, %v3213_v11  ;;  %5925 = vmatprep.subr.bf16.mxu0 %v9677_v60  ;;  %v16757_v11 = vld [vmem:[#allocation152_spill] sm:$0xff] }
 0x477   :  { %v14221_v8 = vcombine.low %v14188_v63, %v4322_v49  ;;  %v14224_v5 = vmax.bf16 %v3391_v34, %v16731_v62  ;;  %v14232_v27 = vcombine.low %v4322_v49, %v4322_v49  ;;  %v3209_v4 = vpop.permute.xlu0 %3208  ;;  %v1562_v42 = vadd.f32 %v16758_v28, %v16757_v11  ;;  %v9686_v0 = vld [vmem:[%s15697_s3 + $0x34] ss:$12 sps:$4 sm:$0xff]  }
 0x478   :  { %5328 = vmatmul.mubr.bf16.gmra.mxu0 %v13927_v30  ;;  %v3561_v30 = vmax.bf16 %v3392_v35, %v16728_v44  ;;  %v3390_v60 = vsel %vm3388_vm3, %v3209_v4, %v3211_v17  ;;  %v16760_v44 = vld [vmem:[#allocation225_spill] sm:$0xff]  ;;  %v16761_v49 = vld [vmem:[#allocation62_spill] sm:$0xff]  ;;  %v9651_v11 = vld [vmem:[%s15697_s3 + $0x1c8] ss:$12 sps:$4 sm:$0xff]  }
 0x479   :  { %5335 = vmatprep.mubr.bf16.mxu0 %v13989_v12  ;;  %3766 = vrot.lane.b32.xlu0 %v14224_v5, %s9945_s21  ;;  %v3207_v62 = vpop.permute.xlu1 %3206  ;;  %v9683_v12 = vld [vmem:[%s15697_s3 + $0x4c] ss:$12 sps:$4 sm:$0xff]   ;;  %v2840_v34 = vadd.f32 %v16761_v49, %v2621_v32  ;;  %v3559_v17 = vmax.bf16 %v3390_v60, %v16733_v57  ;;  %v9684_v57 = vld [vmem:[%s15697_s3 + $0x30] ss:$12 sps:$4 sm:$0xff]   ;;  %v16766_v28 = vld [vmem:[#allocation206_spill] sm:$0xff] }
 0x47a   :  { %v3389_v20 = vsel %vm3388_vm3, %v3207_v62, %v3209_v4  ;;  %5926 = vmatpush1.bf16.msra.mxu0 %v9675_v50  ;;  %v9639_v50 = vld [vmem:[%s15697_s3 + $0x228] ss:$12 sps:$4 sm:$0xff]   ;;  %v9642_v35 = vld [vmem:[%s15697_s3 + $0x210] ss:$12 sps:$4 sm:$0xff]  }
 0x47b   :  { %v14245_v9 = vmax.bf16 %v3389_v20, %v16737_v25  ;;  %5281 = vmatmul.mubr.bf16.gmra.mxu1 %v14232_v27  ;;  %5927 = vmatprep.subr.bf16.mxu0 %v9680_v47  ;;  %v2614_v25 = vadd.f32 %v16760_v44, %v1562_v42  ;;  %v9644_v47 = vld [vmem:[%s15697_s3 + $0x214] ss:$12 sps:$4 sm:$0xff]   ;;  %v9650_v20 = vld [vmem:[%s15697_s3 + $0x1e4] ss:$12 sps:$4 sm:$0xff]   ;;  %v9659_v60 = vld [vmem:[%s15697_s3 + $0x19c] ss:$12 sps:$4 sm:$0xff]  }
 0x47c   :  { %8606 = vmatprep.mubr.msk.bf16.mxu1 %vm3961_vm4, %v16759_v46  ;;  %v16762_v4 = vld [vmem:[#allocation8_spill] sm:$0xff] }
 0x47d   :  { %3805 = vrot.lane.b32.xlu0 %v3561_v30, %s9946_s2  ;;  %3662 = vrot.lane.b32.xlu1 %v14245_v9, %s9945_s21  ;;  %v2833_v38 = vadd.f32 %v16761_v49, %v2614_v25  ;;  %v9656_v42 = vld [vmem:[%s15697_s3 + $0x1b4] ss:$12 sps:$4 sm:$0xff]   ;;  %v9699_v44 = vld [vmem:[%s15697_s3 + $0x150] ss:$12 sps:$4 sm:$0xff]  }
 0x47e   :  { %5928 = vmatpush1.bf16.msra.mxu0 %v9678_v51  ;;  %v9648_v51 = vld [vmem:[%s15697_s3 + $0x1e0] ss:$12 sps:$4 sm:$0xff]   ;;  %v9694_v32 = vld [vmem:[%s15697_s3 + $0x168] ss:$12 sps:$4 sm:$0xff]   ;;  %v9662_v25 = vld [vmem:[%s15697_s3 + $0x184] ss:$12 sps:$4 sm:$0xff]  }
 0x47f   :  { %5929 = vmatprep.subr.bf16.mxu0 %v9683_v12  ;;  %v3015_v62 = vpack.c.bf16 %v2833_v38, %v2833_v38  ;;  %v16765_v12 = vld [vmem:[#allocation66_spill] sm:$0xff]  ;;  %v9665_v49 = vld [vmem:[%s15697_s3 + $0x25c] ss:$12 sps:$4 sm:$0xff]  }
 0x480   :  { %5336 = vmatmul.mubr.bf16.gmra.mxu0 %v13994_v55  ;;  %v9689_v55 = vld [vmem:[%s15697_s3 + $0x1c] ss:$12 sps:$4 sm:$0xff]   ;;  %v9701_v46 = vld [vmem:[%s15697_s3 + $0x154] ss:$12 sps:$4 sm:$0xff]  }
 0x481   :  { %5343 = vmatprep.mubr.bf16.mxu0 %v14061_v1  ;;  %3831 = vrot.lane.b32.xlu0 %v3561_v30, %s9947_s24  ;;  %v3022_v1 = vpack.c.bf16 %v2840_v34, %v2840_v34  ;;  %v16764_v30 = vld [vmem:[#allocation51_spill] sm:$0xff]  ;;  %v9721_v38 = vld [vmem:[%s15697_s3 + $0xf4] ss:$12 sps:$4 sm:$0xff]  }
 0x482   :  { %3701 = vrot.lane.b32.xlu1 %v3559_v17, %s9946_s2  ;;  %5930 = vmatpush1.bf16.msra.mxu0 %v9681_v24  ;;  %v9704_v24 = vld [vmem:[%s15697_s3 + $0x138] ss:$12 sps:$4 sm:$0xff]   ;;  %v9709_v34 = vld [vmem:[%s15697_s3 + $0x120] ss:$12 sps:$4 sm:$0xff]  }
 0x483   :  { %5399 = vmatmul.mubr.bf16.vlgmr.msra.gmra.mxu1 %v13957_v41  ;;  %5931 = vmatprep.subr.bf16.mxu0 %v9686_v0  ;;  %v9647_v41 = vld [vmem:[%s15697_s3 + $0x1fc] ss:$12 sps:$4 sm:$0xff]   ;;  %v14300_v19 = vmax.bf16 %v3022_v1, %v3015_v62  ;;  %v9660_v0 = vld [vmem:[%s15697_s3 + $0x180] ss:$12 sps:$4 sm:$0xff]  }
 0x484   :  { %8607 = vmatprep.mubr.msk.bf16.mxu1 %vm3961_vm4, %v13964_v23  ;;  %6011 = vmatpush1.bf16.msra.mxu1 %v9639_v50  ;;  %v9687_v23 = vld [vmem:[%s15697_s3 + $0x18] ss:$12 sps:$4 sm:$0xff]   ;;  %v9666_v1 = vld [vmem:[%s15697_s3 + $0x240] ss:$12 sps:$4 sm:$0xff]  }
 0x485   :  { %3382 = vrot.lane.b32.xlu0 %v16762_v4, %s9945_s21  ;;  %6012 = vmatprep.subr.bf16.mxu1 %v9644_v47  ;;  %v9668_v50 = vld [vmem:[%s15697_s3 + $0x244] ss:$12 sps:$4 sm:$0xff]   ;;  %v9714_v47 = vld [vmem:[%s15697_s3 + $0x108] ss:$12 sps:$4 sm:$0xff]  }
 0x486   :  { %3727 = vrot.lane.b32.xlu1 %v3559_v17, %s9947_s24  ;;  %5932 = vmatpush1.bf16.msra.mxu0 %v9684_v57  ;;  %v3871_v17 = vpop.permute.xlu1 %3870  ;;  %v16768_v57 = vld [vmem:[#allocation53_spill] sm:$0xff]  ;;  %v16769_v62 = vld [vmem:[#allocation242_spill] sm:$0xff] }
 0x487   :  { %5933 = vmatprep.subr.bf16.mxu0 %v9689_v55  ;;  %v3564_v55 = vmax.bf16 %v13186_v52, %v16768_v57  ;;  %v4174_v52 = vsel %vm3961_vm4, %v16769_v62, %v3871_v17  ;;  %v9728_v17 = vld [vmem:[%s15697_s3 + $0xc8] ss:$12 sps:$4 sm:$0xff]   ;;  %v14513_v57 = vcombine.low %v13734_v7, %v13734_v7 }
 0x488   :  { %5344 = vmatmul.mubr.bf16.gmra.mxu0 %v14066_v37  ;;  %6013 = vmatpush1.bf16.msra.mxu1 %v9642_v35  ;;  %v9692_v37 = vld [vmem:[%s15697_s3 + $0x4] ss:$12 sps:$4 sm:$0xff]  }
 0x489   :  { %5351 = vmatprep.mubr.bf16.mxu0 %v14132_v29  ;;  %3386 = vrot.lane.b32.xlu0 %v16763_v3, %s9945_s21  ;;  %v9690_v29 = vld [vmem:[%s15697_s3] ss:$12 sps:$4 sm:$0xff]   ;;  %v9693_v35 = vld [vmem:[%s15697_s3 + $0x170] ss:$12 sps:$4 sm:$0xff]  }
 0x48a   :  { %3384 = vrot.lane.b32.xlu1 %v14300_v19, %s9945_s21  ;;  %6014 = vmatprep.subr.bf16.mxu1 %v9647_v41  ;;  %v3936_v41 = vpop.permute.xlu1 %3935 }
 0x48b   :  { %5407 = vmatmul.mubr.bf16.gmra.mxu1 %v14026_v56  ;;  %5934 = vmatpush1.bf16.msra.mxu0 %v9687_v23  ;;  %v9653_v56 = vld [vmem:[%s15697_s3 + $0x1cc] ss:$12 sps:$4 sm:$0xff]   ;;  %v4279_v23 = vmax.bf16 %v16669_v48, %v3564_v55  ;;  %v14520_v55 = vcombine.low %v14188_v63, %v14188_v63 }
 0x48c   :  { %8608 = vmatprep.mubr.msk.bf16.mxu1 %vm3961_vm4, %v14036_v61  ;;  %6015 = vmatpush1.bf16.msra.mxu1 %v9645_v43  ;;  %v9696_v61 = vld [vmem:[%s15697_s3 + $0x16c] ss:$12 sps:$4 sm:$0xff]   ;;  %v3910_v43 = vpop.permute.xlu0 %3909 }
 0x48d   :  { %3380 = vrot.lane.b32.xlu0 %v16764_v30, %s9945_s21  ;;  %6016 = vmatprep.subr.bf16.mxu1 %v9650_v20  ;;  %v4212_v20 = vsel %vm4001_vm5, %v4174_v52, %v3910_v43 }
 0x48e   :  { %3378 = vrot.lane.b32.xlu1 %v16765_v12, %s9945_s21  ;;  %5935 = vmatprep.subr.bf16.mxu0 %v9692_v37  ;;  %v9724_v37 = vld [vmem:[%s15697_s3 + $0xd8] ss:$12 sps:$4 sm:$0xff]  }
 0x48f   :  { %5936 = vmatpush1.bf16.msra.mxu0 %v9690_v29  ;;  %v4238_v29 = vsel %vm3388_vm3, %v4212_v20, %v3936_v41 }
 0x490   :  { %5352 = vmatmul.mubr.bf16.gmra.mxu0 %v14136_v13  ;;  %6017 = vmatpush1.bf16.msra.mxu1 %v9648_v51  ;;  %v16767_v13 = vld [vmem:[#allocation45_spill] sm:$0xff]  ;;  %v16770_v51 = vld [vmem:[#allocation71_spill] sm:$0xff] }
 0x491   :  { %5359 = vmatprep.mubr.bf16.mxu0 %v14139_v26  ;;  %3376 = vrot.lane.b32.xlu0 %v16766_v28, %s9945_s21  ;;  %v9654_v26 = vld [vmem:[%s15697_s3 + $0x1b0] ss:$12 sps:$4 sm:$0xff]  }
 0x492   :  { %3374 = vrot.lane.b32.xlu1 %v16767_v13, %s9945_s21  ;;  %6018 = vmatprep.subr.bf16.mxu1 %v9653_v56  ;;  %v14435_v56 = vcombine.low %v4279_v23, %v16770_v51 }
 0x493   :  { %5415 = vmatmul.mubr.bf16.gmra.mxu1 %v14104_v53  ;;  %5937 = vmatprep.subr.bf16.mxu0 %v9696_v61  ;;  %v9706_v53 = vld [vmem:[%s15697_s3 + $0x13c] ss:$12 sps:$4 sm:$0xff]   ;;  %v9731_v61 = vld [vmem:[%s15697_s3 + $0xc4] ss:$12 sps:$4 sm:$0xff]  }
 0x494   :  { %8609 = vmatprep.mubr.msk.bf16.mxu1 %vm3961_vm4, %v14115_v22  ;;  %6019 = vmatpush1.bf16.msra.mxu1 %v9651_v11  ;;  %v9657_v22 = vld [vmem:[%s15697_s3 + $0x198] ss:$12 sps:$4 sm:$0xff]   ;;  %v4278_v11 = vmax.bf16 %v16669_v48, %v4238_v29 }
 0x495   :  { %6020 = vmatprep.subr.bf16.mxu1 %v9656_v42  ;;  %5938 = vmatpush2.bf16.msra.mxu0 %v9694_v32  ;;  %v9729_v42 = vld [vmem:[%s15697_s3 + $0xc0] ss:$12 sps:$4 sm:$0xff]   ;;  %v9697_v32 = vld [vmem:[%s15697_s3 + $0xb0] ss:$12 sps:$4 sm:$0xff]  }
 0x496   :  { %5939 = vmatprep.subr.bf16.mxu0 %v9701_v46  ;;  %v14451_v46 = vcombine.low %v4278_v11, %v13951_v10  ;;  %v9703_v10 = vld [vmem:[%s15697_s3 + $0x140] ss:$12 sps:$4 sm:$0xff]  }
 0x498   :  { %5360 = vmatmul.mubr.bf16.gmra.mxu0 %v14154_v18  ;;  %6021 = vmatpush1.bf16.msra.mxu1 %v9654_v26  ;;  %v9711_v18 = vld [vmem:[%s15697_s3 + $0x124] ss:$12 sps:$4 sm:$0xff]   ;;  %v16771_v26 = vld [vmem:[#allocation233_spill] sm:$0xff] }
 0x499   :  { %6022 = vmatprep.subr.bf16.mxu1 %v9659_v60  ;;  %5940 = vmatpush2.bf16.msra.mxu0 %v9699_v44  ;;  %v9702_v60 = vld [vmem:[%s15697_s3 + $0x98] ss:$12 sps:$4 sm:$0xff]   ;;  %v9707_v44 = vld [vmem:[%s15697_s3 + $0x80] ss:$12 sps:$4 sm:$0xff]  }
 0x49a   :  { %5941 = vmatprep.subr.bf16.mxu0 %v9706_v53  ;;  %v9708_v53 = vld [vmem:[%s15697_s3 + $0x128] ss:$12 sps:$4 sm:$0xff]  }
 0x49b   :  { %5423 = vmatmul.mubr.bf16.gmra.mxu1 %v14160_v6  ;;  %v9716_v6 = vld [vmem:[%s15697_s3 + $0x10c] ss:$12 sps:$4 sm:$0xff]  }
 0x49c   :  { %8610 = vmatprep.mubr.msk.bf16.mxu1 %vm3961_vm4, %v14170_v31  ;;  %6023 = vmatpush1.bf16.msra.mxu1 %v9657_v22  ;;  %v9663_v31 = vld [vmem:[%s15697_s3 + $0x258] ss:$12 sps:$4 sm:$0xff]   ;;  %v16772_v22 = vld [vmem:[#allocation235_spill] sm:$0xff] }
 0x49d   :  { %6024 = vmatprep.subr.bf16.mxu1 %v9662_v25  ;;  %5942 = vmatpush2.bf16.msra.mxu0 %v9704_v24  ;;  %v9712_v25 = vld [vmem:[%s15697_s3 + $0x68] ss:$12 sps:$4 sm:$0xff]   ;;  %v9713_v24 = vld [vmem:[%s15697_s3 + $0x110] ss:$12 sps:$4 sm:$0xff]  }
 0x49e   :  { %5943 = vmatprep.subr.bf16.mxu0 %v9711_v18  ;;  %v9717_v18 = vld [vmem:[%s15697_s3 + $0x50] ss:$12 sps:$4 sm:$0xff]  }
 0x4a0   :  { %6025 = vmatpush1.bf16.msra.mxu1 %v9660_v0  ;;  %v9718_v0 = vld [vmem:[%s15697_s3 + $0xf8] ss:$12 sps:$4 sm:$0xff]  }
 0x4a1   :  { %6038 = vmatprep.subr.bf16.mxu1 %v9665_v49  ;;  %5944 = vmatpush2.bf16.msra.mxu0 %v9709_v34  ;;  %v16773_v49 = vld [vmem:[#allocation238_spill] sm:$0xff] }
 0x4a2   :  { %5945 = vmatprep.subr.bf16.mxu0 %v9716_v6  ;;  %v9722_v34 = vld [vmem:[%s15697_s3 + $0x38] ss:$12 sps:$4 sm:$0xff]   ;;  %v9723_v6 = vld [vmem:[%s15697_s3 + $0xe0] ss:$12 sps:$4 sm:$0xff]  }
 0x4a3   :  { %5431 = vmatmul.mubr.bf16.gmra.mxu1 %v14195_v21  ;;  %v9719_v21 = vld [vmem:[%s15697_s3 + $0xf0] ss:$12 sps:$4 sm:$0xff]  }
 0x4a4   :  { %8611 = vmatprep.mubr.msk.bf16.mxu1 %vm3961_vm4, %v14206_v40  ;;  %6039 = vmatpush2.bf16.msra.mxu1 %v9663_v31  ;;  %v9726_v40 = vld [vmem:[%s15697_s3 + $0xdc] ss:$12 sps:$4 sm:$0xff]   ;;  %v9727_v31 = vld [vmem:[%s15697_s3 + $0x20] ss:$12 sps:$4 sm:$0xff]  }
 0x4a5   :  { %6040 = vmatprep.subr.bf16.mxu1 %v9668_v50  ;;  %5946 = vmatpush2.bf16.msra.mxu0 %v9714_v47  ;;  %v16774_v50 = vld [vmem:[#allocation239_spill] sm:$0xff] }
 0x4a6   :  { %5947 = vmatprep.subr.bf16.mxu0 %v9721_v38  ;;  %v9732_v47 = vld [vmem:[%s15697_s3 + $0x8] ss:$12 sps:$4 sm:$0xff]   ;;  %v9735_v38 = vld [vmem:[%s15697_s3 + $0x58c] ss:$12 sps:$4 sm:$0xff]  }
 0x4a8   :  { %6041 = vmatpush2.bf16.msra.mxu1 %v9666_v1 }
 0x4a9   :  { %9176 = vmatprep.subr.bf16.mxu1 %v9693_v35  ;;  %5948 = vmatpush2.bf16.msra.mxu0 %v9719_v21 }
 0x4aa   :  { %5949 = vmatprep.subr.bf16.mxu0 %v9726_v40 }
 0x4ab   :  { %5439 = vmatmul.mubr.bf16.gmra.mxu1 %v14232_v27  ;;  %v9698_v27 = vld [vmem:[%s15697_s3 + $0x158] ss:$12 sps:$4 sm:$0xff]  }
 0x4ac   :  { %8714 = vmatprep.mubr.msk.bf16.mxu1 %vm3961_vm4, %v14435_v56 }
 0x4ad   :  { %5950 = vmatpush2.bf16.msra.mxu0 %v9724_v37 }
 0x4ae   :  { %5951 = vmatprep.subr.bf16.mxu0 %v9731_v61 }
 0x4b1   :  { %5952 = vmatpush2.bf16.msra.mxu0 %v9729_v42 }
 0x4b2   :  { %6178 = vmatprep.subr.bf16.mxu0 %v16669_v48 }
 0x4b3   :  { %6043 = vmatmul.mubr.bf16.vlgmr.msra.gmra.mxu1 %v14451_v46 }
 0x4b4   :  { %8715 = vmatprep.mubr.msk.bf16.mxu1 %vm3961_vm4, %v16771_v26  ;;  %9177 = vmatpush3.bf16.msra.mxu1 %v9697_v32 }
 0x4b5   :  { %9178 = vmatprep.subr.bf16.mxu1 %v9698_v27 }
 0x4b8   :  { %9179 = vmatpush3.bf16.msra.mxu1 %v9702_v60 }
 0x4b9   :  { %9180 = vmatprep.subr.bf16.mxu1 %v9703_v10  ;;  %v16776_v10 = vld [vmem:[#allocation241_spill] sm:$0xff] }
 0x4bb   :  { %6053 = vmatmul.mubr.bf16.gmra.mxu1 %v14028_v58 }
 0x4bc   :  { %8716 = vmatprep.mubr.msk.bf16.mxu1 %vm3961_vm4, %v16772_v22  ;;  %9181 = vmatpush3.bf16.msra.mxu1 %v9707_v44 }
 0x4bd   :  { %9182 = vmatprep.subr.bf16.mxu1 %v9708_v53 }
 0x4c0   :  { %9183 = vmatpush3.bf16.msra.mxu1 %v9712_v25 }
 0x4c1   :  { %9184 = vmatprep.subr.bf16.mxu1 %v9713_v24 }
 0x4c3   :  { %6063 = vmatmul.mubr.bf16.gmra.mxu1 %v14106_v2 }
 0x4c4   :  { %8717 = vmatprep.mubr.msk.bf16.mxu1 %vm3961_vm4, %v16773_v49  ;;  %9185 = vmatpush3.bf16.msra.mxu1 %v9717_v18 }
 0x4c5   :  { %9186 = vmatprep.subr.bf16.mxu1 %v9718_v0 }
 0x4c8   :  { %9187 = vmatpush3.bf16.msra.mxu1 %v9722_v34 }
 0x4c9   :  { %9188 = vmatprep.subr.bf16.mxu1 %v9723_v6  ;;  %v9733_v6 = vld [vmem:[%s15697_s3 + $0x588] ss:$12 sps:$4 sm:$0xff]  }
 0x4cb   :  { %6073 = vmatmul.mubr.bf16.gmra.mxu1 %v14162_v16 }
 0x4cc   :  { %8718 = vmatprep.mubr.msk.bf16.mxu1 %vm3961_vm4, %v16774_v50  ;;  %9189 = vmatpush3.bf16.msra.mxu1 %v9727_v31  ;;  %v5143_v1 = vpop.f32.mrf.mxu0 }
 0x4cd   :  { %9190 = vmatprep.subr.bf16.mxu1 %v9728_v17 }
 0x4ce   :  { %v5145_v21 = vpop.f32.mrf.mxu0 }
 0x4d0   :  { %9191 = vmatpush3.bf16.msra.mxu1 %v9732_v47  ;;  %v5147_v40 = vpop.f32.mrf.mxu0 }
 0x4d1   :  { %6806 = vmatprep.subr.bf16.mxu1 %v9735_v38  ;;  %v9736_v38 = vld [vmem:[%s15697_s3 + $0x230] ss:$12 sps:$4 sm:$0xff]  }
 0x4d2   :  { %v14530_v51 = vpop.f32.mrf.mxu0 }
 0x4d3   :  { %6083 = vmatmul.mubr.bf16.gmra.mxu1 %v14197_v36  ;;  %16775 = vst [vmem:[#allocation243_spill] sm:$0xff] %v14530_v51 }
 0x4d4   :  { %8719 = vmatprep.mubr.msk.bf16.mxu1 %vm3961_vm4, %v14513_v57 }
 0x4db   :  { %6093 = vmatmul.mubr.bf16.gmra.mxu1 %v14520_v55 }
 0x4e4   :  { %v5153_v27 = vpop.f32.mrf.mxu0 }
 0x4e6   :  { %v5155_v18 = vpop.f32.mrf.mxu0 }
 0x4eb   :  { %v3767_v35 = vpop.permute.xlu0 %3766 }
 0x4ec   :  { %v4070_v43 = vsel %vm3961_vm4, %v14224_v5, %v3767_v35  ;;  %v5157_v35 = vpop.f32.mrf.mxu0 }
 0x4ef   :  { %v5232_v62 = vpop.f32.mrf.mxu1  ;;  %v3806_v52 = vpop.permute.xlu0 %3805 }
 0x4f0   :  { %v14523_v41 = vadd.f32 %v5232_v62, %v5143_v1  ;;  %v3663_v7 = vpop.permute.xlu1 %3662  ;;  %v4108_v63 = vsel %vm4001_vm5, %v4070_v43, %v3806_v52  ;;  %v9739_v1 = vld [vmem:[%s15697_s3 + $0x574] ss:$12 sps:$4 sm:$0xff]   ;;  %v9737_v52 = vld [vmem:[%s15697_s3 + $0x570] ss:$12 sps:$4 sm:$0xff]   ;;  %v9743_v43 = vld [vmem:[%s15697_s3 + $0x218] ss:$12 sps:$4 sm:$0xff]  }
 0x4f1   :  { %v5234_v23 = vpop.f32.mrf.mxu1  ;;  %v3964_v60 = vsel %vm3961_vm4, %v14245_v9, %v3663_v7  ;;  %v16777_v9 = vld [vmem:[#allocation81_spill] sm:$0xff] }
 0x4f2   :  { %v14527_v20 = vadd.f32 %v5234_v23, %v5145_v21 }
 0x4f3   :  { %v5236_v37 = vpop.f32.mrf.mxu1  ;;  %v3832_v29 = vpop.permute.xlu0 %3831 }
 0x4f4   :  { %v14532_v61 = vadd.f32 %v5236_v37, %v5147_v40  ;;  %v4134_v11 = vsel %vm3388_vm3, %v4108_v63, %v3832_v29  ;;  %v3702_v42 = vpop.permute.xlu1 %3701  ;;  %v14574_v63 = vpop.f32.mrf.mxu0 }
 0x4f5   :  { %v4277_v32 = vmax.bf16 %v16669_v48, %v4134_v11  ;;  %v4003_v53 = vsel %vm4001_vm5, %v3964_v60, %v3702_v42  ;;  %v14568_v7 = vpop.f32.mrf.mxu1  ;;  %16779 = vst [vmem:[#allocation244_spill] sm:$0xff] %v14574_v63 }
 0x4f6   :  { %16778 = vst [vmem:[#allocation83_spill] sm:$0xff] %v14568_v7 }
 0x4f7   :  { %v3383_v5 = vpop.permute.xlu0 %3382  ;;  %v8613_v44 = vcombine.low %v4277_v32, %v16776_v10  ;;  %v9740_v32 = vld [vmem:[%s15697_s3 + $0x558] ss:$12 sps:$4 sm:$0xff]  }
 0x4f8   :  { %v3728_v25 = vpop.permute.xlu1 %3727  ;;  %v14584_v60 = vpop.f32.mrf.mxu0 }
 0x4f9   :  { %v4030_v24 = vsel %vm3388_vm3, %v4003_v53, %v3728_v25  ;;  %5953 = vmatprep.mubr.bf16.mxu0 %v8613_v44  ;;  %6131 = vmatprep.mubr.bf16.mxu1 %v8613_v44 }
 0x4fa   :  { %v4276_v0 = vmax.bf16 %v16669_v48, %v4030_v24 }
 0x4fb   :  { %v14542_v34 = vpop.permute.xlu0 %3386 }
 0x4fc   :  { %v8612_v31 = vcombine.low %v4276_v0, %v16777_v9  ;;  %v3385_v17 = vpop.permute.xlu1 %3384  ;;  %v16780_v0 = vld [vmem:[#allocation236_spill] sm:$0xff] }
 0x4fd   :  { %v3465_v47 = vsel %vm3388_vm3, %v3383_v5, %v3385_v17 }
 0x4fe   :  { %v14556_v21 = vmax.bf16 %v3465_v47, %v16762_v4  ;;  %5954 = vmatmul.mubr.bf16.vlgmr.msra.gmra.mxu0 %v8612_v31  ;;  %6132 = vmatmul.mubr.bf16.vlgmr.msra.gmra.mxu1 %v8612_v31  ;;  %v9742_v4 = vld [vmem:[%s15697_s3 + $0x55c] ss:$12 sps:$4 sm:$0xff]  }
 0x4ff   :  { %6807 = vmatpush1.bf16.msra.mxu1 %v9733_v6  ;;  %5963 = vmatprep.mubr.bf16.mxu0 %v13916_v14  ;;  %v3381_v62 = vpop.permute.xlu0 %3380  ;;  %v3466_v6 = vsel %vm3388_vm3, %v3385_v17, %v14542_v34  ;;  %v9750_v17 = vld [vmem:[%s15697_s3 + $0x52c] ss:$12 sps:$4 sm:$0xff]  }
 0x500   :  { %6139 = vmatprep.mubr.bf16.mxu1 %v13916_v14  ;;  %3894 = vrot.lane.b32.xlu1 %v14556_v21, %s9945_s21  ;;  %v3379_v40 = vpop.permute.xlu1 %3378  ;;  %v3464_v29 = vsel %vm3388_vm3, %v3381_v62, %v3383_v5  ;;  %v9746_v5 = vld [vmem:[%s15697_s3 + $0x544] ss:$12 sps:$4 sm:$0xff]  }
 0x501   :  { %v3463_v23 = vsel %vm3388_vm3, %v3379_v40, %v3381_v62  ;;  %6179 = vmatpush1.bf16.msra.mxu0 %v9736_v38  ;;  %6808 = vmatprep.subr.bf16.mxu1 %v9739_v1  ;;  %v3645_v25 = vmax.bf16 %v3464_v29, %v16764_v30  ;;  %v9744_v30 = vld [vmem:[%s15697_s3 + $0x540] ss:$12 sps:$4 sm:$0xff]   ;;  %v3647_v38 = vmax.bf16 %v3466_v6, %v14300_v19 }
 0x502   :  { %v14577_v37 = vmax.bf16 %v3463_v23, %v16765_v12  ;;  %6180 = vmatprep.subr.bf16.mxu0 %v16669_v48  ;;  %v16781_v19 = vld [vmem:[#allocation78_spill] sm:$0xff]  ;;  %v9755_v23 = vld [vmem:[%s15697_s3 + $0x1d0] ss:$12 sps:$4 sm:$0xff]  }
 0x503   :  { %6809 = vmatpush1.bf16.msra.mxu1 %v9737_v52  ;;  %v5242_v11 = vpop.f32.mrf.mxu1  ;;  %v3377_v42 = vpop.permute.xlu0 %3376  ;;  %v9751_v52 = vld [vmem:[%s15697_s3 + $0x1e8] ss:$12 sps:$4 sm:$0xff]  }
 0x504   :  { %v14586_v10 = vadd.f32 %v5242_v11, %v5153_v27  ;;  %3790 = vrot.lane.b32.xlu0 %v14577_v37, %s9945_s21  ;;  %v3375_v12 = vpop.permute.xlu1 %3374  ;;  %6810 = vmatprep.subr.bf16.mxu1 %v9742_v4  ;;  %v3462_v31 = vsel %vm3388_vm3, %v3377_v42, %v3379_v40  ;;  %v9752_v40 = vld [vmem:[%s15697_s3 + $0x510] ss:$12 sps:$4 sm:$0xff]   ;;  %v9756_v11 = vld [vmem:[%s15697_s3 + $0x4f8] ss:$12 sps:$4 sm:$0xff]  }
 0x505   :  { %v3461_v44 = vsel %vm3388_vm3, %v3375_v12, %v3377_v42  ;;  %v5244_v53 = vpop.f32.mrf.mxu1  ;;  %6181 = vmatpush1.bf16.msra.mxu0 %v9743_v43  ;;  %v3643_v1 = vmax.bf16 %v3462_v31, %v16766_v28  ;;  %v9754_v28 = vld [vmem:[%s15697_s3 + $0x514] ss:$12 sps:$4 sm:$0xff]   ;;  %v9758_v43 = vld [vmem:[%s15697_s3 + $0x4fc] ss:$12 sps:$4 sm:$0xff]   ;;  %v9759_v42 = vld [vmem:[%s15697_s3 + $0x1b8] ss:$12 sps:$4 sm:$0xff]  }
 0x506   :  { %v14596_v24 = vmax.bf16 %v3461_v44, %v16767_v13  ;;  %v14598_v27 = vadd.f32 %v5244_v53, %v5155_v18  ;;  %5964 = vmatmul.mubr.bf16.gmra.mxu0 %v16780_v0  ;;  %6140 = vmatmul.mubr.bf16.gmra.mxu1 %v16780_v0  ;;  %v9747_v13 = vld [vmem:[%s15697_s3 + $0x200] ss:$12 sps:$4 sm:$0xff]   ;;  %v5165_v18 = vpop.f32.mrf.mxu0  ;;  %v9762_v12 = vld [vmem:[%s15697_s3 + $0x4e4] ss:$12 sps:$4 sm:$0xff]  }
 0x507   :  { %6811 = vmatpush1.bf16.msra.mxu1 %v9740_v32  ;;  %5973 = vmatprep.mubr.bf16.mxu0 %v13985_v15  ;;  %v5246_v9 = vpop.f32.mrf.mxu1  ;;  %v16784_v53 = vld [vmem:[#allocation79_spill] sm:$0xff] }
 0x508   :  { %6147 = vmatprep.mubr.bf16.mxu1 %v13985_v15  ;;  %v14613_v47 = vadd.f32 %v5246_v9, %v5157_v35  ;;  %3829 = vrot.lane.b32.xlu0 %v3645_v25, %s9946_s2  ;;  %v9748_v35 = vld [vmem:[%s15697_s3 + $0x528] ss:$12 sps:$4 sm:$0xff]   ;;  %v5167_v62 = vpop.f32.mrf.mxu0  ;;  %v9765_v9 = vld [vmem:[%s15697_s3 + $0x64c] ss:$12 sps:$4 sm:$0xff]  }
 0x509   :  { %3686 = vrot.lane.b32.xlu1 %v14596_v24, %s9945_s21  ;;  %6812 = vmatprep.subr.bf16.mxu1 %v9746_v5  ;;  %v14662_v32 = vpop.f32.mrf.mxu1 }
 0x50a   :  { %6182 = vmatprep.subr.bf16.mxu0 %v16669_v48  ;;  %v14642_v4 = vpop.f32.mrf.mxu0  ;;  %16783 = vst [vmem:[#allocation245_spill] sm:$0xff] %v14662_v32 }
 0x50b   :  { %6813 = vmatpush1.bf16.msra.mxu1 %v9744_v30  ;;  %6183 = vmatpush1.bf16.msra.mxu0 %v9747_v13  ;;  %16782 = vst [vmem:[#allocation84_spill] sm:$0xff] %v14642_v4  ;;  %v9766_v30 = vld [vmem:[%s15697_s3 + $0x1a0] ss:$12 sps:$4 sm:$0xff]  }
 0x50c   :  { %3933 = vrot.lane.b32.xlu0 %v3647_v38, %s9946_s2  ;;  %6814 = vmatprep.subr.bf16.mxu1 %v9750_v17  ;;  %v14653_v29 = vpop.f32.mrf.mxu0 }
 0x50d   :  { %3725 = vrot.lane.b32.xlu1 %v3643_v1, %s9946_s2  ;;  %6184 = vmatprep.subr.bf16.mxu0 %v16669_v48 }
 0x50e   :  { %5974 = vmatmul.mubr.bf16.gmra.mxu0 %v16781_v19  ;;  %6148 = vmatmul.mubr.bf16.gmra.mxu1 %v16781_v19  ;;  %v14669_v44 = vpop.f32.mrf.mxu0 }
 0x50f   :  { %6815 = vmatpush1.bf16.msra.mxu1 %v9748_v35  ;;  %5983 = vmatprep.mubr.bf16.mxu0 %v14057_v59  ;;  %v9769_v35 = vld [vmem:[%s15697_s3 + $0x634] ss:$12 sps:$4 sm:$0xff]  }
 0x510   :  { %6155 = vmatprep.mubr.bf16.mxu1 %v14057_v59  ;;  %6185 = vmatpush1.bf16.msra.mxu0 %v9751_v52  ;;  %v14688_v31 = vpop.f32.mrf.mxu0  ;;  %v8633_v52 = vcombine.low %v14110_v33, %v14110_v33 }
 0x511   :  { %3855 = vrot.lane.b32.xlu0 %v3645_v25, %s9947_s24  ;;  %3959 = vrot.lane.b32.xlu1 %v3647_v38, %s9947_s24  ;;  %v9760_v25 = vld [vmem:[%s15697_s3 + $0x4e0] ss:$12 sps:$4 sm:$0xff]   ;;  %v9763_v38 = vld [vmem:[%s15697_s3 + $0x648] ss:$12 sps:$4 sm:$0xff]  }
 0x512   :  { %6816 = vmatprep.subr.bf16.mxu1 %v9754_v28  ;;  %6186 = vmatprep.subr.bf16.mxu0 %v16669_v48  ;;  %v14706_v28 = vpop.f32.mrf.mxu0 }
 0x513   :  { %6817 = vmatpush1.bf16.msra.mxu1 %v9752_v40  ;;  %16785 = vst [vmem:[#allocation85_spill] sm:$0xff] %v14706_v28  ;;  %v16786_v40 = vld [vmem:[#allocation80_spill] sm:$0xff] }
 0x514   :  { %6187 = vmatpush1.bf16.msra.mxu0 %v9755_v23  ;;  %6818 = vmatprep.subr.bf16.mxu1 %v9758_v43  ;;  %v9773_v23 = vld [vmem:[%s15697_s3 + $0x61c] ss:$12 sps:$4 sm:$0xff]   ;;  %v9774_v43 = vld [vmem:[%s15697_s3 + $0x260] ss:$12 sps:$4 sm:$0xff]  }
 0x515   :  { %3751 = vrot.lane.b32.xlu1 %v3643_v1, %s9947_s24  ;;  %6188 = vmatprep.subr.bf16.mxu0 %v16669_v48 }
 0x516   :  { %5984 = vmatmul.mubr.bf16.gmra.mxu0 %v16784_v53  ;;  %6156 = vmatmul.mubr.bf16.gmra.mxu1 %v16784_v53 }
 0x517   :  { %6819 = vmatpush1.bf16.msra.mxu1 %v9756_v11  ;;  %5993 = vmatprep.mubr.bf16.mxu0 %v14129_v39  ;;  %v5252_v5 = vpop.f32.mrf.mxu1 }
 0x518   :  { %6163 = vmatprep.mubr.bf16.mxu1 %v14129_v39  ;;  %v14679_v6 = vadd.f32 %v5252_v5, %v14584_v60  ;;  %6189 = vmatpush1.bf16.msra.mxu0 %v9759_v42  ;;  %v9771_v42 = vld [vmem:[%s15697_s3 + $0x618] ss:$12 sps:$4 sm:$0xff]  }
 0x519   :  { %6820 = vmatprep.subr.bf16.mxu1 %v9762_v12  ;;  %v5254_v13 = vpop.f32.mrf.mxu1  ;;  %6190 = vmatprep.subr.bf16.mxu0 %v16669_v48  ;;  %v8632_v12 = vcombine.low %v13874_v45, %v13874_v45  ;;  %v9775_v45 = vld [vmem:[%s15697_s3 + $0x600] ss:$12 sps:$4 sm:$0xff]  }
 0x51a   :  { %v14690_v17 = vadd.f32 %v5254_v13, %v5165_v18  ;;  %v9770_v18 = vld [vmem:[%s15697_s3 + $0x188] ss:$12 sps:$4 sm:$0xff]   ;;  %v9784_v13 = vld [vmem:[%s15697_s3 + $0x70c] ss:$12 sps:$4 sm:$0xff]  }
 0x51b   :  { %6821 = vmatpush1.bf16.msra.mxu1 %v9760_v25  ;;  %v5256_v60 = vpop.f32.mrf.mxu1  ;;  %v9777_v25 = vld [vmem:[%s15697_s3 + $0x604] ss:$12 sps:$4 sm:$0xff]  }
 0x51c   :  { %v14695_v1 = vadd.f32 %v5256_v60, %v5167_v62  ;;  %6822 = vmatprep.subr.bf16.mxu1 %v9765_v9  ;;  %6191 = vmatpush1.bf16.msra.mxu0 %v9766_v30  ;;  %v9767_v62 = vld [vmem:[%s15697_s3 + $0x630] ss:$12 sps:$4 sm:$0xff]   ;;  %v9778_v30 = vld [vmem:[%s15697_s3 + $0x248] ss:$12 sps:$4 sm:$0xff]  }
 0x51d   :  { %6192 = vmatprep.subr.bf16.mxu0 %v16669_v48 }
 0x51e   :  { %5994 = vmatmul.mubr.bf16.gmra.mxu0 %v16786_v40  ;;  %6164 = vmatmul.mubr.bf16.gmra.mxu1 %v16786_v40 }
 0x51f   :  { %6823 = vmatpush2.bf16.msra.mxu1 %v9763_v38  ;;  %6003 = vmatprep.mubr.bf16.mxu0 %v8633_v52  ;;  %v9781_v38 = vld [vmem:[%s15697_s3 + $0x5ec] ss:$12 sps:$4 sm:$0xff]  }
 0x520   :  { %6171 = vmatprep.mubr.bf16.mxu1 %v8633_v52  ;;  %v5183_v33 = vpop.f32.mrf.mxu0  ;;  %6824 = vmatprep.subr.bf16.mxu1 %v9769_v35  ;;  %v14749_v35 = vpop.f32.mrf.mxu1 }
 0x521   :  { %6193 = vmatpush1.bf16.msra.mxu0 %v9770_v18  ;;  %16788 = vst [vmem:[#allocation86_spill] sm:$0xff] %v14749_v35  ;;  %v9779_v18 = vld [vmem:[%s15697_s3 + $0x5e8] ss:$12 sps:$4 sm:$0xff]  }
 0x522   :  { %v14719_v11 = vpop.f32.mrf.mxu0  ;;  %6206 = vmatprep.subr.bf16.mxu0 %v16669_v48 }
 0x523   :  { %6825 = vmatpush2.bf16.msra.mxu1 %v9767_v62 }
 0x524   :  { %v14727_v5 = vpop.f32.mrf.mxu0  ;;  %6826 = vmatprep.subr.bf16.mxu1 %v9773_v23 }
 0x525   :  { %6207 = vmatpush2.bf16.msra.mxu0 %v9774_v43  ;;  %v9782_v43 = vld [vmem:[%s15697_s3 + $0x708] ss:$12 sps:$4 sm:$0xff]  }
 0x526   :  { %6004 = vmatmul.mubr.bf16.gmra.mxu0 %v8632_v12  ;;  %6172 = vmatmul.mubr.bf16.gmra.mxu1 %v8632_v12  ;;  %v14732_v9 = vpop.f32.mrf.mxu0 }
 0x527   :  { %16787 = vst [vmem:[#allocation246_spill] sm:$0xff] %v14732_v9  ;;  %6827 = vmatpush2.bf16.msra.mxu1 %v9771_v42  ;;  %8720 = vmatprep.mubr.msk.bf16.mxu0 %vm3961_vm4, %v14435_v56  ;;  %v9787_v42 = vld [vmem:[%s15697_s3 + $0x5d4] ss:$12 sps:$4 sm:$0xff]  }
 0x528   :  { %6838 = vmatprep.mubr.bf16.mxu1 %v13916_v14  ;;  %v5193_v60 = vpop.f32.mrf.mxu0  ;;  %6828 = vmatprep.subr.bf16.mxu1 %v9777_v25  ;;  %v9793_v25 = vld [vmem:[%s15697_s3 + $0x6f4] ss:$12 sps:$4 sm:$0xff]  }
 0x529   :  { %6208 = vmatprep.subr.bf16.mxu0 %v16669_v48 }
 0x52a   :  { %v5194_v56 = vpop.f32.mrf.mxu0  ;;  %6209 = vmatpush2.bf16.msra.mxu0 %v9778_v30 }
 0x52b   :  { %6829 = vmatpush2.bf16.msra.mxu1 %v9775_v45  ;;  %v5262_v52 = vpop.f32.mrf.mxu1  ;;  %6895 = vmatprep.subr.bf16.mxu0 %v9784_v13  ;;  %v9785_v13 = vld [vmem:[%s15697_s3 + $0x5d0] ss:$12 sps:$4 sm:$0xff]  }
 0x52c   :  { %v14756_v62 = vadd.f32 %v5262_v52, %v14653_v29  ;;  %v5195_v23 = vpop.f32.mrf.mxu0  ;;  %6830 = vmatprep.subr.bf16.mxu1 %v9781_v38  ;;  %v9799_v52 = vld [vmem:[%s15697_s3 + $0x6dc] ss:$12 sps:$4 sm:$0xff]  }
 0x52d   :  { %v5264_v12 = vpop.f32.mrf.mxu1 }
 0x52e   :  { %v14768_v30 = vadd.f32 %v5264_v12, %v14669_v44  ;;  %6211 = vmatmul.mubr.bf16.vlgmr.msra.gmra.mxu0 %v14451_v46  ;;  %v5196_v29 = vpop.f32.mrf.mxu0  ;;  %v9790_v46 = vld [vmem:[%s15697_s3 + $0x5bc] ss:$12 sps:$4 sm:$0xff]  }
 0x52f   :  { %6831 = vmatpush2.bf16.msra.mxu1 %v9779_v18  ;;  %8721 = vmatprep.mubr.msk.bf16.mxu0 %vm3961_vm4, %v16771_v26  ;;  %v5266_v45 = vpop.f32.mrf.mxu1  ;;  %v9791_v44 = vld [vmem:[%s15697_s3 + $0x6f0] ss:$12 sps:$4 sm:$0xff]   ;;  %v9797_v29 = vld [vmem:[%s15697_s3 + $0x6d8] ss:$12 sps:$4 sm:$0xff]  }
 0x530   :  { %v14777_v60 = vadd.f32 %v5266_v45, %v14688_v31  ;;  %v9140_v38 = vpop.f32.mrf.mxu0  ;;  %6832 = vmatprep.subr.bf16.mxu1 %v9787_v42  ;;  %6896 = vmatpush1.bf16.msra.mxu0 %v9782_v43  ;;  %v9788_v43 = vld [vmem:[%s15697_s3 + $0x5b8] ss:$12 sps:$4 sm:$0xff]  }
 0x531   :  { %v14785_v56 = vpop.f32.mrf.mxu1  ;;  %6897 = vmatprep.subr.bf16.mxu0 %v9793_v25  ;;  %v9796_v25 = vld [vmem:[%s15697_s3 + $0x5a4] ss:$12 sps:$4 sm:$0xff]  }
 0x532   :  { %16789 = vst [vmem:[#allocation247_spill] sm:$0xff] %v14785_v56  ;;  %v9141_v31 = vpop.f32.mrf.mxu0 }
 0x533   :  { %6833 = vmatpush2.bf16.msra.mxu1 %v9785_v13  ;;  %v9142_v18 = vadd.f32 %v9141_v31, %v9140_v38  ;;  %v5272_v23 = vpop.f32.mrf.mxu1  ;;  %v9802_v13 = vld [vmem:[%s15697_s3 + $0x6c4] ss:$12 sps:$4 sm:$0xff]  }
 0x534   :  { %v14793_v42 = vadd.f32 %v5272_v23, %v5183_v33  ;;  %v14795_v12 = vpop.f32.mrf.mxu0  ;;  %6834 = vmatprep.subr.bf16.mxu1 %v9790_v46  ;;  %6898 = vmatpush1.bf16.msra.mxu0 %v9791_v44  ;;  %v9794_v44 = vld [vmem:[%s15697_s3 + $0x5a0] ss:$12 sps:$4 sm:$0xff]  }
 0x535   :  { %v5274_v45 = vpop.f32.mrf.mxu1  ;;  %6899 = vmatprep.subr.bf16.mxu0 %v9799_v52 }
 0x536   :  { %v14807_v33 = vadd.f32 %v5274_v45, %v14719_v11  ;;  %6219 = vmatmul.mubr.bf16.gmra.mxu0 %v14028_v58  ;;  %v9144_v38 = vpop.f32.mrf.mxu0  ;;  %v9800_v11 = vld [vmem:[%s15697_s3 + $0x6c0] ss:$12 sps:$4 sm:$0xff]  }
 0x537   :  { %6835 = vmatpush2.bf16.msra.mxu1 %v9788_v43  ;;  %8722 = vmatprep.mubr.msk.bf16.mxu0 %vm3961_vm4, %v16772_v22  ;;  %v5276_v46 = vpop.f32.mrf.mxu1  ;;  %v9805_v43 = vld [vmem:[%s15697_s3 + $0x6ac] ss:$12 sps:$4 sm:$0xff]  }
 0x538   :  { %v14816_v52 = vadd.f32 %v5276_v46, %v14727_v5  ;;  %v9146_v31 = vpop.f32.mrf.mxu0  ;;  %6836 = vmatprep.subr.bf16.mxu1 %v9796_v25  ;;  %6900 = vmatpush1.bf16.msra.mxu0 %v9797_v29  ;;  %v9803_v25 = vld [vmem:[%s15697_s3 + $0x6a8] ss:$12 sps:$4 sm:$0xff]   ;;  %v9823_v29 = vld [vmem:[%s15697_s3 + $0x710] ss:$12 sps:$4 sm:$0xff]  }
 0x539   :  { %v14821_v23 = vpop.f32.mrf.mxu1  ;;  %6901 = vmatprep.subr.bf16.mxu0 %v9802_v13  ;;  %v9808_v46 = vld [vmem:[%s15697_s3 + $0x694] ss:$12 sps:$4 sm:$0xff]  }
 0x53a   :  { %16790 = vst [vmem:[#allocation87_spill] sm:$0xff] %v14816_v52  ;;  %16791 = vst [vmem:[#allocation248_spill] sm:$0xff] %v14821_v23  ;;  %v9147_v45 = vpop.f32.mrf.mxu0 }
 0x53b   :  { %6837 = vmatpush2.bf16.msra.mxu1 %v9794_v44  ;;  %v9148_v9 = vadd.f32 %v9147_v45, %v9146_v31  ;;  %v5282_v56 = vpop.f32.mrf.mxu1 }
 0x53c   :  { %v14826_v5 = vpop.f32.mrf.mxu0  ;;  %6902 = vmatpush1.bf16.msra.mxu0 %v9800_v11  ;;  %7063 = vmatprep.subr.bf16.mxu1 %v16669_v48  ;;  %v9806_v11 = vld [vmem:[%s15697_s3 + $0x690] ss:$12 sps:$4 sm:$0xff]  }
 0x53d   :  { %v5283_v13 = vpop.f32.mrf.mxu1  ;;  %6903 = vmatprep.subr.bf16.mxu0 %v9805_v43  ;;  %v9826_v43 = vld [vmem:[%s15697_s3 + $0x6f8] ss:$12 sps:$4 sm:$0xff]  }
 0x53e   :  { %6839 = vmatmul.mubr.bf16.vlgmr.msra.gmra.mxu1 %v16780_v0  ;;  %6227 = vmatmul.mubr.bf16.gmra.mxu0 %v14106_v2  ;;  %v9150_v56 = vpop.f32.mrf.mxu0  ;;  %v9811_v13 = vld [vmem:[%s15697_s3 + $0x67c] ss:$12 sps:$4 sm:$0xff]  }
 0x53f   :  { %6848 = vmatprep.mubr.bf16.mxu1 %v13985_v15  ;;  %8723 = vmatprep.mubr.msk.bf16.mxu0 %vm3961_vm4, %v16773_v49  ;;  %v5284_v44 = vpop.f32.mrf.mxu1 }
 0x540   :  { %v9152_v31 = vpop.f32.mrf.mxu0  ;;  %6904 = vmatpush1.bf16.msra.mxu0 %v9803_v25  ;;  %7064 = vmatpush1.bf16.msra.mxu1 %v9823_v29  ;;  %v9809_v29 = vld [vmem:[%s15697_s3 + $0x678] ss:$12 sps:$4 sm:$0xff]  }
 0x541   :  { %v5285_v45 = vpop.f32.mrf.mxu1  ;;  %6905 = vmatprep.subr.bf16.mxu0 %v9808_v46  ;;  %7065 = vmatprep.subr.bf16.mxu1 %v16669_v48  ;;  %v9829_v46 = vld [vmem:[%s15697_s3 + $0x6e0] ss:$12 sps:$4 sm:$0xff]  }
 0x542   :  { %v9153_v44 = vpop.f32.mrf.mxu0 }
 0x543   :  { %v9154_v23 = vadd.f32 %v9153_v44, %v9152_v31  ;;  %v5400_v25 = vpop.f32.mrf.mxu1  ;;  %v9814_v31 = vld [vmem:[%s15697_s3 + $0x664] ss:$12 sps:$4 sm:$0xff]  }
 0x544   :  { %v14853_v28 = vadd.f32 %v9142_v18, %v5400_v25  ;;  %v14855_v35 = vpop.f32.mrf.mxu0  ;;  %6906 = vmatpush1.bf16.msra.mxu0 %v9806_v11  ;;  %7066 = vmatpush1.bf16.msra.mxu1 %v9826_v43  ;;  %v9145_v18 = vadd.f32 %v9144_v38, %v14795_v12  ;;  %v9812_v25 = vld [vmem:[%s15697_s3 + $0x660] ss:$12 sps:$4 sm:$0xff]   ;;  %v9832_v12 = vld [vmem:[%s15697_s3 + $0x6c8] ss:$12 sps:$4 sm:$0xff]  }
 0x545   :  { %v5402_v45 = vpop.f32.mrf.mxu1  ;;  %6907 = vmatprep.subr.bf16.mxu0 %v9811_v13  ;;  %7067 = vmatprep.subr.bf16.mxu1 %v16669_v48 }
 0x546   :  { %6849 = vmatmul.mubr.bf16.gmra.mxu1 %v16781_v19  ;;  %6235 = vmatmul.mubr.bf16.gmra.mxu0 %v14162_v16  ;;  %v9156_v11 = vpop.f32.mrf.mxu0  ;;  %v9817_v45 = vld [vmem:[%s15697_s3 + $0x73c] ss:$12 sps:$4 sm:$0xff]  }
 0x547   :  { %6858 = vmatprep.mubr.bf16.mxu1 %v14057_v59  ;;  %8724 = vmatprep.mubr.msk.bf16.mxu0 %vm3961_vm4, %v16774_v50  ;;  %v5403_v43 = vpop.f32.mrf.mxu1 }
 0x548   :  { %v14873_v13 = vadd.f32 %v9145_v18, %v5403_v43  ;;  %v9158_v44 = vpop.f32.mrf.mxu0  ;;  %6908 = vmatpush1.bf16.msra.mxu0 %v9809_v29  ;;  %7068 = vmatpush1.bf16.msra.mxu1 %v9829_v46  ;;  %v9815_v46 = vld [vmem:[%s15697_s3 + $0x738] ss:$12 sps:$4 sm:$0xff]  }
 0x549   :  { %v5405_v38 = vpop.f32.mrf.mxu1  ;;  %6909 = vmatprep.subr.bf16.mxu0 %v9814_v31  ;;  %7069 = vmatprep.subr.bf16.mxu1 %v16669_v48  ;;  %v9835_v31 = vld [vmem:[%s15697_s3 + $0x6b0] ss:$12 sps:$4 sm:$0xff]  }
 0x54a   :  { %v9159_v18 = vpop.f32.mrf.mxu0 }
 0x54b   :  { %v9160_v43 = vadd.f32 %v9159_v18, %v9158_v44  ;;  %v5408_v29 = vpop.f32.mrf.mxu1  ;;  %v9820_v44 = vld [vmem:[%s15697_s3 + $0x724] ss:$12 sps:$4 sm:$0xff]  }
 0x54c   :  { %v14885_v4 = vadd.f32 %v9148_v9, %v5408_v29  ;;  %v9161_v32 = vpop.f32.mrf.mxu0  ;;  %6910 = vmatpush1.bf16.msra.mxu0 %v9812_v25  ;;  %7070 = vmatpush1.bf16.msra.mxu1 %v9832_v12  ;;  %v9151_v9 = vadd.f32 %v9150_v56, %v14826_v5  ;;  %v9818_v29 = vld [vmem:[%s15697_s3 + $0x720] ss:$12 sps:$4 sm:$0xff]   ;;  %v9836_v5 = vld [vmem:[%s15697_s3 + $0x698] ss:$12 sps:$4 sm:$0xff]  }
 0x54d   :  { %v5410_v38 = vpop.f32.mrf.mxu1  ;;  %6923 = vmatprep.subr.bf16.mxu0 %v9817_v45  ;;  %7071 = vmatprep.subr.bf16.mxu1 %v16669_v48 }
 0x54e   :  { %6859 = vmatmul.mubr.bf16.gmra.mxu1 %v16784_v53  ;;  %6243 = vmatmul.mubr.bf16.gmra.mxu0 %v14197_v36  ;;  %v9162_v25 = vpop.f32.mrf.mxu0 }
 0x54f   :  { %6868 = vmatprep.mubr.bf16.mxu1 %v14129_v39  ;;  %8725 = vmatprep.mubr.msk.bf16.mxu0 %vm3961_vm4, %v14513_v57  ;;  %v5411_v12 = vpop.f32.mrf.mxu1  ;;  %v9821_v57 = vld [vmem:[%s15697_s3 + $0x650] ss:$12 sps:$4 sm:$0xff]  }
 0x550   :  { %v14903_v45 = vadd.f32 %v9151_v9, %v5411_v12  ;;  %v9164_v18 = vpop.f32.mrf.mxu0  ;;  %6924 = vmatpush2.bf16.msra.mxu0 %v9815_v46  ;;  %7072 = vmatpush1.bf16.msra.mxu1 %v9835_v31  ;;  %v9839_v31 = vld [vmem:[%s15697_s3 + $0x680] ss:$12 sps:$4 sm:$0xff]  }
 0x551   :  { %v5413_v56 = vpop.f32.mrf.mxu1  ;;  %6925 = vmatprep.subr.bf16.mxu0 %v9820_v44  ;;  %7073 = vmatprep.subr.bf16.mxu1 %v16669_v48  ;;  %v9157_v44 = vadd.f32 %v9156_v11, %v14855_v35 }
 0x552   :  { %v9165_v38 = vpop.f32.mrf.mxu0 }
 0x553   :  { %v9166_v9 = vadd.f32 %v9165_v38, %v9164_v18  ;;  %v5416_v46 = vpop.f32.mrf.mxu1  ;;  %v9822_v38 = vld [vmem:[%s15697_s3 + $0x590] ss:$12 sps:$4 sm:$0xff]  }
 0x554   :  { %v14915_v12 = vadd.f32 %v9154_v23, %v5416_v46  ;;  %v9167_v63 = vpop.f32.mrf.mxu0  ;;  %6926 = vmatpush2.bf16.msra.mxu0 %v9818_v29  ;;  %7074 = vmatpush1.bf16.msra.mxu1 %v9836_v5 }
 0x555   :  { %v5418_v56 = vpop.f32.mrf.mxu1  ;;  %9228 = vmatprep.subr.bf16.mxu0 %v9821_v57  ;;  %7075 = vmatprep.subr.bf16.mxu1 %v16669_v48  ;;  %v9842_v57 = vld [vmem:[%s15697_s3 + $0x668] ss:$12 sps:$4 sm:$0xff]  }
 0x556   :  { %6869 = vmatmul.mubr.bf16.gmra.mxu1 %v16786_v40  ;;  %6251 = vmatmul.mubr.bf16.gmra.mxu0 %v14520_v55  ;;  %v9168_v18 = vpop.f32.mrf.mxu0 }
 0x557   :  { %6878 = vmatprep.mubr.bf16.mxu1 %v14124_v54  ;;  %8916 = vmatprep.mubr.msk.bf16.mxu0 %vm3961_vm4, %v16771_v26  ;;  %v5419_v23 = vpop.f32.mrf.mxu1 }
 0x558   :  { %v14927_v29 = vadd.f32 %v9157_v44, %v5419_v23  ;;  %v9170_v5 = vpop.f32.mrf.mxu0  ;;  %7076 = vmatpush1.bf16.msra.mxu1 %v9839_v31  ;;  %v9824_v31 = vld [vmem:[%s15697_s3 + $0x638] ss:$12 sps:$4 sm:$0xff]   ;;  %v9845_v44 = vld [vmem:[%s15697_s3 + $0x740] ss:$12 sps:$4 sm:$0xff]  }
 0x559   :  { %v5421_v35 = vpop.f32.mrf.mxu1  ;;  %7077 = vmatprep.subr.bf16.mxu1 %v16669_v48  ;;  %v9163_v5 = vadd.f32 %v9162_v25, %v9161_v32  ;;  %v9827_v32 = vld [vmem:[%s15697_s3 + $0x620] ss:$12 sps:$4 sm:$0xff]   ;;  %v9846_v25 = vld [vmem:[%s15697_s3 + $0x728] ss:$12 sps:$4 sm:$0xff]  }
 0x55a   :  { %v9171_v11 = vpop.f32.mrf.mxu0  ;;  %v16792_v35 = vld [vmem:[#allocation82_spill] sm:$0xff] }
 0x55b   :  { %v5424_v55 = vpop.f32.mrf.mxu1 }
 0x55c   :  { %v14936_v46 = vadd.f32 %v9160_v43, %v5424_v55  ;;  %v9173_v56 = vpop.f32.mrf.mxu0  ;;  %7078 = vmatpush1.bf16.msra.mxu1 %v9842_v57  ;;  %v9825_v57 = vld [vmem:[%s15697_s3 + $0x578] ss:$12 sps:$4 sm:$0xff]  }
 0x55d   :  { %v5426_v23 = vpop.f32.mrf.mxu1  ;;  %7091 = vmatprep.subr.bf16.mxu1 %v16669_v48 }
 0x55e   :  { %6879 = vmatmul.mubr.bf16.gmra.mxu1 %v16792_v35  ;;  %6928 = vmatmul.mubr.bf16.vlgmr.msra.gmra.mxu0 %v14028_v58  ;;  %v9174_v43 = vpop.f32.mrf.mxu0  ;;  %v9828_v23 = vld [vmem:[%s15697_s3 + $0x560] ss:$12 sps:$4 sm:$0xff]  }
 0x55f   :  { %8917 = vmatprep.mubr.msk.bf16.mxu0 %vm3961_vm4, %v16772_v22  ;;  %v5427_v11 = vpop.f32.mrf.mxu1  ;;  %9229 = vmatpush3.bf16.msra.mxu0 %v9822_v38  ;;  %v9169_v43 = vadd.f32 %v9168_v18, %v9167_v63  ;;  %v9834_v18 = vld [vmem:[%s15697_s3 + $0x530] ss:$12 sps:$4 sm:$0xff]  }
 0x560   :  { %v14952_v55 = vadd.f32 %v9163_v5, %v5427_v11  ;;  %9230 = vmatprep.subr.bf16.mxu0 %v9824_v31  ;;  %7092 = vmatpush2.bf16.msra.mxu1 %v9845_v44  ;;  %v9830_v31 = vld [vmem:[%s15697_s3 + $0x608] ss:$12 sps:$4 sm:$0xff]  }
 0x561   :  { %v5429_v56 = vpop.f32.mrf.mxu1  ;;  %7093 = vmatprep.subr.bf16.mxu1 %v16669_v48 }
 0x562   :  { %v9837_v56 = vld [vmem:[%s15697_s3 + $0x5d8] ss:$12 sps:$4 sm:$0xff]  }
 0x563   :  { %v5432_v38 = vpop.f32.mrf.mxu1  ;;  %9231 = vmatpush3.bf16.msra.mxu0 %v9825_v57 }
 0x564   :  { %v14964_v5 = vadd.f32 %v9166_v9, %v5432_v38  ;;  %9232 = vmatprep.subr.bf16.mxu0 %v9827_v32  ;;  %7094 = vmatpush2.bf16.msra.mxu1 %v9846_v25  ;;  %v9831_v9 = vld [vmem:[%s15697_s3 + $0x548] ss:$12 sps:$4 sm:$0xff]   ;;  %v9833_v32 = vld [vmem:[%s15697_s3 + $0x5f0] ss:$12 sps:$4 sm:$0xff]  }
 0x565   :  { %v5434_v44 = vpop.f32.mrf.mxu1 }
 0x566   :  { %16793 = vst [vmem:[#allocation165_spill] sm:$0xff] %v14964_v5  ;;  %6938 = vmatmul.mubr.bf16.gmra.mxu0 %v14106_v2  ;;  %v9840_v44 = vld [vmem:[%s15697_s3 + $0x5c0] ss:$12 sps:$4 sm:$0xff]  }
 0x567   :  { %8918 = vmatprep.mubr.msk.bf16.mxu0 %vm3961_vm4, %v16773_v49  ;;  %v5435_v11 = vpop.f32.mrf.mxu1  ;;  %9233 = vmatpush3.bf16.msra.mxu0 %v9828_v23 }
 0x568   :  { %v14975_v57 = vadd.f32 %v9169_v43, %v5435_v11  ;;  %9234 = vmatprep.subr.bf16.mxu0 %v9830_v31  ;;  %v9838_v31 = vld [vmem:[%s15697_s3 + $0x518] ss:$12 sps:$4 sm:$0xff]  }
 0x569   :  { %v5437_v25 = vpop.f32.mrf.mxu1 }
 0x56a   :  { %16794 = vst [vmem:[#allocation10_spill] sm:$0xff] %v14975_v57  ;;  %v3648_v25 = vmax.bf16 %v14542_v34, %v16763_v3 }
 0x56b   :  { %v5440_v63 = vpop.f32.mrf.mxu1  ;;  %9235 = vmatpush3.bf16.msra.mxu0 %v9831_v9  ;;  %v9841_v9 = vld [vmem:[%s15697_s3 + $0x500] ss:$12 sps:$4 sm:$0xff]  }
 0x56c   :  { %9236 = vmatprep.subr.bf16.mxu0 %v9833_v32  ;;  %v9843_v32 = vld [vmem:[%s15697_s3 + $0x5a8] ss:$12 sps:$4 sm:$0xff]  }
 0x56d   :  { %v5441_v38 = vpop.f32.mrf.mxu1 }
 0x56e   :  { %6948 = vmatmul.mubr.bf16.gmra.mxu0 %v14162_v16  ;;  %v16797_v38 = vld [vmem:[#allocation240_spill] sm:$0xff] }
 0x56f   :  { %8919 = vmatprep.mubr.msk.bf16.mxu0 %vm3961_vm4, %v16774_v50  ;;  %v5442_v23 = vpop.f32.mrf.mxu1  ;;  %9237 = vmatpush3.bf16.msra.mxu0 %v9834_v18 }
 0x570   :  { %9238 = vmatprep.subr.bf16.mxu0 %v9837_v56 }
 0x571   :  { %v5443_v43 = vpop.f32.mrf.mxu1 }
 0x572   :  { %v3895_v56 = vpop.permute.xlu1 %3894 }
 0x573   :  { %v14995_v11 = vpop.f32.mrf.mxu1  ;;  %9239 = vmatpush3.bf16.msra.mxu0 %v9838_v31  ;;  %v9844_v31 = vld [vmem:[%s15697_s3 + $0x4e8] ss:$12 sps:$4 sm:$0xff]  }
 0x574   :  { %16795 = vst [vmem:[#allocation88_spill] sm:$0xff] %v14995_v11  ;;  %9240 = vmatprep.subr.bf16.mxu0 %v9840_v44  ;;  %v4327_v44 = vmax.bf16 %v16669_v48, %v3648_v25 }
 0x575   :  { %v15005_v63 = vpop.f32.mrf.mxu1 }
 0x576   :  { %16796 = vst [vmem:[#allocation249_spill] sm:$0xff] %v15005_v63  ;;  %6958 = vmatmul.mubr.bf16.gmra.mxu0 %v14197_v36  ;;  %v3791_v18 = vpop.permute.xlu0 %3790  ;;  %v15020_v11 = vcombine.low %v4327_v44, %v4327_v44 }
 0x577   :  { %8920 = vmatprep.mubr.msk.bf16.mxu0 %vm3961_vm4, %v16797_v38  ;;  %v15010_v23 = vpop.f32.mrf.mxu1  ;;  %9241 = vmatpush3.bf16.msra.mxu0 %v9841_v9 }
 0x578   :  { %16798 = vst [vmem:[#allocation89_spill] sm:$0xff] %v15010_v23  ;;  %9242 = vmatprep.subr.bf16.mxu0 %v9843_v32 }
 0x579   :  { %v15016_v3 = vpop.f32.mrf.mxu1 }
 0x57a   :  { %16799 = vst [vmem:[#allocation250_spill] sm:$0xff] %v15016_v3  ;;  %v3830_v34 = vpop.permute.xlu0 %3829  ;;  %v4210_v3 = vsel %vm3961_vm4, %v14556_v21, %v3895_v56 }
 0x57b   :  { %v3687_v43 = vpop.permute.xlu1 %3686  ;;  %v15018_v63 = vpop.f32.mrf.mxu1  ;;  %9243 = vmatpush3.bf16.msra.mxu0 %v9844_v31  ;;  %v4106_v31 = vsel %vm3961_vm4, %v14577_v37, %v3791_v18 }
 0x57c   :  { %16800 = vst [vmem:[#allocation166_spill] sm:$0xff] %v15018_v63  ;;  %v4132_v44 = vsel %vm4001_vm5, %v4106_v31, %v3830_v34  ;;  %v4000_v21 = vsel %vm3961_vm4, %v14596_v24, %v3687_v43 }
 0x57d   :  { %v15022_v7 = vpop.f32.mrf.mxu1 }
 0x57e   :  { %16801 = vst [vmem:[#allocation20_spill] sm:$0xff] %v15022_v7  ;;  %6968 = vmatmul.mubr.bf16.gmra.mxu0 %v14221_v8  ;;  %v3934_v9 = vpop.permute.xlu0 %3933 }
 0x57f   :  { %v3726_v23 = vpop.permute.xlu1 %3725  ;;  %8921 = vmatprep.mubr.msk.bf16.mxu0 %vm3961_vm4, %v15020_v11  ;;  %v15027_v32 = vpop.f32.mrf.mxu1  ;;  %v4236_v7 = vsel %vm4001_vm5, %v4210_v3, %v3934_v9 }
 0x580   :  { %16802 = vst [vmem:[#allocation167_spill] sm:$0xff] %v15027_v32  ;;  %v4027_v18 = vsel %vm4001_vm5, %v4000_v21, %v3726_v23 }
 0x581   :  { %v15029_v25 = vpop.f32.mrf.mxu1 }
 0x582   :  { %16803 = vst [vmem:[#allocation22_spill] sm:$0xff] %v15029_v25 }
 0x583   :  { %v3856_v63 = vpop.permute.xlu0 %3855  ;;  %v3960_v51 = vpop.permute.xlu1 %3959 }
 0x584   :  { %v4170_v57 = vsel %vm3388_vm3, %v4132_v44, %v3856_v63  ;;  %v4274_v5 = vsel %vm3388_vm3, %v4236_v7, %v3960_v51  ;;  %v15039_v52 = vpop.f32.mrf.mxu1 }
 0x585   :  { %v4325_v25 = vmax.bf16 %v16669_v48, %v4170_v57  ;;  %v4326_v32 = vmax.bf16 %v16669_v48, %v4274_v5 }
 0x586   :  { %v15045_v37 = vpop.f32.mrf.mxu1 }
 0x587   :  { %v8835_v56 = vcombine.low %v4325_v25, %v4325_v25  ;;  %v8836_v3 = vcombine.low %v4326_v32, %v4326_v32  ;;  %v3752_v34 = vpop.permute.xlu1 %3751 }
 0x588   :  { %v4066_v63 = vsel %vm3388_vm3, %v4027_v18, %v3752_v34  ;;  %v15049_v9 = vpop.f32.mrf.mxu1 }
 0x589   :  { %v4324_v51 = vmax.bf16 %v16669_v48, %v4066_v63  ;;  %6888 = vmatprep.mubr.bf16.mxu1 %v8835_v56  ;;  %6978 = vmatmul.mubr.bf16.gmra.mxu0 %v8836_v3 }
 0x58a   :  { %7016 = vmatprep.mubr.bf16.mxu0 %v13916_v14  ;;  %v15053_v7 = vpop.f32.mrf.mxu1 }
 0x58b   :  { %v8834_v24 = vcombine.low %v4324_v51, %v4324_v51 }
 0x58c   :  { %v15055_v5 = vpop.f32.mrf.mxu1 }
 0x58d   :  { %6889 = vmatmul.mubr.bf16.gmra.mxu1 %v8834_v24 }
 0x58e   :  { %8922 = vmatprep.mubr.msk.bf16.mxu1 %vm3961_vm4, %v16771_v26  ;;  %v15059_v57 = vpop.f32.mrf.mxu1 }
 0x590   :  { %v15061_v23 = vpop.f32.mrf.mxu1 }
 0x591   :  { %7017 = vmatmul.mubr.bf16.vlgmr.msra.gmra.mxu0 %v16780_v0 }
 0x592   :  { %7024 = vmatprep.mubr.bf16.mxu0 %v13985_v15  ;;  %v15065_v43 = vpop.f32.mrf.mxu1 }
 0x594   :  { %v15067_v14 = vpop.f32.mrf.mxu1 }
 0x595   :  { %7096 = vmatmul.mubr.bf16.vlgmr.msra.gmra.mxu1 %v14028_v58 }
 0x596   :  { %8923 = vmatprep.mubr.msk.bf16.mxu1 %vm3961_vm4, %v16772_v22  ;;  %v15072_v32 = vpop.f32.mrf.mxu1 }
 0x598   :  { %v15074_v26 = vpop.f32.mrf.mxu1 }
 0x599   :  { %7025 = vmatmul.mubr.bf16.gmra.mxu0 %v16781_v19 }
 0x59a   :  { %7032 = vmatprep.mubr.bf16.mxu0 %v14057_v59  ;;  %v15078_v0 = vpop.f32.mrf.mxu1 }
 0x59c   :  { %v6094_v15 = vpop.f32.mrf.mxu1 }
 0x59d   :  { %7104 = vmatmul.mubr.bf16.gmra.mxu1 %v14106_v2 }
 0x59e   :  { %8924 = vmatprep.mubr.msk.bf16.mxu1 %vm3961_vm4, %v16773_v49  ;;  %v6095_v58 = vpop.f32.mrf.mxu1 }
 0x5a0   :  { %v6096_v25 = vpop.f32.mrf.mxu1 }
 0x5a1   :  { %7033 = vmatmul.mubr.bf16.gmra.mxu0 %v16784_v53 }
 0x5a2   :  { %7040 = vmatprep.mubr.bf16.mxu0 %v14129_v39  ;;  %v6097_v22 = vpop.f32.mrf.mxu1 }
 0x5a5   :  { %7112 = vmatmul.mubr.bf16.gmra.mxu1 %v14162_v16 }
 0x5a6   :  { %8925 = vmatprep.mubr.msk.bf16.mxu1 %vm3961_vm4, %v16774_v50 }
 0x5a9   :  { %7041 = vmatmul.mubr.bf16.gmra.mxu0 %v16786_v40 }
 0x5aa   :  { %7048 = vmatprep.mubr.bf16.mxu0 %v14124_v54 }
 0x5ad   :  { %7120 = vmatmul.mubr.bf16.gmra.mxu1 %v14197_v36 }
 0x5ae   :  { %8926 = vmatprep.mubr.msk.bf16.mxu1 %vm3961_vm4, %v16797_v38 }
 0x5b1   :  { %7049 = vmatmul.mubr.bf16.gmra.mxu0 %v16792_v35 }
 0x5b2   :  { %7056 = vmatprep.mubr.bf16.mxu0 %v8835_v56 }
 0x5b5   :  { %7128 = vmatmul.mubr.bf16.gmra.mxu1 %v14221_v8 }
 0x5b6   :  { %8927 = vmatprep.mubr.msk.bf16.mxu1 %vm3961_vm4, %v15020_v11 }
 0x5b9   :  { %7057 = vmatmul.mubr.bf16.gmra.mxu0 %v8834_v24 }
 0x5bd   :  { %7136 = vmatmul.mubr.bf16.gmra.mxu1 %v8836_v3 }
 0x5be   :  { %v5955_v59 = vpop.f32.mrf.mxu0  ;;  %v9192_v2 = vpop.f32.mrf.mxu1 }
 0x5bf   :  { %v15098_v39 = vadd.f32 %v5955_v59, %v14523_v41 }
 0x5c0   :  { %v5957_v54 = vpop.f32.mrf.mxu0  ;;  %v9193_v16 = vpop.f32.mrf.mxu1 }
 0x5c1   :  { %v15101_v36 = vadd.f32 %v5957_v54, %v14527_v20  ;;  %v9194_v49 = vadd.f32 %v9193_v16, %v9192_v2 }
 0x5c2   :  { %v5959_v50 = vpop.f32.mrf.mxu0  ;;  %v9195_v19 = vpop.f32.mrf.mxu1 }
 0x5c3   :  { %v15104_v8 = vadd.f32 %v5959_v50, %v14532_v61  ;;  %v15107_v53 = vadd.f32 %v9194_v49, %v14853_v28 }
 0x5c4   :  { %v15109_v40 = vpop.f32.mrf.mxu0  ;;  %v9196_v35 = vpop.f32.mrf.mxu1 }
 0x5c5   :  { %v9197_v11 = vadd.f32 %v9196_v35, %v9195_v19 }
 0x5c6   :  { %v5965_v41 = vpop.f32.mrf.mxu0  ;;  %v9198_v38 = vpop.f32.mrf.mxu1 }
 0x5c7   :  { %v15112_v31 = vadd.f32 %v5965_v41, %v14586_v10  ;;  %v15115_v20 = vadd.f32 %v9197_v11, %v14873_v13 }
 0x5c8   :  { %v5967_v44 = vpop.f32.mrf.mxu0  ;;  %v9199_v21 = vpop.f32.mrf.mxu1 }
 0x5c9   :  { %v15118_v61 = vadd.f32 %v5967_v44, %v14598_v27  ;;  %v9200_v18 = vadd.f32 %v9199_v21, %v9198_v38 }
 0x5ca   :  { %v5969_v28 = vpop.f32.mrf.mxu0  ;;  %v9201_v56 = vpop.f32.mrf.mxu1 }
 0x5cb   :  { %v15121_v3 = vadd.f32 %v5969_v28, %v14613_v47  ;;  %v15124_v34 = vadd.f32 %v9200_v18, %v14885_v4 }
 0x5cc   :  { %v15126_v63 = vpop.f32.mrf.mxu0  ;;  %v9202_v10 = vpop.f32.mrf.mxu1 }
 0x5cd   :  { %v9203_v51 = vadd.f32 %v9202_v10, %v9201_v56 }
 0x5ce   :  { %v5975_v13 = vpop.f32.mrf.mxu0  ;;  %v9204_v24 = vpop.f32.mrf.mxu1 }
 0x5cf   :  { %v15129_v15 = vadd.f32 %v5975_v13, %v14679_v6  ;;  %v6145_v27 = vadd.f32 %v9203_v51, %v14903_v45 }
 0x5d0   :  { %v5977_v58 = vpop.f32.mrf.mxu0  ;;  %v9205_v25 = vpop.f32.mrf.mxu1 }
 0x5d1   :  { %v15133_v22 = vadd.f32 %v5977_v58, %v14690_v17  ;;  %v9206_v47 = vadd.f32 %v9205_v25, %v9204_v24 }
 0x5d2   :  { %v5979_v59 = vpop.f32.mrf.mxu0  ;;  %v9207_v4 = vpop.f32.mrf.mxu1 }
 0x5d3   :  { %v15136_v2 = vadd.f32 %v5979_v59, %v14695_v1  ;;  %v6150_v54 = vadd.f32 %v9206_v47, %v14915_v12  ;;  %v16805_v59 = vld [vmem:[#allocation165_spill] sm:$0xff] }
 0x5d4   :  { %v15139_v16 = vpop.f32.mrf.mxu0  ;;  %v9208_v49 = vpop.f32.mrf.mxu1 }
 0x5d5   :  { %v9209_v6 = vadd.f32 %v9208_v49, %v9207_v4 }
 0x5d6   :  { %v5985_v50 = vpop.f32.mrf.mxu0  ;;  %v9210_v19 = vpop.f32.mrf.mxu1 }
 0x5d7   :  { %v15142_v45 = vadd.f32 %v5985_v50, %v14756_v62  ;;  %v6153_v17 = vadd.f32 %v9209_v6, %v14927_v29 }
 0x5d8   :  { %v5987_v35 = vpop.f32.mrf.mxu0  ;;  %v9211_v11 = vpop.f32.mrf.mxu1 }
 0x5d9   :  { %v15146_v41 = vadd.f32 %v5987_v35, %v14768_v30  ;;  %v9212_v1 = vadd.f32 %v9211_v11, %v9210_v19 }
 0x5da   :  { %v5989_v38 = vpop.f32.mrf.mxu0  ;;  %v9213_v44 = vpop.f32.mrf.mxu1 }
 0x5db   :  { %v15149_v12 = vadd.f32 %v5989_v38, %v14777_v60  ;;  %v6158_v21 = vadd.f32 %v9212_v1, %v14936_v46  ;;  %v16804_v46 = vld [vmem:[#allocation87_spill] sm:$0xff] }
 0x5dc   :  { %v15152_v18 = vpop.f32.mrf.mxu0  ;;  %v9214_v28 = vpop.f32.mrf.mxu1 }
 0x5dd   :  { %v9215_v62 = vadd.f32 %v9214_v28, %v9213_v44 }
 0x5de   :  { %v5995_v56 = vpop.f32.mrf.mxu0  ;;  %v9216_v10 = vpop.f32.mrf.mxu1 }
 0x5df   :  { %v15155_v29 = vadd.f32 %v5995_v56, %v14793_v42  ;;  %v6161_v30 = vadd.f32 %v9215_v62, %v14952_v55  ;;  %v16806_v55 = vld [vmem:[#allocation10_spill] sm:$0xff] }
 0x5e0   :  { %v5997_v51 = vpop.f32.mrf.mxu0  ;;  %v9217_v13 = vpop.f32.mrf.mxu1 }
 0x5e1   :  { %v15159_v24 = vadd.f32 %v5997_v51, %v14807_v33  ;;  %v9218_v60 = vadd.f32 %v9217_v13, %v9216_v10 }
 0x5e2   :  { %v5999_v58 = vpop.f32.mrf.mxu0  ;;  %v9219_v25 = vpop.f32.mrf.mxu1 }
 0x5e3   :  { %v15162_v47 = vadd.f32 %v5999_v58, %v16804_v46  ;;  %v6166_v4 = vadd.f32 %v9218_v60, %v16805_v59 }
 0x5e4   :  { %v15165_v49 = vpop.f32.mrf.mxu0  ;;  %v9220_v6 = vpop.f32.mrf.mxu1 }
 0x5e5   :  { %v9221_v42 = vadd.f32 %v9220_v6, %v9219_v25 }
 0x5e6   :  { %v6005_v50 = vpop.f32.mrf.mxu0  ;;  %v9222_v19 = vpop.f32.mrf.mxu1 }
 0x5e7   :  { %v6169_v35 = vadd.f32 %v9221_v42, %v16806_v55 }
 0x5e8   :  { %v6006_v11 = vpop.f32.mrf.mxu0  ;;  %v9223_v1 = vpop.f32.mrf.mxu1 }
 0x5ea   :  { %v6007_v33 = vpop.f32.mrf.mxu0  ;;  %v9225_v38 = vpop.f32.mrf.mxu1 }
 0x5ec   :  { %v6008_v44 = vpop.f32.mrf.mxu0  ;;  %v9226_v28 = vpop.f32.mrf.mxu1 }
 0x5ee   :  { %v6212_v62 = vpop.f32.mrf.mxu0 }
 0x5ef   :  { %v15169_v56 = vadd.f32 %v6212_v62, %v15107_v53 }
 0x5f0   :  { %v6214_v10 = vpop.f32.mrf.mxu0 }
 0x5f2   :  { %v6215_v51 = vpop.f32.mrf.mxu0 }
 0x5f3   :  { %v15172_v13 = vadd.f32 %v6215_v51, %v15115_v20 }
 0x5f4   :  { %v6217_v60 = vpop.f32.mrf.mxu0 }
 0x5f5   :  { %16807 = vst [vmem:[#allocation168_spill] sm:$0xff] %v15172_v13 }
 0x5f6   :  { %v6220_v58 = vpop.f32.mrf.mxu0 }
 0x5f7   :  { %v15175_v25 = vadd.f32 %v6220_v58, %v15124_v34 }
 0x5f8   :  { %v6222_v46 = vpop.f32.mrf.mxu0 }
 0x5f9   :  { %16808 = vst [vmem:[#allocation90_spill] sm:$0xff] %v15175_v25 }
 0x5fa   :  { %v6223_v59 = vpop.f32.mrf.mxu0 }
 0x5fb   :  { %v15177_v6 = vadd.f32 %v6223_v59, %v6145_v27 }
 0x5fc   :  { %v6225_v42 = vpop.f32.mrf.mxu0 }
 0x5fd   :  { %16809 = vst [vmem:[#allocation251_spill] sm:$0xff] %v15177_v6 }
 0x5fe   :  { %v6840_v50 = vpop.f32.mrf.mxu1  ;;  %v6228_v19 = vpop.f32.mrf.mxu0 }
 0x5ff   :  { %v15179_v55 = vadd.f32 %v6228_v19, %v6150_v54 }
 0x600   :  { %v6842_v53 = vpop.f32.mrf.mxu1  ;;  %v6230_v11 = vpop.f32.mrf.mxu0 }
 0x601   :  { %16810 = vst [vmem:[#allocation91_spill] sm:$0xff] %v15179_v55 }
 0x602   :  { %v6844_v1 = vpop.f32.mrf.mxu1  ;;  %v6231_v33 = vpop.f32.mrf.mxu0 }
 0x603   :  { %v15181_v20 = vadd.f32 %v6231_v33, %v6153_v17 }
 0x604   :  { %v6846_v38 = vpop.f32.mrf.mxu1  ;;  %v6233_v44 = vpop.f32.mrf.mxu0 }
 0x605   :  { %16811 = vst [vmem:[#allocation252_spill] sm:$0xff] %v15181_v20 }
 0x606   :  { %v6236_v28 = vpop.f32.mrf.mxu0  ;;  %v6850_v62 = vpop.f32.mrf.mxu1 }
 0x607   :  { %v15183_v34 = vadd.f32 %v6236_v28, %v6158_v21 }
 0x608   :  { %v6238_v10 = vpop.f32.mrf.mxu0  ;;  %v6852_v60 = vpop.f32.mrf.mxu1 }
 0x609   :  { %16812 = vst [vmem:[#allocation169_spill] sm:$0xff] %v15183_v34 }
 0x60a   :  { %v6239_v27 = vpop.f32.mrf.mxu0  ;;  %v6854_v59 = vpop.f32.mrf.mxu1 }
 0x60b   :  { %v15185_v51 = vadd.f32 %v6239_v27, %v6161_v30 }
 0x60c   :  { %v6241_v58 = vpop.f32.mrf.mxu0  ;;  %v6856_v11 = vpop.f32.mrf.mxu1 }
 0x60d   :  { %16813 = vst [vmem:[#allocation170_spill] sm:$0xff] %v15185_v51  ;;  %v16817_v58 = vld [vmem:[#allocation243_spill] sm:$0xff]  ;;  %v16822_v51 = vld [vmem:[#allocation249_spill] sm:$0xff] }
 0x60e   :  { %v6244_v54 = vpop.f32.mrf.mxu0  ;;  %v15191_v21 = vpop.f32.mrf.mxu1  ;;  %v6047_v34 = vadd.f32 %v16822_v51, %v15101_v36 }
 0x60f   :  { %v15187_v46 = vadd.f32 %v6244_v54, %v6166_v4  ;;  %v15198_v4 = vld [vmem:[%s15698_s4] sm:$0x7]  ;;  %v16818_v54 = vld [vmem:[#allocation83_spill] sm:$0xff] }
 0x610   :  { %v6246_v42 = vpop.f32.mrf.mxu0  ;;  %v15193_v48 = vpop.f32.mrf.mxu1  ;;  %16816 = vst [vmem:[#allocation92_spill] sm:$0xff] %v15198_v4 }
 0x611   :  { %16814 = vst [vmem:[#allocation24_spill] sm:$0xff] %v15187_v46  ;;  %v16819_v42 = vld [vmem:[#allocation88_spill] sm:$0xff] }
 0x612   :  { %v6247_v19 = vpop.f32.mrf.mxu0 }
 0x613   :  { %v15189_v17 = vadd.f32 %v6247_v19, %v6169_v35  ;;  %v5239_v35 = vadd.f32 %v16818_v54, %v16817_v58  ;;  %v6045_v19 = vadd.f32 %v16819_v42, %v15098_v39 }
 0x614   :  { %v6249_v33 = vpop.f32.mrf.mxu0 }
 0x615   :  { %16815 = vst [vmem:[#allocation171_spill] sm:$0xff] %v15189_v17  ;;  %v16821_v17 = vld [vmem:[#allocation319_spill] sm:$0xff]  ;;  %v5962_v58 = vadd.f32 %v15109_v40, %v5239_v35  ;;  %v16825_v40 = vld [vmem:[#allocation244_spill] sm:$0xff]  ;;  %v16826_v35 = vld [vmem:[#allocation245_spill] sm:$0xff] }
 0x616   :  { %v6252_v44 = vpop.f32.mrf.mxu0  ;;  %v15212_v46 = vrot.slane %v15198_v4, %v16821_v17  ;;  %v16824_v17 = vld [vmem:[#allocation250_spill] sm:$0xff] }
 0x617   :  { %v16820_v44 = vld [vmem:[#allocation317_spill] sm:$0xff]  ;;  %v6051_v13 = vadd.f32 %v16824_v17, %v5962_v58 }
 0x618   :  { %v6253_v28 = vpop.f32.mrf.mxu0 }
 0x619   :  { %v15206_v28 = vrot.slane %v15198_v4, %v16820_v44 }
 0x61a   :  { %v6254_v10 = vpop.f32.mrf.mxu0 }
 0x61b   :  { %v15208_v10 = vpop.f32.mrf.mxu1 }
 0x61c   :  { %v6255_v30 = vpop.f32.mrf.mxu0 }
 0x61d   :  { %v15220_v6 = vpop.f32.mrf.mxu1 }
 0x61e   :  { %v6929_v27 = vpop.f32.mrf.mxu0 }
 0x61f   :  { %v6930_v33 = vadd.f32 %v6929_v27, %v6840_v50  ;;  %v16823_v50 = vld [vmem:[#allocation89_spill] sm:$0xff]  ;;  %v6870_v58 = vpop.f32.mrf.mxu1 }
 0x620   :  { %v6931_v30 = vpop.f32.mrf.mxu0  ;;  %v6049_v27 = vadd.f32 %v16823_v50, %v15104_v8 }
 0x621   :  { %v7142_v54 = vadd.f32 %v6930_v33, %v6045_v19  ;;  %v6932_v20 = vadd.f32 %v6931_v30, %v6842_v53  ;;  %v5249_v53 = vadd.f32 %v16826_v35, %v16825_v40 }
 0x622   :  { %v6933_v39 = vpop.f32.mrf.mxu0 }
 0x623   :  { %v7189_v42 = vadd.f32 %v15206_v28, %v7142_v54  ;;  %v7143_v44 = vadd.f32 %v6932_v20, %v6047_v34  ;;  %v6934_v55 = vadd.f32 %v6933_v39, %v6844_v1  ;;  %v16827_v20 = vld [vmem:[#allocation166_spill] sm:$0xff]  ;;  %v16828_v34 = vld [vmem:[#allocation20_spill] sm:$0xff]  ;;  %v5972_v17 = vadd.f32 %v15126_v63, %v5249_v53 }
 0x624   :  { %v6935_v25 = vpop.f32.mrf.mxu0  ;;  %v6055_v1 = vadd.f32 %v16827_v20, %v15112_v31  ;;  %v6057_v54 = vadd.f32 %v16828_v34, %v15118_v61  ;;  %v16829_v31 = vld [vmem:[#allocation167_spill] sm:$0xff]  ;;  %v6872_v61 = vpop.f32.mrf.mxu1  ;;  %v16830_v53 = vld [vmem:[#allocation22_spill] sm:$0xff]  ;;  %v16831_v34 = vld [vmem:[#allocation84_spill] sm:$0xff] }
 0x625   :  { %v7190_v4 = vadd.f32 %v15212_v46, %v7143_v44  ;;  %v7145_v36 = vadd.f32 %v6934_v55, %v6049_v27  ;;  %v6936_v51 = vadd.f32 %v6935_v25, %v6846_v38  ;;  %v7219_v55 = vpack.c.bf16 %v7189_v42, %v7189_v42 }
 0x626   :  { %v6939_v19 = vpop.f32.mrf.mxu0  ;;  %v6059_v40 = vadd.f32 %v16829_v31, %v15121_v3 }
 0x627   :  { %v7192_v33 = vadd.f32 %v15206_v28, %v7145_v36  ;;  %v7146_v8 = vadd.f32 %v6936_v51, %v6051_v13  ;;  %v6940_v30 = vadd.f32 %v6939_v19, %v6850_v62  ;;  %v7220_v36 = vpack.c.bf16 %v7190_v4, %v7190_v4 }
 0x628   :  { %v6941_v44 = vpop.f32.mrf.mxu0  ;;  %v6061_v19 = vadd.f32 %v16830_v53, %v5972_v17  ;;  %v6065_v4 = vadd.f32 %v15039_v52, %v15129_v15  ;;  %v6067_v52 = vadd.f32 %v15045_v37, %v15133_v22  ;;  %v16834_v53 = vld [vmem:[#allocation247_spill] sm:$0xff] }
 0x629   :  { %v7222_v25 = vpack.c.bf16 %v7192_v33, %v7192_v33  ;;  %v7193_v38 = vadd.f32 %v15212_v46, %v7146_v8  ;;  %v6942_v39 = vadd.f32 %v6941_v44, %v6852_v60  ;;  %v7148_v50 = vadd.f32 %v6940_v30, %v6055_v1  ;;  %v6874_v44 = vpop.f32.mrf.mxu1 }
 0x62a   :  { %v6943_v27 = vpop.f32.mrf.mxu0 }
 0x62b   :  { %v15233_v13 = vmax.bf16 %v7222_v25, %v7219_v55  ;;  %v7223_v62 = vpack.c.bf16 %v7193_v38, %v7193_v38  ;;  %v7149_v51 = vadd.f32 %v6942_v39, %v6057_v54  ;;  %v6944_v35 = vadd.f32 %v6943_v27, %v6854_v59  ;;  %v16832_v59 = vld [vmem:[#allocation86_spill] sm:$0xff]  ;;  %v6876_v31 = vpop.f32.mrf.mxu1 }
 0x62c   :  { %v6945_v63 = vpop.f32.mrf.mxu0  ;;  %v7195_v60 = vadd.f32 %v15206_v28, %v7148_v50  ;;  %v5259_v54 = vadd.f32 %v16832_v59, %v16831_v34  ;;  %v6069_v27 = vadd.f32 %v15049_v9, %v15136_v2 }
 0x62d   :  { %v15238_v42 = vmax.bf16 %v7223_v62, %v7220_v36  ;;  %v6946_v33 = vadd.f32 %v6945_v63, %v6856_v11  ;;  %v7151_v8 = vadd.f32 %v6944_v35, %v6059_v40  ;;  %v7196_v20 = vadd.f32 %v15212_v46, %v7149_v51 }
 0x62e   :  { %v6949_v30 = vpop.f32.mrf.mxu0  ;;  %v5982_v15 = vadd.f32 %v15139_v16, %v5259_v54  ;;  %v7225_v39 = vpack.c.bf16 %v7195_v60, %v7195_v60  ;;  %v16833_v16 = vld [vmem:[#allocation85_spill] sm:$0xff]  ;;  %v6079_v54 = vadd.f32 %v15061_v23, %v15149_v12  ;;  %v16835_v23 = vld [vmem:[#allocation246_spill] sm:$0xff]  ;;  %v16836_v12 = vld [vmem:[#allocation248_spill] sm:$0xff] }
 0x62f   :  { %v7152_v1 = vadd.f32 %v6946_v33, %v6061_v19  ;;  %v6950_v3 = vadd.f32 %v6949_v30, %v15191_v21  ;;  %v7198_v17 = vadd.f32 %v15206_v28, %v7151_v8  ;;  %v7226_v36 = vpack.c.bf16 %v7196_v20, %v7196_v20 }
 0x630   :  { %v6951_v55 = vpop.f32.mrf.mxu0  ;;  %v5269_v19 = vadd.f32 %v16834_v53, %v16833_v16  ;;  %v6071_v33 = vadd.f32 %v15053_v7, %v5982_v15  ;;  %v6077_v30 = vadd.f32 %v15059_v57, %v15146_v41 }
 0x631   :  { %v7199_v11 = vadd.f32 %v15212_v46, %v7152_v1  ;;  %v7154_v25 = vadd.f32 %v6950_v3, %v6065_v4  ;;  %v6952_v38 = vadd.f32 %v6951_v55, %v15193_v48  ;;  %v7228_v50 = vpack.c.bf16 %v7198_v17, %v7198_v17  ;;  %v6880_v4 = vpop.f32.mrf.mxu1 }
 0x632   :  { %v6953_v21 = vpop.f32.mrf.mxu0  ;;  %v5992_v7 = vadd.f32 %v15152_v18, %v5269_v19 }
 0x633   :  { %v7229_v62 = vpack.c.bf16 %v7199_v11, %v7199_v11  ;;  %v6954_v51 = vadd.f32 %v6953_v21, %v15208_v10  ;;  %v15256_v40 = vmax.bf16 %v7228_v50, %v7225_v39  ;;  %v7155_v35 = vadd.f32 %v6952_v38, %v6067_v52  ;;  %v6882_v18 = vpop.f32.mrf.mxu1 }
 0x634   :  { %v6955_v48 = vpop.f32.mrf.mxu0  ;;  %v7201_v37 = vadd.f32 %v15206_v28, %v7154_v25  ;;  %v6075_v10 = vadd.f32 %v15055_v5, %v15142_v45  ;;  %v6081_v52 = vadd.f32 %v15065_v43, %v5992_v7  ;;  %v5279_v50 = vadd.f32 %v16836_v12, %v16835_v23  ;;  %v16837_v12 = vld [vmem:[#allocation313_spill] sm:$0xff] }
 0x635   :  { %v15258_v63 = vmax.bf16 %v7229_v62, %v7226_v36  ;;  %v7157_v22 = vadd.f32 %v6954_v51, %v6069_v27  ;;  %v6956_v9 = vadd.f32 %v6955_v48, %v15220_v6  ;;  %7285 = vrot.lane.b32.xlu0 %v15256_v40, %s9945_s21  ;;  %v7202_v6 = vadd.f32 %v15212_v46, %v7155_v35  ;;  %v6884_v35 = vpop.f32.mrf.mxu1 }
 0x636   :  { %v6959_v2 = vpop.f32.mrf.mxu0  ;;  %v7231_v3 = vpack.c.bf16 %v7201_v37, %v7201_v37  ;;  %v6085_v27 = vadd.f32 %v15067_v14, %v15155_v29  ;;  %v6087_v51 = vadd.f32 %v15072_v32, %v15159_v24 }
 0x637   :  { %v7204_v60 = vadd.f32 %v15206_v28, %v7157_v22  ;;  %v6960_v8 = vadd.f32 %v6959_v2, %v6870_v58  ;;  %7287 = vrot.lane.b32.xlu1 %v15258_v63, %s9945_s21  ;;  %v7158_v20 = vadd.f32 %v6956_v9, %v6071_v33  ;;  %v7232_v55 = vpack.c.bf16 %v7202_v6, %v7202_v6  ;;  %v6886_v2 = vpop.f32.mrf.mxu1 }
 0x638   :  { %v6961_v1 = vpop.f32.mrf.mxu0 }
 0x639   :  { %v7234_v34 = vpack.c.bf16 %v7204_v60, %v7204_v60  ;;  %v7160_v59 = vadd.f32 %v6960_v8, %v6075_v10  ;;  %v6962_v5 = vadd.f32 %v6961_v1, %v6872_v61  ;;  %v7205_v45 = vadd.f32 %v15212_v46, %v7158_v20 }
 0x63a   :  { %v6963_v58 = vpop.f32.mrf.mxu0 }
 0x63b   :  { %v15279_v17 = vmax.bf16 %v7234_v34, %v7231_v3  ;;  %v7161_v57 = vadd.f32 %v6962_v5, %v6077_v30  ;;  %v6964_v41 = vadd.f32 %v6963_v58, %v6874_v44  ;;  %v7235_v11 = vpack.c.bf16 %v7205_v45, %v7205_v45 }
 0x63c   :  { %v7207_v25 = vadd.f32 %v15206_v28, %v7160_v59  ;;  %v6965_v38 = vpop.f32.mrf.mxu0 }
 0x63d   :  { %v7208_v61 = vadd.f32 %v15212_v46, %v7161_v57  ;;  %v7163_v15 = vadd.f32 %v6964_v41, %v6079_v54  ;;  %v6966_v39 = vadd.f32 %v6965_v38, %v6876_v31  ;;  %7291 = vrot.lane.b32.xlu0 %v15279_v17, %s9945_s21  ;;  %v15288_v21 = vmax.bf16 %v7235_v11, %v7232_v55 }
 0x63e   :  { %v6969_v44 = vpop.f32.mrf.mxu0  ;;  %v6002_v31 = vadd.f32 %v15165_v49, %v5279_v50  ;;  %v7237_v48 = vpack.c.bf16 %v7207_v25, %v7207_v25  ;;  %v6089_v49 = vadd.f32 %v15074_v26, %v15162_v47  ;;  %v16838_v50 = vsub.s32 2, %v16837_v12 }
 0x63f   :  { %v7210_v36 = vadd.f32 %v15206_v28, %v7163_v15  ;;  %v7164_v62 = vadd.f32 %v6966_v39, %v6081_v52  ;;  %v6970_v43 = vadd.f32 %v6969_v44, %v6880_v4  ;;  %7293 = vrot.lane.b32.xlu1 %v15288_v21, %s9945_s21  ;;  %v7238_v29 = vpack.c.bf16 %v7208_v61, %v7208_v61  ;;  %v16839_v44 = vld [vmem:[#allocation92_spill] sm:$0xff] }
 0x640   :  { %v6971_v37 = vpop.f32.mrf.mxu0  ;;  %v6091_v8 = vadd.f32 %v15078_v0, %v6002_v31 }
 0x641   :  { %v7240_v22 = vpack.c.bf16 %v7210_v36, %v7210_v36  ;;  %v7211_v16 = vadd.f32 %v15212_v46, %v7164_v62  ;;  %v7166_v53 = vadd.f32 %v6970_v43, %v6085_v27  ;;  %v6972_v14 = vadd.f32 %v6971_v37, %v6882_v18  ;;  %v16840_v37 = vld [vmem:[#allocation168_spill] sm:$0xff] }
 0x642   :  { %v6973_v19 = vpop.f32.mrf.mxu0  ;;  %v15318_v27 = vrot.slane %v16839_v44, %v16838_v50 }
 0x643   :  { %v15299_v33 = vmax.bf16 %v7240_v22, %v7237_v48  ;;  %v7241_v9 = vpack.c.bf16 %v7211_v16, %v7211_v16  ;;  %v7213_v32 = vadd.f32 %v15206_v28, %v7166_v53  ;;  %v7167_v24 = vadd.f32 %v6972_v14, %v6087_v51 }
 0x644   :  { %v6974_v10 = vadd.f32 %v6973_v19, %v6884_v35  ;;  %v6975_v60 = vpop.f32.mrf.mxu0 }
 0x645   :  { %v15305_v30 = vmax.bf16 %v7241_v9, %v7238_v29  ;;  %v7214_v7 = vadd.f32 %v15212_v46, %v7167_v24  ;;  %v6976_v4 = vadd.f32 %v6975_v60, %v6886_v2  ;;  %v7243_v59 = vpack.c.bf16 %v7213_v32, %v7213_v32 }
 0x646   :  { %v7169_v6 = vadd.f32 %v6974_v10, %v6089_v49  ;;  %v16841_v49 = vld [vmem:[#allocation90_spill] sm:$0xff] }
 0x647   :  { %v7170_v20 = vadd.f32 %v6976_v4, %v6091_v8  ;;  %v7244_v26 = vpack.c.bf16 %v7214_v7, %v7214_v7 }
 0x648   :  { %v7216_v1 = vadd.f32 %v15206_v28, %v7169_v6 }
 0x649   :  { %v7217_v3 = vadd.f32 %v15212_v46, %v7170_v20  ;;  %v6979_v34 = vpop.f32.mrf.mxu0 }
 0x64a   :  { %v7246_v5 = vpack.c.bf16 %v7216_v1, %v7216_v1 }
 0x64b   :  { %v7247_v47 = vpack.c.bf16 %v7217_v3, %v7217_v3  ;;  %v6980_v45 = vpop.f32.mrf.mxu0  ;;  %v16842_v3 = vld [vmem:[#allocation251_spill] sm:$0xff] }
 0x64c   :  { %v15310_v58 = vmax.bf16 %v7246_v5, %v7243_v59 }
 0x64d   :  { %v15312_v0 = vmax.bf16 %v7247_v47, %v7244_v26  ;;  %v6890_v54 = vpop.f32.mrf.mxu1  ;;  %v6981_v57 = vpop.f32.mrf.mxu0 }
 0x64f   :  { %v6891_v41 = vpop.f32.mrf.mxu1  ;;  %v6982_v18 = vpop.f32.mrf.mxu0 }
 0x651   :  { %v6892_v55 = vpop.f32.mrf.mxu1  ;;  %v9244_v11 = vpop.f32.mrf.mxu0 }
 0x652   :  { %v16843_v55 = vld [vmem:[#allocation91_spill] sm:$0xff] }
 0x653   :  { %v6893_v25 = vpop.f32.mrf.mxu1  ;;  %v9245_v28 = vpop.f32.mrf.mxu0 }
 0x654   :  { %v9246_v38 = vadd.f32 %v9245_v28, %v9244_v11 }
 0x655   :  { %v9247_v46 = vpop.f32.mrf.mxu0  ;;  %v7097_v52 = vpop.f32.mrf.mxu1 }
 0x656   :  { %v7098_v61 = vadd.f32 %v9246_v38, %v7097_v52 }
 0x657   :  { %v9248_v15 = vpop.f32.mrf.mxu0  ;;  %v7099_v39 = vpop.f32.mrf.mxu1 }
 0x658   :  { %v7144_v23 = vadd.f32 %v7098_v61, %v15169_v56  ;;  %v9249_v36 = vadd.f32 %v9248_v15, %v9247_v46 }
 0x659   :  { %v9250_v62 = vpop.f32.mrf.mxu0  ;;  %v7100_v43 = vpop.f32.mrf.mxu1 }
 0x65a   :  { %v7101_v51 = vadd.f32 %v9249_v36, %v7100_v43  ;;  %v7191_v48 = vadd.f32 %v15318_v27, %v7144_v23  ;;  %v16844_v23 = vld [vmem:[#allocation252_spill] sm:$0xff] }
 0x65b   :  { %v9251_v31 = vpop.f32.mrf.mxu0  ;;  %v7102_v35 = vpop.f32.mrf.mxu1 }
 0x65c   :  { %v7147_v22 = vadd.f32 %v7101_v51, %v16840_v37  ;;  %v9252_v16 = vadd.f32 %v9251_v31, %v9250_v62  ;;  %v7221_v32 = vpack.c.bf16 %v7191_v48, %v7191_v48  ;;  %v16845_v37 = vld [vmem:[#allocation169_spill] sm:$0xff] }
 0x65d   :  { %v9253_v53 = vpop.f32.mrf.mxu0  ;;  %v7105_v14 = vpop.f32.mrf.mxu1 }
 0x65e   :  { %v7194_v56 = vadd.f32 %v15318_v27, %v7147_v22  ;;  %v7106_v29 = vadd.f32 %v9252_v16, %v7105_v14 }
 0x65f   :  { %v9254_v19 = vpop.f32.mrf.mxu0  ;;  %v7107_v9 = vpop.f32.mrf.mxu1 }
 0x660   :  { %v7224_v24 = vpack.c.bf16 %v7194_v56, %v7194_v56  ;;  %v7150_v2 = vadd.f32 %v7106_v29, %v16841_v49  ;;  %v9255_v10 = vadd.f32 %v9254_v19, %v9253_v53 }
 0x661   :  { %v9256_v60 = vpop.f32.mrf.mxu0  ;;  %v7108_v8 = vpop.f32.mrf.mxu1 }
 0x662   :  { %v15324_v7 = vmax.bf16 %v7224_v24, %v7221_v32  ;;  %v7109_v4 = vadd.f32 %v9255_v10, %v7108_v8  ;;  %v7197_v1 = vadd.f32 %v15318_v27, %v7150_v2  ;;  %v16846_v24 = vld [vmem:[#allocation170_spill] sm:$0xff] }
 0x663   :  { %v9257_v6 = vpop.f32.mrf.mxu0  ;;  %v7110_v20 = vpop.f32.mrf.mxu1 }
 0x664   :  { %v7153_v34 = vadd.f32 %v7109_v4, %v16842_v3  ;;  %v9258_v59 = vadd.f32 %v9257_v6, %v9256_v60  ;;  %v7227_v41 = vpack.c.bf16 %v7197_v1, %v7197_v1 }
 0x665   :  { %v9259_v5 = vpop.f32.mrf.mxu0  ;;  %v7113_v26 = vpop.f32.mrf.mxu1 }
 0x666   :  { %v7200_v47 = vadd.f32 %v15318_v27, %v7153_v34  ;;  %v7114_v45 = vadd.f32 %v9258_v59, %v7113_v26  ;;  %v16847_v34 = vld [vmem:[#allocation24_spill] sm:$0xff] }
 0x667   :  { %v9260_v54 = vpop.f32.mrf.mxu0  ;;  %v7115_v57 = vpop.f32.mrf.mxu1 }
 0x668   :  { %v7230_v18 = vpack.c.bf16 %v7200_v47, %v7200_v47  ;;  %v7156_v11 = vadd.f32 %v7114_v45, %v16843_v55  ;;  %v9261_v25 = vadd.f32 %v9260_v54, %v9259_v5  ;;  %v16848_v55 = vld [vmem:[#allocation171_spill] sm:$0xff] }
 0x669   :  { %v9262_v28 = vpop.f32.mrf.mxu0  ;;  %v7116_v38 = vpop.f32.mrf.mxu1 }
 0x66a   :  { %v15330_v46 = vmax.bf16 %v7230_v18, %v7227_v41  ;;  %v7117_v52 = vadd.f32 %v9261_v25, %v7116_v38  ;;  %v7203_v39 = vadd.f32 %v15318_v27, %v7156_v11 }
 0x66b   :  { %v9263_v61 = vpop.f32.mrf.mxu0  ;;  %v7118_v15 = vpop.f32.mrf.mxu1 }
 0x66c   :  { %v7159_v12 = vadd.f32 %v7117_v52, %v16844_v23  ;;  %v9264_v50 = vadd.f32 %v9263_v61, %v9262_v28  ;;  %7289 = vrot.lane.b32.xlu0 %v15330_v46, %s9945_s21  ;;  %v7233_v35 = vpack.c.bf16 %v7203_v39, %v7203_v39 }
 0x66d   :  { %v9265_v44 = vpop.f32.mrf.mxu0  ;;  %v7121_v36 = vpop.f32.mrf.mxu1 }
 0x66e   :  { %v7206_v62 = vadd.f32 %v15318_v27, %v7159_v12  ;;  %v7122_v43 = vadd.f32 %v9264_v50, %v7121_v36 }
 0x66f   :  { %v9266_v51 = vpop.f32.mrf.mxu0  ;;  %v7123_v31 = vpop.f32.mrf.mxu1 }
 0x670   :  { %v7236_v48 = vpack.c.bf16 %v7206_v62, %v7206_v62  ;;  %v7162_v22 = vadd.f32 %v7122_v43, %v16845_v37  ;;  %v9267_v16 = vadd.f32 %v9266_v51, %v9265_v44  ;;  %7297 = vrot.lane.b32.xlu0 %v15299_v33, %s9945_s21  ;;  %v9847_v62 = vld [vmem:[%s15699_s5 + $0x110] ss:$8 sps:$4 sm:$0xff]   ;;  %v9849_v51 = vld [vmem:[%s15699_s5 + $0x114] ss:$8 sps:$4 sm:$0xff]   ;;  %v9852_v31 = vld [vmem:[%s15699_s5 + $0x104] ss:$8 sps:$4 sm:$0xff]  }
 0x671   :  { %v9268_v53 = vpop.f32.mrf.mxu0  ;;  %v7124_v14 = vpop.f32.mrf.mxu1  ;;  %7608 = vmatprep.subr.bf16.mxu0 %v9849_v51  ;;  %v9864_v37 = vld [vmem:[%s15699_s5 + $0x74] ss:$8 sps:$4 sm:$0xff]  }
 0x672   :  { %v15340_v56 = vmax.bf16 %v7236_v48, %v7233_v35  ;;  %v7125_v29 = vadd.f32 %v9267_v16, %v7124_v14  ;;  %v7209_v32 = vadd.f32 %v15318_v27, %v7162_v22  ;;  %7609 = vmatpush1.bf16.msra.mxu0 %v9847_v62  ;;  %v9850_v35 = vld [vmem:[%s15699_s5 + $0x100] ss:$8 sps:$4 sm:$0xff]   ;;  %v9862_v48 = vld [vmem:[%s15699_s5 + $0x70] ss:$8 sps:$4 sm:$0xff]   ;;  %7769 = vmatprep.subr.bf16.mxu1 %v9864_v37  ;;  %v9909_v51 = vld [vmem:[%s15699_s5 + $0x94] ss:$8 sps:$4 sm:$0xff]  }
 0x673   :  { %v9269_v19 = vpop.f32.mrf.mxu0  ;;  %v7126_v9 = vpop.f32.mrf.mxu1  ;;  %7610 = vmatprep.subr.bf16.mxu0 %v9852_v31  ;;  %7770 = vmatpush1.bf16.msra.mxu1 %v9862_v48  ;;  %v9907_v62 = vld [vmem:[%s15699_s5 + $0x90] ss:$8 sps:$4 sm:$0xff]   ;;  %v9915_v48 = vld [vmem:[%s15699_s5 + $0x84] ss:$8 sps:$4 sm:$0xff]  }
 0x674   :  { %v7165_v49 = vadd.f32 %v7125_v29, %v16846_v24  ;;  %v9270_v2 = vadd.f32 %v9269_v19, %v9268_v53  ;;  %7295 = vrot.lane.b32.xlu1 %v15340_v56, %s9945_s21  ;;  %v7239_v1 = vpack.c.bf16 %v7209_v32, %v7209_v32  ;;  %v9853_v53 = vld [vmem:[%s15699_s5 + $0xf0] ss:$8 sps:$4 sm:$0xff]   ;;  %v9858_v29 = vld [vmem:[%s15699_s5 + $0xe4] ss:$8 sps:$4 sm:$0xff]   ;;  %v9868_v9 = vld [vmem:[%s15699_s5 + $0x60] ss:$8 sps:$4 sm:$0xff]  }
 0x675   :  { %v9271_v10 = vpop.f32.mrf.mxu0  ;;  %v7129_v60 = vpop.f32.mrf.mxu1  ;;  %v9870_v32 = vld [vmem:[%s15699_s5 + $0x64] ss:$8 sps:$4 sm:$0xff]   ;;  %v9856_v24 = vld [vmem:[%s15699_s5 + $0xe0] ss:$8 sps:$4 sm:$0xff]  }
 0x676   :  { %v7212_v8 = vadd.f32 %v15318_v27, %v7165_v49  ;;  %v7130_v4 = vadd.f32 %v9270_v2, %v7129_v60  ;;  %7611 = vmatpush1.bf16.msra.mxu0 %v9850_v35  ;;  %v9873_v49 = vld [vmem:[%s15699_s5 + $0x54] ss:$8 sps:$4 sm:$0xff]   ;;  %7771 = vmatprep.subr.bf16.mxu1 %v9870_v32  ;;  %v9871_v2 = vld [vmem:[%s15699_s5 + $0x50] ss:$8 sps:$4 sm:$0xff]   ;;  %v9867_v60 = vld [vmem:[%s15699_s5 + $0xc4] ss:$8 sps:$4 sm:$0xff]  }
 0x677   :  { %v9272_v6 = vpop.f32.mrf.mxu0  ;;  %v7131_v20 = vpop.f32.mrf.mxu1  ;;  %7772 = vmatpush1.bf16.msra.mxu1 %v9868_v9  ;;  %v16850_v9 = vmov 0.0  }
 0x678   :  { %v7242_v3 = vpack.c.bf16 %v7212_v8, %v7212_v8  ;;  %v7168_v59 = vadd.f32 %v7130_v4, %v16847_v34  ;;  %v9273_v5 = vadd.f32 %v9272_v6, %v9271_v10  ;;  %7299 = vrot.lane.b32.xlu1 %v15305_v30, %s9945_s21  ;;  %v9859_v10 = vld [vmem:[%s15699_s5 + $0xd0] ss:$8 sps:$4 sm:$0xff]   ;;  %7773 = vmatprep.subr.bf16.mxu1 %v9873_v49  ;;  %v9865_v8 = vld [vmem:[%s15699_s5 + $0xc0] ss:$8 sps:$4 sm:$0xff]   ;;  %v9876_v4 = vld [vmem:[%s15699_s5 + $0xb4] ss:$8 sps:$4 sm:$0xff]  }
 0x679   :  { %v9274_v26 = vpop.f32.mrf.mxu0  ;;  %v7132_v47 = vpop.f32.mrf.mxu1  ;;  %v9874_v6 = vld [vmem:[%s15699_s5 + $0xb0] ss:$8 sps:$4 sm:$0xff]   ;;  %v9877_v20 = vld [vmem:[%s15699_s5 + $0x40] ss:$8 sps:$4 sm:$0xff]   ;;  %v9882_v34 = vld [vmem:[%s15699_s5 + $0xa4] ss:$8 sps:$4 sm:$0xff]  }
 0x67a   :  { %v15350_v45 = vmax.bf16 %v7242_v3, %v7239_v1  ;;  %v7215_v54 = vadd.f32 %v15318_v27, %v7168_v59  ;;  %v7133_v57 = vadd.f32 %v9273_v5, %v7132_v47  ;;  %v9879_v1 = vld [vmem:[%s15699_s5 + $0x44] ss:$8 sps:$4 sm:$0xff]   ;;  %v9880_v3 = vld [vmem:[%s15699_s5 + $0xa0] ss:$8 sps:$4 sm:$0xff]   ;;  %v9885_v59 = vld [vmem:[%s15699_s5 + $0x34] ss:$8 sps:$4 sm:$0xff]  }
 0x67b   :  { %v9275_v41 = vpop.f32.mrf.mxu0  ;;  %v7134_v18 = vpop.f32.mrf.mxu1  ;;  %7774 = vmatpush1.bf16.msra.mxu1 %v9871_v2  ;;  %v9883_v5 = vld [vmem:[%s15699_s5 + $0x30] ss:$8 sps:$4 sm:$0xff]   ;;  %v9888_v26 = vld [vmem:[%s15699_s5 + $0x134] ss:$8 sps:$4 sm:$0xff]  }
 0x67c   :  { %v7171_v11 = vadd.f32 %v7133_v57, %v16848_v55  ;;  %7279 = vrot.lane.b32.xlu1 %v15233_v13, %s9945_s21  ;;  %7301 = vrot.lane.b32.xlu0 %v15350_v45, %s9945_s21  ;;  %v7245_v15 = vpack.c.bf16 %v7215_v54, %v7215_v54  ;;  %v9886_v47 = vld [vmem:[%s15699_s5 + $0x130] ss:$8 sps:$4 sm:$0xff]   ;;  %v9889_v54 = vld [vmem:[%s15699_s5 + $0x20] ss:$8 sps:$4 sm:$0xff]  }
 0x67d   :  { %v9277_v25 = vpop.f32.mrf.mxu0  ;;  %v7137_v28 = vpop.f32.mrf.mxu1  ;;  %7775 = vmatprep.subr.bf16.mxu1 %v9879_v1  ;;  %v9891_v57 = vld [vmem:[%s15699_s5 + $0x24] ss:$8 sps:$4 sm:$0xff]  }
 0x67e   :  { %v7218_v38 = vadd.f32 %v15318_v27, %v7171_v11  ;;  %v9894_v11 = vld [vmem:[%s15699_s5 + $0x124] ss:$8 sps:$4 sm:$0xff]   ;;  %v9892_v25 = vld [vmem:[%s15699_s5 + $0x120] ss:$8 sps:$4 sm:$0xff]   ;;  %v9897_v28 = vld [vmem:[%s15699_s5 + $0x14] ss:$8 sps:$4 sm:$0xff]  }
 0x67f   :  { %v9278_v52 = vpop.f32.mrf.mxu0  ;;  %v7138_v61 = vpop.f32.mrf.mxu1  ;;  %7776 = vmatpush1.bf16.msra.mxu1 %v9877_v20 }
 0x680   :  { %v7248_v39 = vpack.c.bf16 %v7218_v38, %v7218_v38  ;;  %7281 = vrot.lane.b32.xlu0 %v15238_v42, %s9945_s21  ;;  %7283 = vrot.lane.b32.xlu1 %v15324_v7, %s9945_s21  ;;  %v9900_v38 = vld [vmem:[%s15699_s5 + $0x1b4] ss:$8 sps:$4 sm:$0xff]   ;;  %v9903_v61 = vld [vmem:[%s15699_s5 + $0x4] ss:$8 sps:$4 sm:$0xff]  }
 0x681   :  { %v7139_v23 = vpop.f32.mrf.mxu1  ;;  %7777 = vmatprep.subr.bf16.mxu1 %v9885_v59 }
 0x682   :  { %v15363_v12 = vmax.bf16 %v7248_v39, %v7245_v15  ;;  %v9901_v39 = vld [vmem:[%s15699_s5] ss:$8 sps:$4 sm:$0xff]  }
 0x683   :  { %v7140_v50 = vpop.f32.mrf.mxu1  ;;  %7778 = vmatpush1.bf16.msra.mxu1 %v9883_v5 }
 0x684   :  { %7779 = vmatprep.subr.bf16.mxu1 %v9891_v57 }
 0x687   :  { %7780 = vmatpush1.bf16.msra.mxu1 %v9889_v54 }
 0x688   :  { %7781 = vmatprep.subr.bf16.mxu1 %v9897_v28 }
 0x6a7   :  { %v7286_v44 = vpop.permute.xlu0 %7285 }
 0x6a9   :  { %v15365_v36 = vpop.permute.xlu1 %7287 }
 0x6aa   :  { %v7311_v27 = vsel %vm3388_vm3, %v7286_v44, %v15365_v36  ;;  %v16849_v44 = vmov 0  }
 0x6ab   :  { %v15373_v43 = vmax.bf16 %v7311_v27, %v15256_v40  ;;  %v9855_v40 = vld [vmem:[%s15699_s5 + $0xf4] ss:$8 sps:$4 sm:$0xff]  }
 0x6ac   :  { %7612 = vmatprep.subr.bf16.mxu0 %v9855_v40 }
 0x6ad   :  { %7356 = vrot.lane.b32.xlu0 %v15373_v43, %s9945_s21  ;;  %7613 = vmatpush1.bf16.msra.mxu0 %v9853_v53 }
 0x6ae   :  { %7614 = vmatprep.subr.bf16.mxu0 %v9858_v29 }
 0x6af   :  { %v7292_v22 = vpop.permute.xlu0 %7291 }
 0x6b1   :  { %v15395_v16 = vpop.permute.xlu1 %7293  ;;  %7615 = vmatpush1.bf16.msra.mxu0 %v9856_v24 }
 0x6b2   :  { %v7313_v14 = vsel %vm3388_vm3, %v7292_v22, %v15395_v16 }
 0x6b3   :  { %v15406_v19 = vmax.bf16 %v7313_v14, %v15279_v17  ;;  %v9861_v17 = vld [vmem:[%s15699_s5 + $0xd4] ss:$8 sps:$4 sm:$0xff]  }
 0x6b4   :  { %7616 = vmatprep.subr.bf16.mxu0 %v9861_v17 }
 0x6b5   :  { %7358 = vrot.lane.b32.xlu1 %v15406_v19, %s9945_s21  ;;  %7617 = vmatpush1.bf16.msra.mxu0 %v9859_v10 }
 0x6b6   :  { %7618 = vmatprep.subr.bf16.mxu0 %v9867_v60 }
 0x6b9   :  { %7619 = vmatpush1.bf16.msra.mxu0 %v9865_v8 }
 0x6ba   :  { %7620 = vmatprep.subr.bf16.mxu0 %v9876_v4 }
 0x6bd   :  { %7621 = vmatpush1.bf16.msra.mxu0 %v9874_v6 }
 0x6be   :  { %7622 = vmatprep.subr.bf16.mxu0 %v9882_v34 }
 0x6c1   :  { %7623 = vmatpush1.bf16.msra.mxu0 %v9880_v3 }
 0x6c2   :  { %7636 = vmatprep.subr.bf16.mxu0 %v9888_v26 }
 0x6c5   :  { %7637 = vmatpush2.bf16.msra.mxu0 %v9886_v47 }
 0x6c6   :  { %7638 = vmatprep.subr.bf16.mxu0 %v9894_v11  ;;  %v9906_v11 = vld [vmem:[%s15699_s5 + $0x1a4] ss:$8 sps:$4 sm:$0xff]  }
 0x6c9   :  { %7639 = vmatpush2.bf16.msra.mxu0 %v9892_v25 }
 0x6ca   :  { %7955 = vmatprep.subr.bf16.mxu0 %v9900_v38  ;;  %v9904_v38 = vld [vmem:[%s15699_s5 + $0x1a0] ss:$8 sps:$4 sm:$0xff]  }
 0x6de   :  { %v7290_v41 = vpop.permute.xlu0 %7289 }
 0x6df   :  { %v7312_v18 = vsel %vm3388_vm3, %v15365_v36, %v7290_v41  ;;  %v7339_v52 = vmax.bf16 %v7290_v41, %v15330_v46 }
 0x6e0   :  { %v7338_v55 = vmax.bf16 %v7312_v18, %v15258_v63  ;;  %v9895_v63 = vld [vmem:[%s15699_s5 + $0x10] ss:$8 sps:$4 sm:$0xff]  }
 0x6e1   :  { %7782 = vmatpush1.bf16.msra.mxu1 %v9895_v63  ;;  %v7432_v36 = vmax.bf16 %v16849_v44, %v7339_v52 }
 0x6e2   :  { %7371 = vrot.lane.b32.xlu0 %v7338_v55, %s9946_s2  ;;  %7783 = vmatprep.subr.bf16.mxu1 %v9903_v61  ;;  %v7298_v31 = vpop.permute.xlu0 %7297 }
 0x6e5   :  { %7784 = vmatpush1.bf16.msra.mxu1 %v9901_v39  ;;  %v9912_v39 = vld [vmem:[%s15699_s5 + $0x194] ss:$8 sps:$4 sm:$0xff]  }
 0x6e6   :  { %7381 = vrot.lane.b32.xlu0 %v7338_v55, %s9947_s24  ;;  %v7296_v15 = vpop.permute.xlu1 %7295  ;;  %7797 = vmatprep.subr.bf16.mxu1 %v9909_v51  ;;  %v9918_v51 = vld [vmem:[%s15699_s5 + $0x184] ss:$8 sps:$4 sm:$0xff]  }
 0x6e7   :  { %v7314_v23 = vsel %vm3388_vm3, %v15395_v16, %v7296_v15  ;;  %v7342_v50 = vmax.bf16 %v7296_v15, %v15340_v56  ;;  %v9913_v16 = vld [vmem:[%s15699_s5 + $0x80] ss:$8 sps:$4 sm:$0xff]  }
 0x6e8   :  { %v7341_v46 = vmax.bf16 %v7314_v23, %v15288_v21 }
 0x6e9   :  { %v15506_v27 = vmax.bf16 %v16849_v44, %v7342_v50  ;;  %7798 = vmatpush2.bf16.msra.mxu1 %v9907_v62  ;;  %v9910_v50 = vld [vmem:[%s15699_s5 + $0x190] ss:$8 sps:$4 sm:$0xff]  }
 0x6ea   :  { %7373 = vrot.lane.b32.xlu1 %v7341_v46, %s9946_s2  ;;  %v7300_v56 = vpop.permute.xlu1 %7299  ;;  %7799 = vmatprep.subr.bf16.mxu1 %v9915_v48 }
 0x6eb   :  { %v7315_v21 = vsel %vm3388_vm3, %v7298_v31, %v7300_v56  ;;  %v8949_v35 = vcombine.low %v7432_v36, %v15506_v27 }
 0x6ec   :  { %v7343_v40 = vmax.bf16 %v7315_v21, %v15299_v33 }
 0x6ed   :  { %8972 = vmatprep.mubr.msk.bf16.mxu0 %vm3961_vm4, %v8949_v35  ;;  %7800 = vmatpush2.bf16.msra.mxu1 %v9913_v16  ;;  %v9916_v35 = vld [vmem:[%s15699_s5 + $0x180] ss:$8 sps:$4 sm:$0xff]  }
 0x6ee   :  { %v7302_v37 = vpop.permute.xlu0 %7301  ;;  %7383 = vrot.lane.b32.xlu1 %v7341_v46, %s9947_s24  ;;  %7360 = vrot.lane.b32.xlu0 %v7343_v40, %s9945_s21  ;;  %v7280_v22 = vpop.permute.xlu1 %7279 }
 0x6ef   :  { %v7316_v53 = vsel %vm3388_vm3, %v7300_v56, %v7302_v37  ;;  %v7345_v33 = vmax.bf16 %v7302_v37, %v15350_v45  ;;  %9453 = vmatprep.subr.bf16.mxu1 %v16850_v9  ;;  %v9921_v37 = vld [vmem:[%s15699_s5 + $0x174] ss:$8 sps:$4 sm:$0xff]  }
 0x6f0   :  { %v7344_v14 = vmax.bf16 %v7316_v53, %v15305_v30  ;;  %v8977_v53 = vcombine.low %v15506_v27, %v15506_v27 }
 0x6f1   :  { %v15531_v29 = vmax.bf16 %v16849_v44, %v7345_v33 }
 0x6f2   :  { %v7282_v32 = vpop.permute.xlu0 %7281  ;;  %7375 = vrot.lane.b32.xlu1 %v7344_v14, %s9946_s2  ;;  %7385 = vrot.lane.b32.xlu0 %v7344_v14, %s9947_s24  ;;  %v7284_v24 = vpop.permute.xlu1 %7283 }
 0x6f3   :  { %v9021_v49 = vcombine.low %v15506_v27, %v15531_v29  ;;  %v7309_v45 = vsel %vm3388_vm3, %v7280_v22, %v7282_v32  ;;  %v7310_v17 = vsel %vm3388_vm3, %v7282_v32, %v7284_v24  ;;  %v7336_v10 = vmax.bf16 %v7284_v24, %v15324_v7  ;;  %v9919_v32 = vld [vmem:[%s15699_s5 + $0x170] ss:$8 sps:$4 sm:$0xff]   ;;  %v9924_v27 = vld [vmem:[%s15699_s5 + $0x164] ss:$8 sps:$4 sm:$0xff]   ;;  %v9927_v24 = vld [vmem:[%s15699_s5 + $0x154] ss:$8 sps:$4 sm:$0xff]  }
 0x6f4   :  { %v7334_v30 = vmax.bf16 %v7309_v45, %v15233_v13  ;;  %v7335_v2 = vmax.bf16 %v7310_v17, %v15238_v42  ;;  %v8951_v25 = vcombine.low %v15531_v29, %v15531_v29  ;;  %v9930_v45 = vld [vmem:[%s15699_s5 + $0x144] ss:$8 sps:$4 sm:$0xff]   ;;  %v9928_v17 = vld [vmem:[%s15699_s5 + $0x140] ss:$8 sps:$4 sm:$0xff]  }
 0x6f5   :  { %v7430_v60 = vmax.bf16 %v16849_v44, %v7336_v10  ;;  %v9936_v10 = vld [vmem:[%s15699_s5 + $0x1c4] ss:$8 sps:$4 sm:$0xff]  }
 0x6f6   :  { %7354 = vrot.lane.b32.xlu1 %v7334_v30, %s9945_s21  ;;  %7369 = vrot.lane.b32.xlu0 %v7335_v2, %s9946_s2 }
 0x6f7   :  { %v8975_v8 = vcombine.low %v7430_v60, %v7432_v36 }
 0x6f9   :  { %8998 = vmatprep.mubr.msk.bf16.mxu1 %vm3961_vm4, %v8975_v8  ;;  %v9934_v8 = vld [vmem:[%s15699_s5 + $0x1c0] ss:$8 sps:$4 sm:$0xff]  }
 0x6fa   :  { %7379 = vrot.lane.b32.xlu1 %v7335_v2, %s9947_s24  ;;  %7303 = vrot.lane.b32.xlu0 %v15310_v58, %s9945_s21  ;;  %v9931_v2 = vld [vmem:[%s15699_s5 + $0x1d0] ss:$8 sps:$4 sm:$0xff]  }
 0x6fe   :  { %7305 = vrot.lane.b32.xlu1 %v15312_v0, %s9945_s21  ;;  %7307 = vrot.lane.b32.xlu0 %v15363_v12, %s9945_s21 }
 0x71f   :  { %v7357_v13 = vpop.permute.xlu0 %7356 }
 0x720   :  { %v7394_v20 = vsel %vm3961_vm4, %v15373_v43, %v7357_v13  ;;  %v9898_v43 = vld [vmem:[%s15699_s5 + $0x1b0] ss:$8 sps:$4 sm:$0xff]  }
 0x727   :  { %v7359_v7 = vpop.permute.xlu1 %7358 }
 0x728   :  { %v7397_v3 = vsel %vm3961_vm4, %v15406_v19, %v7359_v7 }
 0x754   :  { %v7372_v42 = vpop.permute.xlu0 %7371 }
 0x755   :  { %v7407_v1 = vsel %vm4001_vm5, %v7394_v20, %v7372_v42 }
 0x758   :  { %v7382_v4 = vpop.permute.xlu0 %7381 }
 0x759   :  { %v7418_v34 = vsel %vm3388_vm3, %v7407_v1, %v7382_v4 }
 0x75a   :  { %v7431_v54 = vmax.bf16 %v16849_v44, %v7418_v34 }
 0x75c   :  { %v7374_v6 = vpop.permute.xlu1 %7373 }
 0x75d   :  { %v7409_v59 = vsel %vm4001_vm5, %v7397_v3, %v7374_v6 }
 0x760   :  { %v7361_v5 = vpop.permute.xlu0 %7360  ;;  %v7384_v26 = vpop.permute.xlu1 %7383 }
 0x761   :  { %v7421_v47 = vsel %vm3388_vm3, %v7409_v59, %v7384_v26  ;;  %v7400_v41 = vsel %vm3961_vm4, %v7343_v40, %v7361_v5 }
 0x762   :  { %v15564_v57 = vmax.bf16 %v16849_v44, %v7421_v47 }
 0x764   :  { %v8948_v19 = vcombine.low %v7431_v54, %v15564_v57  ;;  %v7386_v18 = vpop.permute.xlu0 %7385  ;;  %v7376_v55 = vpop.permute.xlu1 %7375 }
 0x765   :  { %v7411_v28 = vsel %vm4001_vm5, %v7400_v41, %v7376_v55 }
 0x766   :  { %v7424_v63 = vsel %vm3388_vm3, %v7411_v28, %v7386_v18  ;;  %7641 = vmatmul.mubr.bf16.vlgmr.msra.gmra.mxu0 %v8948_v19 }
 0x767   :  { %7956 = vmatpush1.bf16.msra.mxu0 %v9898_v43  ;;  %8973 = vmatprep.mubr.msk.bf16.mxu0 %vm3961_vm4, %v8951_v25  ;;  %v15583_v52 = vmax.bf16 %v16849_v44, %v7424_v63  ;;  %v9937_v25 = vld [vmem:[%s15700_s7 + $0x18] sm:$0xff]   ;;  %v9938_v63 = vld [vmem:[%s15700_s7 + $0x10] sm:$0xff]  }
 0x768   :  { %v7370_v61 = vpop.permute.xlu0 %7369  ;;  %v7355_v15 = vpop.permute.xlu1 %7354  ;;  %7957 = vmatprep.subr.bf16.mxu0 %v9906_v11 }
 0x769   :  { %v7391_v23 = vsel %vm3961_vm4, %v7334_v30, %v7355_v15  ;;  %v8950_v46 = vcombine.low %v15583_v52, %v15583_v52  ;;  %v9933_v30 = vld [vmem:[%s15699_s5 + $0x1d4] ss:$8 sps:$4 sm:$0xff]   ;;  %v9020_v42 = vcombine.low %v15564_v57, %v15583_v52 }
 0x76a   :  { %v7405_v36 = vsel %vm4001_vm5, %v7391_v23, %v7370_v61  ;;  %v9939_v23 = vld [vmem:[%s15700_s7 + $0x8] sm:$0xff]  }
 0x76b   :  { %7958 = vmatpush1.bf16.msra.mxu0 %v9904_v38 }
 0x76c   :  { %v7380_v62 = vpop.permute.xlu1 %7379  ;;  %7959 = vmatprep.subr.bf16.mxu0 %v9912_v39  ;;  %v7304_v31 = vpop.permute.xlu0 %7303  ;;  %v8008_v39 = vld [vmem:[%s15701_s6] sm:$0x3] }
 0x76d   :  { %v7415_v56 = vsel %vm3388_vm3, %v7405_v36, %v7380_v62 }
 0x76e   :  { %v7429_v21 = vmax.bf16 %v16849_v44, %v7415_v56  ;;  %7651 = vmatmul.mubr.bf16.gmra.mxu0 %v8950_v46 }
 0x76f   :  { %7960 = vmatpush1.bf16.msra.mxu0 %v9910_v50  ;;  %9044 = vmatprep.mubr.msk.bf16.mxu0 %vm3961_vm4, %v9021_v49  ;;  %v9925_v49 = vld [vmem:[%s15699_s5 + $0x150] ss:$8 sps:$4 sm:$0xff]  }
 0x770   :  { %v8974_v40 = vcombine.low %v7429_v21, %v7431_v54  ;;  %v7306_v48 = vpop.permute.xlu1 %7305  ;;  %7961 = vmatprep.subr.bf16.mxu0 %v9918_v51  ;;  %v7308_v22 = vpop.permute.xlu0 %7307  ;;  %v16851_v51 = vld [vmem:[#allocation317_spill] sm:$0xff]  ;;  %v9940_v21 = vld [vmem:[%s15700_s7] sm:$0xff]  }
 0x771   :  { %v7317_v16 = vsel %vm3388_vm3, %v7304_v31, %v7306_v48  ;;  %v7318_v33 = vsel %vm3388_vm3, %v7306_v48, %v7308_v22  ;;  %v7348_v60 = vmax.bf16 %v7308_v22, %v15363_v12  ;;  %v8013_v31 = vrot.slane %v8008_v39, %v16851_v51  ;;  %v16852_v48 = vld [vmem:[#allocation319_spill] sm:$0xff] }
 0x772   :  { %v7346_v14 = vmax.bf16 %v7317_v16, %v15310_v58  ;;  %7802 = vmatmul.mubr.bf16.vlgmr.msra.gmra.mxu1 %v8974_v40  ;;  %v7347_v29 = vmax.bf16 %v7318_v33, %v15312_v0  ;;  %v9922_v58 = vld [vmem:[%s15699_s5 + $0x160] ss:$8 sps:$4 sm:$0xff]   ;;  %v8976_v0 = vcombine.low %v15564_v57, %v15564_v57 }
 0x773   :  { %7962 = vmatpush1.bf16.msra.mxu0 %v9916_v35  ;;  %8999 = vmatprep.mubr.msk.bf16.mxu1 %vm3961_vm4, %v8977_v53  ;;  %v7438_v13 = vmax.bf16 %v16849_v44, %v7348_v60 }
 0x774   :  { %7362 = vrot.lane.b32.xlu1 %v7346_v14, %s9945_s21  ;;  %7963 = vmatprep.subr.bf16.mxu0 %v9921_v37  ;;  %v8017_v37 = vrot.slane %v8008_v39, %v16852_v48 }
 0x775   :  { %7377 = vrot.lane.b32.xlu0 %v7347_v29, %s9946_s2  ;;  %v9023_v7 = vcombine.low %v7438_v13, %v7438_v13  ;;  %9454 = vmatpush3.bf16.msra.mxu1 %v9937_v25 }
 0x776   :  { %9455 = vmatprep.subr.bf16.mxu1 %v16850_v9 }
 0x777   :  { %7964 = vmatpush1.bf16.msra.mxu0 %v9919_v32 }
 0x778   :  { %7387 = vrot.lane.b32.xlu1 %v7347_v29, %s9947_s24  ;;  %7965 = vmatprep.subr.bf16.mxu0 %v9924_v27 }
 0x779   :  { %9456 = vmatpush3.bf16.msra.mxu1 %v9938_v63 }
 0x77a   :  { %7812 = vmatmul.mubr.bf16.gmra.mxu1 %v8976_v0  ;;  %9457 = vmatprep.subr.bf16.mxu1 %v16850_v9 }
 0x77b   :  { %7966 = vmatpush1.bf16.msra.mxu0 %v9922_v58  ;;  %9461 = vmatprep.mubr.msk.bf16.mxu1 %vm9944_vm2, %v16850_v9 }
 0x77c   :  { %7967 = vmatprep.subr.bf16.mxu0 %v9927_v24 }
 0x77d   :  { %9458 = vmatpush3.bf16.msra.mxu1 %v9939_v23 }
 0x77e   :  { %9459 = vmatprep.subr.bf16.mxu1 %v16850_v9 }
 0x77f   :  { %7968 = vmatpush1.bf16.msra.mxu0 %v9925_v49 }
 0x780   :  { %7969 = vmatprep.subr.bf16.mxu0 %v9930_v45 }
 0x781   :  { %9460 = vmatpush3.bf16.msra.mxu1 %v9940_v21 }
 0x783   :  { %7970 = vmatpush1.bf16.msra.mxu0 %v9928_v17 }
 0x784   :  { %7983 = vmatprep.subr.bf16.mxu0 %v9933_v30 }
 0x787   :  { %7984 = vmatpush2.bf16.msra.mxu0 %v9931_v2 }
 0x788   :  { %7985 = vmatprep.subr.bf16.mxu0 %v9936_v10 }
 0x78b   :  { %7986 = vmatpush2.bf16.msra.mxu0 %v9934_v8 }
 0x78e   :  { %7988 = vmatmul.mubr.bf16.vlgmr.msra.gmra.mxu0 %v9020_v42 }
 0x78f   :  { %9045 = vmatprep.mubr.msk.bf16.mxu0 %vm3961_vm4, %v9023_v7 }
 0x7e6   :  { %v7363_v4 = vpop.permute.xlu1 %7362 }
 0x7e7   :  { %v7378_v6 = vpop.permute.xlu0 %7377  ;;  %v7403_v12 = vsel %vm3961_vm4, %v7346_v14, %v7363_v4 }
 0x7e8   :  { %v7413_v20 = vsel %vm4001_vm5, %v7403_v12, %v7378_v6  ;;  %v9046_v6 = vld [vmem:[%s15702_s8] ss:$0 sm:$0xff] }
 0x7ea   :  { %v7388_v1 = vpop.permute.xlu1 %7387 }
 0x7eb   :  { %v7427_v3 = vsel %vm3388_vm3, %v7413_v20, %v7388_v1 }
 0x7ec   :  { %v7437_v34 = vmax.bf16 %v16849_v44, %v7427_v3 }
 0x7ee   :  { %v9022_v59 = vcombine.low %v7437_v34, %v7437_v34 }
 0x7f0   :  { %7998 = vmatmul.mubr.bf16.gmra.mxu0 %v9022_v59 }
 0x826   :  { %v7642_v5 = vpop.f32.mrf.mxu0 }
 0x828   :  { %v7644_v26 = vpop.f32.mrf.mxu0 }
 0x82a   :  { %v7646_v47 = vpop.f32.mrf.mxu0 }
 0x82c   :  { %v7648_v54 = vpop.f32.mrf.mxu0 }
 0x82e   :  { %v7652_v57 = vpop.f32.mrf.mxu0 }
 0x830   :  { %v7653_v43 = vpop.f32.mrf.mxu0 }
 0x832   :  { %v7654_v41 = vpop.f32.mrf.mxu0  ;;  %v7803_v19 = vpop.f32.mrf.mxu1 }
 0x833   :  { %v7804_v50 = vadd.f32 %v7803_v19, %v7642_v5 }
 0x834   :  { %v7655_v18 = vpop.f32.mrf.mxu0  ;;  %v7805_v55 = vpop.f32.mrf.mxu1 }
 0x835   :  { %v7806_v36 = vadd.f32 %v7805_v55, %v7644_v26 }
 0x836   :  { %v7807_v11 = vpop.f32.mrf.mxu1 }
 0x837   :  { %v7808_v35 = vadd.f32 %v7807_v11, %v7646_v47 }
 0x838   :  { %v7809_v28 = vpop.f32.mrf.mxu1 }
 0x839   :  { %v7810_v16 = vadd.f32 %v7809_v28, %v7648_v54 }
 0x83a   :  { %v7813_v38 = vpop.f32.mrf.mxu1 }
 0x83c   :  { %v7814_v52 = vpop.f32.mrf.mxu1 }
 0x83e   :  { %v7815_v61 = vpop.f32.mrf.mxu1 }
 0x840   :  { %v7816_v15 = vpop.f32.mrf.mxu1 }
 0x84e   :  { %v7989_v46 = vpop.f32.mrf.mxu0 }
 0x84f   :  { %v8004_v62 = vadd.f32 %v7989_v46, %v7804_v50 }
 0x850   :  { %v7991_v56 = vpop.f32.mrf.mxu0 }
 0x851   :  { %v8005_v40 = vadd.f32 %v7991_v56, %v7806_v36  ;;  %v8020_v53 = vadd.f32 %v8013_v31, %v8004_v62 }
 0x852   :  { %v7993_v22 = vpop.f32.mrf.mxu0 }
 0x853   :  { %v8006_v33 = vadd.f32 %v7993_v22, %v7808_v35  ;;  %v8021_v29 = vadd.f32 %v8017_v37, %v8005_v40  ;;  %v8024_v58 = vpack.c.bf16 %v8020_v53, %v8020_v53 }
 0x854   :  { %v7995_v14 = vpop.f32.mrf.mxu0 }
 0x855   :  { %v8022_v32 = vadd.f32 %v8013_v31, %v8006_v33  ;;  %v8007_v27 = vadd.f32 %v7995_v14, %v7810_v16  ;;  %v8025_v24 = vpack.c.bf16 %v8021_v29, %v8021_v29 }
 0x857   :  { %v8026_v9 = vpack.c.bf16 %v8022_v32, %v8022_v32  ;;  %v8023_v0 = vadd.f32 %v8017_v37, %v8007_v27 }
 0x859   :  { %v8028_v49 = vmax.bf16 %v8026_v9, %v8024_v58  ;;  %v8027_v45 = vpack.c.bf16 %v8023_v0, %v8023_v0 }
 0x85b   :  { %v8029_v17 = vmax.bf16 %v8027_v45, %v8025_v24  ;;  %8032 = vrot.lane.b32.xlu0 %v8028_v49, %s9946_s2 }
 0x85d   :  { %8034 = vrot.lane.b32.xlu1 %v8029_v17, %s9946_s2 }
 0x8b0   :  { %v7999_v30 = vpop.f32.mrf.mxu0 }
 0x8b2   :  { %v8000_v2 = vpop.f32.mrf.mxu0 }
 0x8b4   :  { %v8001_v10 = vpop.f32.mrf.mxu0 }
 0x8b6   :  { %v8002_v60 = vpop.f32.mrf.mxu0 }
 0x8cd   :  { %v8033_v8 = vpop.permute.xlu0 %8032 }
 0x8cf   :  { %v8035_v13 = vpop.permute.xlu1 %8034 }
 0x8d0   :  { %v8037_v42 = vsel %vm4001_vm5, %v8033_v8, %v8035_v13 }
 0x8d1   :  { %v8039_v7 = vmax.bf16 %v8037_v42, %v8028_v49 }
 0x8d3   :  { %v8040_v4 = vmax.bf16 %v16849_v44, %v8039_v7 }
 0x8d5   :  { %9462 = vmatmul.mubr.msk.bf16.vlgmr.msra.gmra.mxu1 %vm4001_vm5, %v8040_v4 }
 0x995   :  { %v8117_v12 = vpop.f32.mrf.mxu1 }
 0x996   :  { %v8118_v20 = vadd.f32 %v9046_v6, %v8117_v12 }
 0x997   :  { %v9463_v1 = vpop.f32.mrf.mxu1 }
 0x998   :  { %8123 = vst [vmem:[%s15703_s9] sm:$0xff] %v8118_v20 }
 0x999   :  { %v8120_v3 = vpop.f32.mrf.mxu1 }
 0x99b   :  { %v9464_v34 = vpop.f32.mrf.mxu1 }

</bundles_post_ra>
